<compile_context>
chip_gen: v7x
topology: tpu7x:2x2x1
jax: 0.10.0
libtpu: 0.0.40
codegen_flags: <defaults>
</compile_context>

<pallas_src>
import math
import functools

import jax
import jax.numpy as jnp
from jax.experimental import pallas as pl
from jax.experimental.pallas import tpu as pltpu


# Order in which parameter arrays are passed to / unpacked inside the kernel.
PARAM_ORDER = (
    "w_src_emb", "b_src_emb", "w_tgt_emb", "b_tgt_emb",
    # encoder (stacked over N layers)
    "e_ln0a", "e_ln0b", "e_wqkv", "e_bqkv", "e_wo", "e_bo",
    "e_ln1a", "e_ln1b", "e_w1", "e_b1", "e_w2", "e_b2",
    "e_na", "e_nb",
    # decoder (stacked over N layers)
    "d_ln0a", "d_ln0b", "d_swqkv", "d_sbqkv", "d_swo", "d_sbo",
    "d_ln1a", "d_ln1b", "d_cwq", "d_cbq", "d_cwkv", "d_cbkv", "d_cwo", "d_cbo",
    "d_ln2a", "d_ln2b", "d_w1", "d_b1", "d_w2", "d_b2",
    "d_na", "d_nb",
    # generator
    "g_w", "g_b",
)


# ------------------------------ fused kernel --------------------------------

def _encdec_kernel(*refs, N, h, D, Bb, eps):
    assert len(refs) == 6 + len(PARAM_ORDER) + 1
    src_ref, tgt_ref, smask_ref, tmask_ref, pe_s_ref, pe_t_ref = refs[:6]
    out_ref = refs[-1]
    p = dict(zip(PARAM_ORDER, refs[6:-1]))

    dk = D // h
    scale = 1.0 / math.sqrt(dk)
    sqrt_d = math.sqrt(D)

    src = src_ref[...]                         # (Bb, Ls, V)
    tgt = tgt_ref[...]                         # (Bb, Lt, V)
    Ls, V = src.shape[1], src.shape[2]
    Lt = tgt.shape[1]

    src0 = src[:, 0:1, :]                      # (Bb, 1, V)
    src_flat = (src - src0).reshape(Bb * Ls, V)
    tgt_flat = (tgt - src0).reshape(Bb * Lt, V)

    # Per-batch-element "masked position" booleans, hoisted out of the layer/head loops;
    # never materialized at (B, h, Lq, Lk) in HBM.
    enc_masks, cross_masks, tgt_masks = [], [], []
    for b in range(Bb):
        sm = smask_ref[b]                                   # (1, Ls) float 0/1
        enc_masks.append(jnp.broadcast_to(sm, (Ls, Ls)) == 0.0)
        cross_masks.append(jnp.broadcast_to(sm, (Lt, Ls)) == 0.0)
        tgt_masks.append(jnp.broadcast_to(tmask_ref[b], (Lt, Lt)) == 0.0)

    def layer_norm(x, a, b_):
        # torch.std default is UNBIASED -> divide by (D - 1); divide by (std + eps).
        mean = jnp.mean(x, axis=-1, keepdims=True)
        dx = x - mean
        var = jnp.sum(dx * dx, axis=-1, keepdims=True) * (1.0 / (D - 1))
        return a * dx / (jnp.sqrt(var) + eps) + b_          # exact divide (parity)

    def matmul(x, w, b_):
        return jnp.dot(x, w, preferred_element_type=jnp.float32) + b_

    def mh_attention(q, k, v, masks, wo, bo, Lq, Lk):
        # q: (Bb*Lq, D), k/v: (Bb*Lk, D).  Heads batched via einsum; short Python loop
        # over the small per-step batch block for masking/softmax.
        ctx = []
        for b in range(Bb):
            qb = q[b * Lq:(b + 1) * Lq, :].reshape(Lq, h, dk)
            kb = k[b * Lk:(b + 1) * Lk, :].reshape(Lk, h, dk)
            vb = v[b * Lk:(b + 1) * Lk, :].reshape(Lk, h, dk)
            s = jnp.einsum("qhd,khd->hqk", qb, kb,
                           preferred_element_type=jnp.float32) * scale
            # PyTorch: scores.masked_fill(mask == 0, 1e-09) -- fills the VALUE, not -inf.
            s = jnp.where(masks[b], 1e-9, s)
            s = s - jnp.max(s, axis=-1, keepdims=True)
            e = jnp.exp(s)
            pr = e / jnp.sum(e, axis=-1, keepdims=True)     # exact divide (parity)
            ob = jnp.einsum("hqk,khd->qhd", pr, vb,
                            preferred_element_type=jnp.float32)
            ctx.append(ob.reshape(Lq, D))
        # Single (Bb*Lq, D) @ (D, D) output projection (== concat(heads) @ Wo).
        return matmul(jnp.concatenate(ctx, axis=0), wo, bo)

    def self_attention(x, masks, wqkv, bqkv, wo, bo, L):
        qkv = matmul(x, wqkv, bqkv)                         # fused (D, 3D) projection
        return mh_attention(qkv[:, :D], qkv[:, D:2 * D], qkv[:, 2 * D:],
                            masks, wo, bo, L, L)

    def feed_forward(x, w1, b1, w2, b2):
        return matmul(jnp.maximum(matmul(x, w1, b1), 0.0), w2, b2)

    # ------------------------------- encoder --------------------------------
    x = matmul(src_flat, p["w_src_emb"][...], p["b_src_emb"][...]) * sqrt_d
    x = x + pe_s_ref[...]                                   # PE pre-tiled to (Bb*Ls, D)
    for l in range(N):
        nx = layer_norm(x, p["e_ln0a"][l], p["e_ln0b"][l])
        x = x + self_attention(nx, enc_masks, p["e_wqkv"][l], p["e_bqkv"][l],
                               p["e_wo"][l], p["e_bo"][l], Ls)
        nx = layer_norm(x, p["e_ln1a"][l], p["e_ln1b"][l])
        x = x + feed_forward(nx, p["e_w1"][l], p["e_b1"][l],
                             p["e_w2"][l], p["e_b2"][l])
    memory = layer_norm(x, p["e_na"][...], p["e_nb"][...])  # (Bb*Ls, D)

    # ------------------------------- decoder --------------------------------
    y = matmul(tgt_flat, p["w_tgt_emb"][...], p["b_tgt_emb"][...]) * sqrt_d
    y = y + pe_t_ref[...]
    for l in range(N):
        ny = layer_norm(y, p["d_ln0a"][l], p["d_ln0b"][l])
        y = y + self_attention(ny, tgt_masks, p["d_swqkv"][l], p["d_sbqkv"][l],
                               p["d_swo"][l], p["d_sbo"][l], Lt)
        ny = layer_norm(y, p["d_ln1a"][l], p["d_ln1b"][l])
        q = matmul(ny, p["d_cwq"][l], p["d_cbq"][l])
        kv = matmul(memory, p["d_cwkv"][l], p["d_cbkv"][l])   # fused (D, 2D) K/V proj
        y = y + mh_attention(q, kv[:, :D], kv[:, D:], cross_masks,
                             p["d_cwo"][l], p["d_cbo"][l], Lt, Ls)
        ny = layer_norm(y, p["d_ln2a"][l], p["d_ln2b"][l])
        y = y + feed_forward(ny, p["d_w1"][l], p["d_b1"][l],
                             p["d_w2"][l], p["d_b2"][l])
    y = layer_norm(y, p["d_na"][...], p["d_nb"][...])

    # --------------------- generator + add back src[:, 0] -------------------
    out = matmul(y, p["g_w"][...], p["g_b"][...])            # (Bb*Lt, Vt)
    Vt = out.shape[1]
    out = out.reshape(Bb, Lt, Vt) + src0
    out_ref[0] = out.reshape(Bb, Lt * Vt).astype(out_ref.dtype)


# ------------------------------- wrapper ------------------------------------

def encoder_decoder_forward(params, src, tgt, src_mask, tgt_mask, *, N, h, D, pe,
                            batch_block=None):
    B, Ls, Vs = src.shape
    _, Lt, Vt = tgt.shape
    assert Vs == Vt, "src/tgt kinematics dims must match (like the PyTorch reference)"
    assert src_mask.shape[0] == B and tgt_mask.shape[0] == B
    # Cross-attention broadcasts src_mask over a different query length, so the middle
    # dim must be 1 (same assumption the PyTorch module relies on).
    assert src_mask.shape[1] == 1 and src_mask.shape[2] == Ls
    assert tgt_mask.shape[1] in (1, Lt) and tgt_mask.shape[2] == Lt

    if batch_block is None:
        # 2 parallel grid steps when possible (keeps both v7x TensorCores busy); on
        # v5e/v6e this is just 2 cheap sequential steps.
        batch_block = B // 2 if (B % 2 == 0 and B >= 2) else B
    assert B % batch_block == 0
    n_blocks = B // batch_block

    pe_s = jnp.tile(pe[:Ls], (batch_block, 1))     # (Bb*Ls, D) pre-tiled PE
    pe_t = jnp.tile(pe[:Lt], (batch_block, 1))     # (Bb*Lt, D)

    data = [src.astype(jnp.float32), tgt.astype(jnp.float32),
            src_mask.astype(jnp.float32), tgt_mask.astype(jnp.float32),
            pe_s, pe_t]
    plist = [params[k] for k in PARAM_ORDER]

    def per_block(a):      # split along batch only; full extent on trailing dims
        return pl.BlockSpec((batch_block,) + a.shape[1:], lambda g: (g, 0, 0))

    def resident(a):       # whole array at a constant block index -> stays in VMEM
        return pl.BlockSpec(a.shape, lambda g, n=a.ndim: (0,) * n)

    in_specs = ([per_block(a) for a in data[:4]] +
                [resident(a) for a in data[4:]] +
                [resident(a) for a in plist])

    # Explicit scoped-VMEM limit sized from the resident footprint (defaults of
    # 16/32 MiB bite first as the model grows); capped for v7x's 64 MiB VMEM.
    footprint = sum(int(a.size) * a.dtype.itemsize for a in data + plist)
    vmem_limit = int(min(64 * 2**20, max(32 * 2**20, 6 * footprint)))

    out_flat = pl.pallas_call(
        functools.partial(_encdec_kernel, N=N, h=h, D=D, Bb=batch_block, eps=1e-6),
        out_shape=jax.ShapeDtypeStruct((n_blocks, batch_block, Lt * Vt), jnp.float32),
        grid=(n_blocks,),
        in_specs=in_specs,
        # Lane-denser (Bb, Lt*Vt) output slab; block last two dims == full array dims.
        out_specs=pl.BlockSpec((1, batch_block, Lt * Vt), lambda g: (g, 0, 0)),
        compiler_params=pltpu.CompilerParams(
            dimension_semantics=("parallel",),
            vmem_limit_bytes=vmem_limit),
    )(*data, *plist)
    return out_flat.reshape(B, Lt, Vt)


# ------------------------------ param init ----------------------------------

def positional_encoding(D, max_len=64):
    position = jnp.arange(max_len, dtype=jnp.float32)[:, None]
    div_term = jnp.exp(jnp.arange(0, D, 2, dtype=jnp.float32)
                       * -(math.log(10000.0) / D))
    pe = jnp.zeros((max_len, D), jnp.float32)
    pe = pe.at[:, 0::2].set(jnp.sin(position * div_term))
    pe = pe.at[:, 1::2].set(jnp.cos(position * div_term))
    return pe


def init_params(key, src_vocab, tgt_vocab, N, D, d_ff):
    keys = iter(jax.random.split(key, 4096))

    def xavier(fan_in, fan_out):
        bound = math.sqrt(6.0 / (fan_in + fan_out))     # xavier uniform
        return jax.random.uniform(next(keys), (fan_in, fan_out), jnp.float32,
                                  -bound, bound)

    def stack_xavier(fan_in, fan_out):
        return jnp.stack([xavier(fan_in, fan_out) for _ in range(N)])

    def stack_fused(n_fused):
        # fused projection = concat of n_fused independently-initialized (D, D) weights
        return jnp.stack([jnp.concatenate([xavier(D, D) for _ in range(n_fused)],
                                          axis=1) for _ in range(N)])

    def ln_a():
        return jnp.ones((N, 1, D), jnp.float32)

    def ln_b():
        return jnp.zeros((N, 1, D), jnp.float32)

    def zb(n):
        return jnp.zeros((N, 1, n), jnp.float32)

    return {
        # embeddings (weights stored as (in, out) = transposed PyTorch layout)
        "w_src_emb": xavier(src_vocab, D), "b_src_emb": jnp.zeros((1, D), jnp.float32),
        "w_tgt_emb": xavier(tgt_vocab, D), "b_tgt_emb": jnp.zeros((1, D), jnp.float32),
        # encoder
        "e_ln0a": ln_a(), "e_ln0b": ln_b(),
        "e_wqkv": stack_fused(3), "e_bqkv": zb(3 * D),
        "e_wo": stack_xavier(D, D), "e_bo": zb(D),
        "e_ln1a": ln_a(), "e_ln1b": ln_b(),
        "e_w1": stack_xavier(D, d_ff), "e_b1": zb(d_ff),
        "e_w2": stack_xavier(d_ff, D), "e_b2": zb(D),
        "e_na": jnp.ones((1, D), jnp.float32), "e_nb": jnp.zeros((1, D), jnp.float32),
        # decoder
        "d_ln0a": ln_a(), "d_ln0b": ln_b(),
        "d_swqkv": stack_fused(3), "d_sbqkv": zb(3 * D),
        "d_swo": stack_xavier(D, D), "d_sbo": zb(D),
        "d_ln1a": ln_a(), "d_ln1b": ln_b(),
        "d_cwq": stack_xavier(D, D), "d_cbq": zb(D),
        "d_cwkv": stack_fused(2), "d_cbkv": zb(2 * D),
        "d_cwo": stack_xavier(D, D), "d_cbo": zb(D),
        "d_ln2a": ln_a(), "d_ln2b": ln_b(),
        "d_w1": stack_xavier(D, d_ff), "d_b1": zb(d_ff),
        "d_w2": stack_xavier(d_ff, D), "d_b2": zb(D),
        "d_na": jnp.ones((1, D), jnp.float32), "d_nb": jnp.zeros((1, D), jnp.float32),
        # generator (single Linear d_model -> tgt_vocab)
        "g_w": xavier(D, tgt_vocab), "g_b": jnp.zeros((1, tgt_vocab), jnp.float32),
    }


# --------------------------------- main --------------------------------------

if __name__ == "__main__":
    # Small but shape-consistent config: kinematics dim 8, d_model 32, 4 heads, 2 layers.
    B, S_src, S_tgt = 4, 8, 6
    src_vocab = tgt_vocab = 8
    N, D, d_ff, h = 2, 32, 64, 4

    key = jax.random.PRNGKey(0)
    kp, ksrc, ktgt = jax.random.split(key, 3)

    params = init_params(kp, src_vocab, tgt_vocab, N, D, d_ff)
    pe = positional_encoding(D, max_len=64)

    src = jax.random.normal(ksrc, (B, S_src, src_vocab), jnp.float32)
    tgt = jax.random.normal(ktgt, (B, S_tgt, tgt_vocab), jnp.float32)
    # src_mask: attend to all source positions; tgt_mask: causal (subsequent_mask)
    src_mask = jnp.ones((B, 1, S_src), jnp.float32)
    causal = (jnp.tril(jnp.ones((S_tgt, S_tgt), jnp.float32)) > 0).astype(jnp.float32)
    tgt_mask = jnp.broadcast_to(causal[None], (B, S_tgt, S_tgt))

    fwd = jax.jit(functools.partial(encoder_decoder_forward, N=N, h=h, D=D, pe=pe))
    out = fwd(params, src, tgt, src_mask, tgt_mask)
    jax.block_until_ready(out)
    assert out.shape == (B, S_tgt, tgt_vocab)
    print("KERNEL_OK")
</pallas_src>

<mosaic_0001>
module attributes {stable_mosaic.version = 11 : i64} {
  func.func @_encdec_kernel(%arg0: i32, %arg1: memref<2x8x8xf32, #tpu.memory_space<vmem>>, %arg2: memref<2x6x8xf32, #tpu.memory_space<vmem>>, %arg3: memref<2x1x8xf32, #tpu.memory_space<vmem>>, %arg4: memref<2x6x6xf32, #tpu.memory_space<vmem>>, %arg5: memref<16x32xf32, #tpu.memory_space<vmem>>, %arg6: memref<12x32xf32, #tpu.memory_space<vmem>>, %arg7: memref<8x32xf32, #tpu.memory_space<vmem>>, %arg8: memref<1x32xf32, #tpu.memory_space<vmem>>, %arg9: memref<8x32xf32, #tpu.memory_space<vmem>>, %arg10: memref<1x32xf32, #tpu.memory_space<vmem>>, %arg11: memref<2x1x32xf32, #tpu.memory_space<vmem>>, %arg12: memref<2x1x32xf32, #tpu.memory_space<vmem>>, %arg13: memref<2x32x96xf32, #tpu.memory_space<vmem>>, %arg14: memref<2x1x96xf32, #tpu.memory_space<vmem>>, %arg15: memref<2x32x32xf32, #tpu.memory_space<vmem>>, %arg16: memref<2x1x32xf32, #tpu.memory_space<vmem>>, %arg17: memref<2x1x32xf32, #tpu.memory_space<vmem>>, %arg18: memref<2x1x32xf32, #tpu.memory_space<vmem>>, %arg19: memref<2x32x64xf32, #tpu.memory_space<vmem>>, %arg20: memref<2x1x64xf32, #tpu.memory_space<vmem>>, %arg21: memref<2x64x32xf32, #tpu.memory_space<vmem>>, %arg22: memref<2x1x32xf32, #tpu.memory_space<vmem>>, %arg23: memref<1x32xf32, #tpu.memory_space<vmem>>, %arg24: memref<1x32xf32, #tpu.memory_space<vmem>>, %arg25: memref<2x1x32xf32, #tpu.memory_space<vmem>>, %arg26: memref<2x1x32xf32, #tpu.memory_space<vmem>>, %arg27: memref<2x32x96xf32, #tpu.memory_space<vmem>>, %arg28: memref<2x1x96xf32, #tpu.memory_space<vmem>>, %arg29: memref<2x32x32xf32, #tpu.memory_space<vmem>>, %arg30: memref<2x1x32xf32, #tpu.memory_space<vmem>>, %arg31: memref<2x1x32xf32, #tpu.memory_space<vmem>>, %arg32: memref<2x1x32xf32, #tpu.memory_space<vmem>>, %arg33: memref<2x32x32xf32, #tpu.memory_space<vmem>>, %arg34: memref<2x1x32xf32, #tpu.memory_space<vmem>>, %arg35: memref<2x32x64xf32, #tpu.memory_space<vmem>>, %arg36: memref<2x1x64xf32, #tpu.memory_space<vmem>>, %arg37: memref<2x32x32xf32, #tpu.memory_space<vmem>>, %arg38: memref<2x1x32xf32, #tpu.memory_space<vmem>>, %arg39: memref<2x1x32xf32, #tpu.memory_space<vmem>>, %arg40: memref<2x1x32xf32, #tpu.memory_space<vmem>>, %arg41: memref<2x32x64xf32, #tpu.memory_space<vmem>>, %arg42: memref<2x1x64xf32, #tpu.memory_space<vmem>>, %arg43: memref<2x64x32xf32, #tpu.memory_space<vmem>>, %arg44: memref<2x1x32xf32, #tpu.memory_space<vmem>>, %arg45: memref<1x32xf32, #tpu.memory_space<vmem>>, %arg46: memref<1x32xf32, #tpu.memory_space<vmem>>, %arg47: memref<32x8xf32, #tpu.memory_space<vmem>>, %arg48: memref<1x8xf32, #tpu.memory_space<vmem>>, %arg49: memref<1x2x48xf32, #tpu.memory_space<vmem>>) attributes {dimension_semantics = [#tpu.dimension_semantics<parallel>], iteration_bounds = array<i64: 2>, scalar_prefetch = 0 : i64, scratch_operands = 0 : i64, tpu.core_type = #tpu.core_type<tc>, window_params = [{transform_indices = @transform_0, window_bounds = array<i64: 2, 8, 8>}, {transform_indices = @transform_1, window_bounds = array<i64: 2, 6, 8>}, {transform_indices = @transform_2, window_bounds = array<i64: 2, 1, 8>}, {transform_indices = @transform_3, window_bounds = array<i64: 2, 6, 6>}, {pipeline_mode = #tpu.pipeline_mode<synchronous>, transform_indices = @transform_4, window_bounds = array<i64: 16, 32>}, {pipeline_mode = #tpu.pipeline_mode<synchronous>, transform_indices = @transform_5, window_bounds = array<i64: 12, 32>}, {pipeline_mode = #tpu.pipeline_mode<synchronous>, transform_indices = @transform_6, window_bounds = array<i64: 8, 32>}, {pipeline_mode = #tpu.pipeline_mode<synchronous>, transform_indices = @transform_7, window_bounds = array<i64: 1, 32>}, {pipeline_mode = #tpu.pipeline_mode<synchronous>, transform_indices = @transform_8, window_bounds = array<i64: 8, 32>}, {pipeline_mode = #tpu.pipeline_mode<synchronous>, transform_indices = @transform_9, window_bounds = array<i64: 1, 32>}, {pipeline_mode = #tpu.pipeline_mode<synchronous>, transform_indices = @transform_10, window_bounds = array<i64: 2, 1, 32>}, {pipeline_mode = #tpu.pipeline_mode<synchronous>, transform_indices = @transform_11, window_bounds = array<i64: 2, 1, 32>}, {pipeline_mode = #tpu.pipeline_mode<synchronous>, transform_indices = @transform_12, window_bounds = array<i64: 2, 32, 96>}, {pipeline_mode = #tpu.pipeline_mode<synchronous>, transform_indices = @transform_13, window_bounds = array<i64: 2, 1, 96>}, {pipeline_mode = #tpu.pipeline_mode<synchronous>, transform_indices = @transform_14, window_bounds = array<i64: 2, 32, 32>}, {pipeline_mode = #tpu.pipeline_mode<synchronous>, transform_indices = @transform_15, window_bounds = array<i64: 2, 1, 32>}, {pipeline_mode = #tpu.pipeline_mode<synchronous>, transform_indices = @transform_16, window_bounds = array<i64: 2, 1, 32>}, {pipeline_mode = #tpu.pipeline_mode<synchronous>, transform_indices = @transform_17, window_bounds = array<i64: 2, 1, 32>}, {pipeline_mode = #tpu.pipeline_mode<synchronous>, transform_indices = @transform_18, window_bounds = array<i64: 2, 32, 64>}, {pipeline_mode = #tpu.pipeline_mode<synchronous>, transform_indices = @transform_19, window_bounds = array<i64: 2, 1, 64>}, {pipeline_mode = #tpu.pipeline_mode<synchronous>, transform_indices = @transform_20, window_bounds = array<i64: 2, 64, 32>}, {pipeline_mode = #tpu.pipeline_mode<synchronous>, transform_indices = @transform_21, window_bounds = array<i64: 2, 1, 32>}, {pipeline_mode = #tpu.pipeline_mode<synchronous>, transform_indices = @transform_22, window_bounds = array<i64: 1, 32>}, {pipeline_mode = #tpu.pipeline_mode<synchronous>, transform_indices = @transform_23, window_bounds = array<i64: 1, 32>}, {pipeline_mode = #tpu.pipeline_mode<synchronous>, transform_indices = @transform_24, window_bounds = array<i64: 2, 1, 32>}, {pipeline_mode = #tpu.pipeline_mode<synchronous>, transform_indices = @transform_25, window_bounds = array<i64: 2, 1, 32>}, {pipeline_mode = #tpu.pipeline_mode<synchronous>, transform_indices = @transform_26, window_bounds = array<i64: 2, 32, 96>}, {pipeline_mode = #tpu.pipeline_mode<synchronous>, transform_indices = @transform_27, window_bounds = array<i64: 2, 1, 96>}, {pipeline_mode = #tpu.pipeline_mode<synchronous>, transform_indices = @transform_28, window_bounds = array<i64: 2, 32, 32>}, {pipeline_mode = #tpu.pipeline_mode<synchronous>, transform_indices = @transform_29, window_bounds = array<i64: 2, 1, 32>}, {pipeline_mode = #tpu.pipeline_mode<synchronous>, transform_indices = @transform_30, window_bounds = array<i64: 2, 1, 32>}, {pipeline_mode = #tpu.pipeline_mode<synchronous>, transform_indices = @transform_31, window_bounds = array<i64: 2, 1, 32>}, {pipeline_mode = #tpu.pipeline_mode<synchronous>, transform_indices = @transform_32, window_bounds = array<i64: 2, 32, 32>}, {pipeline_mode = #tpu.pipeline_mode<synchronous>, transform_indices = @transform_33, window_bounds = array<i64: 2, 1, 32>}, {pipeline_mode = #tpu.pipeline_mode<synchronous>, transform_indices = @transform_34, window_bounds = array<i64: 2, 32, 64>}, {pipeline_mode = #tpu.pipeline_mode<synchronous>, transform_indices = @transform_35, window_bounds = array<i64: 2, 1, 64>}, {pipeline_mode = #tpu.pipeline_mode<synchronous>, transform_indices = @transform_36, window_bounds = array<i64: 2, 32, 32>}, {pipeline_mode = #tpu.pipeline_mode<synchronous>, transform_indices = @transform_37, window_bounds = array<i64: 2, 1, 32>}, {pipeline_mode = #tpu.pipeline_mode<synchronous>, transform_indices = @transform_38, window_bounds = array<i64: 2, 1, 32>}, {pipeline_mode = #tpu.pipeline_mode<synchronous>, transform_indices = @transform_39, window_bounds = array<i64: 2, 1, 32>}, {pipeline_mode = #tpu.pipeline_mode<synchronous>, transform_indices = @transform_40, window_bounds = array<i64: 2, 32, 64>}, {pipeline_mode = #tpu.pipeline_mode<synchronous>, transform_indices = @transform_41, window_bounds = array<i64: 2, 1, 64>}, {pipeline_mode = #tpu.pipeline_mode<synchronous>, transform_indices = @transform_42, window_bounds = array<i64: 2, 64, 32>}, {pipeline_mode = #tpu.pipeline_mode<synchronous>, transform_indices = @transform_43, window_bounds = array<i64: 2, 1, 32>}, {pipeline_mode = #tpu.pipeline_mode<synchronous>, transform_indices = @transform_44, window_bounds = array<i64: 1, 32>}, {pipeline_mode = #tpu.pipeline_mode<synchronous>, transform_indices = @transform_45, window_bounds = array<i64: 1, 32>}, {pipeline_mode = #tpu.pipeline_mode<synchronous>, transform_indices = @transform_46, window_bounds = array<i64: 32, 8>}, {pipeline_mode = #tpu.pipeline_mode<synchronous>, transform_indices = @transform_47, window_bounds = array<i64: 1, 8>}, {transform_indices = @transform_48, window_bounds = array<i64: 1, 2, 48>}]} {
    %c0 = arith.constant 0 : index
    %c0_0 = arith.constant 0 : index
    %c0_1 = arith.constant 0 : index
    %0 = vector.load %arg1[%c0, %c0_0, %c0_1] : memref<2x8x8xf32, #tpu.memory_space<vmem>>, vector<2x8x8xf32>
    %c0_2 = arith.constant 0 : index
    %c0_3 = arith.constant 0 : index
    %c0_4 = arith.constant 0 : index
    %1 = vector.load %arg2[%c0_2, %c0_3, %c0_4] : memref<2x6x8xf32, #tpu.memory_space<vmem>>, vector<2x6x8xf32>
    %2 = vector.extract_strided_slice %0 {offsets = [0, 0, 0], sizes = [2, 1, 8], strides = [1, 1, 1]} : vector<2x8x8xf32> to vector<2x1x8xf32>
    %3 = vector.broadcast %2 : vector<2x1x8xf32> to vector<2x8x8xf32>
    %4 = arith.subf %0, %3 : vector<2x8x8xf32>
    %5 = vector.shape_cast %4 : vector<2x8x8xf32> to vector<16x8xf32>
    %6 = vector.broadcast %2 : vector<2x1x8xf32> to vector<2x6x8xf32>
    %7 = arith.subf %1, %6 : vector<2x6x8xf32>
    %8 = vector.shape_cast %7 : vector<2x6x8xf32> to vector<12x8xf32>
    %c0_5 = arith.constant 0 : index
    %c0_6 = arith.constant 0 : index
    %c0_7 = arith.constant 0 : index
    %9 = vector.load %arg3[%c0_5, %c0_6, %c0_7] : memref<2x1x8xf32, #tpu.memory_space<vmem>>, vector<1x1x8xf32>
    %10 = vector.shape_cast %9 : vector<1x1x8xf32> to vector<1x8xf32>
    %11 = vector.shape_cast %10 : vector<1x8xf32> to vector<1x8xf32>
    %12 = vector.broadcast %11 : vector<1x8xf32> to vector<8x8xf32>
    %cst = arith.constant 0.000000e+00 : f32
    %13 = vector.broadcast %cst : f32 to vector<8x8xf32>
    %14 = arith.cmpf oeq, %12, %13 : vector<8x8xf32>
    %15 = vector.shape_cast %10 : vector<1x8xf32> to vector<1x8xf32>
    %16 = vector.broadcast %15 : vector<1x8xf32> to vector<6x8xf32>
    %cst_8 = arith.constant 0.000000e+00 : f32
    %17 = vector.broadcast %cst_8 : f32 to vector<6x8xf32>
    %18 = arith.cmpf oeq, %16, %17 : vector<6x8xf32>
    %c0_9 = arith.constant 0 : index
    %c0_10 = arith.constant 0 : index
    %c0_11 = arith.constant 0 : index
    %19 = vector.load %arg4[%c0_9, %c0_10, %c0_11] : memref<2x6x6xf32, #tpu.memory_space<vmem>>, vector<1x6x6xf32>
    %20 = vector.shape_cast %19 : vector<1x6x6xf32> to vector<6x6xf32>
    %cst_12 = arith.constant 0.000000e+00 : f32
    %21 = vector.broadcast %cst_12 : f32 to vector<6x6xf32>
    %22 = arith.cmpf oeq, %20, %21 : vector<6x6xf32>
    %c1 = arith.constant 1 : index
    %c0_13 = arith.constant 0 : index
    %c0_14 = arith.constant 0 : index
    %23 = vector.load %arg3[%c1, %c0_13, %c0_14] : memref<2x1x8xf32, #tpu.memory_space<vmem>>, vector<1x1x8xf32>
    %24 = vector.shape_cast %23 : vector<1x1x8xf32> to vector<1x8xf32>
    %25 = vector.shape_cast %24 : vector<1x8xf32> to vector<1x8xf32>
    %26 = vector.broadcast %25 : vector<1x8xf32> to vector<8x8xf32>
    %cst_15 = arith.constant 0.000000e+00 : f32
    %27 = vector.broadcast %cst_15 : f32 to vector<8x8xf32>
    %28 = arith.cmpf oeq, %26, %27 : vector<8x8xf32>
    %29 = vector.shape_cast %24 : vector<1x8xf32> to vector<1x8xf32>
    %30 = vector.broadcast %29 : vector<1x8xf32> to vector<6x8xf32>
    %cst_16 = arith.constant 0.000000e+00 : f32
    %31 = vector.broadcast %cst_16 : f32 to vector<6x8xf32>
    %32 = arith.cmpf oeq, %30, %31 : vector<6x8xf32>
    %c1_17 = arith.constant 1 : index
    %c0_18 = arith.constant 0 : index
    %c0_19 = arith.constant 0 : index
    %33 = vector.load %arg4[%c1_17, %c0_18, %c0_19] : memref<2x6x6xf32, #tpu.memory_space<vmem>>, vector<1x6x6xf32>
    %34 = vector.shape_cast %33 : vector<1x6x6xf32> to vector<6x6xf32>
    %cst_20 = arith.constant 0.000000e+00 : f32
    %35 = vector.broadcast %cst_20 : f32 to vector<6x6xf32>
    %36 = arith.cmpf oeq, %34, %35 : vector<6x6xf32>
    %c0_21 = arith.constant 0 : index
    %c0_22 = arith.constant 0 : index
    %37 = vector.load %arg7[%c0_21, %c0_22] : memref<8x32xf32, #tpu.memory_space<vmem>>, vector<8x32xf32>
    %c0_23 = arith.constant 0 : index
    %c0_24 = arith.constant 0 : index
    %38 = vector.load %arg8[%c0_23, %c0_24] : memref<1x32xf32, #tpu.memory_space<vmem>>, vector<1x32xf32>
    %cst_25 = arith.constant dense<0.000000e+00> : vector<16x32xf32>
    %39 = tpu.matmul %5, %37, %cst_25 {dimension_numbers = #tpu.dot_dimension_numbers<[1], [0], [0], [1], [0, 0, 1, 1], [], []>} : vector<16x8xf32>, vector<8x32xf32>, vector<16x32xf32> -> vector<16x32xf32>
    %40 = vector.broadcast %38 : vector<1x32xf32> to vector<16x32xf32>
    %41 = arith.addf %39, %40 : vector<16x32xf32>
    %cst_26 = arith.constant 5.65685415 : f32
    %42 = vector.broadcast %cst_26 : f32 to vector<16x32xf32>
    %43 = arith.mulf %41, %42 : vector<16x32xf32>
    %c0_27 = arith.constant 0 : index
    %c0_28 = arith.constant 0 : index
    %44 = vector.load %arg5[%c0_27, %c0_28] : memref<16x32xf32, #tpu.memory_space<vmem>>, vector<16x32xf32>
    %45 = arith.addf %43, %44 : vector<16x32xf32>
    %c0_29 = arith.constant 0 : index
    %c0_30 = arith.constant 0 : index
    %c0_31 = arith.constant 0 : index
    %46 = vector.load %arg11[%c0_29, %c0_30, %c0_31] : memref<2x1x32xf32, #tpu.memory_space<vmem>>, vector<1x1x32xf32>
    %47 = vector.shape_cast %46 : vector<1x1x32xf32> to vector<1x32xf32>
    %c0_32 = arith.constant 0 : index
    %c0_33 = arith.constant 0 : index
    %c0_34 = arith.constant 0 : index
    %48 = vector.load %arg12[%c0_32, %c0_33, %c0_34] : memref<2x1x32xf32, #tpu.memory_space<vmem>>, vector<1x1x32xf32>
    %49 = vector.shape_cast %48 : vector<1x1x32xf32> to vector<1x32xf32>
    %cst_35 = arith.constant dense<0.000000e+00> : vector<16xf32>
    %50 = vector.multi_reduction <add>, %45, %cst_35 [1] : vector<16x32xf32> to vector<16xf32>
    %51 = vector.shape_cast %50 : vector<16xf32> to vector<16x1xf32>
    %cst_36 = arith.constant 3.200000e+01 : f32
    %52 = vector.broadcast %cst_36 : f32 to vector<16x1xf32>
    %53 = arith.divf %51, %52 : vector<16x1xf32>
    %54 = vector.broadcast %53 : vector<16x1xf32> to vector<16x32xf32>
    %55 = arith.subf %45, %54 : vector<16x32xf32>
    %56 = arith.mulf %55, %55 : vector<16x32xf32>
    %cst_37 = arith.constant dense<0.000000e+00> : vector<16xf32>
    %57 = vector.multi_reduction <add>, %56, %cst_37 [1] : vector<16x32xf32> to vector<16xf32>
    %58 = vector.shape_cast %57 : vector<16xf32> to vector<16x1xf32>
    %cst_38 = arith.constant 0.0322580636 : f32
    %59 = vector.broadcast %cst_38 : f32 to vector<16x1xf32>
    %60 = arith.mulf %58, %59 : vector<16x1xf32>
    %61 = vector.broadcast %47 : vector<1x32xf32> to vector<16x32xf32>
    %62 = arith.mulf %61, %55 : vector<16x32xf32>
    %63 = math.sqrt %60 : vector<16x1xf32>
    %cst_39 = arith.constant 9.99999997E-7 : f32
    %64 = vector.broadcast %cst_39 : f32 to vector<16x1xf32>
    %65 = arith.addf %63, %64 : vector<16x1xf32>
    %66 = vector.broadcast %65 : vector<16x1xf32> to vector<16x32xf32>
    %67 = arith.divf %62, %66 : vector<16x32xf32>
    %68 = vector.broadcast %49 : vector<1x32xf32> to vector<16x32xf32>
    %69 = arith.addf %67, %68 : vector<16x32xf32>
    %c0_40 = arith.constant 0 : index
    %c0_41 = arith.constant 0 : index
    %c0_42 = arith.constant 0 : index
    %70 = vector.load %arg13[%c0_40, %c0_41, %c0_42] : memref<2x32x96xf32, #tpu.memory_space<vmem>>, vector<1x32x96xf32>
    %71 = vector.shape_cast %70 : vector<1x32x96xf32> to vector<32x96xf32>
    %c0_43 = arith.constant 0 : index
    %c0_44 = arith.constant 0 : index
    %c0_45 = arith.constant 0 : index
    %72 = vector.load %arg14[%c0_43, %c0_44, %c0_45] : memref<2x1x96xf32, #tpu.memory_space<vmem>>, vector<1x1x96xf32>
    %73 = vector.shape_cast %72 : vector<1x1x96xf32> to vector<1x96xf32>
    %c0_46 = arith.constant 0 : index
    %c0_47 = arith.constant 0 : index
    %c0_48 = arith.constant 0 : index
    %74 = vector.load %arg15[%c0_46, %c0_47, %c0_48] : memref<2x32x32xf32, #tpu.memory_space<vmem>>, vector<1x32x32xf32>
    %75 = vector.shape_cast %74 : vector<1x32x32xf32> to vector<32x32xf32>
    %c0_49 = arith.constant 0 : index
    %c0_50 = arith.constant 0 : index
    %c0_51 = arith.constant 0 : index
    %76 = vector.load %arg16[%c0_49, %c0_50, %c0_51] : memref<2x1x32xf32, #tpu.memory_space<vmem>>, vector<1x1x32xf32>
    %77 = vector.shape_cast %76 : vector<1x1x32xf32> to vector<1x32xf32>
    %cst_52 = arith.constant dense<0.000000e+00> : vector<16x96xf32>
    %78 = tpu.matmul %69, %71, %cst_52 {dimension_numbers = #tpu.dot_dimension_numbers<[1], [0], [0], [1], [0, 0, 1, 1], [], []>} : vector<16x32xf32>, vector<32x96xf32>, vector<16x96xf32> -> vector<16x96xf32>
    %79 = vector.broadcast %73 : vector<1x96xf32> to vector<16x96xf32>
    %80 = arith.addf %78, %79 : vector<16x96xf32>
    %81 = vector.extract_strided_slice %80 {offsets = [0, 0], sizes = [16, 32], strides = [1, 1]} : vector<16x96xf32> to vector<16x32xf32>
    %82 = vector.extract_strided_slice %80 {offsets = [0, 32], sizes = [16, 32], strides = [1, 1]} : vector<16x96xf32> to vector<16x32xf32>
    %83 = vector.extract_strided_slice %80 {offsets = [0, 64], sizes = [16, 32], strides = [1, 1]} : vector<16x96xf32> to vector<16x32xf32>
    %84 = vector.extract_strided_slice %81 {offsets = [0, 0], sizes = [8, 32], strides = [1, 1]} : vector<16x32xf32> to vector<8x32xf32>
    %85 = vector.shape_cast %84 : vector<8x32xf32> to vector<8x4x8xf32>
    %86 = vector.extract_strided_slice %82 {offsets = [0, 0], sizes = [8, 32], strides = [1, 1]} : vector<16x32xf32> to vector<8x32xf32>
    %87 = vector.shape_cast %86 : vector<8x32xf32> to vector<8x4x8xf32>
    %88 = vector.extract_strided_slice %83 {offsets = [0, 0], sizes = [8, 32], strides = [1, 1]} : vector<16x32xf32> to vector<8x32xf32>
    %89 = vector.shape_cast %88 : vector<8x32xf32> to vector<8x4x8xf32>
    "tpu.trace_start"() <{level = 10 : i32, message = "qhd,khd->hqk"}> : () -> ()
    %cst_53 = arith.constant dense<0.000000e+00> : vector<4x8x8xf32>
    %90 = tpu.matmul %85, %87, %cst_53 {dimension_numbers = #tpu.dot_dimension_numbers<[2], [2], [0], [0], [0, 1, 0, 0, 1, 0], [1], [1]>} : vector<8x4x8xf32>, vector<8x4x8xf32>, vector<4x8x8xf32> -> vector<4x8x8xf32>
    "tpu.trace_stop"() : () -> ()
    %cst_54 = arith.constant 0.353553385 : f32
    %91 = vector.broadcast %cst_54 : f32 to vector<4x8x8xf32>
    %92 = arith.mulf %90, %91 : vector<4x8x8xf32>
    %cst_55 = arith.constant 9.99999971E-10 : f32
    %93 = vector.shape_cast %14 : vector<8x8xi1> to vector<1x8x8xi1>
    %94 = vector.broadcast %93 : vector<1x8x8xi1> to vector<4x8x8xi1>
    %95 = vector.broadcast %cst_55 : f32 to vector<4x8x8xf32>
    %96 = arith.select %94, %95, %92 : vector<4x8x8xi1>, vector<4x8x8xf32>
    %cst_56 = arith.constant dense<0xFF800000> : vector<4x8xf32>
    %97 = vector.multi_reduction <maximumf>, %96, %cst_56 [2] : vector<4x8x8xf32> to vector<4x8xf32>
    %98 = vector.shape_cast %97 : vector<4x8xf32> to vector<4x8x1xf32>
    %99 = vector.broadcast %98 : vector<4x8x1xf32> to vector<4x8x8xf32>
    %100 = arith.subf %96, %99 : vector<4x8x8xf32>
    %101 = math.exp %100 : vector<4x8x8xf32>
    %cst_57 = arith.constant dense<0.000000e+00> : vector<4x8xf32>
    %102 = vector.multi_reduction <add>, %101, %cst_57 [2] : vector<4x8x8xf32> to vector<4x8xf32>
    %103 = vector.shape_cast %102 : vector<4x8xf32> to vector<4x8x1xf32>
    %104 = vector.broadcast %103 : vector<4x8x1xf32> to vector<4x8x8xf32>
    %105 = arith.divf %101, %104 : vector<4x8x8xf32>
    "tpu.trace_start"() <{level = 10 : i32, message = "hqk,khd->qhd"}> : () -> ()
    %cst_58 = arith.constant dense<0.000000e+00> : vector<4x8x8xf32>
    %106 = tpu.matmul %89, %105, %cst_58 {dimension_numbers = #tpu.dot_dimension_numbers<[0], [2], [2], [1], [0, 1, 0, 2, 1, 1], [1], [0]>} : vector<8x4x8xf32>, vector<4x8x8xf32>, vector<4x8x8xf32> -> vector<4x8x8xf32>
    %107 = tpu.transpose %106, [2, 0, 1] : vector<4x8x8xf32> -> vector<8x4x8xf32>
    "tpu.trace_stop"() : () -> ()
    %108 = vector.shape_cast %107 : vector<8x4x8xf32> to vector<8x32xf32>
    %109 = vector.extract_strided_slice %81 {offsets = [8, 0], sizes = [8, 32], strides = [1, 1]} : vector<16x32xf32> to vector<8x32xf32>
    %110 = vector.shape_cast %109 : vector<8x32xf32> to vector<8x4x8xf32>
    %111 = vector.extract_strided_slice %82 {offsets = [8, 0], sizes = [8, 32], strides = [1, 1]} : vector<16x32xf32> to vector<8x32xf32>
    %112 = vector.shape_cast %111 : vector<8x32xf32> to vector<8x4x8xf32>
    %113 = vector.extract_strided_slice %83 {offsets = [8, 0], sizes = [8, 32], strides = [1, 1]} : vector<16x32xf32> to vector<8x32xf32>
    %114 = vector.shape_cast %113 : vector<8x32xf32> to vector<8x4x8xf32>
    "tpu.trace_start"() <{level = 10 : i32, message = "qhd,khd->hqk"}> : () -> ()
    %cst_59 = arith.constant dense<0.000000e+00> : vector<4x8x8xf32>
    %115 = tpu.matmul %110, %112, %cst_59 {dimension_numbers = #tpu.dot_dimension_numbers<[2], [2], [0], [0], [0, 1, 0, 0, 1, 0], [1], [1]>} : vector<8x4x8xf32>, vector<8x4x8xf32>, vector<4x8x8xf32> -> vector<4x8x8xf32>
    "tpu.trace_stop"() : () -> ()
    %cst_60 = arith.constant 0.353553385 : f32
    %116 = vector.broadcast %cst_60 : f32 to vector<4x8x8xf32>
    %117 = arith.mulf %115, %116 : vector<4x8x8xf32>
    %cst_61 = arith.constant 9.99999971E-10 : f32
    %118 = vector.shape_cast %28 : vector<8x8xi1> to vector<1x8x8xi1>
    %119 = vector.broadcast %118 : vector<1x8x8xi1> to vector<4x8x8xi1>
    %120 = vector.broadcast %cst_61 : f32 to vector<4x8x8xf32>
    %121 = arith.select %119, %120, %117 : vector<4x8x8xi1>, vector<4x8x8xf32>
    %cst_62 = arith.constant dense<0xFF800000> : vector<4x8xf32>
    %122 = vector.multi_reduction <maximumf>, %121, %cst_62 [2] : vector<4x8x8xf32> to vector<4x8xf32>
    %123 = vector.shape_cast %122 : vector<4x8xf32> to vector<4x8x1xf32>
    %124 = vector.broadcast %123 : vector<4x8x1xf32> to vector<4x8x8xf32>
    %125 = arith.subf %121, %124 : vector<4x8x8xf32>
    %126 = math.exp %125 : vector<4x8x8xf32>
    %cst_63 = arith.constant dense<0.000000e+00> : vector<4x8xf32>
    %127 = vector.multi_reduction <add>, %126, %cst_63 [2] : vector<4x8x8xf32> to vector<4x8xf32>
    %128 = vector.shape_cast %127 : vector<4x8xf32> to vector<4x8x1xf32>
    %129 = vector.broadcast %128 : vector<4x8x1xf32> to vector<4x8x8xf32>
    %130 = arith.divf %126, %129 : vector<4x8x8xf32>
    "tpu.trace_start"() <{level = 10 : i32, message = "hqk,khd->qhd"}> : () -> ()
    %cst_64 = arith.constant dense<0.000000e+00> : vector<4x8x8xf32>
    %131 = tpu.matmul %114, %130, %cst_64 {dimension_numbers = #tpu.dot_dimension_numbers<[0], [2], [2], [1], [0, 1, 0, 2, 1, 1], [1], [0]>} : vector<8x4x8xf32>, vector<4x8x8xf32>, vector<4x8x8xf32> -> vector<4x8x8xf32>
    %132 = tpu.transpose %131, [2, 0, 1] : vector<4x8x8xf32> -> vector<8x4x8xf32>
    "tpu.trace_stop"() : () -> ()
    %133 = vector.shape_cast %132 : vector<8x4x8xf32> to vector<8x32xf32>
    %134 = tpu.concatenate %108, %133 in 0 : vector<8x32xf32>, vector<8x32xf32> -> vector<16x32xf32>
    %cst_65 = arith.constant dense<0.000000e+00> : vector<16x32xf32>
    %135 = tpu.matmul %134, %75, %cst_65 {dimension_numbers = #tpu.dot_dimension_numbers<[1], [0], [0], [1], [0, 0, 1, 1], [], []>} : vector<16x32xf32>, vector<32x32xf32>, vector<16x32xf32> -> vector<16x32xf32>
    %136 = vector.broadcast %77 : vector<1x32xf32> to vector<16x32xf32>
    %137 = arith.addf %135, %136 : vector<16x32xf32>
    %138 = arith.addf %45, %137 : vector<16x32xf32>
    %c0_66 = arith.constant 0 : index
    %c0_67 = arith.constant 0 : index
    %c0_68 = arith.constant 0 : index
    %139 = vector.load %arg17[%c0_66, %c0_67, %c0_68] : memref<2x1x32xf32, #tpu.memory_space<vmem>>, vector<1x1x32xf32>
    %140 = vector.shape_cast %139 : vector<1x1x32xf32> to vector<1x32xf32>
    %c0_69 = arith.constant 0 : index
    %c0_70 = arith.constant 0 : index
    %c0_71 = arith.constant 0 : index
    %141 = vector.load %arg18[%c0_69, %c0_70, %c0_71] : memref<2x1x32xf32, #tpu.memory_space<vmem>>, vector<1x1x32xf32>
    %142 = vector.shape_cast %141 : vector<1x1x32xf32> to vector<1x32xf32>
    %cst_72 = arith.constant dense<0.000000e+00> : vector<16xf32>
    %143 = vector.multi_reduction <add>, %138, %cst_72 [1] : vector<16x32xf32> to vector<16xf32>
    %144 = vector.shape_cast %143 : vector<16xf32> to vector<16x1xf32>
    %cst_73 = arith.constant 3.200000e+01 : f32
    %145 = vector.broadcast %cst_73 : f32 to vector<16x1xf32>
    %146 = arith.divf %144, %145 : vector<16x1xf32>
    %147 = vector.broadcast %146 : vector<16x1xf32> to vector<16x32xf32>
    %148 = arith.subf %138, %147 : vector<16x32xf32>
    %149 = arith.mulf %148, %148 : vector<16x32xf32>
    %cst_74 = arith.constant dense<0.000000e+00> : vector<16xf32>
    %150 = vector.multi_reduction <add>, %149, %cst_74 [1] : vector<16x32xf32> to vector<16xf32>
    %151 = vector.shape_cast %150 : vector<16xf32> to vector<16x1xf32>
    %cst_75 = arith.constant 0.0322580636 : f32
    %152 = vector.broadcast %cst_75 : f32 to vector<16x1xf32>
    %153 = arith.mulf %151, %152 : vector<16x1xf32>
    %154 = vector.broadcast %140 : vector<1x32xf32> to vector<16x32xf32>
    %155 = arith.mulf %154, %148 : vector<16x32xf32>
    %156 = math.sqrt %153 : vector<16x1xf32>
    %cst_76 = arith.constant 9.99999997E-7 : f32
    %157 = vector.broadcast %cst_76 : f32 to vector<16x1xf32>
    %158 = arith.addf %156, %157 : vector<16x1xf32>
    %159 = vector.broadcast %158 : vector<16x1xf32> to vector<16x32xf32>
    %160 = arith.divf %155, %159 : vector<16x32xf32>
    %161 = vector.broadcast %142 : vector<1x32xf32> to vector<16x32xf32>
    %162 = arith.addf %160, %161 : vector<16x32xf32>
    %c0_77 = arith.constant 0 : index
    %c0_78 = arith.constant 0 : index
    %c0_79 = arith.constant 0 : index
    %163 = vector.load %arg19[%c0_77, %c0_78, %c0_79] : memref<2x32x64xf32, #tpu.memory_space<vmem>>, vector<1x32x64xf32>
    %164 = vector.shape_cast %163 : vector<1x32x64xf32> to vector<32x64xf32>
    %c0_80 = arith.constant 0 : index
    %c0_81 = arith.constant 0 : index
    %c0_82 = arith.constant 0 : index
    %165 = vector.load %arg20[%c0_80, %c0_81, %c0_82] : memref<2x1x64xf32, #tpu.memory_space<vmem>>, vector<1x1x64xf32>
    %166 = vector.shape_cast %165 : vector<1x1x64xf32> to vector<1x64xf32>
    %c0_83 = arith.constant 0 : index
    %c0_84 = arith.constant 0 : index
    %c0_85 = arith.constant 0 : index
    %167 = vector.load %arg21[%c0_83, %c0_84, %c0_85] : memref<2x64x32xf32, #tpu.memory_space<vmem>>, vector<1x64x32xf32>
    %168 = vector.shape_cast %167 : vector<1x64x32xf32> to vector<64x32xf32>
    %c0_86 = arith.constant 0 : index
    %c0_87 = arith.constant 0 : index
    %c0_88 = arith.constant 0 : index
    %169 = vector.load %arg22[%c0_86, %c0_87, %c0_88] : memref<2x1x32xf32, #tpu.memory_space<vmem>>, vector<1x1x32xf32>
    %170 = vector.shape_cast %169 : vector<1x1x32xf32> to vector<1x32xf32>
    %cst_89 = arith.constant dense<0.000000e+00> : vector<16x64xf32>
    %171 = tpu.matmul %162, %164, %cst_89 {dimension_numbers = #tpu.dot_dimension_numbers<[1], [0], [0], [1], [0, 0, 1, 1], [], []>} : vector<16x32xf32>, vector<32x64xf32>, vector<16x64xf32> -> vector<16x64xf32>
    %172 = vector.broadcast %166 : vector<1x64xf32> to vector<16x64xf32>
    %173 = arith.addf %171, %172 : vector<16x64xf32>
    %cst_90 = arith.constant 0.000000e+00 : f32
    %174 = vector.broadcast %cst_90 : f32 to vector<16x64xf32>
    %175 = arith.maximumf %173, %174 : vector<16x64xf32>
    %cst_91 = arith.constant dense<0.000000e+00> : vector<16x32xf32>
    %176 = tpu.matmul %175, %168, %cst_91 {dimension_numbers = #tpu.dot_dimension_numbers<[1], [0], [0], [1], [0, 0, 1, 1], [], []>} : vector<16x64xf32>, vector<64x32xf32>, vector<16x32xf32> -> vector<16x32xf32>
    %177 = vector.broadcast %170 : vector<1x32xf32> to vector<16x32xf32>
    %178 = arith.addf %176, %177 : vector<16x32xf32>
    %179 = arith.addf %138, %178 : vector<16x32xf32>
    %c1_92 = arith.constant 1 : index
    %c0_93 = arith.constant 0 : index
    %c0_94 = arith.constant 0 : index
    %180 = vector.load %arg11[%c1_92, %c0_93, %c0_94] : memref<2x1x32xf32, #tpu.memory_space<vmem>>, vector<1x1x32xf32>
    %181 = vector.shape_cast %180 : vector<1x1x32xf32> to vector<1x32xf32>
    %c1_95 = arith.constant 1 : index
    %c0_96 = arith.constant 0 : index
    %c0_97 = arith.constant 0 : index
    %182 = vector.load %arg12[%c1_95, %c0_96, %c0_97] : memref<2x1x32xf32, #tpu.memory_space<vmem>>, vector<1x1x32xf32>
    %183 = vector.shape_cast %182 : vector<1x1x32xf32> to vector<1x32xf32>
    %cst_98 = arith.constant dense<0.000000e+00> : vector<16xf32>
    %184 = vector.multi_reduction <add>, %179, %cst_98 [1] : vector<16x32xf32> to vector<16xf32>
    %185 = vector.shape_cast %184 : vector<16xf32> to vector<16x1xf32>
    %cst_99 = arith.constant 3.200000e+01 : f32
    %186 = vector.broadcast %cst_99 : f32 to vector<16x1xf32>
    %187 = arith.divf %185, %186 : vector<16x1xf32>
    %188 = vector.broadcast %187 : vector<16x1xf32> to vector<16x32xf32>
    %189 = arith.subf %179, %188 : vector<16x32xf32>
    %190 = arith.mulf %189, %189 : vector<16x32xf32>
    %cst_100 = arith.constant dense<0.000000e+00> : vector<16xf32>
    %191 = vector.multi_reduction <add>, %190, %cst_100 [1] : vector<16x32xf32> to vector<16xf32>
    %192 = vector.shape_cast %191 : vector<16xf32> to vector<16x1xf32>
    %cst_101 = arith.constant 0.0322580636 : f32
    %193 = vector.broadcast %cst_101 : f32 to vector<16x1xf32>
    %194 = arith.mulf %192, %193 : vector<16x1xf32>
    %195 = vector.broadcast %181 : vector<1x32xf32> to vector<16x32xf32>
    %196 = arith.mulf %195, %189 : vector<16x32xf32>
    %197 = math.sqrt %194 : vector<16x1xf32>
    %cst_102 = arith.constant 9.99999997E-7 : f32
    %198 = vector.broadcast %cst_102 : f32 to vector<16x1xf32>
    %199 = arith.addf %197, %198 : vector<16x1xf32>
    %200 = vector.broadcast %199 : vector<16x1xf32> to vector<16x32xf32>
    %201 = arith.divf %196, %200 : vector<16x32xf32>
    %202 = vector.broadcast %183 : vector<1x32xf32> to vector<16x32xf32>
    %203 = arith.addf %201, %202 : vector<16x32xf32>
    %c1_103 = arith.constant 1 : index
    %c0_104 = arith.constant 0 : index
    %c0_105 = arith.constant 0 : index
    %204 = vector.load %arg13[%c1_103, %c0_104, %c0_105] : memref<2x32x96xf32, #tpu.memory_space<vmem>>, vector<1x32x96xf32>
    %205 = vector.shape_cast %204 : vector<1x32x96xf32> to vector<32x96xf32>
    %c1_106 = arith.constant 1 : index
    %c0_107 = arith.constant 0 : index
    %c0_108 = arith.constant 0 : index
    %206 = vector.load %arg14[%c1_106, %c0_107, %c0_108] : memref<2x1x96xf32, #tpu.memory_space<vmem>>, vector<1x1x96xf32>
    %207 = vector.shape_cast %206 : vector<1x1x96xf32> to vector<1x96xf32>
    %c1_109 = arith.constant 1 : index
    %c0_110 = arith.constant 0 : index
    %c0_111 = arith.constant 0 : index
    %208 = vector.load %arg15[%c1_109, %c0_110, %c0_111] : memref<2x32x32xf32, #tpu.memory_space<vmem>>, vector<1x32x32xf32>
    %209 = vector.shape_cast %208 : vector<1x32x32xf32> to vector<32x32xf32>
    %c1_112 = arith.constant 1 : index
    %c0_113 = arith.constant 0 : index
    %c0_114 = arith.constant 0 : index
    %210 = vector.load %arg16[%c1_112, %c0_113, %c0_114] : memref<2x1x32xf32, #tpu.memory_space<vmem>>, vector<1x1x32xf32>
    %211 = vector.shape_cast %210 : vector<1x1x32xf32> to vector<1x32xf32>
    %cst_115 = arith.constant dense<0.000000e+00> : vector<16x96xf32>
    %212 = tpu.matmul %203, %205, %cst_115 {dimension_numbers = #tpu.dot_dimension_numbers<[1], [0], [0], [1], [0, 0, 1, 1], [], []>} : vector<16x32xf32>, vector<32x96xf32>, vector<16x96xf32> -> vector<16x96xf32>
    %213 = vector.broadcast %207 : vector<1x96xf32> to vector<16x96xf32>
    %214 = arith.addf %212, %213 : vector<16x96xf32>
    %215 = vector.extract_strided_slice %214 {offsets = [0, 0], sizes = [16, 32], strides = [1, 1]} : vector<16x96xf32> to vector<16x32xf32>
    %216 = vector.extract_strided_slice %214 {offsets = [0, 32], sizes = [16, 32], strides = [1, 1]} : vector<16x96xf32> to vector<16x32xf32>
    %217 = vector.extract_strided_slice %214 {offsets = [0, 64], sizes = [16, 32], strides = [1, 1]} : vector<16x96xf32> to vector<16x32xf32>
    %218 = vector.extract_strided_slice %215 {offsets = [0, 0], sizes = [8, 32], strides = [1, 1]} : vector<16x32xf32> to vector<8x32xf32>
    %219 = vector.shape_cast %218 : vector<8x32xf32> to vector<8x4x8xf32>
    %220 = vector.extract_strided_slice %216 {offsets = [0, 0], sizes = [8, 32], strides = [1, 1]} : vector<16x32xf32> to vector<8x32xf32>
    %221 = vector.shape_cast %220 : vector<8x32xf32> to vector<8x4x8xf32>
    %222 = vector.extract_strided_slice %217 {offsets = [0, 0], sizes = [8, 32], strides = [1, 1]} : vector<16x32xf32> to vector<8x32xf32>
    %223 = vector.shape_cast %222 : vector<8x32xf32> to vector<8x4x8xf32>
    "tpu.trace_start"() <{level = 10 : i32, message = "qhd,khd->hqk"}> : () -> ()
    %cst_116 = arith.constant dense<0.000000e+00> : vector<4x8x8xf32>
    %224 = tpu.matmul %219, %221, %cst_116 {dimension_numbers = #tpu.dot_dimension_numbers<[2], [2], [0], [0], [0, 1, 0, 0, 1, 0], [1], [1]>} : vector<8x4x8xf32>, vector<8x4x8xf32>, vector<4x8x8xf32> -> vector<4x8x8xf32>
    "tpu.trace_stop"() : () -> ()
    %cst_117 = arith.constant 0.353553385 : f32
    %225 = vector.broadcast %cst_117 : f32 to vector<4x8x8xf32>
    %226 = arith.mulf %224, %225 : vector<4x8x8xf32>
    %cst_118 = arith.constant 9.99999971E-10 : f32
    %227 = vector.shape_cast %14 : vector<8x8xi1> to vector<1x8x8xi1>
    %228 = vector.broadcast %227 : vector<1x8x8xi1> to vector<4x8x8xi1>
    %229 = vector.broadcast %cst_118 : f32 to vector<4x8x8xf32>
    %230 = arith.select %228, %229, %226 : vector<4x8x8xi1>, vector<4x8x8xf32>
    %cst_119 = arith.constant dense<0xFF800000> : vector<4x8xf32>
    %231 = vector.multi_reduction <maximumf>, %230, %cst_119 [2] : vector<4x8x8xf32> to vector<4x8xf32>
    %232 = vector.shape_cast %231 : vector<4x8xf32> to vector<4x8x1xf32>
    %233 = vector.broadcast %232 : vector<4x8x1xf32> to vector<4x8x8xf32>
    %234 = arith.subf %230, %233 : vector<4x8x8xf32>
    %235 = math.exp %234 : vector<4x8x8xf32>
    %cst_120 = arith.constant dense<0.000000e+00> : vector<4x8xf32>
    %236 = vector.multi_reduction <add>, %235, %cst_120 [2] : vector<4x8x8xf32> to vector<4x8xf32>
    %237 = vector.shape_cast %236 : vector<4x8xf32> to vector<4x8x1xf32>
    %238 = vector.broadcast %237 : vector<4x8x1xf32> to vector<4x8x8xf32>
    %239 = arith.divf %235, %238 : vector<4x8x8xf32>
    "tpu.trace_start"() <{level = 10 : i32, message = "hqk,khd->qhd"}> : () -> ()
    %cst_121 = arith.constant dense<0.000000e+00> : vector<4x8x8xf32>
    %240 = tpu.matmul %223, %239, %cst_121 {dimension_numbers = #tpu.dot_dimension_numbers<[0], [2], [2], [1], [0, 1, 0, 2, 1, 1], [1], [0]>} : vector<8x4x8xf32>, vector<4x8x8xf32>, vector<4x8x8xf32> -> vector<4x8x8xf32>
    %241 = tpu.transpose %240, [2, 0, 1] : vector<4x8x8xf32> -> vector<8x4x8xf32>
    "tpu.trace_stop"() : () -> ()
    %242 = vector.shape_cast %241 : vector<8x4x8xf32> to vector<8x32xf32>
    %243 = vector.extract_strided_slice %215 {offsets = [8, 0], sizes = [8, 32], strides = [1, 1]} : vector<16x32xf32> to vector<8x32xf32>
    %244 = vector.shape_cast %243 : vector<8x32xf32> to vector<8x4x8xf32>
    %245 = vector.extract_strided_slice %216 {offsets = [8, 0], sizes = [8, 32], strides = [1, 1]} : vector<16x32xf32> to vector<8x32xf32>
    %246 = vector.shape_cast %245 : vector<8x32xf32> to vector<8x4x8xf32>
    %247 = vector.extract_strided_slice %217 {offsets = [8, 0], sizes = [8, 32], strides = [1, 1]} : vector<16x32xf32> to vector<8x32xf32>
    %248 = vector.shape_cast %247 : vector<8x32xf32> to vector<8x4x8xf32>
    "tpu.trace_start"() <{level = 10 : i32, message = "qhd,khd->hqk"}> : () -> ()
    %cst_122 = arith.constant dense<0.000000e+00> : vector<4x8x8xf32>
    %249 = tpu.matmul %244, %246, %cst_122 {dimension_numbers = #tpu.dot_dimension_numbers<[2], [2], [0], [0], [0, 1, 0, 0, 1, 0], [1], [1]>} : vector<8x4x8xf32>, vector<8x4x8xf32>, vector<4x8x8xf32> -> vector<4x8x8xf32>
    "tpu.trace_stop"() : () -> ()
    %cst_123 = arith.constant 0.353553385 : f32
    %250 = vector.broadcast %cst_123 : f32 to vector<4x8x8xf32>
    %251 = arith.mulf %249, %250 : vector<4x8x8xf32>
    %cst_124 = arith.constant 9.99999971E-10 : f32
    %252 = vector.shape_cast %28 : vector<8x8xi1> to vector<1x8x8xi1>
    %253 = vector.broadcast %252 : vector<1x8x8xi1> to vector<4x8x8xi1>
    %254 = vector.broadcast %cst_124 : f32 to vector<4x8x8xf32>
    %255 = arith.select %253, %254, %251 : vector<4x8x8xi1>, vector<4x8x8xf32>
    %cst_125 = arith.constant dense<0xFF800000> : vector<4x8xf32>
    %256 = vector.multi_reduction <maximumf>, %255, %cst_125 [2] : vector<4x8x8xf32> to vector<4x8xf32>
    %257 = vector.shape_cast %256 : vector<4x8xf32> to vector<4x8x1xf32>
    %258 = vector.broadcast %257 : vector<4x8x1xf32> to vector<4x8x8xf32>
    %259 = arith.subf %255, %258 : vector<4x8x8xf32>
    %260 = math.exp %259 : vector<4x8x8xf32>
    %cst_126 = arith.constant dense<0.000000e+00> : vector<4x8xf32>
    %261 = vector.multi_reduction <add>, %260, %cst_126 [2] : vector<4x8x8xf32> to vector<4x8xf32>
    %262 = vector.shape_cast %261 : vector<4x8xf32> to vector<4x8x1xf32>
    %263 = vector.broadcast %262 : vector<4x8x1xf32> to vector<4x8x8xf32>
    %264 = arith.divf %260, %263 : vector<4x8x8xf32>
    "tpu.trace_start"() <{level = 10 : i32, message = "hqk,khd->qhd"}> : () -> ()
    %cst_127 = arith.constant dense<0.000000e+00> : vector<4x8x8xf32>
    %265 = tpu.matmul %248, %264, %cst_127 {dimension_numbers = #tpu.dot_dimension_numbers<[0], [2], [2], [1], [0, 1, 0, 2, 1, 1], [1], [0]>} : vector<8x4x8xf32>, vector<4x8x8xf32>, vector<4x8x8xf32> -> vector<4x8x8xf32>
    %266 = tpu.transpose %265, [2, 0, 1] : vector<4x8x8xf32> -> vector<8x4x8xf32>
    "tpu.trace_stop"() : () -> ()
    %267 = vector.shape_cast %266 : vector<8x4x8xf32> to vector<8x32xf32>
    %268 = tpu.concatenate %242, %267 in 0 : vector<8x32xf32>, vector<8x32xf32> -> vector<16x32xf32>
    %cst_128 = arith.constant dense<0.000000e+00> : vector<16x32xf32>
    %269 = tpu.matmul %268, %209, %cst_128 {dimension_numbers = #tpu.dot_dimension_numbers<[1], [0], [0], [1], [0, 0, 1, 1], [], []>} : vector<16x32xf32>, vector<32x32xf32>, vector<16x32xf32> -> vector<16x32xf32>
    %270 = vector.broadcast %211 : vector<1x32xf32> to vector<16x32xf32>
    %271 = arith.addf %269, %270 : vector<16x32xf32>
    %272 = arith.addf %179, %271 : vector<16x32xf32>
    %c1_129 = arith.constant 1 : index
    %c0_130 = arith.constant 0 : index
    %c0_131 = arith.constant 0 : index
    %273 = vector.load %arg17[%c1_129, %c0_130, %c0_131] : memref<2x1x32xf32, #tpu.memory_space<vmem>>, vector<1x1x32xf32>
    %274 = vector.shape_cast %273 : vector<1x1x32xf32> to vector<1x32xf32>
    %c1_132 = arith.constant 1 : index
    %c0_133 = arith.constant 0 : index
    %c0_134 = arith.constant 0 : index
    %275 = vector.load %arg18[%c1_132, %c0_133, %c0_134] : memref<2x1x32xf32, #tpu.memory_space<vmem>>, vector<1x1x32xf32>
    %276 = vector.shape_cast %275 : vector<1x1x32xf32> to vector<1x32xf32>
    %cst_135 = arith.constant dense<0.000000e+00> : vector<16xf32>
    %277 = vector.multi_reduction <add>, %272, %cst_135 [1] : vector<16x32xf32> to vector<16xf32>
    %278 = vector.shape_cast %277 : vector<16xf32> to vector<16x1xf32>
    %cst_136 = arith.constant 3.200000e+01 : f32
    %279 = vector.broadcast %cst_136 : f32 to vector<16x1xf32>
    %280 = arith.divf %278, %279 : vector<16x1xf32>
    %281 = vector.broadcast %280 : vector<16x1xf32> to vector<16x32xf32>
    %282 = arith.subf %272, %281 : vector<16x32xf32>
    %283 = arith.mulf %282, %282 : vector<16x32xf32>
    %cst_137 = arith.constant dense<0.000000e+00> : vector<16xf32>
    %284 = vector.multi_reduction <add>, %283, %cst_137 [1] : vector<16x32xf32> to vector<16xf32>
    %285 = vector.shape_cast %284 : vector<16xf32> to vector<16x1xf32>
    %cst_138 = arith.constant 0.0322580636 : f32
    %286 = vector.broadcast %cst_138 : f32 to vector<16x1xf32>
    %287 = arith.mulf %285, %286 : vector<16x1xf32>
    %288 = vector.broadcast %274 : vector<1x32xf32> to vector<16x32xf32>
    %289 = arith.mulf %288, %282 : vector<16x32xf32>
    %290 = math.sqrt %287 : vector<16x1xf32>
    %cst_139 = arith.constant 9.99999997E-7 : f32
    %291 = vector.broadcast %cst_139 : f32 to vector<16x1xf32>
    %292 = arith.addf %290, %291 : vector<16x1xf32>
    %293 = vector.broadcast %292 : vector<16x1xf32> to vector<16x32xf32>
    %294 = arith.divf %289, %293 : vector<16x32xf32>
    %295 = vector.broadcast %276 : vector<1x32xf32> to vector<16x32xf32>
    %296 = arith.addf %294, %295 : vector<16x32xf32>
    %c1_140 = arith.constant 1 : index
    %c0_141 = arith.constant 0 : index
    %c0_142 = arith.constant 0 : index
    %297 = vector.load %arg19[%c1_140, %c0_141, %c0_142] : memref<2x32x64xf32, #tpu.memory_space<vmem>>, vector<1x32x64xf32>
    %298 = vector.shape_cast %297 : vector<1x32x64xf32> to vector<32x64xf32>
    %c1_143 = arith.constant 1 : index
    %c0_144 = arith.constant 0 : index
    %c0_145 = arith.constant 0 : index
    %299 = vector.load %arg20[%c1_143, %c0_144, %c0_145] : memref<2x1x64xf32, #tpu.memory_space<vmem>>, vector<1x1x64xf32>
    %300 = vector.shape_cast %299 : vector<1x1x64xf32> to vector<1x64xf32>
    %c1_146 = arith.constant 1 : index
    %c0_147 = arith.constant 0 : index
    %c0_148 = arith.constant 0 : index
    %301 = vector.load %arg21[%c1_146, %c0_147, %c0_148] : memref<2x64x32xf32, #tpu.memory_space<vmem>>, vector<1x64x32xf32>
    %302 = vector.shape_cast %301 : vector<1x64x32xf32> to vector<64x32xf32>
    %c1_149 = arith.constant 1 : index
    %c0_150 = arith.constant 0 : index
    %c0_151 = arith.constant 0 : index
    %303 = vector.load %arg22[%c1_149, %c0_150, %c0_151] : memref<2x1x32xf32, #tpu.memory_space<vmem>>, vector<1x1x32xf32>
    %304 = vector.shape_cast %303 : vector<1x1x32xf32> to vector<1x32xf32>
    %cst_152 = arith.constant dense<0.000000e+00> : vector<16x64xf32>
    %305 = tpu.matmul %296, %298, %cst_152 {dimension_numbers = #tpu.dot_dimension_numbers<[1], [0], [0], [1], [0, 0, 1, 1], [], []>} : vector<16x32xf32>, vector<32x64xf32>, vector<16x64xf32> -> vector<16x64xf32>
    %306 = vector.broadcast %300 : vector<1x64xf32> to vector<16x64xf32>
    %307 = arith.addf %305, %306 : vector<16x64xf32>
    %cst_153 = arith.constant 0.000000e+00 : f32
    %308 = vector.broadcast %cst_153 : f32 to vector<16x64xf32>
    %309 = arith.maximumf %307, %308 : vector<16x64xf32>
    %cst_154 = arith.constant dense<0.000000e+00> : vector<16x32xf32>
    %310 = tpu.matmul %309, %302, %cst_154 {dimension_numbers = #tpu.dot_dimension_numbers<[1], [0], [0], [1], [0, 0, 1, 1], [], []>} : vector<16x64xf32>, vector<64x32xf32>, vector<16x32xf32> -> vector<16x32xf32>
    %311 = vector.broadcast %304 : vector<1x32xf32> to vector<16x32xf32>
    %312 = arith.addf %310, %311 : vector<16x32xf32>
    %313 = arith.addf %272, %312 : vector<16x32xf32>
    %c0_155 = arith.constant 0 : index
    %c0_156 = arith.constant 0 : index
    %314 = vector.load %arg23[%c0_155, %c0_156] : memref<1x32xf32, #tpu.memory_space<vmem>>, vector<1x32xf32>
    %c0_157 = arith.constant 0 : index
    %c0_158 = arith.constant 0 : index
    %315 = vector.load %arg24[%c0_157, %c0_158] : memref<1x32xf32, #tpu.memory_space<vmem>>, vector<1x32xf32>
    %cst_159 = arith.constant dense<0.000000e+00> : vector<16xf32>
    %316 = vector.multi_reduction <add>, %313, %cst_159 [1] : vector<16x32xf32> to vector<16xf32>
    %317 = vector.shape_cast %316 : vector<16xf32> to vector<16x1xf32>
    %cst_160 = arith.constant 3.200000e+01 : f32
    %318 = vector.broadcast %cst_160 : f32 to vector<16x1xf32>
    %319 = arith.divf %317, %318 : vector<16x1xf32>
    %320 = vector.broadcast %319 : vector<16x1xf32> to vector<16x32xf32>
    %321 = arith.subf %313, %320 : vector<16x32xf32>
    %322 = arith.mulf %321, %321 : vector<16x32xf32>
    %cst_161 = arith.constant dense<0.000000e+00> : vector<16xf32>
    %323 = vector.multi_reduction <add>, %322, %cst_161 [1] : vector<16x32xf32> to vector<16xf32>
    %324 = vector.shape_cast %323 : vector<16xf32> to vector<16x1xf32>
    %cst_162 = arith.constant 0.0322580636 : f32
    %325 = vector.broadcast %cst_162 : f32 to vector<16x1xf32>
    %326 = arith.mulf %324, %325 : vector<16x1xf32>
    %327 = vector.broadcast %314 : vector<1x32xf32> to vector<16x32xf32>
    %328 = arith.mulf %327, %321 : vector<16x32xf32>
    %329 = math.sqrt %326 : vector<16x1xf32>
    %cst_163 = arith.constant 9.99999997E-7 : f32
    %330 = vector.broadcast %cst_163 : f32 to vector<16x1xf32>
    %331 = arith.addf %329, %330 : vector<16x1xf32>
    %332 = vector.broadcast %331 : vector<16x1xf32> to vector<16x32xf32>
    %333 = arith.divf %328, %332 : vector<16x32xf32>
    %334 = vector.broadcast %315 : vector<1x32xf32> to vector<16x32xf32>
    %335 = arith.addf %333, %334 : vector<16x32xf32>
    %c0_164 = arith.constant 0 : index
    %c0_165 = arith.constant 0 : index
    %336 = vector.load %arg9[%c0_164, %c0_165] : memref<8x32xf32, #tpu.memory_space<vmem>>, vector<8x32xf32>
    %c0_166 = arith.constant 0 : index
    %c0_167 = arith.constant 0 : index
    %337 = vector.load %arg10[%c0_166, %c0_167] : memref<1x32xf32, #tpu.memory_space<vmem>>, vector<1x32xf32>
    %cst_168 = arith.constant dense<0.000000e+00> : vector<12x32xf32>
    %338 = tpu.matmul %8, %336, %cst_168 {dimension_numbers = #tpu.dot_dimension_numbers<[1], [0], [0], [1], [0, 0, 1, 1], [], []>} : vector<12x8xf32>, vector<8x32xf32>, vector<12x32xf32> -> vector<12x32xf32>
    %339 = vector.broadcast %337 : vector<1x32xf32> to vector<12x32xf32>
    %340 = arith.addf %338, %339 : vector<12x32xf32>
    %cst_169 = arith.constant 5.65685415 : f32
    %341 = vector.broadcast %cst_169 : f32 to vector<12x32xf32>
    %342 = arith.mulf %340, %341 : vector<12x32xf32>
    %c0_170 = arith.constant 0 : index
    %c0_171 = arith.constant 0 : index
    %343 = vector.load %arg6[%c0_170, %c0_171] : memref<12x32xf32, #tpu.memory_space<vmem>>, vector<12x32xf32>
    %344 = arith.addf %342, %343 : vector<12x32xf32>
    %c0_172 = arith.constant 0 : index
    %c0_173 = arith.constant 0 : index
    %c0_174 = arith.constant 0 : index
    %345 = vector.load %arg25[%c0_172, %c0_173, %c0_174] : memref<2x1x32xf32, #tpu.memory_space<vmem>>, vector<1x1x32xf32>
    %346 = vector.shape_cast %345 : vector<1x1x32xf32> to vector<1x32xf32>
    %c0_175 = arith.constant 0 : index
    %c0_176 = arith.constant 0 : index
    %c0_177 = arith.constant 0 : index
    %347 = vector.load %arg26[%c0_175, %c0_176, %c0_177] : memref<2x1x32xf32, #tpu.memory_space<vmem>>, vector<1x1x32xf32>
    %348 = vector.shape_cast %347 : vector<1x1x32xf32> to vector<1x32xf32>
    %cst_178 = arith.constant dense<0.000000e+00> : vector<12xf32>
    %349 = vector.multi_reduction <add>, %344, %cst_178 [1] : vector<12x32xf32> to vector<12xf32>
    %350 = vector.shape_cast %349 : vector<12xf32> to vector<12x1xf32>
    %cst_179 = arith.constant 3.200000e+01 : f32
    %351 = vector.broadcast %cst_179 : f32 to vector<12x1xf32>
    %352 = arith.divf %350, %351 : vector<12x1xf32>
    %353 = vector.broadcast %352 : vector<12x1xf32> to vector<12x32xf32>
    %354 = arith.subf %344, %353 : vector<12x32xf32>
    %355 = arith.mulf %354, %354 : vector<12x32xf32>
    %cst_180 = arith.constant dense<0.000000e+00> : vector<12xf32>
    %356 = vector.multi_reduction <add>, %355, %cst_180 [1] : vector<12x32xf32> to vector<12xf32>
    %357 = vector.shape_cast %356 : vector<12xf32> to vector<12x1xf32>
    %cst_181 = arith.constant 0.0322580636 : f32
    %358 = vector.broadcast %cst_181 : f32 to vector<12x1xf32>
    %359 = arith.mulf %357, %358 : vector<12x1xf32>
    %360 = vector.broadcast %346 : vector<1x32xf32> to vector<12x32xf32>
    %361 = arith.mulf %360, %354 : vector<12x32xf32>
    %362 = math.sqrt %359 : vector<12x1xf32>
    %cst_182 = arith.constant 9.99999997E-7 : f32
    %363 = vector.broadcast %cst_182 : f32 to vector<12x1xf32>
    %364 = arith.addf %362, %363 : vector<12x1xf32>
    %365 = vector.broadcast %364 : vector<12x1xf32> to vector<12x32xf32>
    %366 = arith.divf %361, %365 : vector<12x32xf32>
    %367 = vector.broadcast %348 : vector<1x32xf32> to vector<12x32xf32>
    %368 = arith.addf %366, %367 : vector<12x32xf32>
    %c0_183 = arith.constant 0 : index
    %c0_184 = arith.constant 0 : index
    %c0_185 = arith.constant 0 : index
    %369 = vector.load %arg27[%c0_183, %c0_184, %c0_185] : memref<2x32x96xf32, #tpu.memory_space<vmem>>, vector<1x32x96xf32>
    %370 = vector.shape_cast %369 : vector<1x32x96xf32> to vector<32x96xf32>
    %c0_186 = arith.constant 0 : index
    %c0_187 = arith.constant 0 : index
    %c0_188 = arith.constant 0 : index
    %371 = vector.load %arg28[%c0_186, %c0_187, %c0_188] : memref<2x1x96xf32, #tpu.memory_space<vmem>>, vector<1x1x96xf32>
    %372 = vector.shape_cast %371 : vector<1x1x96xf32> to vector<1x96xf32>
    %c0_189 = arith.constant 0 : index
    %c0_190 = arith.constant 0 : index
    %c0_191 = arith.constant 0 : index
    %373 = vector.load %arg29[%c0_189, %c0_190, %c0_191] : memref<2x32x32xf32, #tpu.memory_space<vmem>>, vector<1x32x32xf32>
    %374 = vector.shape_cast %373 : vector<1x32x32xf32> to vector<32x32xf32>
    %c0_192 = arith.constant 0 : index
    %c0_193 = arith.constant 0 : index
    %c0_194 = arith.constant 0 : index
    %375 = vector.load %arg30[%c0_192, %c0_193, %c0_194] : memref<2x1x32xf32, #tpu.memory_space<vmem>>, vector<1x1x32xf32>
    %376 = vector.shape_cast %375 : vector<1x1x32xf32> to vector<1x32xf32>
    %cst_195 = arith.constant dense<0.000000e+00> : vector<12x96xf32>
    %377 = tpu.matmul %368, %370, %cst_195 {dimension_numbers = #tpu.dot_dimension_numbers<[1], [0], [0], [1], [0, 0, 1, 1], [], []>} : vector<12x32xf32>, vector<32x96xf32>, vector<12x96xf32> -> vector<12x96xf32>
    %378 = vector.broadcast %372 : vector<1x96xf32> to vector<12x96xf32>
    %379 = arith.addf %377, %378 : vector<12x96xf32>
    %380 = vector.extract_strided_slice %379 {offsets = [0, 0], sizes = [12, 32], strides = [1, 1]} : vector<12x96xf32> to vector<12x32xf32>
    %381 = vector.extract_strided_slice %379 {offsets = [0, 32], sizes = [12, 32], strides = [1, 1]} : vector<12x96xf32> to vector<12x32xf32>
    %382 = vector.extract_strided_slice %379 {offsets = [0, 64], sizes = [12, 32], strides = [1, 1]} : vector<12x96xf32> to vector<12x32xf32>
    %383 = vector.extract_strided_slice %380 {offsets = [0, 0], sizes = [6, 32], strides = [1, 1]} : vector<12x32xf32> to vector<6x32xf32>
    %384 = vector.shape_cast %383 : vector<6x32xf32> to vector<6x4x8xf32>
    %385 = vector.extract_strided_slice %381 {offsets = [0, 0], sizes = [6, 32], strides = [1, 1]} : vector<12x32xf32> to vector<6x32xf32>
    %386 = vector.shape_cast %385 : vector<6x32xf32> to vector<6x4x8xf32>
    %387 = vector.extract_strided_slice %382 {offsets = [0, 0], sizes = [6, 32], strides = [1, 1]} : vector<12x32xf32> to vector<6x32xf32>
    %388 = vector.shape_cast %387 : vector<6x32xf32> to vector<6x4x8xf32>
    "tpu.trace_start"() <{level = 10 : i32, message = "qhd,khd->hqk"}> : () -> ()
    %cst_196 = arith.constant dense<0.000000e+00> : vector<4x6x6xf32>
    %389 = tpu.matmul %384, %386, %cst_196 {dimension_numbers = #tpu.dot_dimension_numbers<[2], [2], [0], [0], [0, 1, 0, 0, 1, 0], [1], [1]>} : vector<6x4x8xf32>, vector<6x4x8xf32>, vector<4x6x6xf32> -> vector<4x6x6xf32>
    "tpu.trace_stop"() : () -> ()
    %cst_197 = arith.constant 0.353553385 : f32
    %390 = vector.broadcast %cst_197 : f32 to vector<4x6x6xf32>
    %391 = arith.mulf %389, %390 : vector<4x6x6xf32>
    %cst_198 = arith.constant 9.99999971E-10 : f32
    %392 = vector.shape_cast %22 : vector<6x6xi1> to vector<1x6x6xi1>
    %393 = vector.broadcast %392 : vector<1x6x6xi1> to vector<4x6x6xi1>
    %394 = vector.broadcast %cst_198 : f32 to vector<4x6x6xf32>
    %395 = arith.select %393, %394, %391 : vector<4x6x6xi1>, vector<4x6x6xf32>
    %cst_199 = arith.constant dense<0xFF800000> : vector<4x6xf32>
    %396 = vector.multi_reduction <maximumf>, %395, %cst_199 [2] : vector<4x6x6xf32> to vector<4x6xf32>
    %397 = vector.shape_cast %396 : vector<4x6xf32> to vector<4x6x1xf32>
    %398 = vector.broadcast %397 : vector<4x6x1xf32> to vector<4x6x6xf32>
    %399 = arith.subf %395, %398 : vector<4x6x6xf32>
    %400 = math.exp %399 : vector<4x6x6xf32>
    %cst_200 = arith.constant dense<0.000000e+00> : vector<4x6xf32>
    %401 = vector.multi_reduction <add>, %400, %cst_200 [2] : vector<4x6x6xf32> to vector<4x6xf32>
    %402 = vector.shape_cast %401 : vector<4x6xf32> to vector<4x6x1xf32>
    %403 = vector.broadcast %402 : vector<4x6x1xf32> to vector<4x6x6xf32>
    %404 = arith.divf %400, %403 : vector<4x6x6xf32>
    "tpu.trace_start"() <{level = 10 : i32, message = "hqk,khd->qhd"}> : () -> ()
    %cst_201 = arith.constant dense<0.000000e+00> : vector<4x8x6xf32>
    %405 = tpu.matmul %388, %404, %cst_201 {dimension_numbers = #tpu.dot_dimension_numbers<[0], [2], [2], [1], [0, 1, 0, 2, 1, 1], [1], [0]>} : vector<6x4x8xf32>, vector<4x6x6xf32>, vector<4x8x6xf32> -> vector<4x8x6xf32>
    %406 = tpu.transpose %405, [2, 0, 1] : vector<4x8x6xf32> -> vector<6x4x8xf32>
    "tpu.trace_stop"() : () -> ()
    %407 = vector.shape_cast %406 : vector<6x4x8xf32> to vector<6x32xf32>
    %408 = vector.extract_strided_slice %380 {offsets = [6, 0], sizes = [6, 32], strides = [1, 1]} : vector<12x32xf32> to vector<6x32xf32>
    %409 = vector.shape_cast %408 : vector<6x32xf32> to vector<6x4x8xf32>
    %410 = vector.extract_strided_slice %381 {offsets = [6, 0], sizes = [6, 32], strides = [1, 1]} : vector<12x32xf32> to vector<6x32xf32>
    %411 = vector.shape_cast %410 : vector<6x32xf32> to vector<6x4x8xf32>
    %412 = vector.extract_strided_slice %382 {offsets = [6, 0], sizes = [6, 32], strides = [1, 1]} : vector<12x32xf32> to vector<6x32xf32>
    %413 = vector.shape_cast %412 : vector<6x32xf32> to vector<6x4x8xf32>
    "tpu.trace_start"() <{level = 10 : i32, message = "qhd,khd->hqk"}> : () -> ()
    %cst_202 = arith.constant dense<0.000000e+00> : vector<4x6x6xf32>
    %414 = tpu.matmul %409, %411, %cst_202 {dimension_numbers = #tpu.dot_dimension_numbers<[2], [2], [0], [0], [0, 1, 0, 0, 1, 0], [1], [1]>} : vector<6x4x8xf32>, vector<6x4x8xf32>, vector<4x6x6xf32> -> vector<4x6x6xf32>
    "tpu.trace_stop"() : () -> ()
    %cst_203 = arith.constant 0.353553385 : f32
    %415 = vector.broadcast %cst_203 : f32 to vector<4x6x6xf32>
    %416 = arith.mulf %414, %415 : vector<4x6x6xf32>
    %cst_204 = arith.constant 9.99999971E-10 : f32
    %417 = vector.shape_cast %36 : vector<6x6xi1> to vector<1x6x6xi1>
    %418 = vector.broadcast %417 : vector<1x6x6xi1> to vector<4x6x6xi1>
    %419 = vector.broadcast %cst_204 : f32 to vector<4x6x6xf32>
    %420 = arith.select %418, %419, %416 : vector<4x6x6xi1>, vector<4x6x6xf32>
    %cst_205 = arith.constant dense<0xFF800000> : vector<4x6xf32>
    %421 = vector.multi_reduction <maximumf>, %420, %cst_205 [2] : vector<4x6x6xf32> to vector<4x6xf32>
    %422 = vector.shape_cast %421 : vector<4x6xf32> to vector<4x6x1xf32>
    %423 = vector.broadcast %422 : vector<4x6x1xf32> to vector<4x6x6xf32>
    %424 = arith.subf %420, %423 : vector<4x6x6xf32>
    %425 = math.exp %424 : vector<4x6x6xf32>
    %cst_206 = arith.constant dense<0.000000e+00> : vector<4x6xf32>
    %426 = vector.multi_reduction <add>, %425, %cst_206 [2] : vector<4x6x6xf32> to vector<4x6xf32>
    %427 = vector.shape_cast %426 : vector<4x6xf32> to vector<4x6x1xf32>
    %428 = vector.broadcast %427 : vector<4x6x1xf32> to vector<4x6x6xf32>
    %429 = arith.divf %425, %428 : vector<4x6x6xf32>
    "tpu.trace_start"() <{level = 10 : i32, message = "hqk,khd->qhd"}> : () -> ()
    %cst_207 = arith.constant dense<0.000000e+00> : vector<4x8x6xf32>
    %430 = tpu.matmul %413, %429, %cst_207 {dimension_numbers = #tpu.dot_dimension_numbers<[0], [2], [2], [1], [0, 1, 0, 2, 1, 1], [1], [0]>} : vector<6x4x8xf32>, vector<4x6x6xf32>, vector<4x8x6xf32> -> vector<4x8x6xf32>
    %431 = tpu.transpose %430, [2, 0, 1] : vector<4x8x6xf32> -> vector<6x4x8xf32>
    "tpu.trace_stop"() : () -> ()
    %432 = vector.shape_cast %431 : vector<6x4x8xf32> to vector<6x32xf32>
    %433 = tpu.concatenate %407, %432 in 0 : vector<6x32xf32>, vector<6x32xf32> -> vector<12x32xf32>
    %cst_208 = arith.constant dense<0.000000e+00> : vector<12x32xf32>
    %434 = tpu.matmul %433, %374, %cst_208 {dimension_numbers = #tpu.dot_dimension_numbers<[1], [0], [0], [1], [0, 0, 1, 1], [], []>} : vector<12x32xf32>, vector<32x32xf32>, vector<12x32xf32> -> vector<12x32xf32>
    %435 = vector.broadcast %376 : vector<1x32xf32> to vector<12x32xf32>
    %436 = arith.addf %434, %435 : vector<12x32xf32>
    %437 = arith.addf %344, %436 : vector<12x32xf32>
    %c0_209 = arith.constant 0 : index
    %c0_210 = arith.constant 0 : index
    %c0_211 = arith.constant 0 : index
    %438 = vector.load %arg31[%c0_209, %c0_210, %c0_211] : memref<2x1x32xf32, #tpu.memory_space<vmem>>, vector<1x1x32xf32>
    %439 = vector.shape_cast %438 : vector<1x1x32xf32> to vector<1x32xf32>
    %c0_212 = arith.constant 0 : index
    %c0_213 = arith.constant 0 : index
    %c0_214 = arith.constant 0 : index
    %440 = vector.load %arg32[%c0_212, %c0_213, %c0_214] : memref<2x1x32xf32, #tpu.memory_space<vmem>>, vector<1x1x32xf32>
    %441 = vector.shape_cast %440 : vector<1x1x32xf32> to vector<1x32xf32>
    %cst_215 = arith.constant dense<0.000000e+00> : vector<12xf32>
    %442 = vector.multi_reduction <add>, %437, %cst_215 [1] : vector<12x32xf32> to vector<12xf32>
    %443 = vector.shape_cast %442 : vector<12xf32> to vector<12x1xf32>
    %cst_216 = arith.constant 3.200000e+01 : f32
    %444 = vector.broadcast %cst_216 : f32 to vector<12x1xf32>
    %445 = arith.divf %443, %444 : vector<12x1xf32>
    %446 = vector.broadcast %445 : vector<12x1xf32> to vector<12x32xf32>
    %447 = arith.subf %437, %446 : vector<12x32xf32>
    %448 = arith.mulf %447, %447 : vector<12x32xf32>
    %cst_217 = arith.constant dense<0.000000e+00> : vector<12xf32>
    %449 = vector.multi_reduction <add>, %448, %cst_217 [1] : vector<12x32xf32> to vector<12xf32>
    %450 = vector.shape_cast %449 : vector<12xf32> to vector<12x1xf32>
    %cst_218 = arith.constant 0.0322580636 : f32
    %451 = vector.broadcast %cst_218 : f32 to vector<12x1xf32>
    %452 = arith.mulf %450, %451 : vector<12x1xf32>
    %453 = vector.broadcast %439 : vector<1x32xf32> to vector<12x32xf32>
    %454 = arith.mulf %453, %447 : vector<12x32xf32>
    %455 = math.sqrt %452 : vector<12x1xf32>
    %cst_219 = arith.constant 9.99999997E-7 : f32
    %456 = vector.broadcast %cst_219 : f32 to vector<12x1xf32>
    %457 = arith.addf %455, %456 : vector<12x1xf32>
    %458 = vector.broadcast %457 : vector<12x1xf32> to vector<12x32xf32>
    %459 = arith.divf %454, %458 : vector<12x32xf32>
    %460 = vector.broadcast %441 : vector<1x32xf32> to vector<12x32xf32>
    %461 = arith.addf %459, %460 : vector<12x32xf32>
    %c0_220 = arith.constant 0 : index
    %c0_221 = arith.constant 0 : index
    %c0_222 = arith.constant 0 : index
    %462 = vector.load %arg33[%c0_220, %c0_221, %c0_222] : memref<2x32x32xf32, #tpu.memory_space<vmem>>, vector<1x32x32xf32>
    %463 = vector.shape_cast %462 : vector<1x32x32xf32> to vector<32x32xf32>
    %c0_223 = arith.constant 0 : index
    %c0_224 = arith.constant 0 : index
    %c0_225 = arith.constant 0 : index
    %464 = vector.load %arg34[%c0_223, %c0_224, %c0_225] : memref<2x1x32xf32, #tpu.memory_space<vmem>>, vector<1x1x32xf32>
    %465 = vector.shape_cast %464 : vector<1x1x32xf32> to vector<1x32xf32>
    %cst_226 = arith.constant dense<0.000000e+00> : vector<12x32xf32>
    %466 = tpu.matmul %461, %463, %cst_226 {dimension_numbers = #tpu.dot_dimension_numbers<[1], [0], [0], [1], [0, 0, 1, 1], [], []>} : vector<12x32xf32>, vector<32x32xf32>, vector<12x32xf32> -> vector<12x32xf32>
    %467 = vector.broadcast %465 : vector<1x32xf32> to vector<12x32xf32>
    %468 = arith.addf %466, %467 : vector<12x32xf32>
    %c0_227 = arith.constant 0 : index
    %c0_228 = arith.constant 0 : index
    %c0_229 = arith.constant 0 : index
    %469 = vector.load %arg35[%c0_227, %c0_228, %c0_229] : memref<2x32x64xf32, #tpu.memory_space<vmem>>, vector<1x32x64xf32>
    %470 = vector.shape_cast %469 : vector<1x32x64xf32> to vector<32x64xf32>
    %c0_230 = arith.constant 0 : index
    %c0_231 = arith.constant 0 : index
    %c0_232 = arith.constant 0 : index
    %471 = vector.load %arg36[%c0_230, %c0_231, %c0_232] : memref<2x1x64xf32, #tpu.memory_space<vmem>>, vector<1x1x64xf32>
    %472 = vector.shape_cast %471 : vector<1x1x64xf32> to vector<1x64xf32>
    %cst_233 = arith.constant dense<0.000000e+00> : vector<16x64xf32>
    %473 = tpu.matmul %335, %470, %cst_233 {dimension_numbers = #tpu.dot_dimension_numbers<[1], [0], [0], [1], [0, 0, 1, 1], [], []>} : vector<16x32xf32>, vector<32x64xf32>, vector<16x64xf32> -> vector<16x64xf32>
    %474 = vector.broadcast %472 : vector<1x64xf32> to vector<16x64xf32>
    %475 = arith.addf %473, %474 : vector<16x64xf32>
    %476 = vector.extract_strided_slice %475 {offsets = [0, 0], sizes = [16, 32], strides = [1, 1]} : vector<16x64xf32> to vector<16x32xf32>
    %477 = vector.extract_strided_slice %475 {offsets = [0, 32], sizes = [16, 32], strides = [1, 1]} : vector<16x64xf32> to vector<16x32xf32>
    %c0_234 = arith.constant 0 : index
    %c0_235 = arith.constant 0 : index
    %c0_236 = arith.constant 0 : index
    %478 = vector.load %arg37[%c0_234, %c0_235, %c0_236] : memref<2x32x32xf32, #tpu.memory_space<vmem>>, vector<1x32x32xf32>
    %479 = vector.shape_cast %478 : vector<1x32x32xf32> to vector<32x32xf32>
    %c0_237 = arith.constant 0 : index
    %c0_238 = arith.constant 0 : index
    %c0_239 = arith.constant 0 : index
    %480 = vector.load %arg38[%c0_237, %c0_238, %c0_239] : memref<2x1x32xf32, #tpu.memory_space<vmem>>, vector<1x1x32xf32>
    %481 = vector.shape_cast %480 : vector<1x1x32xf32> to vector<1x32xf32>
    %482 = vector.extract_strided_slice %468 {offsets = [0, 0], sizes = [6, 32], strides = [1, 1]} : vector<12x32xf32> to vector<6x32xf32>
    %483 = vector.shape_cast %482 : vector<6x32xf32> to vector<6x4x8xf32>
    %484 = vector.extract_strided_slice %476 {offsets = [0, 0], sizes = [8, 32], strides = [1, 1]} : vector<16x32xf32> to vector<8x32xf32>
    %485 = vector.shape_cast %484 : vector<8x32xf32> to vector<8x4x8xf32>
    %486 = vector.extract_strided_slice %477 {offsets = [0, 0], sizes = [8, 32], strides = [1, 1]} : vector<16x32xf32> to vector<8x32xf32>
    %487 = vector.shape_cast %486 : vector<8x32xf32> to vector<8x4x8xf32>
    "tpu.trace_start"() <{level = 10 : i32, message = "qhd,khd->hqk"}> : () -> ()
    %cst_240 = arith.constant dense<0.000000e+00> : vector<4x6x8xf32>
    %488 = tpu.matmul %483, %485, %cst_240 {dimension_numbers = #tpu.dot_dimension_numbers<[2], [2], [0], [0], [0, 1, 0, 0, 1, 0], [1], [1]>} : vector<6x4x8xf32>, vector<8x4x8xf32>, vector<4x6x8xf32> -> vector<4x6x8xf32>
    "tpu.trace_stop"() : () -> ()
    %cst_241 = arith.constant 0.353553385 : f32
    %489 = vector.broadcast %cst_241 : f32 to vector<4x6x8xf32>
    %490 = arith.mulf %488, %489 : vector<4x6x8xf32>
    %cst_242 = arith.constant 9.99999971E-10 : f32
    %491 = vector.shape_cast %18 : vector<6x8xi1> to vector<1x6x8xi1>
    %492 = vector.broadcast %491 : vector<1x6x8xi1> to vector<4x6x8xi1>
    %493 = vector.broadcast %cst_242 : f32 to vector<4x6x8xf32>
    %494 = arith.select %492, %493, %490 : vector<4x6x8xi1>, vector<4x6x8xf32>
    %cst_243 = arith.constant dense<0xFF800000> : vector<4x6xf32>
    %495 = vector.multi_reduction <maximumf>, %494, %cst_243 [2] : vector<4x6x8xf32> to vector<4x6xf32>
    %496 = vector.shape_cast %495 : vector<4x6xf32> to vector<4x6x1xf32>
    %497 = vector.broadcast %496 : vector<4x6x1xf32> to vector<4x6x8xf32>
    %498 = arith.subf %494, %497 : vector<4x6x8xf32>
    %499 = math.exp %498 : vector<4x6x8xf32>
    %cst_244 = arith.constant dense<0.000000e+00> : vector<4x6xf32>
    %500 = vector.multi_reduction <add>, %499, %cst_244 [2] : vector<4x6x8xf32> to vector<4x6xf32>
    %501 = vector.shape_cast %500 : vector<4x6xf32> to vector<4x6x1xf32>
    %502 = vector.broadcast %501 : vector<4x6x1xf32> to vector<4x6x8xf32>
    %503 = arith.divf %499, %502 : vector<4x6x8xf32>
    "tpu.trace_start"() <{level = 10 : i32, message = "hqk,khd->qhd"}> : () -> ()
    %cst_245 = arith.constant dense<0.000000e+00> : vector<4x8x6xf32>
    %504 = tpu.matmul %487, %503, %cst_245 {dimension_numbers = #tpu.dot_dimension_numbers<[0], [2], [2], [1], [0, 1, 0, 2, 1, 1], [1], [0]>} : vector<8x4x8xf32>, vector<4x6x8xf32>, vector<4x8x6xf32> -> vector<4x8x6xf32>
    %505 = tpu.transpose %504, [2, 0, 1] : vector<4x8x6xf32> -> vector<6x4x8xf32>
    "tpu.trace_stop"() : () -> ()
    %506 = vector.shape_cast %505 : vector<6x4x8xf32> to vector<6x32xf32>
    %507 = vector.extract_strided_slice %468 {offsets = [6, 0], sizes = [6, 32], strides = [1, 1]} : vector<12x32xf32> to vector<6x32xf32>
    %508 = vector.shape_cast %507 : vector<6x32xf32> to vector<6x4x8xf32>
    %509 = vector.extract_strided_slice %476 {offsets = [8, 0], sizes = [8, 32], strides = [1, 1]} : vector<16x32xf32> to vector<8x32xf32>
    %510 = vector.shape_cast %509 : vector<8x32xf32> to vector<8x4x8xf32>
    %511 = vector.extract_strided_slice %477 {offsets = [8, 0], sizes = [8, 32], strides = [1, 1]} : vector<16x32xf32> to vector<8x32xf32>
    %512 = vector.shape_cast %511 : vector<8x32xf32> to vector<8x4x8xf32>
    "tpu.trace_start"() <{level = 10 : i32, message = "qhd,khd->hqk"}> : () -> ()
    %cst_246 = arith.constant dense<0.000000e+00> : vector<4x6x8xf32>
    %513 = tpu.matmul %508, %510, %cst_246 {dimension_numbers = #tpu.dot_dimension_numbers<[2], [2], [0], [0], [0, 1, 0, 0, 1, 0], [1], [1]>} : vector<6x4x8xf32>, vector<8x4x8xf32>, vector<4x6x8xf32> -> vector<4x6x8xf32>
    "tpu.trace_stop"() : () -> ()
    %cst_247 = arith.constant 0.353553385 : f32
    %514 = vector.broadcast %cst_247 : f32 to vector<4x6x8xf32>
    %515 = arith.mulf %513, %514 : vector<4x6x8xf32>
    %cst_248 = arith.constant 9.99999971E-10 : f32
    %516 = vector.shape_cast %32 : vector<6x8xi1> to vector<1x6x8xi1>
    %517 = vector.broadcast %516 : vector<1x6x8xi1> to vector<4x6x8xi1>
    %518 = vector.broadcast %cst_248 : f32 to vector<4x6x8xf32>
    %519 = arith.select %517, %518, %515 : vector<4x6x8xi1>, vector<4x6x8xf32>
    %cst_249 = arith.constant dense<0xFF800000> : vector<4x6xf32>
    %520 = vector.multi_reduction <maximumf>, %519, %cst_249 [2] : vector<4x6x8xf32> to vector<4x6xf32>
    %521 = vector.shape_cast %520 : vector<4x6xf32> to vector<4x6x1xf32>
    %522 = vector.broadcast %521 : vector<4x6x1xf32> to vector<4x6x8xf32>
    %523 = arith.subf %519, %522 : vector<4x6x8xf32>
    %524 = math.exp %523 : vector<4x6x8xf32>
    %cst_250 = arith.constant dense<0.000000e+00> : vector<4x6xf32>
    %525 = vector.multi_reduction <add>, %524, %cst_250 [2] : vector<4x6x8xf32> to vector<4x6xf32>
    %526 = vector.shape_cast %525 : vector<4x6xf32> to vector<4x6x1xf32>
    %527 = vector.broadcast %526 : vector<4x6x1xf32> to vector<4x6x8xf32>
    %528 = arith.divf %524, %527 : vector<4x6x8xf32>
    "tpu.trace_start"() <{level = 10 : i32, message = "hqk,khd->qhd"}> : () -> ()
    %cst_251 = arith.constant dense<0.000000e+00> : vector<4x8x6xf32>
    %529 = tpu.matmul %512, %528, %cst_251 {dimension_numbers = #tpu.dot_dimension_numbers<[0], [2], [2], [1], [0, 1, 0, 2, 1, 1], [1], [0]>} : vector<8x4x8xf32>, vector<4x6x8xf32>, vector<4x8x6xf32> -> vector<4x8x6xf32>
    %530 = tpu.transpose %529, [2, 0, 1] : vector<4x8x6xf32> -> vector<6x4x8xf32>
    "tpu.trace_stop"() : () -> ()
    %531 = vector.shape_cast %530 : vector<6x4x8xf32> to vector<6x32xf32>
    %532 = tpu.concatenate %506, %531 in 0 : vector<6x32xf32>, vector<6x32xf32> -> vector<12x32xf32>
    %cst_252 = arith.constant dense<0.000000e+00> : vector<12x32xf32>
    %533 = tpu.matmul %532, %479, %cst_252 {dimension_numbers = #tpu.dot_dimension_numbers<[1], [0], [0], [1], [0, 0, 1, 1], [], []>} : vector<12x32xf32>, vector<32x32xf32>, vector<12x32xf32> -> vector<12x32xf32>
    %534 = vector.broadcast %481 : vector<1x32xf32> to vector<12x32xf32>
    %535 = arith.addf %533, %534 : vector<12x32xf32>
    %536 = arith.addf %437, %535 : vector<12x32xf32>
    %c0_253 = arith.constant 0 : index
    %c0_254 = arith.constant 0 : index
    %c0_255 = arith.constant 0 : index
    %537 = vector.load %arg39[%c0_253, %c0_254, %c0_255] : memref<2x1x32xf32, #tpu.memory_space<vmem>>, vector<1x1x32xf32>
    %538 = vector.shape_cast %537 : vector<1x1x32xf32> to vector<1x32xf32>
    %c0_256 = arith.constant 0 : index
    %c0_257 = arith.constant 0 : index
    %c0_258 = arith.constant 0 : index
    %539 = vector.load %arg40[%c0_256, %c0_257, %c0_258] : memref<2x1x32xf32, #tpu.memory_space<vmem>>, vector<1x1x32xf32>
    %540 = vector.shape_cast %539 : vector<1x1x32xf32> to vector<1x32xf32>
    %cst_259 = arith.constant dense<0.000000e+00> : vector<12xf32>
    %541 = vector.multi_reduction <add>, %536, %cst_259 [1] : vector<12x32xf32> to vector<12xf32>
    %542 = vector.shape_cast %541 : vector<12xf32> to vector<12x1xf32>
    %cst_260 = arith.constant 3.200000e+01 : f32
    %543 = vector.broadcast %cst_260 : f32 to vector<12x1xf32>
    %544 = arith.divf %542, %543 : vector<12x1xf32>
    %545 = vector.broadcast %544 : vector<12x1xf32> to vector<12x32xf32>
    %546 = arith.subf %536, %545 : vector<12x32xf32>
    %547 = arith.mulf %546, %546 : vector<12x32xf32>
    %cst_261 = arith.constant dense<0.000000e+00> : vector<12xf32>
    %548 = vector.multi_reduction <add>, %547, %cst_261 [1] : vector<12x32xf32> to vector<12xf32>
    %549 = vector.shape_cast %548 : vector<12xf32> to vector<12x1xf32>
    %cst_262 = arith.constant 0.0322580636 : f32
    %550 = vector.broadcast %cst_262 : f32 to vector<12x1xf32>
    %551 = arith.mulf %549, %550 : vector<12x1xf32>
    %552 = vector.broadcast %538 : vector<1x32xf32> to vector<12x32xf32>
    %553 = arith.mulf %552, %546 : vector<12x32xf32>
    %554 = math.sqrt %551 : vector<12x1xf32>
    %cst_263 = arith.constant 9.99999997E-7 : f32
    %555 = vector.broadcast %cst_263 : f32 to vector<12x1xf32>
    %556 = arith.addf %554, %555 : vector<12x1xf32>
    %557 = vector.broadcast %556 : vector<12x1xf32> to vector<12x32xf32>
    %558 = arith.divf %553, %557 : vector<12x32xf32>
    %559 = vector.broadcast %540 : vector<1x32xf32> to vector<12x32xf32>
    %560 = arith.addf %558, %559 : vector<12x32xf32>
    %c0_264 = arith.constant 0 : index
    %c0_265 = arith.constant 0 : index
    %c0_266 = arith.constant 0 : index
    %561 = vector.load %arg41[%c0_264, %c0_265, %c0_266] : memref<2x32x64xf32, #tpu.memory_space<vmem>>, vector<1x32x64xf32>
    %562 = vector.shape_cast %561 : vector<1x32x64xf32> to vector<32x64xf32>
    %c0_267 = arith.constant 0 : index
    %c0_268 = arith.constant 0 : index
    %c0_269 = arith.constant 0 : index
    %563 = vector.load %arg42[%c0_267, %c0_268, %c0_269] : memref<2x1x64xf32, #tpu.memory_space<vmem>>, vector<1x1x64xf32>
    %564 = vector.shape_cast %563 : vector<1x1x64xf32> to vector<1x64xf32>
    %c0_270 = arith.constant 0 : index
    %c0_271 = arith.constant 0 : index
    %c0_272 = arith.constant 0 : index
    %565 = vector.load %arg43[%c0_270, %c0_271, %c0_272] : memref<2x64x32xf32, #tpu.memory_space<vmem>>, vector<1x64x32xf32>
    %566 = vector.shape_cast %565 : vector<1x64x32xf32> to vector<64x32xf32>
    %c0_273 = arith.constant 0 : index
    %c0_274 = arith.constant 0 : index
    %c0_275 = arith.constant 0 : index
    %567 = vector.load %arg44[%c0_273, %c0_274, %c0_275] : memref<2x1x32xf32, #tpu.memory_space<vmem>>, vector<1x1x32xf32>
    %568 = vector.shape_cast %567 : vector<1x1x32xf32> to vector<1x32xf32>
    %cst_276 = arith.constant dense<0.000000e+00> : vector<12x64xf32>
    %569 = tpu.matmul %560, %562, %cst_276 {dimension_numbers = #tpu.dot_dimension_numbers<[1], [0], [0], [1], [0, 0, 1, 1], [], []>} : vector<12x32xf32>, vector<32x64xf32>, vector<12x64xf32> -> vector<12x64xf32>
    %570 = vector.broadcast %564 : vector<1x64xf32> to vector<12x64xf32>
    %571 = arith.addf %569, %570 : vector<12x64xf32>
    %cst_277 = arith.constant 0.000000e+00 : f32
    %572 = vector.broadcast %cst_277 : f32 to vector<12x64xf32>
    %573 = arith.maximumf %571, %572 : vector<12x64xf32>
    %cst_278 = arith.constant dense<0.000000e+00> : vector<12x32xf32>
    %574 = tpu.matmul %573, %566, %cst_278 {dimension_numbers = #tpu.dot_dimension_numbers<[1], [0], [0], [1], [0, 0, 1, 1], [], []>} : vector<12x64xf32>, vector<64x32xf32>, vector<12x32xf32> -> vector<12x32xf32>
    %575 = vector.broadcast %568 : vector<1x32xf32> to vector<12x32xf32>
    %576 = arith.addf %574, %575 : vector<12x32xf32>
    %577 = arith.addf %536, %576 : vector<12x32xf32>
    %c1_279 = arith.constant 1 : index
    %c0_280 = arith.constant 0 : index
    %c0_281 = arith.constant 0 : index
    %578 = vector.load %arg25[%c1_279, %c0_280, %c0_281] : memref<2x1x32xf32, #tpu.memory_space<vmem>>, vector<1x1x32xf32>
    %579 = vector.shape_cast %578 : vector<1x1x32xf32> to vector<1x32xf32>
    %c1_282 = arith.constant 1 : index
    %c0_283 = arith.constant 0 : index
    %c0_284 = arith.constant 0 : index
    %580 = vector.load %arg26[%c1_282, %c0_283, %c0_284] : memref<2x1x32xf32, #tpu.memory_space<vmem>>, vector<1x1x32xf32>
    %581 = vector.shape_cast %580 : vector<1x1x32xf32> to vector<1x32xf32>
    %cst_285 = arith.constant dense<0.000000e+00> : vector<12xf32>
    %582 = vector.multi_reduction <add>, %577, %cst_285 [1] : vector<12x32xf32> to vector<12xf32>
    %583 = vector.shape_cast %582 : vector<12xf32> to vector<12x1xf32>
    %cst_286 = arith.constant 3.200000e+01 : f32
    %584 = vector.broadcast %cst_286 : f32 to vector<12x1xf32>
    %585 = arith.divf %583, %584 : vector<12x1xf32>
    %586 = vector.broadcast %585 : vector<12x1xf32> to vector<12x32xf32>
    %587 = arith.subf %577, %586 : vector<12x32xf32>
    %588 = arith.mulf %587, %587 : vector<12x32xf32>
    %cst_287 = arith.constant dense<0.000000e+00> : vector<12xf32>
    %589 = vector.multi_reduction <add>, %588, %cst_287 [1] : vector<12x32xf32> to vector<12xf32>
    %590 = vector.shape_cast %589 : vector<12xf32> to vector<12x1xf32>
    %cst_288 = arith.constant 0.0322580636 : f32
    %591 = vector.broadcast %cst_288 : f32 to vector<12x1xf32>
    %592 = arith.mulf %590, %591 : vector<12x1xf32>
    %593 = vector.broadcast %579 : vector<1x32xf32> to vector<12x32xf32>
    %594 = arith.mulf %593, %587 : vector<12x32xf32>
    %595 = math.sqrt %592 : vector<12x1xf32>
    %cst_289 = arith.constant 9.99999997E-7 : f32
    %596 = vector.broadcast %cst_289 : f32 to vector<12x1xf32>
    %597 = arith.addf %595, %596 : vector<12x1xf32>
    %598 = vector.broadcast %597 : vector<12x1xf32> to vector<12x32xf32>
    %599 = arith.divf %594, %598 : vector<12x32xf32>
    %600 = vector.broadcast %581 : vector<1x32xf32> to vector<12x32xf32>
    %601 = arith.addf %599, %600 : vector<12x32xf32>
    %c1_290 = arith.constant 1 : index
    %c0_291 = arith.constant 0 : index
    %c0_292 = arith.constant 0 : index
    %602 = vector.load %arg27[%c1_290, %c0_291, %c0_292] : memref<2x32x96xf32, #tpu.memory_space<vmem>>, vector<1x32x96xf32>
    %603 = vector.shape_cast %602 : vector<1x32x96xf32> to vector<32x96xf32>
    %c1_293 = arith.constant 1 : index
    %c0_294 = arith.constant 0 : index
    %c0_295 = arith.constant 0 : index
    %604 = vector.load %arg28[%c1_293, %c0_294, %c0_295] : memref<2x1x96xf32, #tpu.memory_space<vmem>>, vector<1x1x96xf32>
    %605 = vector.shape_cast %604 : vector<1x1x96xf32> to vector<1x96xf32>
    %c1_296 = arith.constant 1 : index
    %c0_297 = arith.constant 0 : index
    %c0_298 = arith.constant 0 : index
    %606 = vector.load %arg29[%c1_296, %c0_297, %c0_298] : memref<2x32x32xf32, #tpu.memory_space<vmem>>, vector<1x32x32xf32>
    %607 = vector.shape_cast %606 : vector<1x32x32xf32> to vector<32x32xf32>
    %c1_299 = arith.constant 1 : index
    %c0_300 = arith.constant 0 : index
    %c0_301 = arith.constant 0 : index
    %608 = vector.load %arg30[%c1_299, %c0_300, %c0_301] : memref<2x1x32xf32, #tpu.memory_space<vmem>>, vector<1x1x32xf32>
    %609 = vector.shape_cast %608 : vector<1x1x32xf32> to vector<1x32xf32>
    %cst_302 = arith.constant dense<0.000000e+00> : vector<12x96xf32>
    %610 = tpu.matmul %601, %603, %cst_302 {dimension_numbers = #tpu.dot_dimension_numbers<[1], [0], [0], [1], [0, 0, 1, 1], [], []>} : vector<12x32xf32>, vector<32x96xf32>, vector<12x96xf32> -> vector<12x96xf32>
    %611 = vector.broadcast %605 : vector<1x96xf32> to vector<12x96xf32>
    %612 = arith.addf %610, %611 : vector<12x96xf32>
    %613 = vector.extract_strided_slice %612 {offsets = [0, 0], sizes = [12, 32], strides = [1, 1]} : vector<12x96xf32> to vector<12x32xf32>
    %614 = vector.extract_strided_slice %612 {offsets = [0, 32], sizes = [12, 32], strides = [1, 1]} : vector<12x96xf32> to vector<12x32xf32>
    %615 = vector.extract_strided_slice %612 {offsets = [0, 64], sizes = [12, 32], strides = [1, 1]} : vector<12x96xf32> to vector<12x32xf32>
    %616 = vector.extract_strided_slice %613 {offsets = [0, 0], sizes = [6, 32], strides = [1, 1]} : vector<12x32xf32> to vector<6x32xf32>
    %617 = vector.shape_cast %616 : vector<6x32xf32> to vector<6x4x8xf32>
    %618 = vector.extract_strided_slice %614 {offsets = [0, 0], sizes = [6, 32], strides = [1, 1]} : vector<12x32xf32> to vector<6x32xf32>
    %619 = vector.shape_cast %618 : vector<6x32xf32> to vector<6x4x8xf32>
    %620 = vector.extract_strided_slice %615 {offsets = [0, 0], sizes = [6, 32], strides = [1, 1]} : vector<12x32xf32> to vector<6x32xf32>
    %621 = vector.shape_cast %620 : vector<6x32xf32> to vector<6x4x8xf32>
    "tpu.trace_start"() <{level = 10 : i32, message = "qhd,khd->hqk"}> : () -> ()
    %cst_303 = arith.constant dense<0.000000e+00> : vector<4x6x6xf32>
    %622 = tpu.matmul %617, %619, %cst_303 {dimension_numbers = #tpu.dot_dimension_numbers<[2], [2], [0], [0], [0, 1, 0, 0, 1, 0], [1], [1]>} : vector<6x4x8xf32>, vector<6x4x8xf32>, vector<4x6x6xf32> -> vector<4x6x6xf32>
    "tpu.trace_stop"() : () -> ()
    %cst_304 = arith.constant 0.353553385 : f32
    %623 = vector.broadcast %cst_304 : f32 to vector<4x6x6xf32>
    %624 = arith.mulf %622, %623 : vector<4x6x6xf32>
    %cst_305 = arith.constant 9.99999971E-10 : f32
    %625 = vector.shape_cast %22 : vector<6x6xi1> to vector<1x6x6xi1>
    %626 = vector.broadcast %625 : vector<1x6x6xi1> to vector<4x6x6xi1>
    %627 = vector.broadcast %cst_305 : f32 to vector<4x6x6xf32>
    %628 = arith.select %626, %627, %624 : vector<4x6x6xi1>, vector<4x6x6xf32>
    %cst_306 = arith.constant dense<0xFF800000> : vector<4x6xf32>
    %629 = vector.multi_reduction <maximumf>, %628, %cst_306 [2] : vector<4x6x6xf32> to vector<4x6xf32>
    %630 = vector.shape_cast %629 : vector<4x6xf32> to vector<4x6x1xf32>
    %631 = vector.broadcast %630 : vector<4x6x1xf32> to vector<4x6x6xf32>
    %632 = arith.subf %628, %631 : vector<4x6x6xf32>
    %633 = math.exp %632 : vector<4x6x6xf32>
    %cst_307 = arith.constant dense<0.000000e+00> : vector<4x6xf32>
    %634 = vector.multi_reduction <add>, %633, %cst_307 [2] : vector<4x6x6xf32> to vector<4x6xf32>
    %635 = vector.shape_cast %634 : vector<4x6xf32> to vector<4x6x1xf32>
    %636 = vector.broadcast %635 : vector<4x6x1xf32> to vector<4x6x6xf32>
    %637 = arith.divf %633, %636 : vector<4x6x6xf32>
    "tpu.trace_start"() <{level = 10 : i32, message = "hqk,khd->qhd"}> : () -> ()
    %cst_308 = arith.constant dense<0.000000e+00> : vector<4x8x6xf32>
    %638 = tpu.matmul %621, %637, %cst_308 {dimension_numbers = #tpu.dot_dimension_numbers<[0], [2], [2], [1], [0, 1, 0, 2, 1, 1], [1], [0]>} : vector<6x4x8xf32>, vector<4x6x6xf32>, vector<4x8x6xf32> -> vector<4x8x6xf32>
    %639 = tpu.transpose %638, [2, 0, 1] : vector<4x8x6xf32> -> vector<6x4x8xf32>
    "tpu.trace_stop"() : () -> ()
    %640 = vector.shape_cast %639 : vector<6x4x8xf32> to vector<6x32xf32>
    %641 = vector.extract_strided_slice %613 {offsets = [6, 0], sizes = [6, 32], strides = [1, 1]} : vector<12x32xf32> to vector<6x32xf32>
    %642 = vector.shape_cast %641 : vector<6x32xf32> to vector<6x4x8xf32>
    %643 = vector.extract_strided_slice %614 {offsets = [6, 0], sizes = [6, 32], strides = [1, 1]} : vector<12x32xf32> to vector<6x32xf32>
    %644 = vector.shape_cast %643 : vector<6x32xf32> to vector<6x4x8xf32>
    %645 = vector.extract_strided_slice %615 {offsets = [6, 0], sizes = [6, 32], strides = [1, 1]} : vector<12x32xf32> to vector<6x32xf32>
    %646 = vector.shape_cast %645 : vector<6x32xf32> to vector<6x4x8xf32>
    "tpu.trace_start"() <{level = 10 : i32, message = "qhd,khd->hqk"}> : () -> ()
    %cst_309 = arith.constant dense<0.000000e+00> : vector<4x6x6xf32>
    %647 = tpu.matmul %642, %644, %cst_309 {dimension_numbers = #tpu.dot_dimension_numbers<[2], [2], [0], [0], [0, 1, 0, 0, 1, 0], [1], [1]>} : vector<6x4x8xf32>, vector<6x4x8xf32>, vector<4x6x6xf32> -> vector<4x6x6xf32>
    "tpu.trace_stop"() : () -> ()
    %cst_310 = arith.constant 0.353553385 : f32
    %648 = vector.broadcast %cst_310 : f32 to vector<4x6x6xf32>
    %649 = arith.mulf %647, %648 : vector<4x6x6xf32>
    %cst_311 = arith.constant 9.99999971E-10 : f32
    %650 = vector.shape_cast %36 : vector<6x6xi1> to vector<1x6x6xi1>
    %651 = vector.broadcast %650 : vector<1x6x6xi1> to vector<4x6x6xi1>
    %652 = vector.broadcast %cst_311 : f32 to vector<4x6x6xf32>
    %653 = arith.select %651, %652, %649 : vector<4x6x6xi1>, vector<4x6x6xf32>
    %cst_312 = arith.constant dense<0xFF800000> : vector<4x6xf32>
    %654 = vector.multi_reduction <maximumf>, %653, %cst_312 [2] : vector<4x6x6xf32> to vector<4x6xf32>
    %655 = vector.shape_cast %654 : vector<4x6xf32> to vector<4x6x1xf32>
    %656 = vector.broadcast %655 : vector<4x6x1xf32> to vector<4x6x6xf32>
    %657 = arith.subf %653, %656 : vector<4x6x6xf32>
    %658 = math.exp %657 : vector<4x6x6xf32>
    %cst_313 = arith.constant dense<0.000000e+00> : vector<4x6xf32>
    %659 = vector.multi_reduction <add>, %658, %cst_313 [2] : vector<4x6x6xf32> to vector<4x6xf32>
    %660 = vector.shape_cast %659 : vector<4x6xf32> to vector<4x6x1xf32>
    %661 = vector.broadcast %660 : vector<4x6x1xf32> to vector<4x6x6xf32>
    %662 = arith.divf %658, %661 : vector<4x6x6xf32>
    "tpu.trace_start"() <{level = 10 : i32, message = "hqk,khd->qhd"}> : () -> ()
    %cst_314 = arith.constant dense<0.000000e+00> : vector<4x8x6xf32>
    %663 = tpu.matmul %646, %662, %cst_314 {dimension_numbers = #tpu.dot_dimension_numbers<[0], [2], [2], [1], [0, 1, 0, 2, 1, 1], [1], [0]>} : vector<6x4x8xf32>, vector<4x6x6xf32>, vector<4x8x6xf32> -> vector<4x8x6xf32>
    %664 = tpu.transpose %663, [2, 0, 1] : vector<4x8x6xf32> -> vector<6x4x8xf32>
    "tpu.trace_stop"() : () -> ()
    %665 = vector.shape_cast %664 : vector<6x4x8xf32> to vector<6x32xf32>
    %666 = tpu.concatenate %640, %665 in 0 : vector<6x32xf32>, vector<6x32xf32> -> vector<12x32xf32>
    %cst_315 = arith.constant dense<0.000000e+00> : vector<12x32xf32>
    %667 = tpu.matmul %666, %607, %cst_315 {dimension_numbers = #tpu.dot_dimension_numbers<[1], [0], [0], [1], [0, 0, 1, 1], [], []>} : vector<12x32xf32>, vector<32x32xf32>, vector<12x32xf32> -> vector<12x32xf32>
    %668 = vector.broadcast %609 : vector<1x32xf32> to vector<12x32xf32>
    %669 = arith.addf %667, %668 : vector<12x32xf32>
    %670 = arith.addf %577, %669 : vector<12x32xf32>
    %c1_316 = arith.constant 1 : index
    %c0_317 = arith.constant 0 : index
    %c0_318 = arith.constant 0 : index
    %671 = vector.load %arg31[%c1_316, %c0_317, %c0_318] : memref<2x1x32xf32, #tpu.memory_space<vmem>>, vector<1x1x32xf32>
    %672 = vector.shape_cast %671 : vector<1x1x32xf32> to vector<1x32xf32>
    %c1_319 = arith.constant 1 : index
    %c0_320 = arith.constant 0 : index
    %c0_321 = arith.constant 0 : index
    %673 = vector.load %arg32[%c1_319, %c0_320, %c0_321] : memref<2x1x32xf32, #tpu.memory_space<vmem>>, vector<1x1x32xf32>
    %674 = vector.shape_cast %673 : vector<1x1x32xf32> to vector<1x32xf32>
    %cst_322 = arith.constant dense<0.000000e+00> : vector<12xf32>
    %675 = vector.multi_reduction <add>, %670, %cst_322 [1] : vector<12x32xf32> to vector<12xf32>
    %676 = vector.shape_cast %675 : vector<12xf32> to vector<12x1xf32>
    %cst_323 = arith.constant 3.200000e+01 : f32
    %677 = vector.broadcast %cst_323 : f32 to vector<12x1xf32>
    %678 = arith.divf %676, %677 : vector<12x1xf32>
    %679 = vector.broadcast %678 : vector<12x1xf32> to vector<12x32xf32>
    %680 = arith.subf %670, %679 : vector<12x32xf32>
    %681 = arith.mulf %680, %680 : vector<12x32xf32>
    %cst_324 = arith.constant dense<0.000000e+00> : vector<12xf32>
    %682 = vector.multi_reduction <add>, %681, %cst_324 [1] : vector<12x32xf32> to vector<12xf32>
    %683 = vector.shape_cast %682 : vector<12xf32> to vector<12x1xf32>
    %cst_325 = arith.constant 0.0322580636 : f32
    %684 = vector.broadcast %cst_325 : f32 to vector<12x1xf32>
    %685 = arith.mulf %683, %684 : vector<12x1xf32>
    %686 = vector.broadcast %672 : vector<1x32xf32> to vector<12x32xf32>
    %687 = arith.mulf %686, %680 : vector<12x32xf32>
    %688 = math.sqrt %685 : vector<12x1xf32>
    %cst_326 = arith.constant 9.99999997E-7 : f32
    %689 = vector.broadcast %cst_326 : f32 to vector<12x1xf32>
    %690 = arith.addf %688, %689 : vector<12x1xf32>
    %691 = vector.broadcast %690 : vector<12x1xf32> to vector<12x32xf32>
    %692 = arith.divf %687, %691 : vector<12x32xf32>
    %693 = vector.broadcast %674 : vector<1x32xf32> to vector<12x32xf32>
    %694 = arith.addf %692, %693 : vector<12x32xf32>
    %c1_327 = arith.constant 1 : index
    %c0_328 = arith.constant 0 : index
    %c0_329 = arith.constant 0 : index
    %695 = vector.load %arg33[%c1_327, %c0_328, %c0_329] : memref<2x32x32xf32, #tpu.memory_space<vmem>>, vector<1x32x32xf32>
    %696 = vector.shape_cast %695 : vector<1x32x32xf32> to vector<32x32xf32>
    %c1_330 = arith.constant 1 : index
    %c0_331 = arith.constant 0 : index
    %c0_332 = arith.constant 0 : index
    %697 = vector.load %arg34[%c1_330, %c0_331, %c0_332] : memref<2x1x32xf32, #tpu.memory_space<vmem>>, vector<1x1x32xf32>
    %698 = vector.shape_cast %697 : vector<1x1x32xf32> to vector<1x32xf32>
    %cst_333 = arith.constant dense<0.000000e+00> : vector<12x32xf32>
    %699 = tpu.matmul %694, %696, %cst_333 {dimension_numbers = #tpu.dot_dimension_numbers<[1], [0], [0], [1], [0, 0, 1, 1], [], []>} : vector<12x32xf32>, vector<32x32xf32>, vector<12x32xf32> -> vector<12x32xf32>
    %700 = vector.broadcast %698 : vector<1x32xf32> to vector<12x32xf32>
    %701 = arith.addf %699, %700 : vector<12x32xf32>
    %c1_334 = arith.constant 1 : index
    %c0_335 = arith.constant 0 : index
    %c0_336 = arith.constant 0 : index
    %702 = vector.load %arg35[%c1_334, %c0_335, %c0_336] : memref<2x32x64xf32, #tpu.memory_space<vmem>>, vector<1x32x64xf32>
    %703 = vector.shape_cast %702 : vector<1x32x64xf32> to vector<32x64xf32>
    %c1_337 = arith.constant 1 : index
    %c0_338 = arith.constant 0 : index
    %c0_339 = arith.constant 0 : index
    %704 = vector.load %arg36[%c1_337, %c0_338, %c0_339] : memref<2x1x64xf32, #tpu.memory_space<vmem>>, vector<1x1x64xf32>
    %705 = vector.shape_cast %704 : vector<1x1x64xf32> to vector<1x64xf32>
    %cst_340 = arith.constant dense<0.000000e+00> : vector<16x64xf32>
    %706 = tpu.matmul %335, %703, %cst_340 {dimension_numbers = #tpu.dot_dimension_numbers<[1], [0], [0], [1], [0, 0, 1, 1], [], []>} : vector<16x32xf32>, vector<32x64xf32>, vector<16x64xf32> -> vector<16x64xf32>
    %707 = vector.broadcast %705 : vector<1x64xf32> to vector<16x64xf32>
    %708 = arith.addf %706, %707 : vector<16x64xf32>
    %709 = vector.extract_strided_slice %708 {offsets = [0, 0], sizes = [16, 32], strides = [1, 1]} : vector<16x64xf32> to vector<16x32xf32>
    %710 = vector.extract_strided_slice %708 {offsets = [0, 32], sizes = [16, 32], strides = [1, 1]} : vector<16x64xf32> to vector<16x32xf32>
    %c1_341 = arith.constant 1 : index
    %c0_342 = arith.constant 0 : index
    %c0_343 = arith.constant 0 : index
    %711 = vector.load %arg37[%c1_341, %c0_342, %c0_343] : memref<2x32x32xf32, #tpu.memory_space<vmem>>, vector<1x32x32xf32>
    %712 = vector.shape_cast %711 : vector<1x32x32xf32> to vector<32x32xf32>
    %c1_344 = arith.constant 1 : index
    %c0_345 = arith.constant 0 : index
    %c0_346 = arith.constant 0 : index
    %713 = vector.load %arg38[%c1_344, %c0_345, %c0_346] : memref<2x1x32xf32, #tpu.memory_space<vmem>>, vector<1x1x32xf32>
    %714 = vector.shape_cast %713 : vector<1x1x32xf32> to vector<1x32xf32>
    %715 = vector.extract_strided_slice %701 {offsets = [0, 0], sizes = [6, 32], strides = [1, 1]} : vector<12x32xf32> to vector<6x32xf32>
    %716 = vector.shape_cast %715 : vector<6x32xf32> to vector<6x4x8xf32>
    %717 = vector.extract_strided_slice %709 {offsets = [0, 0], sizes = [8, 32], strides = [1, 1]} : vector<16x32xf32> to vector<8x32xf32>
    %718 = vector.shape_cast %717 : vector<8x32xf32> to vector<8x4x8xf32>
    %719 = vector.extract_strided_slice %710 {offsets = [0, 0], sizes = [8, 32], strides = [1, 1]} : vector<16x32xf32> to vector<8x32xf32>
    %720 = vector.shape_cast %719 : vector<8x32xf32> to vector<8x4x8xf32>
    "tpu.trace_start"() <{level = 10 : i32, message = "qhd,khd->hqk"}> : () -> ()
    %cst_347 = arith.constant dense<0.000000e+00> : vector<4x6x8xf32>
    %721 = tpu.matmul %716, %718, %cst_347 {dimension_numbers = #tpu.dot_dimension_numbers<[2], [2], [0], [0], [0, 1, 0, 0, 1, 0], [1], [1]>} : vector<6x4x8xf32>, vector<8x4x8xf32>, vector<4x6x8xf32> -> vector<4x6x8xf32>
    "tpu.trace_stop"() : () -> ()
    %cst_348 = arith.constant 0.353553385 : f32
    %722 = vector.broadcast %cst_348 : f32 to vector<4x6x8xf32>
    %723 = arith.mulf %721, %722 : vector<4x6x8xf32>
    %cst_349 = arith.constant 9.99999971E-10 : f32
    %724 = vector.shape_cast %18 : vector<6x8xi1> to vector<1x6x8xi1>
    %725 = vector.broadcast %724 : vector<1x6x8xi1> to vector<4x6x8xi1>
    %726 = vector.broadcast %cst_349 : f32 to vector<4x6x8xf32>
    %727 = arith.select %725, %726, %723 : vector<4x6x8xi1>, vector<4x6x8xf32>
    %cst_350 = arith.constant dense<0xFF800000> : vector<4x6xf32>
    %728 = vector.multi_reduction <maximumf>, %727, %cst_350 [2] : vector<4x6x8xf32> to vector<4x6xf32>
    %729 = vector.shape_cast %728 : vector<4x6xf32> to vector<4x6x1xf32>
    %730 = vector.broadcast %729 : vector<4x6x1xf32> to vector<4x6x8xf32>
    %731 = arith.subf %727, %730 : vector<4x6x8xf32>
    %732 = math.exp %731 : vector<4x6x8xf32>
    %cst_351 = arith.constant dense<0.000000e+00> : vector<4x6xf32>
    %733 = vector.multi_reduction <add>, %732, %cst_351 [2] : vector<4x6x8xf32> to vector<4x6xf32>
    %734 = vector.shape_cast %733 : vector<4x6xf32> to vector<4x6x1xf32>
    %735 = vector.broadcast %734 : vector<4x6x1xf32> to vector<4x6x8xf32>
    %736 = arith.divf %732, %735 : vector<4x6x8xf32>
    "tpu.trace_start"() <{level = 10 : i32, message = "hqk,khd->qhd"}> : () -> ()
    %cst_352 = arith.constant dense<0.000000e+00> : vector<4x8x6xf32>
    %737 = tpu.matmul %720, %736, %cst_352 {dimension_numbers = #tpu.dot_dimension_numbers<[0], [2], [2], [1], [0, 1, 0, 2, 1, 1], [1], [0]>} : vector<8x4x8xf32>, vector<4x6x8xf32>, vector<4x8x6xf32> -> vector<4x8x6xf32>
    %738 = tpu.transpose %737, [2, 0, 1] : vector<4x8x6xf32> -> vector<6x4x8xf32>
    "tpu.trace_stop"() : () -> ()
    %739 = vector.shape_cast %738 : vector<6x4x8xf32> to vector<6x32xf32>
    %740 = vector.extract_strided_slice %701 {offsets = [6, 0], sizes = [6, 32], strides = [1, 1]} : vector<12x32xf32> to vector<6x32xf32>
    %741 = vector.shape_cast %740 : vector<6x32xf32> to vector<6x4x8xf32>
    %742 = vector.extract_strided_slice %709 {offsets = [8, 0], sizes = [8, 32], strides = [1, 1]} : vector<16x32xf32> to vector<8x32xf32>
    %743 = vector.shape_cast %742 : vector<8x32xf32> to vector<8x4x8xf32>
    %744 = vector.extract_strided_slice %710 {offsets = [8, 0], sizes = [8, 32], strides = [1, 1]} : vector<16x32xf32> to vector<8x32xf32>
    %745 = vector.shape_cast %744 : vector<8x32xf32> to vector<8x4x8xf32>
    "tpu.trace_start"() <{level = 10 : i32, message = "qhd,khd->hqk"}> : () -> ()
    %cst_353 = arith.constant dense<0.000000e+00> : vector<4x6x8xf32>
    %746 = tpu.matmul %741, %743, %cst_353 {dimension_numbers = #tpu.dot_dimension_numbers<[2], [2], [0], [0], [0, 1, 0, 0, 1, 0], [1], [1]>} : vector<6x4x8xf32>, vector<8x4x8xf32>, vector<4x6x8xf32> -> vector<4x6x8xf32>
    "tpu.trace_stop"() : () -> ()
    %cst_354 = arith.constant 0.353553385 : f32
    %747 = vector.broadcast %cst_354 : f32 to vector<4x6x8xf32>
    %748 = arith.mulf %746, %747 : vector<4x6x8xf32>
    %cst_355 = arith.constant 9.99999971E-10 : f32
    %749 = vector.shape_cast %32 : vector<6x8xi1> to vector<1x6x8xi1>
    %750 = vector.broadcast %749 : vector<1x6x8xi1> to vector<4x6x8xi1>
    %751 = vector.broadcast %cst_355 : f32 to vector<4x6x8xf32>
    %752 = arith.select %750, %751, %748 : vector<4x6x8xi1>, vector<4x6x8xf32>
    %cst_356 = arith.constant dense<0xFF800000> : vector<4x6xf32>
    %753 = vector.multi_reduction <maximumf>, %752, %cst_356 [2] : vector<4x6x8xf32> to vector<4x6xf32>
    %754 = vector.shape_cast %753 : vector<4x6xf32> to vector<4x6x1xf32>
    %755 = vector.broadcast %754 : vector<4x6x1xf32> to vector<4x6x8xf32>
    %756 = arith.subf %752, %755 : vector<4x6x8xf32>
    %757 = math.exp %756 : vector<4x6x8xf32>
    %cst_357 = arith.constant dense<0.000000e+00> : vector<4x6xf32>
    %758 = vector.multi_reduction <add>, %757, %cst_357 [2] : vector<4x6x8xf32> to vector<4x6xf32>
    %759 = vector.shape_cast %758 : vector<4x6xf32> to vector<4x6x1xf32>
    %760 = vector.broadcast %759 : vector<4x6x1xf32> to vector<4x6x8xf32>
    %761 = arith.divf %757, %760 : vector<4x6x8xf32>
    "tpu.trace_start"() <{level = 10 : i32, message = "hqk,khd->qhd"}> : () -> ()
    %cst_358 = arith.constant dense<0.000000e+00> : vector<4x8x6xf32>
    %762 = tpu.matmul %745, %761, %cst_358 {dimension_numbers = #tpu.dot_dimension_numbers<[0], [2], [2], [1], [0, 1, 0, 2, 1, 1], [1], [0]>} : vector<8x4x8xf32>, vector<4x6x8xf32>, vector<4x8x6xf32> -> vector<4x8x6xf32>
    %763 = tpu.transpose %762, [2, 0, 1] : vector<4x8x6xf32> -> vector<6x4x8xf32>
    "tpu.trace_stop"() : () -> ()
    %764 = vector.shape_cast %763 : vector<6x4x8xf32> to vector<6x32xf32>
    %765 = tpu.concatenate %739, %764 in 0 : vector<6x32xf32>, vector<6x32xf32> -> vector<12x32xf32>
    %cst_359 = arith.constant dense<0.000000e+00> : vector<12x32xf32>
    %766 = tpu.matmul %765, %712, %cst_359 {dimension_numbers = #tpu.dot_dimension_numbers<[1], [0], [0], [1], [0, 0, 1, 1], [], []>} : vector<12x32xf32>, vector<32x32xf32>, vector<12x32xf32> -> vector<12x32xf32>
    %767 = vector.broadcast %714 : vector<1x32xf32> to vector<12x32xf32>
    %768 = arith.addf %766, %767 : vector<12x32xf32>
    %769 = arith.addf %670, %768 : vector<12x32xf32>
    %c1_360 = arith.constant 1 : index
    %c0_361 = arith.constant 0 : index
    %c0_362 = arith.constant 0 : index
    %770 = vector.load %arg39[%c1_360, %c0_361, %c0_362] : memref<2x1x32xf32, #tpu.memory_space<vmem>>, vector<1x1x32xf32>
    %771 = vector.shape_cast %770 : vector<1x1x32xf32> to vector<1x32xf32>
    %c1_363 = arith.constant 1 : index
    %c0_364 = arith.constant 0 : index
    %c0_365 = arith.constant 0 : index
    %772 = vector.load %arg40[%c1_363, %c0_364, %c0_365] : memref<2x1x32xf32, #tpu.memory_space<vmem>>, vector<1x1x32xf32>
    %773 = vector.shape_cast %772 : vector<1x1x32xf32> to vector<1x32xf32>
    %cst_366 = arith.constant dense<0.000000e+00> : vector<12xf32>
    %774 = vector.multi_reduction <add>, %769, %cst_366 [1] : vector<12x32xf32> to vector<12xf32>
    %775 = vector.shape_cast %774 : vector<12xf32> to vector<12x1xf32>
    %cst_367 = arith.constant 3.200000e+01 : f32
    %776 = vector.broadcast %cst_367 : f32 to vector<12x1xf32>
    %777 = arith.divf %775, %776 : vector<12x1xf32>
    %778 = vector.broadcast %777 : vector<12x1xf32> to vector<12x32xf32>
    %779 = arith.subf %769, %778 : vector<12x32xf32>
    %780 = arith.mulf %779, %779 : vector<12x32xf32>
    %cst_368 = arith.constant dense<0.000000e+00> : vector<12xf32>
    %781 = vector.multi_reduction <add>, %780, %cst_368 [1] : vector<12x32xf32> to vector<12xf32>
    %782 = vector.shape_cast %781 : vector<12xf32> to vector<12x1xf32>
    %cst_369 = arith.constant 0.0322580636 : f32
    %783 = vector.broadcast %cst_369 : f32 to vector<12x1xf32>
    %784 = arith.mulf %782, %783 : vector<12x1xf32>
    %785 = vector.broadcast %771 : vector<1x32xf32> to vector<12x32xf32>
    %786 = arith.mulf %785, %779 : vector<12x32xf32>
    %787 = math.sqrt %784 : vector<12x1xf32>
    %cst_370 = arith.constant 9.99999997E-7 : f32
    %788 = vector.broadcast %cst_370 : f32 to vector<12x1xf32>
    %789 = arith.addf %787, %788 : vector<12x1xf32>
    %790 = vector.broadcast %789 : vector<12x1xf32> to vector<12x32xf32>
    %791 = arith.divf %786, %790 : vector<12x32xf32>
    %792 = vector.broadcast %773 : vector<1x32xf32> to vector<12x32xf32>
    %793 = arith.addf %791, %792 : vector<12x32xf32>
    %c1_371 = arith.constant 1 : index
    %c0_372 = arith.constant 0 : index
    %c0_373 = arith.constant 0 : index
    %794 = vector.load %arg41[%c1_371, %c0_372, %c0_373] : memref<2x32x64xf32, #tpu.memory_space<vmem>>, vector<1x32x64xf32>
    %795 = vector.shape_cast %794 : vector<1x32x64xf32> to vector<32x64xf32>
    %c1_374 = arith.constant 1 : index
    %c0_375 = arith.constant 0 : index
    %c0_376 = arith.constant 0 : index
    %796 = vector.load %arg42[%c1_374, %c0_375, %c0_376] : memref<2x1x64xf32, #tpu.memory_space<vmem>>, vector<1x1x64xf32>
    %797 = vector.shape_cast %796 : vector<1x1x64xf32> to vector<1x64xf32>
    %c1_377 = arith.constant 1 : index
    %c0_378 = arith.constant 0 : index
    %c0_379 = arith.constant 0 : index
    %798 = vector.load %arg43[%c1_377, %c0_378, %c0_379] : memref<2x64x32xf32, #tpu.memory_space<vmem>>, vector<1x64x32xf32>
    %799 = vector.shape_cast %798 : vector<1x64x32xf32> to vector<64x32xf32>
    %c1_380 = arith.constant 1 : index
    %c0_381 = arith.constant 0 : index
    %c0_382 = arith.constant 0 : index
    %800 = vector.load %arg44[%c1_380, %c0_381, %c0_382] : memref<2x1x32xf32, #tpu.memory_space<vmem>>, vector<1x1x32xf32>
    %801 = vector.shape_cast %800 : vector<1x1x32xf32> to vector<1x32xf32>
    %cst_383 = arith.constant dense<0.000000e+00> : vector<12x64xf32>
    %802 = tpu.matmul %793, %795, %cst_383 {dimension_numbers = #tpu.dot_dimension_numbers<[1], [0], [0], [1], [0, 0, 1, 1], [], []>} : vector<12x32xf32>, vector<32x64xf32>, vector<12x64xf32> -> vector<12x64xf32>
    %803 = vector.broadcast %797 : vector<1x64xf32> to vector<12x64xf32>
    %804 = arith.addf %802, %803 : vector<12x64xf32>
    %cst_384 = arith.constant 0.000000e+00 : f32
    %805 = vector.broadcast %cst_384 : f32 to vector<12x64xf32>
    %806 = arith.maximumf %804, %805 : vector<12x64xf32>
    %cst_385 = arith.constant dense<0.000000e+00> : vector<12x32xf32>
    %807 = tpu.matmul %806, %799, %cst_385 {dimension_numbers = #tpu.dot_dimension_numbers<[1], [0], [0], [1], [0, 0, 1, 1], [], []>} : vector<12x64xf32>, vector<64x32xf32>, vector<12x32xf32> -> vector<12x32xf32>
    %808 = vector.broadcast %801 : vector<1x32xf32> to vector<12x32xf32>
    %809 = arith.addf %807, %808 : vector<12x32xf32>
    %810 = arith.addf %769, %809 : vector<12x32xf32>
    %c0_386 = arith.constant 0 : index
    %c0_387 = arith.constant 0 : index
    %811 = vector.load %arg45[%c0_386, %c0_387] : memref<1x32xf32, #tpu.memory_space<vmem>>, vector<1x32xf32>
    %c0_388 = arith.constant 0 : index
    %c0_389 = arith.constant 0 : index
    %812 = vector.load %arg46[%c0_388, %c0_389] : memref<1x32xf32, #tpu.memory_space<vmem>>, vector<1x32xf32>
    %cst_390 = arith.constant dense<0.000000e+00> : vector<12xf32>
    %813 = vector.multi_reduction <add>, %810, %cst_390 [1] : vector<12x32xf32> to vector<12xf32>
    %814 = vector.shape_cast %813 : vector<12xf32> to vector<12x1xf32>
    %cst_391 = arith.constant 3.200000e+01 : f32
    %815 = vector.broadcast %cst_391 : f32 to vector<12x1xf32>
    %816 = arith.divf %814, %815 : vector<12x1xf32>
    %817 = vector.broadcast %816 : vector<12x1xf32> to vector<12x32xf32>
    %818 = arith.subf %810, %817 : vector<12x32xf32>
    %819 = arith.mulf %818, %818 : vector<12x32xf32>
    %cst_392 = arith.constant dense<0.000000e+00> : vector<12xf32>
    %820 = vector.multi_reduction <add>, %819, %cst_392 [1] : vector<12x32xf32> to vector<12xf32>
    %821 = vector.shape_cast %820 : vector<12xf32> to vector<12x1xf32>
    %cst_393 = arith.constant 0.0322580636 : f32
    %822 = vector.broadcast %cst_393 : f32 to vector<12x1xf32>
    %823 = arith.mulf %821, %822 : vector<12x1xf32>
    %824 = vector.broadcast %811 : vector<1x32xf32> to vector<12x32xf32>
    %825 = arith.mulf %824, %818 : vector<12x32xf32>
    %826 = math.sqrt %823 : vector<12x1xf32>
    %cst_394 = arith.constant 9.99999997E-7 : f32
    %827 = vector.broadcast %cst_394 : f32 to vector<12x1xf32>
    %828 = arith.addf %826, %827 : vector<12x1xf32>
    %829 = vector.broadcast %828 : vector<12x1xf32> to vector<12x32xf32>
    %830 = arith.divf %825, %829 : vector<12x32xf32>
    %831 = vector.broadcast %812 : vector<1x32xf32> to vector<12x32xf32>
    %832 = arith.addf %830, %831 : vector<12x32xf32>
    %c0_395 = arith.constant 0 : index
    %c0_396 = arith.constant 0 : index
    %833 = vector.load %arg47[%c0_395, %c0_396] : memref<32x8xf32, #tpu.memory_space<vmem>>, vector<32x8xf32>
    %c0_397 = arith.constant 0 : index
    %c0_398 = arith.constant 0 : index
    %834 = vector.load %arg48[%c0_397, %c0_398] : memref<1x8xf32, #tpu.memory_space<vmem>>, vector<1x8xf32>
    %cst_399 = arith.constant dense<0.000000e+00> : vector<12x8xf32>
    %835 = tpu.matmul %832, %833, %cst_399 {dimension_numbers = #tpu.dot_dimension_numbers<[1], [0], [0], [1], [0, 0, 1, 1], [], []>} : vector<12x32xf32>, vector<32x8xf32>, vector<12x8xf32> -> vector<12x8xf32>
    %836 = vector.broadcast %834 : vector<1x8xf32> to vector<12x8xf32>
    %837 = arith.addf %835, %836 : vector<12x8xf32>
    %838 = vector.shape_cast %837 : vector<12x8xf32> to vector<2x6x8xf32>
    %839 = vector.broadcast %2 : vector<2x1x8xf32> to vector<2x6x8xf32>
    %840 = arith.addf %838, %839 : vector<2x6x8xf32>
    %841 = vector.shape_cast %840 : vector<2x6x8xf32> to vector<2x48xf32>
    %c0_400 = arith.constant 0 : index
    %c0_401 = arith.constant 0 : index
    %c0_402 = arith.constant 0 : index
    %842 = vector.load %arg49[%c0_400, %c0_401, %c0_402] : memref<1x2x48xf32, #tpu.memory_space<vmem>>, vector<1x2x48xf32>
    %843 = vector.shape_cast %842 : vector<1x2x48xf32> to vector<2x48xf32>
    %844 = vector.shape_cast %841 : vector<2x48xf32> to vector<1x2x48xf32>
    tpu.vector_store %arg49[%c0_400, %c0_401, %c0_402], %844 {strides = array<i32>} : memref<1x2x48xf32, #tpu.memory_space<vmem>>, vector<1x2x48xf32>,
    return
  }
  func.func @transform_0(%arg0: i32) -> (i32, i32, i32) {
    %c0_i32 = arith.constant 0 : i32
    %c0_i32_0 = arith.constant 0 : i32
    %c0_i32_1 = arith.constant 0 : i32
    return %arg0, %c0_i32, %c0_i32_0 : i32, i32, i32
  }
  func.func @transform_1(%arg0: i32) -> (i32, i32, i32) {
    %c0_i32 = arith.constant 0 : i32
    %c0_i32_0 = arith.constant 0 : i32
    %c0_i32_1 = arith.constant 0 : i32
    return %arg0, %c0_i32, %c0_i32_0 : i32, i32, i32
  }
  func.func @transform_2(%arg0: i32) -> (i32, i32, i32) {
    %c0_i32 = arith.constant 0 : i32
    %c0_i32_0 = arith.constant 0 : i32
    %c0_i32_1 = arith.constant 0 : i32
    return %arg0, %c0_i32, %c0_i32_0 : i32, i32, i32
  }
  func.func @transform_3(%arg0: i32) -> (i32, i32, i32) {
    %c0_i32 = arith.constant 0 : i32
    %c0_i32_0 = arith.constant 0 : i32
    %c0_i32_1 = arith.constant 0 : i32
    return %arg0, %c0_i32, %c0_i32_0 : i32, i32, i32
  }
  func.func @transform_4(%arg0: i32) -> (i32, i32) {
    %c0_i32 = arith.constant 0 : i32
    %c0_i32_0 = arith.constant 0 : i32
    %c0_i32_1 = arith.constant 0 : i32
    return %c0_i32, %c0_i32_0 : i32, i32
  }
  func.func @transform_5(%arg0: i32) -> (i32, i32) {
    %c0_i32 = arith.constant 0 : i32
    %c0_i32_0 = arith.constant 0 : i32
    %c0_i32_1 = arith.constant 0 : i32
    return %c0_i32, %c0_i32_0 : i32, i32
  }
  func.func @transform_6(%arg0: i32) -> (i32, i32) {
    %c0_i32 = arith.constant 0 : i32
    %c0_i32_0 = arith.constant 0 : i32
    %c0_i32_1 = arith.constant 0 : i32
    return %c0_i32, %c0_i32_0 : i32, i32
  }
  func.func @transform_7(%arg0: i32) -> (i32, i32) {
    %c0_i32 = arith.constant 0 : i32
    %c0_i32_0 = arith.constant 0 : i32
    %c0_i32_1 = arith.constant 0 : i32
    return %c0_i32, %c0_i32_0 : i32, i32
  }
  func.func @transform_8(%arg0: i32) -> (i32, i32) {
    %c0_i32 = arith.constant 0 : i32
    %c0_i32_0 = arith.constant 0 : i32
    %c0_i32_1 = arith.constant 0 : i32
    return %c0_i32, %c0_i32_0 : i32, i32
  }
  func.func @transform_9(%arg0: i32) -> (i32, i32) {
    %c0_i32 = arith.constant 0 : i32
    %c0_i32_0 = arith.constant 0 : i32
    %c0_i32_1 = arith.constant 0 : i32
    return %c0_i32, %c0_i32_0 : i32, i32
  }
  func.func @transform_10(%arg0: i32) -> (i32, i32, i32) {
    %c0_i32 = arith.constant 0 : i32
    %c0_i32_0 = arith.constant 0 : i32
    %c0_i32_1 = arith.constant 0 : i32
    %c0_i32_2 = arith.constant 0 : i32
    return %c0_i32, %c0_i32_0, %c0_i32_1 : i32, i32, i32
  }
  func.func @transform_11(%arg0: i32) -> (i32, i32, i32) {
    %c0_i32 = arith.constant 0 : i32
    %c0_i32_0 = arith.constant 0 : i32
    %c0_i32_1 = arith.constant 0 : i32
    %c0_i32_2 = arith.constant 0 : i32
    return %c0_i32, %c0_i32_0, %c0_i32_1 : i32, i32, i32
  }
  func.func @transform_12(%arg0: i32) -> (i32, i32, i32) {
    %c0_i32 = arith.constant 0 : i32
    %c0_i32_0 = arith.constant 0 : i32
    %c0_i32_1 = arith.constant 0 : i32
    %c0_i32_2 = arith.constant 0 : i32
    return %c0_i32, %c0_i32_0, %c0_i32_1 : i32, i32, i32
  }
  func.func @transform_13(%arg0: i32) -> (i32, i32, i32) {
    %c0_i32 = arith.constant 0 : i32
    %c0_i32_0 = arith.constant 0 : i32
    %c0_i32_1 = arith.constant 0 : i32
    %c0_i32_2 = arith.constant 0 : i32
    return %c0_i32, %c0_i32_0, %c0_i32_1 : i32, i32, i32
  }
  func.func @transform_14(%arg0: i32) -> (i32, i32, i32) {
    %c0_i32 = arith.constant 0 : i32
    %c0_i32_0 = arith.constant 0 : i32
    %c0_i32_1 = arith.constant 0 : i32
    %c0_i32_2 = arith.constant 0 : i32
    return %c0_i32, %c0_i32_0, %c0_i32_1 : i32, i32, i32
  }
  func.func @transform_15(%arg0: i32) -> (i32, i32, i32) {
    %c0_i32 = arith.constant 0 : i32
    %c0_i32_0 = arith.constant 0 : i32
    %c0_i32_1 = arith.constant 0 : i32
    %c0_i32_2 = arith.constant 0 : i32
    return %c0_i32, %c0_i32_0, %c0_i32_1 : i32, i32, i32
  }
  func.func @transform_16(%arg0: i32) -> (i32, i32, i32) {
    %c0_i32 = arith.constant 0 : i32
    %c0_i32_0 = arith.constant 0 : i32
    %c0_i32_1 = arith.constant 0 : i32
    %c0_i32_2 = arith.constant 0 : i32
    return %c0_i32, %c0_i32_0, %c0_i32_1 : i32, i32, i32
  }
  func.func @transform_17(%arg0: i32) -> (i32, i32, i32) {
    %c0_i32 = arith.constant 0 : i32
    %c0_i32_0 = arith.constant 0 : i32
    %c0_i32_1 = arith.constant 0 : i32
    %c0_i32_2 = arith.constant 0 : i32
    return %c0_i32, %c0_i32_0, %c0_i32_1 : i32, i32, i32
  }
  func.func @transform_18(%arg0: i32) -> (i32, i32, i32) {
    %c0_i32 = arith.constant 0 : i32
    %c0_i32_0 = arith.constant 0 : i32
    %c0_i32_1 = arith.constant 0 : i32
    %c0_i32_2 = arith.constant 0 : i32
    return %c0_i32, %c0_i32_0, %c0_i32_1 : i32, i32, i32
  }
  func.func @transform_19(%arg0: i32) -> (i32, i32, i32) {
    %c0_i32 = arith.constant 0 : i32
    %c0_i32_0 = arith.constant 0 : i32
    %c0_i32_1 = arith.constant 0 : i32
    %c0_i32_2 = arith.constant 0 : i32
    return %c0_i32, %c0_i32_0, %c0_i32_1 : i32, i32, i32
  }
  func.func @transform_20(%arg0: i32) -> (i32, i32, i32) {
    %c0_i32 = arith.constant 0 : i32
    %c0_i32_0 = arith.constant 0 : i32
    %c0_i32_1 = arith.constant 0 : i32
    %c0_i32_2 = arith.constant 0 : i32
    return %c0_i32, %c0_i32_0, %c0_i32_1 : i32, i32, i32
  }
  func.func @transform_21(%arg0: i32) -> (i32, i32, i32) {
    %c0_i32 = arith.constant 0 : i32
    %c0_i32_0 = arith.constant 0 : i32
    %c0_i32_1 = arith.constant 0 : i32
    %c0_i32_2 = arith.constant 0 : i32
    return %c0_i32, %c0_i32_0, %c0_i32_1 : i32, i32, i32
  }
  func.func @transform_22(%arg0: i32) -> (i32, i32) {
    %c0_i32 = arith.constant 0 : i32
    %c0_i32_0 = arith.constant 0 : i32
    %c0_i32_1 = arith.constant 0 : i32
    return %c0_i32, %c0_i32_0 : i32, i32
  }
  func.func @transform_23(%arg0: i32) -> (i32, i32) {
    %c0_i32 = arith.constant 0 : i32
    %c0_i32_0 = arith.constant 0 : i32
    %c0_i32_1 = arith.constant 0 : i32
    return %c0_i32, %c0_i32_0 : i32, i32
  }
  func.func @transform_24(%arg0: i32) -> (i32, i32, i32) {
    %c0_i32 = arith.constant 0 : i32
    %c0_i32_0 = arith.constant 0 : i32
    %c0_i32_1 = arith.constant 0 : i32
    %c0_i32_2 = arith.constant 0 : i32
    return %c0_i32, %c0_i32_0, %c0_i32_1 : i32, i32, i32
  }
  func.func @transform_25(%arg0: i32) -> (i32, i32, i32) {
    %c0_i32 = arith.constant 0 : i32
    %c0_i32_0 = arith.constant 0 : i32
    %c0_i32_1 = arith.constant 0 : i32
    %c0_i32_2 = arith.constant 0 : i32
    return %c0_i32, %c0_i32_0, %c0_i32_1 : i32, i32, i32
  }
  func.func @transform_26(%arg0: i32) -> (i32, i32, i32) {
    %c0_i32 = arith.constant 0 : i32
    %c0_i32_0 = arith.constant 0 : i32
    %c0_i32_1 = arith.constant 0 : i32
    %c0_i32_2 = arith.constant 0 : i32
    return %c0_i32, %c0_i32_0, %c0_i32_1 : i32, i32, i32
  }
  func.func @transform_27(%arg0: i32) -> (i32, i32, i32) {
    %c0_i32 = arith.constant 0 : i32
    %c0_i32_0 = arith.constant 0 : i32
    %c0_i32_1 = arith.constant 0 : i32
    %c0_i32_2 = arith.constant 0 : i32
    return %c0_i32, %c0_i32_0, %c0_i32_1 : i32, i32, i32
  }
  func.func @transform_28(%arg0: i32) -> (i32, i32, i32) {
    %c0_i32 = arith.constant 0 : i32
    %c0_i32_0 = arith.constant 0 : i32
    %c0_i32_1 = arith.constant 0 : i32
    %c0_i32_2 = arith.constant 0 : i32
    return %c0_i32, %c0_i32_0, %c0_i32_1 : i32, i32, i32
  }
  func.func @transform_29(%arg0: i32) -> (i32, i32, i32) {
    %c0_i32 = arith.constant 0 : i32
    %c0_i32_0 = arith.constant 0 : i32
    %c0_i32_1 = arith.constant 0 : i32
    %c0_i32_2 = arith.constant 0 : i32
    return %c0_i32, %c0_i32_0, %c0_i32_1 : i32, i32, i32
  }
  func.func @transform_30(%arg0: i32) -> (i32, i32, i32) {
    %c0_i32 = arith.constant 0 : i32
    %c0_i32_0 = arith.constant 0 : i32
    %c0_i32_1 = arith.constant 0 : i32
    %c0_i32_2 = arith.constant 0 : i32
    return %c0_i32, %c0_i32_0, %c0_i32_1 : i32, i32, i32
  }
  func.func @transform_31(%arg0: i32) -> (i32, i32, i32) {
    %c0_i32 = arith.constant 0 : i32
    %c0_i32_0 = arith.constant 0 : i32
    %c0_i32_1 = arith.constant 0 : i32
    %c0_i32_2 = arith.constant 0 : i32
    return %c0_i32, %c0_i32_0, %c0_i32_1 : i32, i32, i32
  }
  func.func @transform_32(%arg0: i32) -> (i32, i32, i32) {
    %c0_i32 = arith.constant 0 : i32
    %c0_i32_0 = arith.constant 0 : i32
    %c0_i32_1 = arith.constant 0 : i32
    %c0_i32_2 = arith.constant 0 : i32
    return %c0_i32, %c0_i32_0, %c0_i32_1 : i32, i32, i32
  }
  func.func @transform_33(%arg0: i32) -> (i32, i32, i32) {
    %c0_i32 = arith.constant 0 : i32
    %c0_i32_0 = arith.constant 0 : i32
    %c0_i32_1 = arith.constant 0 : i32
    %c0_i32_2 = arith.constant 0 : i32
    return %c0_i32, %c0_i32_0, %c0_i32_1 : i32, i32, i32
  }
  func.func @transform_34(%arg0: i32) -> (i32, i32, i32) {
    %c0_i32 = arith.constant 0 : i32
    %c0_i32_0 = arith.constant 0 : i32
    %c0_i32_1 = arith.constant 0 : i32
    %c0_i32_2 = arith.constant 0 : i32
    return %c0_i32, %c0_i32_0, %c0_i32_1 : i32, i32, i32
  }
  func.func @transform_35(%arg0: i32) -> (i32, i32, i32) {
    %c0_i32 = arith.constant 0 : i32
    %c0_i32_0 = arith.constant 0 : i32
    %c0_i32_1 = arith.constant 0 : i32
    %c0_i32_2 = arith.constant 0 : i32
    return %c0_i32, %c0_i32_0, %c0_i32_1 : i32, i32, i32
  }
  func.func @transform_36(%arg0: i32) -> (i32, i32, i32) {
    %c0_i32 = arith.constant 0 : i32
    %c0_i32_0 = arith.constant 0 : i32
    %c0_i32_1 = arith.constant 0 : i32
    %c0_i32_2 = arith.constant 0 : i32
    return %c0_i32, %c0_i32_0, %c0_i32_1 : i32, i32, i32
  }
  func.func @transform_37(%arg0: i32) -> (i32, i32, i32) {
    %c0_i32 = arith.constant 0 : i32
    %c0_i32_0 = arith.constant 0 : i32
    %c0_i32_1 = arith.constant 0 : i32
    %c0_i32_2 = arith.constant 0 : i32
    return %c0_i32, %c0_i32_0, %c0_i32_1 : i32, i32, i32
  }
  func.func @transform_38(%arg0: i32) -> (i32, i32, i32) {
    %c0_i32 = arith.constant 0 : i32
    %c0_i32_0 = arith.constant 0 : i32
    %c0_i32_1 = arith.constant 0 : i32
    %c0_i32_2 = arith.constant 0 : i32
    return %c0_i32, %c0_i32_0, %c0_i32_1 : i32, i32, i32
  }
  func.func @transform_39(%arg0: i32) -> (i32, i32, i32) {
    %c0_i32 = arith.constant 0 : i32
    %c0_i32_0 = arith.constant 0 : i32
    %c0_i32_1 = arith.constant 0 : i32
    %c0_i32_2 = arith.constant 0 : i32
    return %c0_i32, %c0_i32_0, %c0_i32_1 : i32, i32, i32
  }
  func.func @transform_40(%arg0: i32) -> (i32, i32, i32) {
    %c0_i32 = arith.constant 0 : i32
    %c0_i32_0 = arith.constant 0 : i32
    %c0_i32_1 = arith.constant 0 : i32
    %c0_i32_2 = arith.constant 0 : i32
    return %c0_i32, %c0_i32_0, %c0_i32_1 : i32, i32, i32
  }
  func.func @transform_41(%arg0: i32) -> (i32, i32, i32) {
    %c0_i32 = arith.constant 0 : i32
    %c0_i32_0 = arith.constant 0 : i32
    %c0_i32_1 = arith.constant 0 : i32
    %c0_i32_2 = arith.constant 0 : i32
    return %c0_i32, %c0_i32_0, %c0_i32_1 : i32, i32, i32
  }
  func.func @transform_42(%arg0: i32) -> (i32, i32, i32) {
    %c0_i32 = arith.constant 0 : i32
    %c0_i32_0 = arith.constant 0 : i32
    %c0_i32_1 = arith.constant 0 : i32
    %c0_i32_2 = arith.constant 0 : i32
    return %c0_i32, %c0_i32_0, %c0_i32_1 : i32, i32, i32
  }
  func.func @transform_43(%arg0: i32) -> (i32, i32, i32) {
    %c0_i32 = arith.constant 0 : i32
    %c0_i32_0 = arith.constant 0 : i32
    %c0_i32_1 = arith.constant 0 : i32
    %c0_i32_2 = arith.constant 0 : i32
    return %c0_i32, %c0_i32_0, %c0_i32_1 : i32, i32, i32
  }
  func.func @transform_44(%arg0: i32) -> (i32, i32) {
    %c0_i32 = arith.constant 0 : i32
    %c0_i32_0 = arith.constant 0 : i32
    %c0_i32_1 = arith.constant 0 : i32
    return %c0_i32, %c0_i32_0 : i32, i32
  }
  func.func @transform_45(%arg0: i32) -> (i32, i32) {
    %c0_i32 = arith.constant 0 : i32
    %c0_i32_0 = arith.constant 0 : i32
    %c0_i32_1 = arith.constant 0 : i32
    return %c0_i32, %c0_i32_0 : i32, i32
  }
  func.func @transform_46(%arg0: i32) -> (i32, i32) {
    %c0_i32 = arith.constant 0 : i32
    %c0_i32_0 = arith.constant 0 : i32
    %c0_i32_1 = arith.constant 0 : i32
    return %c0_i32, %c0_i32_0 : i32, i32
  }
  func.func @transform_47(%arg0: i32) -> (i32, i32) {
    %c0_i32 = arith.constant 0 : i32
    %c0_i32_0 = arith.constant 0 : i32
    %c0_i32_1 = arith.constant 0 : i32
    return %c0_i32, %c0_i32_0 : i32, i32
  }
  func.func @transform_48(%arg0: i32) -> (i32, i32, i32) {
    %c0_i32 = arith.constant 0 : i32
    %c0_i32_0 = arith.constant 0 : i32
    %c0_i32_1 = arith.constant 0 : i32
    return %arg0, %c0_i32, %c0_i32_0 : i32, i32, i32
  }
}

</mosaic_0001>

<bundles_post_ra>
// kernel: tile.15
= control target key start
LH: loop header
LB: loop body
LE: loop exit
PB: predicated region body
PF: predicated region fallthrough
CT: control target
= control target key end

     0   :  { %vm3_vm0 = vcmask 261120   ;;  %s34_s0 = inlined_call_operand.vmem [shape: f32[2,6,32], index: 0, kind: input, shape index: {}]   ;;  %s35_s1 = inlined_call_operand.vmem [shape: f32[12,32], index: 1, kind: output, shape index: {}]  }
   0x1   :  { %v2_v0 = vld [vmem:[%s34_s0] sm:$0x3f]   ;;  %v10_v1 = vld [vmem:[%s34_s0 + $0x8] sm:$0x3f]  }
   0x2   :  { %4 = vst.msk [vmem:[%s35_s1] sm:$0x3f] %vm3_vm0, %v2_v0   ;;  %11 = vst.msk [vmem:[%s35_s1 + $0x6] sm:$0x3f] %vm3_vm0, %v10_v1  }

// kernel: encoder_decoder_forward.1
= control target key start
LH: loop header
LB: loop body
LE: loop exit
PB: predicated region body
PF: predicated region fallthrough
CT: control target
= control target key end

     0   :  { %s23417_s6 = smov 1   ;;  %s23418_s10 = smov 2   ;;  %s26102_s0 = inlined_call_operand.smem [shape: u32[49], index: -1, kind: input, shape index: {}] }
   0x1   :  { %s23520_s5 = sld [smem:[%s26102_s0]]   ;;  %s23419_s14 = smov 3  }
   0x2   :  { %s23525_s9 = sld [smem:[%s26102_s0 + %s23417_s6]]   ;;  %s23420_s18 = smov 4  }
   0x3   :  { %s23530_s13 = sld [smem:[%s26102_s0 + %s23418_s10]]   ;;  %s23421_s22 = smov 5  }
   0x4   :  { %s23535_s17 = sld [smem:[%s26102_s0 + %s23419_s14]]   ;;  %s23422_s26 = smov 6  }
   0x5   :  { %s23540_s21 = sld [smem:[%s26102_s0 + %s23420_s18]]   ;;  %s23423_s30 = smov 7  }
   0x6   :  { %s23545_s25 = sld [smem:[%s26102_s0 + %s23421_s22]]   ;;  %s23424_s4 = smov 8  }
   0x7   :  { %26177 = sst [smem:[#allocation61_spill]] %s23520_s5  ;;  %s23425_s10 = smov 9  }
   0x8   :  { %26178 = sst [smem:[#allocation62_spill]] %s23525_s9  ;;  %s23426_s15 = smov 10  }
   0x9   :  { %26179 = sst [smem:[#allocation63_spill]] %s23530_s13  ;;  %s23427_s20 = smov 11  }
   0xa   :  { %26180 = sst [smem:[#allocation64_spill]] %s23535_s17  ;;  %s23429_s1 = smov 13  }
   0xb   :  { %26181 = sst [smem:[#allocation65_spill]] %s23540_s21  ;;  %s23430_s7 = smov 14  }
   0xc   :  { %26182 = sst [smem:[#allocation66_spill]] %s23545_s25  ;;  %s23432_s22 = smov 16  }
   0xd   :  { %s23550_s29 = sld [smem:[%s26102_s0 + %s23422_s26]]   ;;  %s23428_s26 = smov 12  }
   0xe   :  { %s23555_s3 = sld [smem:[%s26102_s0 + %s23423_s30]]   ;;  %s23433_s28 = smov 17  }
   0xf   :  { %s23560_s8 = sld [smem:[%s26102_s0 + %s23424_s4]]  }
  0x10   :  { %s23565_s14 = sld [smem:[%s26102_s0 + %s23425_s10]]  }
  0x11   :  { %s23570_s19 = sld [smem:[%s26102_s0 + %s23426_s15]]   ;;  %s23431_s15 = smov 15  }
  0x12   :  { %s23575_s24 = sld [smem:[%s26102_s0 + %s23427_s20]]  }
  0x13   :  { %26183 = sst [smem:[#allocation67_spill]] %s23550_s29 }
  0x14   :  { %26184 = sst [smem:[#allocation68_spill]] %s23555_s3 }
  0x15   :  { %26185 = sst [smem:[#allocation69_spill]] %s23560_s8 }
  0x16   :  { %26186 = sst [smem:[#allocation70_spill]] %s23565_s14 }
  0x17   :  { %26187 = sst [smem:[#allocation71_spill]] %s23570_s19 }
  0x18   :  { %s23580_s30 = sld [smem:[%s26102_s0 + %s23428_s26]]  }
  0x19   :  { %s23585_s6 = sld [smem:[%s26102_s0 + %s23429_s1]]  }
  0x1a   :  { %s23590_s12 = sld [smem:[%s26102_s0 + %s23430_s7]]   ;;  %s23434_s7 = smov 18  }
  0x1b   :  { %s23595_s20 = sld [smem:[%s26102_s0 + %s23431_s15]]   ;;  %s23435_s15 = smov 19  }
  0x1c   :  { %s23600_s27 = sld [smem:[%s26102_s0 + %s23432_s22]]   ;;  %s23436_s22 = smov 20  }
  0x1d   :  { %s23605_s4 = sld [smem:[%s26102_s0 + %s23433_s28]]   ;;  %s23437_s28 = smov 21  }
  0x1e   :  { %26188 = sst [smem:[#allocation72_spill]] %s23580_s30 }
  0x1f   :  { %26189 = sst [smem:[#allocation73_spill]] %s23585_s6 }
  0x20   :  { %26190 = sst [smem:[#allocation74_spill]] %s23590_s12 }
  0x21   :  { %s23610_s17 = sld [smem:[%s26102_s0 + %s23434_s7]]   ;;  %s23438_s7 = smov 22  }
  0x22   :  { %26191 = sst [smem:[#allocation75_spill]] %s23600_s27 }
  0x23   :  { %26192 = sst [smem:[#allocation76_spill]] %s23605_s4 }
  0x24   :  { %s23615_s25 = sld [smem:[%s26102_s0 + %s23435_s15]]   ;;  %s23439_s15 = smov 23  }
  0x25   :  { %s23620_s9 = sld [smem:[%s26102_s0 + %s23436_s22]]   ;;  %s23440_s22 = smov 24  }
  0x26   :  { %s23625_s8 = sld [smem:[%s26102_s0 + %s23437_s28]]   ;;  %s23441_s28 = smov 25  }
  0x27   :  { %26193 = sst [smem:[#allocation77_spill]] %s23610_s17 }
  0x28   :  { %s23630_s17 = sld [smem:[%s26102_s0 + %s23438_s7]]   ;;  %s23442_s7 = smov 26  }
  0x29   :  { %s23635_s12 = sld [smem:[%s26102_s0 + %s23439_s15]]   ;;  %s23443_s15 = smov 27  }
  0x2a   :  { %26194 = sst [smem:[#allocation78_spill]] %s23615_s25 }
  0x2b   :  { %26195 = sst [smem:[#allocation79_spill]] %s23620_s9 }
  0x2c   :  { %26196 = sst [smem:[#allocation80_spill]] %s23625_s8 }
  0x2d   :  { %s23640_s9 = sld [smem:[%s26102_s0 + %s23440_s22]]   ;;  %s23444_s22 = smov 28  }
  0x2e   :  { %26197 = sst [smem:[#allocation81_spill]] %s23630_s17 }
  0x2f   :  { %26198 = sst [smem:[#allocation82_spill]] %s23635_s12 }
  0x30   :  { %s23645_s13 = sld [smem:[%s26102_s0 + %s23441_s28]]   ;;  %s23445_s28 = smov 29  }
  0x31   :  { %s23650_s30 = sld [smem:[%s26102_s0 + %s23442_s7]]   ;;  %s23446_s7 = smov 30  }
  0x32   :  { %s23655_s21 = sld [smem:[%s26102_s0 + %s23443_s15]]   ;;  %s23447_s15 = smov 31  }
  0x33   :  { %26199 = sst [smem:[#allocation83_spill]] %s23640_s9 }
  0x34   :  { %s23660_s29 = sld [smem:[%s26102_s0 + %s23444_s22]]   ;;  %s23448_s22 = smov 32  }
  0x35   :  { %s23665_s5 = sld [smem:[%s26102_s0 + %s23445_s28]]   ;;  %s23449_s28 = smov 33  }
  0x36   :  { %26200 = sst [smem:[#allocation84_spill]] %s23645_s13 }
  0x37   :  { %26201 = sst [smem:[#allocation85_spill]] %s23650_s30 }
  0x38   :  { %26202 = sst [smem:[#allocation86_spill]] %s23655_s21 }
  0x39   :  { %s23670_s30 = sld [smem:[%s26102_s0 + %s23446_s7]]   ;;  %s23450_s7 = smov 34  }
  0x3a   :  { %26203 = sst [smem:[#allocation87_spill]] %s23660_s29 }
  0x3b   :  { %26204 = sst [smem:[#allocation88_spill]] %s23665_s5 }
  0x3c   :  { %s23675_s21 = sld [smem:[%s26102_s0 + %s23447_s15]]   ;;  %s23451_s15 = smov 35  }
  0x3d   :  { %s23680_s29 = sld [smem:[%s26102_s0 + %s23448_s22]]   ;;  %s23452_s22 = smov 36  }
  0x3e   :  { %s23685_s9 = sld [smem:[%s26102_s0 + %s23449_s28]]   ;;  %s23453_s28 = smov 37  }
  0x3f   :  { %26205 = sst [smem:[#allocation89_spill]] %s23670_s30 }
  0x40   :  { %s23690_s30 = sld [smem:[%s26102_s0 + %s23450_s7]]   ;;  %s23454_s7 = smov 38  }
  0x41   :  { %s23695_s17 = sld [smem:[%s26102_s0 + %s23451_s15]]   ;;  %s23455_s15 = smov 39  }
  0x42   :  { %s23715_s25 = sld [smem:[%s26102_s0 + %s23455_s15]]   ;;  %s23459_s15 = smov 43  }
  0x43   :  { %26206 = sst [smem:[#allocation90_spill]] %s23680_s29 }
  0x44   :  { %26207 = sst [smem:[#allocation91_spill]] %s23685_s9 }
  0x45   :  { %s23700_s29 = sld [smem:[%s26102_s0 + %s23452_s22]]   ;;  %s23456_s22 = smov 40  }
  0x46   :  { %26208 = sst [smem:[#allocation92_spill]] %s23690_s30 }
  0x47   :  { %s23705_s9 = sld [smem:[%s26102_s0 + %s23453_s28]]   ;;  %s23457_s28 = smov 41  }
  0x48   :  { %s23710_s30 = sld [smem:[%s26102_s0 + %s23454_s7]]   ;;  %s23458_s7 = smov 42  }
  0x49   :  { %26211 = sst [smem:[#allocation95_spill]] %s23715_s25 }
  0x4a   :  { %s23730_s27 = sld [smem:[%s26102_s0 + %s23458_s7]]   ;;  %s23462_s7 = smov 46  }
  0x4b   :  { %26209 = sst [smem:[#allocation93_spill]] %s23700_s29 }
  0x4c   :  { %s23720_s29 = sld [smem:[%s26102_s0 + %s23456_s22]]   ;;  %s23460_s22 = smov 44  }
  0x4d   :  { %26210 = sst [smem:[#allocation94_spill]] %s23705_s9 }
  0x4e   :  { %s23725_s9 = sld [smem:[%s26102_s0 + %s23457_s28]]   ;;  %s23461_s28 = smov 45  }
  0x4f   :  { %s23735_s25 = sld [smem:[%s26102_s0 + %s23459_s15]]   ;;  %s23463_s15 = smov 47  }
  0x50   :  { %26213 = sst [smem:[#allocation97_spill]] %s23730_s27 }
  0x51   :  { %s23740_s6 = sld [smem:[%s26102_s0 + %s23460_s22]]   ;;  %s23464_s22 = smov 48  }
  0x52   :  { %s23750_s27 = sld [smem:[%s26102_s0 + %s23462_s7]]  }
  0x53   :  { %s23755_s19 = sld [smem:[%s26102_s0 + %s23463_s15]]  }
  0x54   :  { %26212 = sst [smem:[#allocation96_spill]] %s23725_s9 }
  0x55   :  { %s23745_s9 = sld [smem:[%s26102_s0 + %s23461_s28]]  }
  0x57   :  { %26214 = sst [smem:[#allocation98_spill]] %s23740_s6 }
  0x58   :  { %s23760_s6 = sld [smem:[%s26102_s0 + %s23464_s22]]  }
  0x5b   :  { %26215 = sst [smem:[#allocation99_spill]] %s23745_s9 }
  0x5c   :  { %102 = vsyncpa [#allocation3], 0 }
  0x5d   :  { %103 = vsyncpa [#allocation5], 0 }
  0x5e   :  { %104 = vsyncpa [#allocation8], 0 }
  0x5f   :  { %105 = vsyncpa [#allocation11], 0 }
  0x60   :  { %106 = vsyncpa [#allocation14], 0 }
  0x61   :  { %107 = vsyncpa [#allocation17], 0 }
  0x62   :  { %108 = vsyncpa [#allocation20], 0 }
  0x63   :  { %109 = vsyncpa [#allocation23], 0 }
  0x64   :  { %110 = vsyncpa [#allocation26], 0 }
  0x65   :  { %111 = vsyncpa [#allocation29], 0 }
  0x66   :  { %112 = vsyncpa [#allocation32], 0 }
  0x67   :  { %113 = vsyncpa [#allocation35], 0 }
  0x68   :  { %114 = vsyncpa [#allocation38], 0 }
  0x69   :  { %115 = vsyncpa [#allocation41], 0 }
  0x6a   :  { %116 = vsyncpa [#allocation44], 0  ;;  %s23762_s28 = smov 0  }
  0x6b LB: > { %s26216_s13 = sld [smem:[#allocation84_spill]]  ;;  %s26217_s12 = sld [smem:[#allocation82_spill]]  ;;  %s23415_s28 = sphi %s23762_s28, %s122_s28  }
  0x6c   : > { %s26218_s9 = sld [smem:[#allocation99_spill]]  ;;  %s26219_s8 = sld [smem:[#allocation80_spill]] }
  0x6d   : > { %s26220_s5 = sld [smem:[#allocation88_spill]]  ;;  %s26221_s3 = sld [smem:[#allocation68_spill]] }
  0x6e   : > { %s26222_s4 = sld [smem:[#allocation76_spill]]  ;;  %s26223_s14 = sld [smem:[#allocation70_spill]] }
  0x6f   : > { %s23465_s0 = smov [#allocation4]   ;;  %s23768_s2 = sadd.s32 4294967295, %s23415_s28  }
  0x70   : > { %s1217_s1 = sshll.u32 %s23465_s0, 4  ;;  %p20159_p0 = scmp.ge.s32.totalorder %s23415_s28, 1  ;;  %s23773_s1 = int_to_ptr.vmem [resolvable:$true] %s1217_s1 }
  0x71   : > { %p1181_p1 = scmp.lt.s32.totalorder %s23415_s28, 3  ;;  %p26128_p2 = scmp.eq.s32.totalorder %s23768_s2, 0 }
  0x72   : > { %s23466_s10 = smov [#allocation7]   ;;  %s23467_s16 = smov [#allocation10]  }
  0x73   : > { %p23775_p3 = pnand %p20159_p0, %p1181_p1  ;;  %s1240_s11 = sshll.u32 %s23466_s10, 4  ;;  %s23781_s11 = int_to_ptr.vmem [resolvable:$true] %s1240_s11 }
  0x74   : > { %s1272_s18 = sshll.u32 %s23467_s16, 4  ;;  %s23468_s22 = smov [#allocation13]   ;;  %s23789_s18 = int_to_ptr.vmem [resolvable:$true] %s1272_s18 }
  0x75   : > { %s26224_s7 = scalar_select %p23775_p3, 1, 0 }
  0x76   : > { %p22000_p4 = pneg %p23775_p3  ;;  %s23791_s23 = sshll.u32 %s23468_s22, 4  ;;  %s1299_s23 = int_to_ptr.vmem [resolvable:$true] %s23791_s23 }
  0x77   : > { %s22537_s26 = scalar_lea.hbm %s26223_s14, 16 }
  0x78   : > { %p23785_p5 = pnand %p26128_p2, %p22000_p4  ;;  %p22538_p6 = scmp.ne.s32.totalorder %s26223_s14, %s22537_s26 }
  0x79   : > { %p22544_p10 = scmp.lt.u32.totalorder %s22537_s26, %s26223_s14 }
  0x7a   : > { %p23797_p7 = pneg %p23785_p5 }
  0x7c   : > { %p22540_p8 = pnand %p23797_p7, %p22538_p6 }
  0x7e   : > { %p22541_p9 = pneg %p22540_p8 }
  0x80   : > { %p22546_p11 = pnand %p22544_p10, %p22541_p9 }
  0x82   : > { %22549 = shalt.err (!%p22546_p11)
}
  0x83   : > { %s22550_s10 = scalar_lea.vmem %s23773_s1, 16  ;;  %s22557_s16 = scalar_lea.vmem %s23773_s1, 32 }
  0x84   : > { %p22551_p12 = scmp.ne.s32.totalorder %s23773_s1, %s22550_s10  ;;  %p22558_p1 = scmp.lt.s32.totalorder %s23773_s1, %s23773_s1 }
  0x85   : > { %p22559_p4 = scmp.lt.s32.totalorder %s22557_s16, %s22550_s10 }
  0x86   : > { %p22553_p13 = pnand %p22551_p12, %p23797_p7 }
  0x87   : > { %p22560_p2 = por %p22559_p4, %p22558_p1 }
  0x88   : > { %p22554_p0 = pneg %p22553_p13 }
  0x8a   : > { %p22561_p6 = pnand %p22560_p2, %p22554_p0 }
  0x8c   : > { %22564 = shalt.err (!%p22561_p6)
}
  0x8d   : > { %22006 = dma.hbm_to_vmem [thread:$0]  (!%p23785_p5), %s26223_s14, 16, %s23773_s1, [#allocation5]  }
  0x8e   : > { %s22565_s22 = scalar_lea.hbm %s23575_s24, 32 }
  0x8f   : > { %p22566_p8 = scmp.ne.s32.totalorder %s23575_s24, %s22565_s22  ;;  %p22572_p11 = scmp.lt.u32.totalorder %s22565_s22, %s23575_s24 }
  0x91   : > { %p22568_p9 = pnand %p22566_p8, %p23797_p7 }
  0x93   : > { %p22569_p10 = pneg %p22568_p9 }
  0x95   : > { %p22574_p12 = pnand %p22572_p11, %p22569_p10 }
  0x97   : > { %22577 = shalt.err (!%p22574_p12)
}
  0x98   : > { %s22578_s26 = scalar_lea.vmem %s23781_s11, 32  ;;  %p22586_p1 = scmp.lt.s32.totalorder %s23781_s11, %s23781_s11 }
  0x99   : > { %p22579_p2 = scmp.ne.s32.totalorder %s23781_s11, %s22578_s26  ;;  %p22587_p4 = scmp.lt.s32.totalorder %s22578_s26, %s22578_s26 }
  0x9b   : > { %p22581_p13 = pnand %p22579_p2, %p23797_p7  ;;  %p22588_p6 = por %p22587_p4, %p22586_p1 }
  0x9d   : > { %p22582_p0 = pneg %p22581_p13 }
  0x9f   : > { %p22589_p3 = pnand %p22588_p6, %p22582_p0 }
  0xa1   : > { %22592 = shalt.err (!%p22589_p3)
}
  0xa2   : > { %s26131_s1 = smov 16   ;;  %s26133_s10 = smov 1  }
  0xa3   : > { %22012 = dma.hbm_to_vmem [thread:$0]  (!%p23785_p5), %s23575_s24, 32, %s23781_s11, [#allocation8], %s26131_s1, %s26131_s1, %s26133_s10  }
  0xa4   : > { %s22593_s16 = scalar_lea.hbm %s23595_s20, 32 }
  0xa5   : > { %p22594_p8 = scmp.ne.s32.totalorder %s23595_s20, %s22593_s16  ;;  %p22600_p3 = scmp.lt.u32.totalorder %s22593_s16, %s23595_s20 }
  0xa7   : > { %p22596_p9 = pnand %p22594_p8, %p23797_p7 }
  0xa9   : > { %p22597_p10 = pneg %p22596_p9 }
  0xab   : > { %p22602_p11 = pnand %p22600_p3, %p22597_p10 }
  0xad   : > { %22605 = shalt.err (!%p22602_p11)
}
  0xae   : > { %s22606_s22 = scalar_lea.vmem %s23789_s18, 32  ;;  %p22614_p0 = scmp.lt.s32.totalorder %s23789_s18, %s23789_s18 }
  0xaf   : > { %p22607_p12 = scmp.ne.s32.totalorder %s23789_s18, %s22606_s22  ;;  %p22615_p1 = scmp.lt.s32.totalorder %s22606_s22, %s22606_s22 }
  0xb1   : > { %p22609_p2 = pnand %p22607_p12, %p23797_p7  ;;  %p22616_p4 = por %p22615_p1, %p22614_p0 }
  0xb3   : > { %p22610_p13 = pneg %p22609_p2 }
  0xb5   : > { %p22617_p6 = pnand %p22616_p4, %p22610_p13 }
  0xb7   : > { %22620 = shalt.err (!%p22617_p6)
}
  0xb8   : > { %22018 = dma.hbm_to_vmem [thread:$0]  (!%p23785_p5), %s23595_s20, 32, %s23789_s18, [#allocation11], %s26131_s1, %s26131_s1, %s26133_s10  }
  0xb9   : > { %s22621_s11 = scalar_lea.hbm %s26222_s4, 32 }
  0xba   : > { %p22622_p8 = scmp.ne.s32.totalorder %s26222_s4, %s22621_s11  ;;  %p22628_p3 = scmp.lt.u32.totalorder %s22621_s11, %s26222_s4 }
  0xbc   : > { %p22624_p9 = pnand %p22622_p8, %p23797_p7 }
  0xbe   : > { %p22625_p10 = pneg %p22624_p9 }
  0xc0   : > { %p22630_p11 = pnand %p22628_p3, %p22625_p10 }
  0xc2   : > { %22633 = shalt.err (!%p22630_p11)
}
  0xc3   : > { %s22634_s26 = scalar_lea.vmem %s1299_s23, 32  ;;  %p22642_p0 = scmp.lt.s32.totalorder %s1299_s23, %s1299_s23 }
  0xc4   : > { %p22635_p12 = scmp.ne.s32.totalorder %s1299_s23, %s22634_s26  ;;  %p22643_p1 = scmp.lt.s32.totalorder %s22634_s26, %s22634_s26 }
  0xc6   : > { %p22637_p2 = pnand %p22635_p12, %p23797_p7  ;;  %p22644_p4 = por %p22643_p1, %p22642_p0 }
  0xc8   : > { %p22638_p13 = pneg %p22637_p2 }
  0xca   : > { %p22645_p6 = pnand %p22644_p4, %p22638_p13 }
  0xcc   : > { %22648 = shalt.err (!%p22645_p6)
}
  0xcd   : > { %22024 = dma.hbm_to_vmem [thread:$0]  (!%p23785_p5), %s26222_s4, 32, %s1299_s23, [#allocation14], %s26131_s1, %s26131_s1, %s26133_s10  }
  0xce   : > { %s23471_s18 = smov [#allocation16]   ;;  %s23472_s22 = smov [#allocation19]  }
  0xcf   : > { %s1330_s16 = sshll.u32 %s23471_s18, 4  ;;  %s1355_s11 = sshll.u32 %s23472_s22, 4  ;;  %s1331_s16 = int_to_ptr.vmem [resolvable:$true] %s1330_s16  ;;  %s1356_s11 = int_to_ptr.vmem [resolvable:$true] %s1355_s11 }
  0xd0   : > { %s22649_s26 = scalar_lea.hbm %s26219_s8, 32 }
  0xd1   : > { %p22650_p8 = scmp.ne.s32.totalorder %s26219_s8, %s22649_s26  ;;  %p22656_p3 = scmp.lt.u32.totalorder %s22649_s26, %s26219_s8 }
  0xd3   : > { %p22652_p9 = pnand %p22650_p8, %p23797_p7 }
  0xd5   : > { %p22653_p10 = pneg %p22652_p9 }
  0xd7   : > { %p22658_p11 = pnand %p22656_p3, %p22653_p10 }
  0xd9   : > { %22661 = shalt.err (!%p22658_p11)
}
  0xda   : > { %s22662_s14 = scalar_lea.vmem %s1331_s16, 32  ;;  %p22670_p0 = scmp.lt.s32.totalorder %s1331_s16, %s1331_s16 }
  0xdb   : > { %p22663_p12 = scmp.ne.s32.totalorder %s1331_s16, %s22662_s14  ;;  %p22671_p1 = scmp.lt.s32.totalorder %s22662_s14, %s22662_s14 }
  0xdd   : > { %p22665_p2 = pnand %p22663_p12, %p23797_p7  ;;  %p22672_p4 = por %p22671_p1, %p22670_p0 }
  0xdf   : > { %p22666_p13 = pneg %p22665_p2 }
  0xe1   : > { %p22673_p6 = pnand %p22672_p4, %p22666_p13 }
  0xe3   : > { %22676 = shalt.err (!%p22673_p6)
}
  0xe4   : > { %22030 = dma.hbm_to_vmem [thread:$0]  (!%p23785_p5), %s26219_s8, 32, %s1331_s16, [#allocation17], %s26131_s1, %s26131_s1, %s26133_s10  }
  0xe5   : > { %s22677_s23 = scalar_lea.hbm %s26217_s12, 16 }
  0xe6   : > { %p22678_p8 = scmp.ne.s32.totalorder %s26217_s12, %s22677_s23  ;;  %p22684_p3 = scmp.lt.u32.totalorder %s22677_s23, %s26217_s12 }
  0xe8   : > { %p22680_p9 = pnand %p22678_p8, %p23797_p7 }
  0xea   : > { %p22681_p10 = pneg %p22680_p9 }
  0xec   : > { %p22686_p11 = pnand %p22684_p3, %p22681_p10 }
  0xee   : > { %22689 = shalt.err (!%p22686_p11)
}
  0xef   : > { %s22690_s14 = scalar_lea.vmem %s1356_s11, 16  ;;  %s22697_s18 = scalar_lea.vmem %s1356_s11, 32 }
  0xf0   : > { %p22691_p12 = scmp.ne.s32.totalorder %s1356_s11, %s22690_s14  ;;  %p22698_p0 = scmp.lt.s32.totalorder %s1356_s11, %s1356_s11 }
  0xf1   : > { %p22699_p1 = scmp.lt.s32.totalorder %s22697_s18, %s22690_s14 }
  0xf2   : > { %p22693_p2 = pnand %p22691_p12, %p23797_p7 }
  0xf3   : > { %p22700_p4 = por %p22699_p1, %p22698_p0 }
  0xf4   : > { %p22694_p13 = pneg %p22693_p2 }
  0xf6   : > { %p22701_p6 = pnand %p22700_p4, %p22694_p13 }
  0xf8   : > { %22704 = shalt.err (!%p22701_p6)
}
  0xf9   : > { %22036 = dma.hbm_to_vmem [thread:$0]  (!%p23785_p5), %s26217_s12, 16, %s1356_s11, [#allocation20]  }
  0xfa   : > { %s23473_s16 = smov [#allocation22]   ;;  %s23474_s26 = smov [#allocation25]  }
  0xfb   : > { %s1378_s22 = sshll.u32 %s23473_s16, 4  ;;  %s1410_s23 = sshll.u32 %s23474_s26, 4  ;;  %s1379_s22 = int_to_ptr.vmem [resolvable:$true] %s1378_s22  ;;  %s1411_s23 = int_to_ptr.vmem [resolvable:$true] %s1410_s23 }
  0xfc   : > { %s22705_s1 = scalar_lea.hbm %s26216_s13, 32 }
  0xfd   : > { %p22706_p8 = scmp.ne.s32.totalorder %s26216_s13, %s22705_s1  ;;  %p22712_p3 = scmp.lt.u32.totalorder %s22705_s1, %s26216_s13 }
  0xff   : > { %p22708_p9 = pnand %p22706_p8, %p23797_p7 }
 0x101   : > { %p22709_p10 = pneg %p22708_p9 }
 0x103   : > { %p22714_p11 = pnand %p22712_p3, %p22709_p10 }
 0x105   : > { %22717 = shalt.err (!%p22714_p11)
}
 0x106   : > { %s22718_s14 = scalar_lea.vmem %s1379_s22, 32  ;;  %p22726_p0 = scmp.lt.s32.totalorder %s1379_s22, %s1379_s22 }
 0x107   : > { %p22719_p12 = scmp.ne.s32.totalorder %s1379_s22, %s22718_s14  ;;  %p22727_p1 = scmp.lt.s32.totalorder %s22718_s14, %s22718_s14 }
 0x109   : > { %p22721_p2 = pnand %p22719_p12, %p23797_p7  ;;  %p22728_p4 = por %p22727_p1, %p22726_p0 }
 0x10b   : > { %p22722_p13 = pneg %p22721_p2 }
 0x10d   : > { %p22729_p6 = pnand %p22728_p4, %p22722_p13 }
 0x10f   : > { %22732 = shalt.err (!%p22729_p6)
}
 0x110   : > { %s26227_s11 = smov 16   ;;  %s22733_s1 = scalar_lea.hbm %s26220_s5, 32 }
 0x111   : > { %22042 = dma.hbm_to_vmem [thread:$0]  (!%p23785_p5), %s26216_s13, 32, %s1379_s22, [#allocation23], %s26227_s11, %s26227_s11, %s26133_s10  }
 0x112   : > { %p22734_p8 = scmp.ne.s32.totalorder %s26220_s5, %s22733_s1  ;;  %p22740_p3 = scmp.lt.u32.totalorder %s22733_s1, %s26220_s5 }
 0x114   : > { %p22736_p9 = pnand %p22734_p8, %p23797_p7 }
 0x116   : > { %p22737_p10 = pneg %p22736_p9 }
 0x118   : > { %p22742_p11 = pnand %p22740_p3, %p22737_p10 }
 0x11a   : > { %22745 = shalt.err (!%p22742_p11)
}
 0x11b   : > { %s22746_s18 = scalar_lea.vmem %s1411_s23, 32  ;;  %p22754_p0 = scmp.lt.s32.totalorder %s1411_s23, %s1411_s23 }
 0x11c   : > { %p22747_p12 = scmp.ne.s32.totalorder %s1411_s23, %s22746_s18  ;;  %p22755_p1 = scmp.lt.s32.totalorder %s22746_s18, %s22746_s18 }
 0x11e   : > { %p22749_p2 = pnand %p22747_p12, %p23797_p7  ;;  %p22756_p4 = por %p22755_p1, %p22754_p0 }
 0x120   : > { %p22750_p13 = pneg %p22749_p2 }
 0x122   : > { %p22757_p6 = pnand %p22756_p4, %p22750_p13 }
 0x124   : > { %22760 = shalt.err (!%p22757_p6)
}
 0x125   : > { %22048 = dma.hbm_to_vmem [thread:$0]  (!%p23785_p5), %s26220_s5, 32, %s1411_s23, [#allocation26], %s26227_s11, %s26227_s11, %s26133_s10  }
 0x126   : > { %s23475_s16 = smov [#allocation28]   ;;  %s23476_s26 = smov [#allocation31]  }
 0x127   : > { %s1436_s22 = sshll.u32 %s23475_s16, 4  ;;  %s1468_s14 = sshll.u32 %s23476_s26, 4  ;;  %s1437_s22 = int_to_ptr.vmem [resolvable:$true] %s1436_s22  ;;  %s1469_s14 = int_to_ptr.vmem [resolvable:$true] %s1468_s14 }
 0x128   : > { %s22761_s1 = scalar_lea.hbm %s23675_s21, 32 }
 0x129   : > { %p22762_p8 = scmp.ne.s32.totalorder %s23675_s21, %s22761_s1  ;;  %p22768_p3 = scmp.lt.u32.totalorder %s22761_s1, %s23675_s21 }
 0x12b   : > { %p22764_p9 = pnand %p22762_p8, %p23797_p7 }
 0x12d   : > { %p22765_p10 = pneg %p22764_p9 }
 0x12f   : > { %p22770_p11 = pnand %p22768_p3, %p22765_p10 }
 0x131   : > { %22773 = shalt.err (!%p22770_p11)
}
 0x132   : > { %s22774_s18 = scalar_lea.vmem %s1437_s22, 32  ;;  %p22782_p0 = scmp.lt.s32.totalorder %s1437_s22, %s1437_s22 }
 0x133   : > { %p22775_p12 = scmp.ne.s32.totalorder %s1437_s22, %s22774_s18  ;;  %p22783_p1 = scmp.lt.s32.totalorder %s22774_s18, %s22774_s18 }
 0x135   : > { %p22777_p2 = pnand %p22775_p12, %p23797_p7  ;;  %p22784_p4 = por %p22783_p1, %p22782_p0 }
 0x137   : > { %p22778_p13 = pneg %p22777_p2 }
 0x139   : > { %p22785_p6 = pnand %p22784_p4, %p22778_p13 }
 0x13b   : > { %22788 = shalt.err (!%p22785_p6)
}
 0x13c   : > { %22054 = dma.hbm_to_vmem [thread:$0]  (!%p23785_p5), %s23675_s21, 32, %s1437_s22, [#allocation29], %s26227_s11, %s26227_s11, %s26133_s10  }
 0x13d   : > { %s22789_s23 = scalar_lea.hbm %s23695_s17, 32 }
 0x13e   : > { %p22790_p8 = scmp.ne.s32.totalorder %s23695_s17, %s22789_s23  ;;  %p22796_p3 = scmp.lt.u32.totalorder %s22789_s23, %s23695_s17 }
 0x140   : > { %p22792_p9 = pnand %p22790_p8, %p23797_p7 }
 0x142   : > { %p22793_p10 = pneg %p22792_p9 }
 0x144   : > { %p22798_p11 = pnand %p22796_p3, %p22793_p10 }
 0x146   : > { %22801 = shalt.err (!%p22798_p11)
}
 0x147   : > { %s22802_s16 = scalar_lea.vmem %s1469_s14, 32  ;;  %p22810_p0 = scmp.lt.s32.totalorder %s1469_s14, %s1469_s14 }
 0x148   : > { %p22803_p12 = scmp.ne.s32.totalorder %s1469_s14, %s22802_s16  ;;  %p22811_p1 = scmp.lt.s32.totalorder %s22802_s16, %s22802_s16 }
 0x14a   : > { %p22805_p2 = pnand %p22803_p12, %p23797_p7  ;;  %p22812_p4 = por %p22811_p1, %p22810_p0 }
 0x14c   : > { %p22806_p13 = pneg %p22805_p2 }
 0x14e   : > { %p22813_p6 = pnand %p22812_p4, %p22806_p13 }
 0x150   : > { %22816 = shalt.err (!%p22813_p6)
}
 0x151   : > { %22060 = dma.hbm_to_vmem [thread:$0]  (!%p23785_p5), %s23695_s17, 32, %s1469_s14, [#allocation32], %s26227_s11, %s26227_s11, %s26133_s10  }
 0x152   : > { %s23477_s22 = smov [#allocation34]   ;;  %s23478_s1 = smov [#allocation37]  }
 0x153   : > { %s1497_s26 = sshll.u32 %s23477_s22, 4  ;;  %s1523_s18 = sshll.u32 %s23478_s1, 4  ;;  %s1498_s26 = int_to_ptr.vmem [resolvable:$true] %s1497_s26  ;;  %s1524_s18 = int_to_ptr.vmem [resolvable:$true] %s1523_s18 }
 0x154   : > { %s22817_s23 = scalar_lea.hbm %s23710_s30, 32 }
 0x155   : > { %p22818_p8 = scmp.ne.s32.totalorder %s23710_s30, %s22817_s23  ;;  %p22824_p3 = scmp.lt.u32.totalorder %s22817_s23, %s23710_s30 }
 0x157   : > { %p22820_p9 = pnand %p22818_p8, %p23797_p7 }
 0x159   : > { %p22821_p10 = pneg %p22820_p9 }
 0x15b   : > { %p22826_p11 = pnand %p22824_p3, %p22821_p10 }
 0x15d   : > { %22829 = shalt.err (!%p22826_p11)
}
 0x15e   : > { %s22830_s16 = scalar_lea.vmem %s1498_s26, 32  ;;  %p22838_p0 = scmp.lt.s32.totalorder %s1498_s26, %s1498_s26 }
 0x15f   : > { %p22831_p12 = scmp.ne.s32.totalorder %s1498_s26, %s22830_s16  ;;  %p22839_p1 = scmp.lt.s32.totalorder %s22830_s16, %s22830_s16 }
 0x161   : > { %p22833_p2 = pnand %p22831_p12, %p23797_p7  ;;  %p22840_p4 = por %p22839_p1, %p22838_p0 }
 0x163   : > { %p22834_p13 = pneg %p22833_p2 }
 0x165   : > { %p22841_p6 = pnand %p22840_p4, %p22834_p13 }
 0x167   : > { %22844 = shalt.err (!%p22841_p6)
}
 0x168   : > { %22066 = dma.hbm_to_vmem [thread:$0]  (!%p23785_p5), %s23710_s30, 32, %s1498_s26, [#allocation35], %s26227_s11, %s26227_s11, %s26133_s10  }
 0x169   : > { %s22845_s14 = scalar_lea.hbm %s23720_s29, 1024 }
 0x16a   : > { %p22846_p8 = scmp.ne.s32.totalorder %s23720_s29, %s22845_s14  ;;  %p22852_p3 = scmp.lt.u32.totalorder %s22845_s14, %s23720_s29 }
 0x16c   : > { %p22848_p9 = pnand %p22846_p8, %p23797_p7 }
 0x16e   : > { %p22849_p10 = pneg %p22848_p9 }
 0x170   : > { %p22854_p11 = pnand %p22852_p3, %p22849_p10 }
 0x172   : > { %22857 = shalt.err (!%p22854_p11)
}
 0x173   : > { %s22858_s22 = scalar_lea.vmem %s1524_s18, 1024  ;;  %p22866_p0 = scmp.lt.s32.totalorder %s1524_s18, %s1524_s18 }
 0x174   : > { %p22859_p12 = scmp.ne.s32.totalorder %s1524_s18, %s22858_s22  ;;  %p22867_p1 = scmp.lt.s32.totalorder %s22858_s22, %s22858_s22 }
 0x176   : > { %p22861_p2 = pnand %p22859_p12, %p23797_p7  ;;  %p22868_p4 = por %p22867_p1, %p22866_p0 }
 0x178   : > { %p22862_p13 = pneg %p22861_p2 }
 0x17a   : > { %p22869_p6 = pnand %p22868_p4, %p22862_p13 }
 0x17c   : > { %22872 = shalt.err (!%p22869_p6)
}
 0x17d   : > { %s23479_s26 = smov 128   ;;  %s23480_s1 = smov 8  }
 0x17e   : > { %22072 = dma.hbm_to_vmem [thread:$0]  (!%p23785_p5), %s23720_s29, 1024, %s1524_s18, [#allocation38], %s23479_s26, %s23479_s26, %s23480_s1  }
 0x17f   : > { %s23481_s23 = smov [#allocation40]   ;;  %s23482_s14 = smov [#allocation43]  }
 0x180   : > { %s1552_s16 = sshll.u32 %s23481_s23, 4  ;;  %s1577_s10 = sshll.u32 %s23482_s14, 4  ;;  %s1553_s16 = int_to_ptr.vmem [resolvable:$true] %s1552_s16  ;;  %s1578_s10 = int_to_ptr.vmem [resolvable:$true] %s1577_s10 }
 0x181   : > { %s22873_s4 = scalar_lea.hbm %s23735_s25, 32 }
 0x182   : > { %p22874_p8 = scmp.ne.s32.totalorder %s23735_s25, %s22873_s4  ;;  %p22880_p3 = scmp.lt.u32.totalorder %s22873_s4, %s23735_s25 }
 0x184   : > { %p22876_p9 = pnand %p22874_p8, %p23797_p7 }
 0x186   : > { %p22877_p10 = pneg %p22876_p9 }
 0x188   : > { %p22882_p11 = pnand %p22880_p3, %p22877_p10 }
 0x18a   : > { %22885 = shalt.err (!%p22882_p11)
}
 0x18b   : > { %s22886_s22 = scalar_lea.vmem %s1553_s16, 32  ;;  %p22894_p0 = scmp.lt.s32.totalorder %s1553_s16, %s1553_s16 }
 0x18c   : > { %p22887_p12 = scmp.ne.s32.totalorder %s1553_s16, %s22886_s22  ;;  %p22895_p1 = scmp.lt.s32.totalorder %s22886_s22, %s22886_s22 }
 0x18e   : > { %p22889_p2 = pnand %p22887_p12, %p23797_p7  ;;  %p22896_p4 = por %p22895_p1, %p22894_p0 }
 0x190   : > { %p22890_p13 = pneg %p22889_p2 }
 0x192   : > { %p22897_p6 = pnand %p22896_p4, %p22890_p13 }
 0x194   : > { %22900 = shalt.err (!%p22897_p6)
}
 0x195   : > { %s26228_s18 = smov 1   ;;  %s22901_s4 = scalar_lea.hbm %s26218_s9, 16 }
 0x196   : > { %22078 = dma.hbm_to_vmem [thread:$0]  (!%p23785_p5), %s23735_s25, 32, %s1553_s16, [#allocation41], %s26227_s11, %s26227_s11, %s26228_s18  }
 0x197   : > { %p22902_p8 = scmp.ne.s32.totalorder %s26218_s9, %s22901_s4  ;;  %p22908_p3 = scmp.lt.u32.totalorder %s22901_s4, %s26218_s9 }
 0x199   : > { %p22904_p9 = pnand %p22902_p8, %p23797_p7 }
 0x19b   : > { %p22905_p10 = pneg %p22904_p9 }
 0x19d   : > { %p22910_p11 = pnand %p22908_p3, %p22905_p10 }
 0x19f   : > { %22913 = shalt.err (!%p22910_p11)
}
 0x1a0   : > { %s22914_s26 = scalar_lea.vmem %s1578_s10, 16  ;;  %s22921_s1 = scalar_lea.vmem %s1578_s10, 32 }
 0x1a1   : > { %p22915_p12 = scmp.ne.s32.totalorder %s1578_s10, %s22914_s26  ;;  %p22922_p0 = scmp.lt.s32.totalorder %s1578_s10, %s1578_s10 }
 0x1a2   : > { %p22923_p1 = scmp.lt.s32.totalorder %s22921_s1, %s22914_s26 }
 0x1a3   : > { %p22917_p2 = pnand %p22915_p12, %p23797_p7 }
 0x1a4   : > { %p22924_p4 = por %p22923_p1, %p22922_p0 }
 0x1a5   : > { %p22918_p13 = pneg %p22917_p2 }
 0x1a7   : > { %p22925_p6 = pnand %p22924_p4, %p22918_p13 }
 0x1a9   : > { %22928 = shalt.err (!%p22925_p6)
}
 0x1aa   : > { %22084 = dma.hbm_to_vmem [thread:$0]  (!%p23785_p5), %s26218_s9, 16, %s1578_s10, [#allocation44]  }
 0x1ab   : > { %s23483_s23 = smov [#allocation2]   ;;  %s23484_s14 = smov [#allocation6]  }
 0x1ac   : > { %s1203_s16 = sshll.u32 %s23483_s23, 4  ;;  %s1227_s22 = sshll.u32 %s23484_s14, 4  ;;  %s1204_s16 = int_to_ptr.vmem [resolvable:$true] %s1203_s16  ;;  %s1228_s22 = int_to_ptr.vmem [resolvable:$true] %s1227_s22 }
 0x1ad   : > { %s22929_s4 = scalar_lea.hbm %s26221_s3, 16 }
 0x1ae   : > { %p22930_p8 = scmp.ne.s32.totalorder %s26221_s3, %s22929_s4  ;;  %p22936_p3 = scmp.lt.u32.totalorder %s22929_s4, %s26221_s3 }
 0x1b0   : > { %p22932_p9 = pnand %p22930_p8, %p23797_p7 }
 0x1b2   : > { %p22933_p10 = pneg %p22932_p9 }
 0x1b4   : > { %p22938_p11 = pnand %p22936_p3, %p22933_p10 }
 0x1b6   : > { %22941 = shalt.err (!%p22938_p11)
}
 0x1b7   : > { %s22942_s26 = scalar_lea.vmem %s1204_s16, 16  ;;  %s22949_s10 = scalar_lea.vmem %s1204_s16, 32 }
 0x1b8   : > { %p22943_p12 = scmp.ne.s32.totalorder %s1204_s16, %s22942_s26  ;;  %p22950_p0 = scmp.lt.s32.totalorder %s1204_s16, %s1204_s16 }
 0x1b9   : > { %p22951_p1 = scmp.lt.s32.totalorder %s22949_s10, %s22942_s26 }
 0x1ba   : > { %p22945_p2 = pnand %p22943_p12, %p23797_p7 }
 0x1bb   : > { %p22952_p4 = por %p22951_p1, %p22950_p0 }
 0x1bc   : > { %p22946_p13 = pneg %p22945_p2 }
 0x1be   : > { %p22953_p6 = pnand %p22952_p4, %p22946_p13 }
 0x1c0   : > { %22956 = shalt.err (!%p22953_p6)
}
 0x1c1   : > { %s26229_s1 = sld [smem:[#allocation71_spill]] }
 0x1c2   : > { %22003 = dma.hbm_to_vmem [thread:$0]  (!%p23785_p5), %s26221_s3, 16, %s1204_s16, [#allocation3]  }
 0x1c7   : > { %s22957_s23 = scalar_lea.hbm %s26229_s1, 32 }
 0x1c8   : > { %p22958_p8 = scmp.ne.s32.totalorder %s26229_s1, %s22957_s23  ;;  %p22964_p3 = scmp.lt.u32.totalorder %s22957_s23, %s26229_s1 }
 0x1ca   : > { %p22960_p9 = pnand %p22958_p8, %p23797_p7 }
 0x1cc   : > { %p22961_p10 = pneg %p22960_p9 }
 0x1ce   : > { %p22966_p11 = pnand %p22964_p3, %p22961_p10 }
 0x1d0   : > { %22969 = shalt.err (!%p22966_p11)
}
 0x1d1   : > { %s22970_s14 = scalar_lea.vmem %s1228_s22, 32  ;;  %p22978_p0 = scmp.lt.s32.totalorder %s1228_s22, %s1228_s22 }
 0x1d2   : > { %p22971_p12 = scmp.ne.s32.totalorder %s1228_s22, %s22970_s14  ;;  %p22979_p1 = scmp.lt.s32.totalorder %s22970_s14, %s22970_s14 }
 0x1d4   : > { %p22973_p2 = pnand %p22971_p12, %p23797_p7  ;;  %p22980_p4 = por %p22979_p1, %p22978_p0 }
 0x1d6   : > { %p22974_p13 = pneg %p22973_p2 }
 0x1d8   : > { %p22981_p6 = pnand %p22980_p4, %p22974_p13 }
 0x1da   : > { %22984 = shalt.err (!%p22981_p6)
}
 0x1db   : > { %s26230_s16 = sld [smem:[#allocation73_spill]]  ;;  %s23485_s4 = smov [#allocation9]  }
 0x1dc   : > { %22009 = dma.hbm_to_vmem [thread:$0]  (!%p23785_p5), %s26229_s1, 32, %s1228_s22, [#allocation5], %s26227_s11, %s26227_s11, %s26228_s18  }
 0x1dd   : > { %s1256_s26 = sshll.u32 %s23485_s4, 4  ;;  %s23486_s10 = smov [#allocation12]   ;;  %s1257_s26 = int_to_ptr.vmem [resolvable:$true] %s1256_s26 }
 0x1de   : > { %s1285_s23 = sshll.u32 %s23486_s10, 4  ;;  %s1286_s23 = int_to_ptr.vmem [resolvable:$true] %s1285_s23 }
 0x1e1   : > { %s22985_s14 = scalar_lea.hbm %s26230_s16, 32 }
 0x1e2   : > { %p22986_p8 = scmp.ne.s32.totalorder %s26230_s16, %s22985_s14  ;;  %p22992_p3 = scmp.lt.u32.totalorder %s22985_s14, %s26230_s16 }
 0x1e4   : > { %p22988_p9 = pnand %p22986_p8, %p23797_p7 }
 0x1e6   : > { %p22989_p10 = pneg %p22988_p9 }
 0x1e8   : > { %p22994_p11 = pnand %p22992_p3, %p22989_p10 }
 0x1ea   : > { %22997 = shalt.err (!%p22994_p11)
}
 0x1eb   : > { %s22998_s3 = scalar_lea.vmem %s1257_s26, 32  ;;  %p23006_p0 = scmp.lt.s32.totalorder %s1257_s26, %s1257_s26 }
 0x1ec   : > { %p22999_p12 = scmp.ne.s32.totalorder %s1257_s26, %s22998_s3  ;;  %p23007_p1 = scmp.lt.s32.totalorder %s22998_s3, %s22998_s3 }
 0x1ee   : > { %p23001_p2 = pnand %p22999_p12, %p23797_p7  ;;  %p23008_p4 = por %p23007_p1, %p23006_p0 }
 0x1f0   : > { %p23002_p13 = pneg %p23001_p2 }
 0x1f2   : > { %p23009_p6 = pnand %p23008_p4, %p23002_p13 }
 0x1f4   : > { %23012 = shalt.err (!%p23009_p6)
}
 0x1f5   : > { %s26231_s22 = sld [smem:[#allocation75_spill]] }
 0x1f6   : > { %22015 = dma.hbm_to_vmem [thread:$0]  (!%p23785_p5), %s26230_s16, 32, %s1257_s26, [#allocation8], %s26227_s11, %s26227_s11, %s26228_s18  }
 0x1fb   : > { %s23013_s4 = scalar_lea.hbm %s26231_s22, 32 }
 0x1fc   : > { %p23014_p8 = scmp.ne.s32.totalorder %s26231_s22, %s23013_s4  ;;  %p23020_p3 = scmp.lt.u32.totalorder %s23013_s4, %s26231_s22 }
 0x1fe   : > { %p23016_p9 = pnand %p23014_p8, %p23797_p7 }
 0x200   : > { %p23017_p10 = pneg %p23016_p9 }
 0x202   : > { %p23022_p11 = pnand %p23020_p3, %p23017_p10 }
 0x204   : > { %23025 = shalt.err (!%p23022_p11)
}
 0x205   : > { %s23026_s3 = scalar_lea.vmem %s1286_s23, 32  ;;  %p23034_p0 = scmp.lt.s32.totalorder %s1286_s23, %s1286_s23 }
 0x206   : > { %p23027_p12 = scmp.ne.s32.totalorder %s1286_s23, %s23026_s3  ;;  %p23035_p1 = scmp.lt.s32.totalorder %s23026_s3, %s23026_s3 }
 0x208   : > { %p23029_p2 = pnand %p23027_p12, %p23797_p7  ;;  %p23036_p4 = por %p23035_p1, %p23034_p0 }
 0x20a   : > { %p23030_p13 = pneg %p23029_p2 }
 0x20c   : > { %p23037_p6 = pnand %p23036_p4, %p23030_p13 }
 0x20e   : > { %23040 = shalt.err (!%p23037_p6)
}
 0x20f   : > { %s26232_s26 = sld [smem:[#allocation78_spill]]  ;;  %s23487_s10 = smov [#allocation15]  }
 0x210   : > { %22021 = dma.hbm_to_vmem [thread:$0]  (!%p23785_p5), %s26231_s22, 32, %s1286_s23, [#allocation11], %s26227_s11, %s26227_s11, %s26228_s18  }
 0x211   : > { %s1314_s14 = sshll.u32 %s23487_s10, 4  ;;  %s23488_s4 = smov [#allocation18]   ;;  %s1315_s14 = int_to_ptr.vmem [resolvable:$true] %s1314_s14 }
 0x212   : > { %s1344_s1 = sshll.u32 %s23488_s4, 4  ;;  %s1345_s1 = int_to_ptr.vmem [resolvable:$true] %s1344_s1 }
 0x215   : > { %s23041_s3 = scalar_lea.hbm %s26232_s26, 32 }
 0x216   : > { %p23042_p8 = scmp.ne.s32.totalorder %s26232_s26, %s23041_s3  ;;  %p23048_p3 = scmp.lt.u32.totalorder %s23041_s3, %s26232_s26 }
 0x218   : > { %p23044_p9 = pnand %p23042_p8, %p23797_p7 }
 0x21a   : > { %p23045_p10 = pneg %p23044_p9 }
 0x21c   : > { %p23050_p11 = pnand %p23048_p3, %p23045_p10 }
 0x21e   : > { %23053 = shalt.err (!%p23050_p11)
}
 0x21f   : > { %s23054_s5 = scalar_lea.vmem %s1315_s14, 32  ;;  %p23062_p0 = scmp.lt.s32.totalorder %s1315_s14, %s1315_s14 }
 0x220   : > { %p23055_p12 = scmp.ne.s32.totalorder %s1315_s14, %s23054_s5  ;;  %p23063_p1 = scmp.lt.s32.totalorder %s23054_s5, %s23054_s5 }
 0x222   : > { %p23057_p2 = pnand %p23055_p12, %p23797_p7  ;;  %p23064_p4 = por %p23063_p1, %p23062_p0 }
 0x224   : > { %p23058_p13 = pneg %p23057_p2 }
 0x226   : > { %p23065_p6 = pnand %p23064_p4, %p23058_p13 }
 0x228   : > { %23068 = shalt.err (!%p23065_p6)
}
 0x229   : > { %s26233_s23 = sld [smem:[#allocation81_spill]] }
 0x22a   : > { %22027 = dma.hbm_to_vmem [thread:$0]  (!%p23785_p5), %s26232_s26, 32, %s1315_s14, [#allocation14], %s26227_s11, %s26227_s11, %s26228_s18  }
 0x22f   : > { %s23069_s10 = scalar_lea.hbm %s26233_s23, 16 }
 0x230   : > { %p23070_p8 = scmp.ne.s32.totalorder %s26233_s23, %s23069_s10  ;;  %p23076_p3 = scmp.lt.u32.totalorder %s23069_s10, %s26233_s23 }
 0x232   : > { %p23072_p9 = pnand %p23070_p8, %p23797_p7 }
 0x234   : > { %p23073_p10 = pneg %p23072_p9 }
 0x236   : > { %p23078_p11 = pnand %p23076_p3, %p23073_p10 }
 0x238   : > { %23081 = shalt.err (!%p23078_p11)
}
 0x239   : > { %s23082_s5 = scalar_lea.vmem %s1345_s1, 16  ;;  %s23089_s4 = scalar_lea.vmem %s1345_s1, 32 }
 0x23a   : > { %p23083_p12 = scmp.ne.s32.totalorder %s1345_s1, %s23082_s5  ;;  %p23090_p0 = scmp.lt.s32.totalorder %s1345_s1, %s1345_s1 }
 0x23b   : > { %p23091_p1 = scmp.lt.s32.totalorder %s23089_s4, %s23082_s5 }
 0x23c   : > { %p23085_p2 = pnand %p23083_p12, %p23797_p7 }
 0x23d   : > { %p23092_p4 = por %p23091_p1, %p23090_p0 }
 0x23e   : > { %p23086_p13 = pneg %p23085_p2 }
 0x240   : > { %p23093_p6 = pnand %p23092_p4, %p23086_p13 }
 0x242   : > { %23096 = shalt.err (!%p23093_p6)
}
 0x243   : > { %s26234_s14 = sld [smem:[#allocation83_spill]]  ;;  %s23489_s3 = smov [#allocation21]  }
 0x244   : > { %22033 = dma.hbm_to_vmem [thread:$0]  (!%p23785_p5), %s26233_s23, 16, %s1345_s1, [#allocation17]  }
 0x245   : > { %s1365_s10 = sshll.u32 %s23489_s3, 4  ;;  %s23490_s8 = smov [#allocation24]   ;;  %s1366_s10 = int_to_ptr.vmem [resolvable:$true] %s1365_s10 }
 0x246   : > { %s1394_s9 = sshll.u32 %s23490_s8, 4  ;;  %s1395_s9 = int_to_ptr.vmem [resolvable:$true] %s1394_s9 }
 0x249   : > { %s23097_s12 = scalar_lea.hbm %s26234_s14, 32 }
 0x24a   : > { %p23098_p8 = scmp.ne.s32.totalorder %s26234_s14, %s23097_s12  ;;  %p23104_p3 = scmp.lt.u32.totalorder %s23097_s12, %s26234_s14 }
 0x24c   : > { %p23100_p9 = pnand %p23098_p8, %p23797_p7 }
 0x24e   : > { %p23101_p10 = pneg %p23100_p9 }
 0x250   : > { %p23106_p11 = pnand %p23104_p3, %p23101_p10 }
 0x252   : > { %23109 = shalt.err (!%p23106_p11)
}
 0x253   : > { %s23110_s5 = scalar_lea.vmem %s1366_s10, 32  ;;  %p23118_p0 = scmp.lt.s32.totalorder %s1366_s10, %s1366_s10 }
 0x254   : > { %p23111_p12 = scmp.ne.s32.totalorder %s1366_s10, %s23110_s5  ;;  %p23119_p1 = scmp.lt.s32.totalorder %s23110_s5, %s23110_s5 }
 0x256   : > { %p23113_p2 = pnand %p23111_p12, %p23797_p7  ;;  %p23120_p4 = por %p23119_p1, %p23118_p0 }
 0x258   : > { %p23114_p13 = pneg %p23113_p2 }
 0x25a   : > { %p23121_p6 = pnand %p23120_p4, %p23114_p13 }
 0x25c   : > { %23124 = shalt.err (!%p23121_p6)
}
 0x25d   : > { %s26235_s8 = sld [smem:[#allocation86_spill]] }
 0x25e   : > { %22039 = dma.hbm_to_vmem [thread:$0]  (!%p23785_p5), %s26234_s14, 32, %s1366_s10, [#allocation20], %s26227_s11, %s26227_s11, %s26228_s18  }
 0x263   : > { %s23125_s12 = scalar_lea.hbm %s26235_s8, 32 }
 0x264   : > { %p23126_p8 = scmp.ne.s32.totalorder %s26235_s8, %s23125_s12  ;;  %p23132_p3 = scmp.lt.u32.totalorder %s23125_s12, %s26235_s8 }
 0x266   : > { %p23128_p9 = pnand %p23126_p8, %p23797_p7 }
 0x268   : > { %p23129_p10 = pneg %p23128_p9 }
 0x26a   : > { %p23134_p11 = pnand %p23132_p3, %p23129_p10 }
 0x26c   : > { %23137 = shalt.err (!%p23134_p11)
}
 0x26d   : > { %s23138_s1 = scalar_lea.vmem %s1395_s9, 32  ;;  %p23146_p0 = scmp.lt.s32.totalorder %s1395_s9, %s1395_s9 }
 0x26e   : > { %p23139_p12 = scmp.ne.s32.totalorder %s1395_s9, %s23138_s1  ;;  %p23147_p1 = scmp.lt.s32.totalorder %s23138_s1, %s23138_s1 }
 0x270   : > { %p23141_p2 = pnand %p23139_p12, %p23797_p7  ;;  %p23148_p4 = por %p23147_p1, %p23146_p0 }
 0x272   : > { %p23142_p13 = pneg %p23141_p2 }
 0x274   : > { %p23149_p6 = pnand %p23148_p4, %p23142_p13 }
 0x276   : > { %23152 = shalt.err (!%p23149_p6)
}
 0x277   : > { %s26236_s4 = sld [smem:[#allocation89_spill]]  ;;  %s23491_s3 = smov [#allocation27]  }
 0x278   : > { %22045 = dma.hbm_to_vmem [thread:$0]  (!%p23785_p5), %s26235_s8, 32, %s1395_s9, [#allocation23], %s26227_s11, %s26227_s11, %s26228_s18  }
 0x279   : > { %s1423_s10 = sshll.u32 %s23491_s3, 4  ;;  %s23492_s5 = smov [#allocation30]   ;;  %s1424_s10 = int_to_ptr.vmem [resolvable:$true] %s1423_s10 }
 0x27a   : > { %s1452_s12 = sshll.u32 %s23492_s5, 4  ;;  %s1453_s12 = int_to_ptr.vmem [resolvable:$true] %s1452_s12 }
 0x27d   : > { %s23153_s1 = scalar_lea.hbm %s26236_s4, 32 }
 0x27e   : > { %p23154_p8 = scmp.ne.s32.totalorder %s26236_s4, %s23153_s1  ;;  %p23160_p3 = scmp.lt.u32.totalorder %s23153_s1, %s26236_s4 }
 0x280   : > { %p23156_p9 = pnand %p23154_p8, %p23797_p7 }
 0x282   : > { %p23157_p10 = pneg %p23156_p9 }
 0x284   : > { %p23162_p11 = pnand %p23160_p3, %p23157_p10 }
 0x286   : > { %23165 = shalt.err (!%p23162_p11)
}
 0x287   : > { %s23166_s13 = scalar_lea.vmem %s1424_s10, 32  ;;  %p23174_p0 = scmp.lt.s32.totalorder %s1424_s10, %s1424_s10 }
 0x288   : > { %p23167_p12 = scmp.ne.s32.totalorder %s1424_s10, %s23166_s13  ;;  %p23175_p1 = scmp.lt.s32.totalorder %s23166_s13, %s23166_s13 }
 0x28a   : > { %p23169_p2 = pnand %p23167_p12, %p23797_p7  ;;  %p23176_p4 = por %p23175_p1, %p23174_p0 }
 0x28c   : > { %p23170_p13 = pneg %p23169_p2 }
 0x28e   : > { %p23177_p6 = pnand %p23176_p4, %p23170_p13 }
 0x290   : > { %23180 = shalt.err (!%p23177_p6)
}
 0x291   : > { %s26237_s9 = sld [smem:[#allocation91_spill]] }
 0x292   : > { %22051 = dma.hbm_to_vmem [thread:$0]  (!%p23785_p5), %s26236_s4, 32, %s1424_s10, [#allocation26], %s26227_s11, %s26227_s11, %s26228_s18  }
 0x297   : > { %s23181_s3 = scalar_lea.hbm %s26237_s9, 32 }
 0x298   : > { %p23182_p8 = scmp.ne.s32.totalorder %s26237_s9, %s23181_s3  ;;  %p23188_p3 = scmp.lt.u32.totalorder %s23181_s3, %s26237_s9 }
 0x29a   : > { %p23184_p9 = pnand %p23182_p8, %p23797_p7 }
 0x29c   : > { %p23185_p10 = pneg %p23184_p9 }
 0x29e   : > { %p23190_p11 = pnand %p23188_p3, %p23185_p10 }
 0x2a0   : > { %23193 = shalt.err (!%p23190_p11)
}
 0x2a1   : > { %s23194_s13 = scalar_lea.vmem %s1453_s12, 32  ;;  %p23202_p0 = scmp.lt.s32.totalorder %s1453_s12, %s1453_s12 }
 0x2a2   : > { %p23195_p12 = scmp.ne.s32.totalorder %s1453_s12, %s23194_s13  ;;  %p23203_p1 = scmp.lt.s32.totalorder %s23194_s13, %s23194_s13 }
 0x2a4   : > { %p23197_p2 = pnand %p23195_p12, %p23797_p7  ;;  %p23204_p4 = por %p23203_p1, %p23202_p0 }
 0x2a6   : > { %p23198_p13 = pneg %p23197_p2 }
 0x2a8   : > { %p23205_p6 = pnand %p23204_p4, %p23198_p13 }
 0x2aa   : > { %23208 = shalt.err (!%p23205_p6)
}
 0x2ab   : > { %s26238_s10 = sld [smem:[#allocation94_spill]]  ;;  %s23493_s5 = smov [#allocation33]  }
 0x2ac   : > { %22057 = dma.hbm_to_vmem [thread:$0]  (!%p23785_p5), %s26237_s9, 32, %s1453_s12, [#allocation29], %s26227_s11, %s26227_s11, %s26228_s18  }
 0x2ad   : > { %s1484_s1 = sshll.u32 %s23493_s5, 4  ;;  %s23494_s3 = smov [#allocation36]   ;;  %s1485_s1 = int_to_ptr.vmem [resolvable:$true] %s1484_s1 }
 0x2ae   : > { %s1510_s4 = sshll.u32 %s23494_s3, 4  ;;  %s1511_s4 = int_to_ptr.vmem [resolvable:$true] %s1510_s4 }
 0x2b1   : > { %s23209_s13 = scalar_lea.hbm %s26238_s10, 32 }
 0x2b2   : > { %p23210_p8 = scmp.ne.s32.totalorder %s26238_s10, %s23209_s13  ;;  %p23216_p3 = scmp.lt.u32.totalorder %s23209_s13, %s26238_s10 }
 0x2b4   : > { %p23212_p9 = pnand %p23210_p8, %p23797_p7 }
 0x2b6   : > { %p23213_p10 = pneg %p23212_p9 }
 0x2b8   : > { %p23218_p11 = pnand %p23216_p3, %p23213_p10 }
 0x2ba   : > { %23221 = shalt.err (!%p23218_p11)
}
 0x2bb   : > { %s23222_s8 = scalar_lea.vmem %s1485_s1, 32  ;;  %p23230_p0 = scmp.lt.s32.totalorder %s1485_s1, %s1485_s1 }
 0x2bc   : > { %p23223_p12 = scmp.ne.s32.totalorder %s1485_s1, %s23222_s8  ;;  %p23231_p1 = scmp.lt.s32.totalorder %s23222_s8, %s23222_s8 }
 0x2be   : > { %p23225_p2 = pnand %p23223_p12, %p23797_p7  ;;  %p23232_p4 = por %p23231_p1, %p23230_p0 }
 0x2c0   : > { %p23226_p13 = pneg %p23225_p2 }
 0x2c2   : > { %p23233_p6 = pnand %p23232_p4, %p23226_p13 }
 0x2c4   : > { %23236 = shalt.err (!%p23233_p6)
}
 0x2c5   : > { %s26239_s12 = sld [smem:[#allocation95_spill]] }
 0x2c6   : > { %22063 = dma.hbm_to_vmem [thread:$0]  (!%p23785_p5), %s26238_s10, 32, %s1485_s1, [#allocation32], %s26227_s11, %s26227_s11, %s26228_s18  }
 0x2cb   : > { %s23237_s5 = scalar_lea.hbm %s26239_s12, 32 }
 0x2cc   : > { %p23238_p8 = scmp.ne.s32.totalorder %s26239_s12, %s23237_s5  ;;  %p23244_p3 = scmp.lt.u32.totalorder %s23237_s5, %s26239_s12 }
 0x2ce   : > { %p23240_p9 = pnand %p23238_p8, %p23797_p7 }
 0x2d0   : > { %p23241_p10 = pneg %p23240_p9 }
 0x2d2   : > { %p23246_p11 = pnand %p23244_p3, %p23241_p10 }
 0x2d4   : > { %23249 = shalt.err (!%p23246_p11)
}
 0x2d5   : > { %s23250_s8 = scalar_lea.vmem %s1511_s4, 32  ;;  %p23258_p0 = scmp.lt.s32.totalorder %s1511_s4, %s1511_s4 }
 0x2d6   : > { %p23251_p12 = scmp.ne.s32.totalorder %s1511_s4, %s23250_s8  ;;  %p23259_p1 = scmp.lt.s32.totalorder %s23250_s8, %s23250_s8 }
 0x2d8   : > { %p23253_p2 = pnand %p23251_p12, %p23797_p7  ;;  %p23260_p4 = por %p23259_p1, %p23258_p0 }
 0x2da   : > { %p23254_p13 = pneg %p23253_p2 }
 0x2dc   : > { %p23261_p6 = pnand %p23260_p4, %p23254_p13 }
 0x2de   : > { %23264 = shalt.err (!%p23261_p6)
}
 0x2df   : > { %s26240_s1 = sld [smem:[#allocation96_spill]]  ;;  %s23495_s3 = smov [#allocation39]  }
 0x2e0   : > { %22069 = dma.hbm_to_vmem [thread:$0]  (!%p23785_p5), %s26239_s12, 32, %s1511_s4, [#allocation35], %s26227_s11, %s26227_s11, %s26228_s18  }
 0x2e1   : > { %s1536_s13 = sshll.u32 %s23495_s3, 4  ;;  %s23496_s5 = smov [#allocation42]   ;;  %s1537_s13 = int_to_ptr.vmem [resolvable:$true] %s1536_s13 }
 0x2e2   : > { %s1566_s9 = sshll.u32 %s23496_s5, 4  ;;  %s1567_s9 = int_to_ptr.vmem [resolvable:$true] %s1566_s9 }
 0x2e5   : > { %s23265_s8 = scalar_lea.hbm %s26240_s1, 32 }
 0x2e6   : > { %p23266_p8 = scmp.ne.s32.totalorder %s26240_s1, %s23265_s8  ;;  %p23272_p3 = scmp.lt.u32.totalorder %s23265_s8, %s26240_s1 }
 0x2e8   : > { %p23268_p9 = pnand %p23266_p8, %p23797_p7 }
 0x2ea   : > { %p23269_p10 = pneg %p23268_p9 }
 0x2ec   : > { %p23274_p11 = pnand %p23272_p3, %p23269_p10 }
 0x2ee   : > { %23277 = shalt.err (!%p23274_p11)
}
 0x2ef   : > { %s23278_s10 = scalar_lea.vmem %s1537_s13, 32  ;;  %p23286_p0 = scmp.lt.s32.totalorder %s1537_s13, %s1537_s13 }
 0x2f0   : > { %p23279_p12 = scmp.ne.s32.totalorder %s1537_s13, %s23278_s10  ;;  %p23287_p1 = scmp.lt.s32.totalorder %s23278_s10, %s23278_s10 }
 0x2f2   : > { %p23281_p2 = pnand %p23279_p12, %p23797_p7  ;;  %p23288_p4 = por %p23287_p1, %p23286_p0 }
 0x2f4   : > { %p23282_p13 = pneg %p23281_p2 }
 0x2f6   : > { %p23289_p6 = pnand %p23288_p4, %p23282_p13 }
 0x2f8   : > { %23292 = shalt.err (!%p23289_p6)
}
 0x2f9   : > { %s26241_s4 = sld [smem:[#allocation98_spill]] }
 0x2fa   : > { %22075 = dma.hbm_to_vmem [thread:$0]  (!%p23785_p5), %s26240_s1, 32, %s1537_s13, [#allocation38], %s26227_s11, %s26227_s11, %s26228_s18  }
 0x2ff   : > { %s23293_s3 = scalar_lea.hbm %s26241_s4, 16 }
 0x300   : > { %p23294_p8 = scmp.ne.s32.totalorder %s26241_s4, %s23293_s3  ;;  %p23300_p3 = scmp.lt.u32.totalorder %s23293_s3, %s26241_s4 }
 0x302   : > { %p23296_p9 = pnand %p23294_p8, %p23797_p7 }
 0x304   : > { %p23297_p10 = pneg %p23296_p9 }
 0x306   : > { %p23302_p11 = pnand %p23300_p3, %p23297_p10 }
 0x308   : > { %23305 = shalt.err (!%p23302_p11)
}
 0x309   : > { %s23306_s10 = scalar_lea.vmem %s1567_s9, 16  ;;  %s23313_s5 = scalar_lea.vmem %s1567_s9, 32 }
 0x30a   : > { %p23307_p12 = scmp.ne.s32.totalorder %s1567_s9, %s23306_s10  ;;  %p23314_p0 = scmp.lt.s32.totalorder %s1567_s9, %s1567_s9 }
 0x30b   : > { %p23315_p1 = scmp.lt.s32.totalorder %s23313_s5, %s23306_s10 }
 0x30c   : > { %p23309_p2 = pnand %p23307_p12, %p23797_p7 }
 0x30d   : > { %p23316_p4 = por %p23315_p1, %p23314_p0 }
 0x30e   : > { %p23310_p13 = pneg %p23309_p2 }
 0x310   : > { %p23317_p6 = pnand %p23316_p4, %p23310_p13 }
 0x312   : > { %23320 = shalt.err (!%p23317_p6)
}
 0x313   : > { %22081 = dma.hbm_to_vmem [thread:$0]  (!%p23785_p5), %s26241_s4, 16, %s1567_s9, [#allocation41]  }
 0x314   : > { %s23497_s11 = smov [#allocation45]   ;;  %s23321_s13 = scalar_lea.hbm %s23755_s19, 16 }
 0x315   : > { %s1591_s18 = sshll.u32 %s23497_s11, 4  ;;  %p23322_p8 = scmp.ne.s32.totalorder %s23755_s19, %s23321_s13  ;;  %s1592_s18 = int_to_ptr.vmem [resolvable:$true] %s1591_s18 }
 0x316   : > { %p23328_p3 = scmp.lt.u32.totalorder %s23321_s13, %s23755_s19 }
 0x317   : > { %p23324_p9 = pnand %p23322_p8, %p23797_p7 }
 0x319   : > { %p23325_p10 = pneg %p23324_p9 }
 0x31b   : > { %p23330_p11 = pnand %p23328_p3, %p23325_p10 }
 0x31d   : > { %23333 = shalt.err (!%p23330_p11)
}
 0x31e   : > { %s23334_s8 = scalar_lea.vmem %s1592_s18, 16  ;;  %s23341_s3 = scalar_lea.vmem %s1592_s18, 32 }
 0x31f   : > { %p23335_p12 = scmp.ne.s32.totalorder %s1592_s18, %s23334_s8  ;;  %p23342_p0 = scmp.lt.s32.totalorder %s1592_s18, %s1592_s18 }
 0x320   : > { %p23343_p1 = scmp.lt.s32.totalorder %s23341_s3, %s23334_s8 }
 0x321   : > { %p23337_p2 = pnand %p23335_p12, %p23797_p7 }
 0x322   : > { %p23344_p4 = por %p23343_p1, %p23342_p0 }
 0x323   : > { %p23338_p13 = pneg %p23337_p2 }
 0x325   : > { %p23345_p6 = pnand %p23344_p4, %p23338_p13 }
 0x327   : > { %23348 = shalt.err (!%p23345_p6)
}
 0x328   : > { %22087 = dma.hbm_to_vmem [thread:$0]  (!%p23785_p5), %s23755_s19, 16, %s1592_s18, [#allocation44]  }
 0x329   : > { %p26242_p8 = scmp.ne.s32.totalorder %s26224_s7, 0 }
 0x32a   : > { %p26243_p9 = scmp.eq.s32.totalorder (!%p26242_p8), %s23768_s2, 0 }
 0x32b   : > { %1639 = sbr.rel (%p26242_p8) target bundleno = 21089 (0x5261), region = 212 }
 0x332   : > { %23354 = dma.done.wait (%p26243_p9), [#allocation3], 16   ;;  %p26244_p10 = pmov %p26243_p9 }
 0x333   : > { %p26245_p7 = pmov %p26243_p9 }
 0x334   : > { %23356 = vsyncadd (%p26244_p10), [#allocation3], 4294967280 }
 0x335   : > { %23358 = dma.done.wait (%p26245_p7), [#allocation5], 48   ;;  %p26246_p3 = pmov %p26245_p7 }
 0x337   : > { %23360 = vsyncadd (%p26246_p3), [#allocation5], 4294967248  ;;  %p26247_p11 = pmov %p26246_p3 }
 0x338   : > { %p26248_p5 = pmov %p26246_p3 }
 0x339   : > { %23362 = dma.done.wait (%p26247_p11), [#allocation8], 64  }
 0x33a   : > { %23364 = vsyncadd (%p26248_p5), [#allocation8], 4294967232  ;;  %p26249_p12 = pmov %p26246_p3 }
 0x33b   : > { %p26250_p2 = pmov %p26246_p3 }
 0x33c   : > { %23366 = dma.done.wait (%p26249_p12), [#allocation11], 64  }
 0x33d   : > { %23368 = vsyncadd (%p26250_p2), [#allocation11], 4294967232  ;;  %p26251_p13 = pmov %p26250_p2 }
 0x33e   : > { %p26252_p0 = pmov %p26250_p2 }
 0x33f   : > { %23370 = dma.done.wait (%p26251_p13), [#allocation14], 64  }
 0x340   : > { %23372 = vsyncadd (%p26252_p0), [#allocation14], 4294967232  ;;  %p26253_p1 = pmov %p26252_p0 }
 0x341   : > { %p26254_p4 = pmov %p26252_p0 }
 0x342   : > { %23374 = dma.done.wait (%p26253_p1), [#allocation17], 48  }
 0x343   : > { %23376 = vsyncadd (%p26254_p4), [#allocation17], 4294967248  ;;  %p26255_p6 = pmov %p26252_p0 }
 0x344   : > { %p26256_p8 = pmov %p26252_p0 }
 0x345   : > { %23378 = dma.done.wait (%p26255_p6), [#allocation20], 48  }
 0x346   : > { %23380 = vsyncadd (%p26256_p8), [#allocation20], 4294967248  ;;  %p26257_p9 = pmov %p26252_p0 }
 0x347   : > { %p26258_p10 = pmov %p26252_p0 }
 0x348   : > { %23382 = dma.done.wait (%p26257_p9), [#allocation23], 64  }
 0x349   : > { %23384 = vsyncadd (%p26258_p10), [#allocation23], 4294967232  ;;  %p26259_p7 = pmov %p26252_p0 }
 0x34a   : > { %p26260_p3 = pmov %p26252_p0 }
 0x34b   : > { %23386 = dma.done.wait (%p26259_p7), [#allocation26], 64  }
 0x34c   : > { %23388 = vsyncadd (%p26260_p3), [#allocation26], 4294967232  ;;  %p26261_p11 = pmov %p26252_p0 }
 0x34d   : > { %p26262_p5 = pmov %p26252_p0 }
 0x34e   : > { %23390 = dma.done.wait (%p26261_p11), [#allocation29], 64  }
 0x34f   : > { %23392 = vsyncadd (%p26262_p5), [#allocation29], 4294967232  ;;  %p26263_p12 = pmov %p26252_p0 }
 0x350   : > { %p26264_p2 = pmov %p26252_p0 }
 0x351   : > { %23394 = dma.done.wait (%p26263_p12), [#allocation32], 64  }
 0x352   : > { %23396 = vsyncadd (%p26264_p2), [#allocation32], 4294967232  ;;  %p26265_p13 = pmov %p26252_p0 }
 0x354   : > { %23398 = dma.done.wait (%p26265_p13), [#allocation35], 64  }
 0x355   : > { %23400 = vsyncadd (%p26252_p0), [#allocation35], 4294967232  ;;  %p26266_p1 = pmov %p26252_p0 }
 0x356   : > { %p26267_p4 = pmov %p26252_p0 }
 0x357   : > { %23402 = dma.done.wait (%p26266_p1), [#allocation38], 1056  }
 0x358   : > { %23404 = vsyncadd (%p26267_p4), [#allocation38], 4294966240  ;;  %p26268_p6 = pmov %p26252_p0 }
 0x359   : > { %p26269_p8 = pmov %p26252_p0 }
 0x35a   : > { %23406 = dma.done.wait (%p26268_p6), [#allocation41], 48  }
 0x35b   : > { %23408 = vsyncadd (%p26269_p8), [#allocation41], 4294967248  ;;  %p26270_p9 = pmov %p26252_p0 }
 0x35c   : > { %p26271_p10 = pmov %p26252_p0 }
 0x35d   : > { %23410 = dma.done.wait (%p26270_p9), [#allocation44], 32  }
 0x35e   : > { %23412 = vsyncadd (%p26271_p10), [#allocation44], 4294967264  ;;  %s26272_s7 = sld [smem:[#allocation61_spill]]  ;;  %s26273_s15 = sld [smem:[#allocation67_spill]]  ;;  %v1909_v0 = vlaneseq  ;;  %vm1985_vm0 = vcmask 64512   ;;  %vm2075_vm1 = vcmask 261120  }
 0x35f   : > { %s20220_s0 = sshll.u32 %s23768_s2, 1  ;;  %s26274_s5 = sld [smem:[#allocation65_spill]]  ;;  %v20232_v10 = vld [vmem:[#allocation2] ss:$0 sm:$0xff]  ;;  %v20235_v55 = vld [vmem:[#allocation6] ss:$0 sm:$0xff] }
 0x360   : > { %p1879_p7 = scmp.lt.s32.totalorder %s20220_s0, 3  ;;  %v24232_v1 = vshrl.u32 %v1909_v0, 7  ;;  %s26275_s11 = sld [smem:[#allocation72_spill]]  ;;  %v20236_v58 = vld [vmem:[#allocation7] ss:$0 sm:$0xff]  ;;  %vm23503_vm6 = vmmov 0  }
 0x361   : > { %s26161_s18 = smov 112   ;;  %s26153_s13 = smov 120   ;;  %vm3440_vm9 = vcmask 130048   ;;  %vm3442_vm10 = vcmask 195584   ;;  %vm26176_vm15 = vcmask 523264  }
 0x362   : > { %s26337_s0 = smov (!%p1879_p7, %s20220_s0), 3  ;;  %v1911_v2 = vsub.s32 0, %v24232_v1  ;;  %s26157_s8 = smov 104  }
 0x363   : > { %s24238_s9 = sshll.u32 %s26337_s0, 3  ;;  %s26155_s3 = smov 96  }
 0x364   : > { %s1882_s10 = scalar_lea.vmem %s26272_s7, %s24238_s9  ;;  %v1977_v3 = vld [vmem:[%s26273_s15] sm:$0xff]  ;;  %s26276_s7 = sld [smem:[#allocation63_spill]] }
 0x365   : > { %v1905_v4 = vld [vmem:[%s1882_s10] sm:$0xff]  ;;  %v1906_v5 = vld [vmem:[%s1882_s10 + $0x8] sm:$0xff]  ;;  %20893 = vmatprep.subr.mxu1 %v1977_v3  ;;  %s26159_s10 = smov 8   ;;  %s26288_s1 = smov 120  }
 0x366   : > { %v24243_v6 = vrot.slane %v1905_v4, %v1911_v2  ;;  %v24245_v7 = vrot.slane %v1906_v5, %v1911_v2  ;;  %20894 = vmatpush3.msra.mxu1 %v1977_v3  ;;  %v2069_v15 = vld [vmem:[%s26274_s5] sm:$0xff]  ;;  %v2070_v18 = vld [vmem:[%s26274_s5 + $0x8] sm:$0xff]  ;;  %v2135_v35 = vld [vmem:[%s26275_s11 + $0x10] sm:$0xff]  ;;  %s26289_s4 = smov 104   ;;  %s26290_s5 = smov 96  }
 0x367   : > { %v2133_v33 = vld [vmem:[%s26275_s11] sm:$0xff]  ;;  %v2134_v34 = vld [vmem:[%s26275_s11 + $0x8] sm:$0xff]  ;;  %v2136_v37 = vld [vmem:[%s26275_s11 + $0x18] sm:$0xff]  ;;  %s26295_s12 = sld [smem:[#allocation90_spill]]  ;;  %s26296_s14 = sld [smem:[#allocation93_spill]] }
 0x368   : > { %v1917_v8 = vsub.f32 %v1905_v4, %v24243_v6  ;;  %v1918_v9 = vsub.f32 %v1906_v5, %v24245_v7  ;;  %v21668_v36 = vpack.c.bf16 %v2134_v34, %v2133_v33  ;;  %v21672_v38 = vpack.c.bf16 %v2136_v37, %v2135_v35  ;;  %v20237_v2 = vld [vmem:[#allocation9] ss:$0 sm:$0xff]  ;;  %p1901_p3 = scmp.lt.s32.totalorder %s23768_s2, 1 }
 0x36a   : > { %20895 = vmatprep.mubr.msk.f32.mxu1 %vm1985_vm0, %v1917_v8  ;;  %21669 = vmatprep.subr.bf16.mxu1 %v21668_v36  ;;  %s24327_s15 = scalar_lea.vmem %s26276_s7, %s26337_s0  ;;  %s26147_s0 = smov 64  }
 0x36b   : > { %20896 = vmatmul.mubr.msk.f32.vlgmr.msra.gmra.mrb[0].mxu1 %vm1985_vm0, %v1918_v9  ;;  %s26151_s7 = smov 24   ;;  %s26339_s2 = smov (!%p1901_p3, %s23768_s2), 1 }
 0x36c   : > { %21671 = vmatpush3.bf16.msra.mxu1 %v21668_v36 }
 0x36d   : > { %21673 = vmatprep.subr.bf16.mxu1 %v21672_v38 }
 0x370   : > { %21675 = vmatpush3.bf16.msra.mxu1 %v21672_v38 }
 0x43e   : > { %v20897_v11 = vpop.f32.mrb[0].mxu1 }
 0x43f   : > { %v2064_v12 = vadd.f32 %v20897_v11, %v20232_v10  ;;  %v2058_v13 = vpop.f32.mrb[1].mxu1 }
 0x440   : > { %v2059_v14 = vadd.f32 %v20232_v10, %v2058_v13 }
 0x441   : > { %v2068_v16 = vmul.f32 5.656854, %v2064_v12  ;;  %v23502_v12 = vmov 0.0  }
 0x442   : > { %v2067_v17 = vmul.f32 5.656854, %v2059_v14  ;;  %20909 = vmatprep.subr.mxu0 %v23502_v12  ;;  %20919 = vmatprep.subr.mxu1 %v23502_v12 }
 0x443   : > { %v24255_v20 = vadd.f32 %v2070_v18, %v2068_v16  ;;  %20911 = vmatprep.mubr.msk.f32.mxu0 %vm23503_vm6, %v23502_v12 }
 0x444   : > { %v24253_v19 = vadd.f32 %v2069_v15, %v2067_v17 }
 0x445   : > { %v2079_v22 = vsel %vm2075_vm1, %v24255_v20, 0.0 }
 0x446   : > { %v2076_v21 = vsel %vm2075_vm1, %v24253_v19, 0.0 }
 0x447   : > { %2077 = vadd.xlane.f32.xlu0 %v2076_v21 }
 0x44b   : > { %2080 = vadd.xlane.f32.xlu0 %v2079_v22 }
 0x4d4   : > { %v2078_v23 = vpop.xlane.xlu0 %2077 }
 0x4d5   : > { %v2083_v24 = vmul.f32 0.03125, %v2078_v23  ;;  %v24330_v23 = vld [vmem:[%s24327_s15] ss:$0 sm:$0xff] }
 0x4d6   : > { %vm1962_vm7 = vcmp.eq.f32.partialorder %v24330_v23, 0.0 }
 0x4d7   : > { %v2085_v25 = vsub.f32 %v24253_v19, %v2083_v24 }
 0x4d8   : > { %v2081_v26 = vpop.xlane.xlu0 %2080 }
 0x4d9   : > { %v2084_v27 = vmul.f32 0.03125, %v2081_v26  ;;  %v2087_v28 = vmul.f32 %v2085_v25, %v2085_v25  ;;  %v2103_v56 = vmul.f32 %v20235_v55, %v2085_v25 }
 0x4db   : > { %v2086_v29 = vsub.f32 %v24255_v20, %v2084_v27  ;;  %v2089_v30 = vsel %vm2075_vm1, %v2087_v28, 0.0 }
 0x4dc   : > { %2090 = vadd.xlane.f32.xlu1 %v2089_v30 }
 0x4dd   : > { %v2088_v31 = vmul.f32 %v2086_v29, %v2086_v29  ;;  %v2104_v60 = vmul.f32 %v20235_v55, %v2086_v29 }
 0x4df   : > { %v2092_v32 = vsel %vm2075_vm1, %v2088_v31, 0.0 }
 0x4e0   : > { %2093 = vadd.xlane.f32.xlu1 %v2092_v32 }
 0x569   : > { %v2091_v39 = vpop.xlane.xlu1 %2090 }
 0x56a   : > { %v2095_v40 = vmul.f32 0.032258064, %v2091_v39 }
 0x56c   : > { %22249 = vrsqrt.f32 %v2095_v40  ;;  %vm2107_vm2 = vcmp.eq.f32.partialorder %v2095_v40, inf  ;;  %v2110_v45 = vand.u32 2147483648, %v2095_v40  ;;  %vm2109_vm3 = vcmp.eq.f32.partialorder %v2095_v40, 0.0 }
 0x56d   : > { %v2094_v41 = vpop.xlane.xlu1 %2093 }
 0x56e   : > { %v2096_v42 = vmul.f32 0.032258064, %v2094_v41 }
 0x570   : > { %22251 = vrsqrt.f32 %v2096_v42  ;;  %vm2114_vm4 = vcmp.eq.f32.partialorder %v2096_v42, inf  ;;  %v2117_v51 = vand.u32 2147483648, %v2096_v42  ;;  %vm2116_vm5 = vcmp.eq.f32.partialorder %v2096_v42, 0.0 }
 0x576   : > { %v22250_v43 = vpop.eup %22249 }
 0x577   : > { %v2106_v44 = vmul.f32 %v22250_v43, %v2095_v40 }
 0x579   : > { %v2108_v46 = vsel %vm2107_vm2, %v2095_v40, %v2106_v44 }
 0x57a   : > { %v22252_v47 = vpop.eup %22251  ;;  %v2111_v48 = vsel %vm2109_vm3, %v2110_v45, %v2108_v46 }
 0x57b   : > { %v2113_v49 = vmul.f32 %v22252_v47, %v2096_v42  ;;  %v2119_v50 = vadd.f32 1e-06, %v2111_v48 }
 0x57d   : > { %v2115_v52 = vsel %vm2114_vm4, %v2096_v42, %v2113_v49  ;;  %22253 = vrcp.f32 %v2119_v50 }
 0x57e   : > { %v2118_v53 = vsel %vm2116_vm5, %v2117_v51, %v2115_v52 }
 0x57f   : > { %v2120_v54 = vadd.f32 1e-06, %v2118_v53 }
 0x581   : > { %22255 = vrcp.f32 %v2120_v54 }
 0x587   : > { %v22254_v57 = vpop.eup %22253 }
 0x588   : > { %v2122_v59 = vmul.f32 %v22254_v57, %v2103_v56 }
 0x58a   : > { %v2131_v61 = vadd.f32 %v20236_v58, %v2122_v59 }
 0x58b   : > { %v22256_v62 = vpop.eup %22255 }
 0x58c   : > { %v2124_v63 = vmul.f32 %v22256_v62, %v2104_v60  ;;  %20906 = vmatprep.mubr.msk.f32.mxu1 %vm2075_vm1, %v2131_v61 }
 0x58e   : > { %v2132_v0 = vadd.f32 %v20236_v58, %v2124_v63 }
 0x590   : > { %20907 = vmatmul.mubr.msk.f32.vlgmr.msra.gmra.mrb[2].mxu1 %vm2075_vm1, %v2132_v0 }
 0x591   : > { %20921 = vmatprep.mubr.msk.f32.mxu1 %vm23503_vm6, %v23502_v12 }
 0x663   : > { %v20908_v3 = vpop.f32.mrb[2].mxu1 }
 0x664   : > { %v24271_v4 = vadd.f32 %v20908_v3, %v20237_v2  ;;  %v2221_v5 = vpop.f32.mrb[3].mxu1 }
 0x665   : > { %v24273_v8 = vadd.f32 %v20237_v2, %v2221_v5 }
 0x667   : > { %2233 = vrot.lane.b32.xlu1 %v24273_v8, %s26161_s18  ;;  %2231 = vrot.lane.b32.xlu0 %v24273_v8, %s26153_s13 }
 0x66b   : > { %2235 = vrot.lane.b32.xlu1 %v24273_v8, %s26157_s8 }
 0x66f   : > { %2237 = vrot.lane.b32.xlu1 %v24273_v8, %s26155_s3 }
 0x6d9   : > { %v24283_v9 = vpop.permute.xlu1 %2233  ;;  %v24285_v10 = vpop.permute.xlu0 %2231 }
 0x6da   : > { %2241 = vrot.lane.b32.xlu1 %v24283_v9, %s26155_s3  ;;  %2239 = vrot.lane.b32.xlu0 %v24285_v10, %s26155_s3 }
 0x6dd   : > { %v24291_v11 = vpop.permute.xlu1 %2235 }
 0x6de   : > { %2243 = vrot.lane.b32.xlu0 %v24291_v11, %s26155_s3 }
 0x6e1   : > { %v2238_v13 = vpop.permute.xlu1 %2237 }
 0x703   : > { %2249 = vxpose.xlu1.b32.start.end [1/1] (short) (narrow) %v2238_v13, 8 }
 0x721   : > { %3445 = vrot.lane.b32.xlu1 %v24271_v4, %s26153_s13 }
 0x74c   : > { %v2240_v14 = vpop.permute.xlu0 %2239  ;;  %v2242_v15 = vpop.permute.xlu1 %2241 }
 0x74d   : > { %2281 = vxpose.xlu0.b32.start.end [1/1] (short) (narrow) %v2240_v14, 8 }
 0x750   : > { %v2244_v16 = vpop.permute.xlu0 %2243 }
 0x751   : > { %2313 = vxpose.xlu0.b32.start.end [1/1] (short) (narrow) %v2242_v15, 8 }
 0x755   : > { %2345 = vxpose.xlu0.b32.start.end [1/1] (short) (narrow) %v2244_v16, 8 }
 0x77e   : > { %3447 = vrot.lane.b32.xlu0 %v24271_v4, %s26161_s18 }
 0x783   : > { %v2265_v17 = vpop.trf.xlu1 }
 0x784   : > { %20910 = vmatpush3.msra.mxu0 %v2265_v17 }
 0x785   : > { %20912 = vmatmul.mubr.msk.f32.vlgmr.msra.gmra.mrb[0].mxu0 %vm1985_vm0, %v24273_v8  ;;  %20914 = vmatprep.subr.mxu0 %v23502_v12 }
 0x786   : > { %20916 = vmatprep.mubr.msk.f32.mxu0 %vm23503_vm6, %v23502_v12 }
 0x793   : > { %v24353_v44 = vpop.permute.xlu1 %3445 }
 0x7cd   : > { %v2297_v18 = vpop.trf.xlu0 }
 0x7ce   : > { %20915 = vmatpush3.msra.mxu0 %v2297_v18 }
 0x7cf   : > { %20917 = vmatmul.mubr.msk.f32.vlgmr.msra.gmra.mrb[2].mxu0 %vm1985_vm0, %v24285_v10  ;;  %20924 = vmatprep.subr.mxu0 %v23502_v12 }
 0x7d0   : > { %20926 = vmatprep.mubr.msk.f32.mxu0 %vm23503_vm6, %v23502_v12 }
 0x7d1   : > { %v2329_v21 = vpop.trf.xlu0 }
 0x7d2   : > { %20920 = vmatpush3.msra.mxu1 %v2329_v21 }
 0x7d3   : > { %20922 = vmatmul.mubr.msk.f32.vlgmr.msra.gmra.mrb[4].mxu1 %vm1985_vm0, %v24283_v9  ;;  %20929 = vmatprep.subr.mxu1 %v23502_v12 }
 0x7d4   : > { %20931 = vmatprep.mubr.msk.f32.mxu1 %vm23503_vm6, %v23502_v12 }
 0x7d5   : > { %v2361_v22 = vpop.trf.xlu0 }
 0x7d6   : > { %20925 = vmatpush3.msra.mxu0 %v2361_v22 }
 0x7d7   : > { %20927 = vmatmul.mubr.msk.f32.vlgmr.msra.gmra.mrb[4].mxu0 %vm1985_vm0, %v24291_v11  ;;  %20934 = vmatprep.subr.mxu0 %v23502_v12 }
 0x7d8   : > { %20936 = vmatprep.mubr.msk.f32.mxu0 %vm23503_vm6, %v23502_v12 }
 0x7f0   : > { %v24361_v49 = vpop.permute.xlu0 %3447 }
 0x858   : > { %v2445_v24 = vpop.f32.mrb[0].mxu0 }
 0x859   : > { %v2665_v25 = vmul.f32 0.35355338, %v2445_v24  ;;  %v20913_v26 = vpop.f32.mrb[1].mxu0 }
 0x85b   : > { %v2671_v27 = vsel %vm1962_vm7, 1e-09, %v2665_v25 }
 0x85c   : > { %v2675_v28 = vsel %vm1985_vm0, %v2671_v27, -inf }
 0x85d   : > { %2676 = vmax.xlane.f32.xlu0 %v2675_v28 }
 0x8a2   : > { %v2517_v29 = vpop.f32.mrb[2].mxu0 }
 0x8a3   : > { %v2666_v30 = vmul.f32 0.35355338, %v2517_v29  ;;  %v20918_v31 = vpop.f32.mrb[3].mxu0 }
 0x8a5   : > { %v2672_v32 = vsel %vm1962_vm7, 1e-09, %v2666_v30 }
 0x8a6   : > { %v2589_v33 = vpop.f32.mrb[4].mxu1  ;;  %v2678_v34 = vsel %vm1985_vm0, %v2672_v32, -inf }
 0x8a7   : > { %v2667_v35 = vmul.f32 0.35355338, %v2589_v33  ;;  %2679 = vmax.xlane.f32.xlu1 %v2678_v34  ;;  %v20923_v36 = vpop.f32.mrb[5].mxu1 }
 0x8a9   : > { %v2673_v37 = vsel %vm1962_vm7, 1e-09, %v2667_v35 }
 0x8aa   : > { %v2661_v38 = vpop.f32.mrb[4].mxu0  ;;  %v2681_v39 = vsel %vm1985_vm0, %v2673_v37, -inf }
 0x8ab   : > { %v2668_v40 = vmul.f32 0.35355338, %v2661_v38  ;;  %2682 = vmax.xlane.f32.xlu1 %v2681_v39  ;;  %v20928_v41 = vpop.f32.mrb[5].mxu0 }
 0x8ad   : > { %v2674_v42 = vsel %vm1962_vm7, 1e-09, %v2668_v40 }
 0x8ae   : > { %v2684_v43 = vsel %vm1985_vm0, %v2674_v42, -inf }
 0x8af   : > { %2685 = vmax.xlane.f32.xlu0 %v2684_v43 }
 0x8bc   : > { %3449 = vrot.lane.b32.xlu1 %v24271_v4, %s26157_s8 }
 0x8c0   : > { %2719 = vrot.lane.b32.xlu1 %v24273_v8, %s26147_s0 }
 0x8c4   : > { %2721 = vrot.lane.b32.xlu1 %v24285_v10, %s26147_s0 }
 0x8c8   : > { %2725 = vrot.lane.b32.xlu1 %v24291_v11, %s26147_s0 }
 0x8cc   : > { %3453 = vrot.lane.b32.xlu1 %v24353_v44, %s26155_s3 }
 0x8ea   : > { %v2677_v50 = vpop.xlane.xlu0 %2676 }
 0x8eb   : > { %v2687_v60 = vsub.f32 %v2671_v27, %v2677_v50  ;;  %v24422_v50 = vld [vmem:[%s24327_s15 + $0x1] ss:$0 sm:$0xff]  ;;  %s26149_s15 = smov 16  }
 0x8ec   : > { %vm26175_vm8 = vcmp.eq.f32.partialorder %v24422_v50, 0.0 }
 0x8ed   : > { %v2691_v61 = vmul.f32 1.442695, %v2687_v60 }
 0x934   : > { %v2680_v45 = vpop.xlane.xlu1 %2679 }
 0x935   : > { %v2688_v51 = vsub.f32 %v2672_v32, %v2680_v45 }
 0x937   : > { %v2693_v53 = vmul.f32 1.442695, %v2688_v51 }
 0x938   : > { %v2683_v46 = vpop.xlane.xlu1 %2682 }
 0x939   : > { %22257 = vpow2.f32 %v2693_v53  ;;  %v2689_v62 = vsub.f32 %v2673_v37, %v2683_v46 }
 0x93b   : > { %v2695_v63 = vmul.f32 1.442695, %v2689_v62 }
 0x93c   : > { %v24357_v47 = vpop.permute.xlu1 %3449  ;;  %v2686_v52 = vpop.xlane.xlu0 %2685 }
 0x93d   : > { %3457 = vrot.lane.b32.xlu1 %v24357_v47, %s26155_s3  ;;  %v2690_v54 = vsub.f32 %v2674_v42, %v2686_v52 }
 0x93f   : > { %v2697_v55 = vmul.f32 1.442695, %v2690_v54 }
 0x940   : > { %v2720_v48 = vpop.permute.xlu1 %2719 }
 0x941   : > { %2731 = vxpose.xlu0.b32.start.end [1/1] (short) (narrow) %v2720_v48, 8  ;;  %22259 = vpow2.f32 %v2697_v55 }
 0x942   : > { %22261 = vpow2.f32 %v2691_v61 }
 0x943   : > { %v22258_v56 = vpop.eup %22257  ;;  %22263 = vpow2.f32 %v2695_v63 }
 0x944   : > { %v2702_v57 = vsel %vm1985_vm0, %v22258_v56, 0.0  ;;  %v2722_v8 = vpop.permute.xlu1 %2721 }
 0x948   : > { %v2726_v11 = vpop.permute.xlu1 %2725 }
 0x94b   : > { %v22260_v58 = vpop.eup %22259 }
 0x94c   : > { %v2708_v59 = vsel %vm1985_vm0, %v22260_v58, 0.0  ;;  %v22262_v0 = vpop.eup %22261  ;;  %v3454_v15 = vpop.permute.xlu1 %3453 }
 0x94d   : > { %v2699_v2 = vsel %vm1985_vm0, %v22262_v0, 0.0  ;;  %v22264_v3 = vpop.eup %22263 }
 0x94e   : > { %v2705_v5 = vsel %vm1985_vm0, %v22264_v3, 0.0 }
 0x961   : > { %2703 = vadd.xlane.f32.xlu1 %v2702_v57 }
 0x965   : > { %2709 = vadd.xlane.f32.xlu1 %v2708_v59 }
 0x96a   : > { %2723 = vrot.lane.b32.xlu0 %v24283_v9, %s26147_s0 }
 0x96e   : > { %3451 = vrot.lane.b32.xlu0 %v24271_v4, %s26155_s3 }
 0x972   : > { %3455 = vrot.lane.b32.xlu0 %v24361_v49, %s26155_s3 }
 0x991   : > { %2700 = vadd.xlane.f32.xlu0 %v2699_v2 }
 0x995   : > { %2706 = vadd.xlane.f32.xlu0 %v2705_v5 }
 0x998   : > { %2763 = vxpose.xlu1.b32.start.end [1/1] (short) (narrow) %v2722_v8, 8 }
 0x9af   : > { %v3458_v16 = vpop.permute.xlu1 %3457 }
 0x9c1   : > { %v2747_v9 = vpop.trf.xlu0 }
 0x9dc   : > { %v2724_v10 = vpop.permute.xlu0 %2723 }
 0x9dd   : > { %2795 = vxpose.xlu0.b32.start.end [1/1] (short) (narrow) %v2724_v10, 8 }
 0x9e0   : > { %v3452_v13 = vpop.permute.xlu0 %3451 }
 0x9e1   : > { %2827 = vxpose.xlu0.b32.start.end [1/1] (short) (narrow) %v2726_v11, 8 }
 0x9e4   : > { %v3456_v14 = vpop.permute.xlu0 %3455 }
 0x9e5   : > { %3463 = vxpose.xlu0.b32.start.end [1/1] (short) (narrow) %v3452_v13, 8  ;;  %3527 = vxpose.xlu1.b32.start.end [1/1] (short) (narrow) %v3456_v14, 8 }
 0x9e9   : > { %3495 = vxpose.xlu0.b32.start.end [1/1] (short) (narrow) %v3454_v15, 8 }
 0x9ed   : > { %3559 = vxpose.xlu0.b32.start.end [1/1] (short) (narrow) %v3458_v16, 8 }
 0x9ee   : > { %v2704_v17 = vpop.xlane.xlu1 %2703 }
 0x9ef   : > { %22265 = vrcp.f32 %v2704_v17 }
 0x9f2   : > { %v2710_v22 = vpop.xlane.xlu1 %2709 }
 0x9f3   : > { %22267 = vrcp.f32 %v2710_v22 }
 0x9f9   : > { %v22266_v18 = vpop.eup %22265 }
 0x9fa   : > { %v2714_v21 = vmul.f32 %v22266_v18, %v22258_v56 }
 0x9fc   : > { %20935 = vmatpush3.xpose.msk.msra.mxu0 %vm1985_vm0, %v2714_v21 }
 0x9fd   : > { %20944 = vmatprep.subr.mxu0 %v23502_v12  ;;  %v22268_v24 = vpop.eup %22267 }
 0x9fe   : > { %v2718_v26 = vmul.f32 %v22268_v24, %v22260_v58 }
 0xa18   : > { %v2779_v25 = vpop.trf.xlu1 }
 0xa19   : > { %20937 = vmatmul.mubr.msk.f32.vlgmr.msra.gmra.mrb[6].mxu0 %vm1985_vm0, %v2779_v25 }
 0xa1a   : > { %20945 = vmatpush3.xpose.msk.msra.mxu0 %vm1985_vm0, %v2718_v26  ;;  %20946 = vmatprep.mubr.msk.f32.mxu0 %vm23503_vm6, %v23502_v12 }
 0xa1b   : > { %20954 = vmatprep.subr.mxu0 %v23502_v12 }
 0xa1e   : > { %v2701_v27 = vpop.xlane.xlu0 %2700 }
 0xa1f   : > { %22269 = vrcp.f32 %v2701_v27 }
 0xa22   : > { %v2707_v28 = vpop.xlane.xlu0 %2706 }
 0xa23   : > { %22271 = vrcp.f32 %v2707_v28 }
 0xa29   : > { %v22270_v29 = vpop.eup %22269 }
 0xa2a   : > { %v2712_v30 = vmul.f32 %v22270_v29, %v22262_v0 }
 0xa2c   : > { %20930 = vmatpush3.xpose.msk.msra.mxu1 %vm1985_vm0, %v2712_v30 }
 0xa2d   : > { %v22272_v31 = vpop.eup %22271  ;;  %20939 = vmatprep.subr.mxu1 %v23502_v12 }
 0xa2e   : > { %v2716_v32 = vmul.f32 %v22272_v31, %v22264_v3 }
 0xa2f   : > { %20932 = vmatmul.mubr.msk.f32.vlgmr.msra.gmra.mrb[6].mxu1 %vm1985_vm0, %v2747_v9 }
 0xa30   : > { %20940 = vmatpush3.xpose.msk.msra.mxu1 %vm1985_vm0, %v2716_v32  ;;  %20941 = vmatprep.mubr.msk.f32.mxu1 %vm23503_vm6, %v23502_v12 }
 0xa31   : > { %20949 = vmatprep.subr.mxu1 %v23502_v12 }
 0xa5d   : > { %v2811_v33 = vpop.trf.xlu0 }
 0xa5e   : > { %20942 = vmatmul.mubr.msk.f32.vlgmr.msra.gmra.mrb[8].mxu1 %vm1985_vm0, %v2811_v33 }
 0xa5f   : > { %20951 = vmatprep.mubr.msk.f32.mxu1 %vm23503_vm6, %v23502_v12 }
 0xa61   : > { %v2843_v34 = vpop.trf.xlu0 }
 0xa62   : > { %20947 = vmatmul.mubr.msk.f32.vlgmr.msra.gmra.mrb[8].mxu0 %vm1985_vm0, %v2843_v34 }
 0xa63   : > { %20956 = vmatprep.mubr.msk.f32.mxu0 %vm23503_vm6, %v23502_v12 }
 0xa65   : > { %v3479_v35 = vpop.trf.xlu0  ;;  %v3543_v36 = vpop.trf.xlu1 }
 0xa66   : > { %20950 = vmatpush3.msra.mxu1 %v3479_v35 }
 0xa67   : > { %20952 = vmatmul.mubr.msk.f32.vlgmr.msra.gmra.mrb[10].mxu1 %vm1985_vm0, %v24271_v4  ;;  %20959 = vmatprep.subr.mxu1 %v23502_v12 }
 0xa68   : > { %20960 = vmatpush3.msra.mxu1 %v3543_v36  ;;  %20961 = vmatprep.mubr.msk.f32.mxu1 %vm23503_vm6, %v23502_v12 }
 0xa69   : > { %v3511_v37 = vpop.trf.xlu0  ;;  %20969 = vmatprep.subr.mxu1 %v23502_v12 }
 0xa6a   : > { %20955 = vmatpush3.msra.mxu0 %v3511_v37 }
 0xa6b   : > { %20957 = vmatmul.mubr.msk.f32.vlgmr.msra.gmra.mrb[10].mxu0 %vm1985_vm0, %v24353_v44  ;;  %20962 = vmatmul.mubr.msk.f32.vlgmr.msra.gmra.mrb[12].mxu1 %vm1985_vm0, %v24361_v49 }
 0xa6c   : > { %20964 = vmatprep.subr.mxu0 %v23502_v12  ;;  %20966 = vmatprep.mubr.msk.f32.mxu0 %vm23503_vm6, %v23502_v12 }
 0xa6d   : > { %v3575_v38 = vpop.trf.xlu0  ;;  %20971 = vmatprep.mubr.msk.f32.mxu1 %vm23503_vm6, %v23502_v12 }
 0xa6e   : > { %20965 = vmatpush3.msra.mxu0 %v3575_v38 }
 0xa6f   : > { %20967 = vmatmul.mubr.msk.f32.vlgmr.msra.gmra.mrb[12].mxu0 %vm1985_vm0, %v24357_v47  ;;  %20974 = vmatprep.subr.mxu0 %v23502_v12 }
 0xa70   : > { %20976 = vmatprep.mubr.msk.f32.mxu0 %vm23503_vm6, %v23502_v12 }
 0xaec   : > { %v24413_v39 = vpop.f32.mrb[6].mxu0 }
 0xaed   : > { %v20938_v40 = vpop.f32.mrb[7].mxu0 }
 0xb02   : > { %v24415_v41 = vpop.f32.mrb[6].mxu1 }
 0xb03   : > { %v20933_v42 = vpop.f32.mrb[7].mxu1 }
 0xb31   : > { %v24417_v43 = vpop.f32.mrb[8].mxu1 }
 0xb32   : > { %v20943_v45 = vpop.f32.mrb[9].mxu1 }
 0xb35   : > { %v24419_v46 = vpop.f32.mrb[8].mxu0 }
 0xb36   : > { %v20948_v48 = vpop.f32.mrb[9].mxu0 }
 0xb3a   : > { %v3659_v51 = vpop.f32.mrb[10].mxu1 }
 0xb3b   : > { %v3879_v52 = vmul.f32 0.35355338, %v3659_v51  ;;  %v20953_v53 = vpop.f32.mrb[11].mxu1 }
 0xb3d   : > { %v3885_v54 = vsel %vm26175_vm8, 1e-09, %v3879_v52 }
 0xb3e   : > { %v3731_v55 = vpop.f32.mrb[10].mxu0  ;;  %v3803_v56 = vpop.f32.mrb[12].mxu1  ;;  %v3889_v57 = vsel %vm1985_vm0, %v3885_v54, -inf }
 0xb3f   : > { %v3880_v58 = vmul.f32 0.35355338, %v3731_v55  ;;  %v3881_v59 = vmul.f32 0.35355338, %v3803_v56  ;;  %3890 = vmax.xlane.f32.xlu1 %v3889_v57  ;;  %v20958_v60 = vpop.f32.mrb[11].mxu0  ;;  %v20963_v61 = vpop.f32.mrb[13].mxu1 }
 0xb40   : > { %v23505_v55 = vmov 1983009808  }
 0xb41   : > { %v3887_v62 = vsel %vm26175_vm8, 1e-09, %v3881_v59  ;;  %v3886_v63 = vsel %vm26175_vm8, 1e-09, %v3880_v58  ;;  %v1925_v56 = vunpack.c.l.s4 %v23505_v55 }
 0xb42   : > { %v3875_v0 = vpop.f32.mrb[12].mxu0  ;;  %v3895_v2 = vsel %vm1985_vm0, %v3887_v62, -inf  ;;  %v3892_v3 = vsel %vm1985_vm0, %v3886_v63, -inf }
 0xb43   : > { %v3882_v5 = vmul.f32 0.35355338, %v3875_v0  ;;  %3896 = vmax.xlane.f32.xlu1 %v3895_v2  ;;  %3893 = vmax.xlane.f32.xlu0 %v3892_v3  ;;  %v20968_v8 = vpop.f32.mrb[13].mxu0  ;;  %v1926_v59 = vunpack.c.0.s8 %v1925_v56 }
 0xb45   : > { %v3888_v9 = vsel %vm26175_vm8, 1e-09, %v3882_v5 }
 0xb46   : > { %v3898_v10 = vsel %vm1985_vm0, %v3888_v9, -inf }
 0xb47   : > { %3899 = vmax.xlane.f32.xlu1 %v3898_v10 }
 0xb58   : > { %3935 = vrot.lane.b32.xlu1 %v24353_v44, %s26147_s0 }
 0xb59   : > { %3933 = vrot.lane.b32.xlu0 %v24271_v4, %s26147_s0 }
 0xb5c   : > { %3937 = vrot.lane.b32.xlu1 %v24361_v49, %s26147_s0 }
 0xb60   : > { %3939 = vrot.lane.b32.xlu1 %v24357_v47, %s26147_s0  ;;  %s26277_s0 = sld [smem:[#allocation74_spill]] }
 0xbcc   : > { %v3891_v11 = vpop.xlane.xlu1 %3890 }
 0xbcd   : > { %v3901_v13 = vsub.f32 %v3885_v54, %v3891_v11 }
 0xbcf   : > { %v3905_v14 = vmul.f32 1.442695, %v3901_v13 }
 0xbd0   : > { %v3897_v15 = vpop.xlane.xlu1 %3896  ;;  %v3894_v16 = vpop.xlane.xlu0 %3893 }
 0xbd1   : > { %22273 = vpow2.f32 %v3905_v14  ;;  %v3903_v17 = vsub.f32 %v3887_v62, %v3897_v15  ;;  %v3902_v18 = vsub.f32 %v3886_v63, %v3894_v16  ;;  %v24468_v62 = vsub.s32 %v1926_v59, %v24232_v1 }
 0xbd2   : > { %v23506_v63 = vmov 1934713408  }
 0xbd3   : > { %v3909_v21 = vmul.f32 1.442695, %v3903_v17  ;;  %v3907_v22 = vmul.f32 1.442695, %v3902_v18  ;;  %v3326_v0 = vunpack.c.l.s4 %v23506_v63 }
 0xbd4   : > { %v3900_v44 = vpop.xlane.xlu1 %3899  ;;  %v3934_v32 = vpop.permute.xlu0 %3933 }
 0xbd5   : > { %22275 = vpow2.f32 %v3909_v21  ;;  %v3904_v24 = vsub.f32 %v3888_v9, %v3900_v44  ;;  %v3327_v11 = vunpack.c.0.s8 %v3326_v0 }
 0xbd6   : > { %22277 = vpow2.f32 %v3907_v22 }
 0xbd7   : > { %v3911_v4 = vmul.f32 1.442695, %v3904_v24  ;;  %v24475_v44 = vsub.s32 %v3327_v11, %v24232_v1  ;;  %v2139_v11 = vld [vmem:[%s26277_s0 + $0x8] sm:$0xff] }
 0xbd8   : > { %v3936_v31 = vpop.permute.xlu1 %3935 }
 0xbd9   : > { %22279 = vpow2.f32 %v3911_v4 }
 0xbdb   : > { %v22274_v49 = vpop.eup %22273 }
 0xbdc   : > { %v3913_v25 = vsel %vm1985_vm0, %v22274_v49, 0.0  ;;  %v3938_v33 = vpop.permute.xlu1 %3937 }
 0xbdd   : > { %3914 = vadd.xlane.f32.xlu0 %v3913_v25 }
 0xbdf   : > { %v22276_v47 = vpop.eup %22275 }
 0xbe0   : > { %v22278_v26 = vpop.eup %22277  ;;  %v3919_v27 = vsel %vm1985_vm0, %v22276_v47, 0.0  ;;  %v3940_v34 = vpop.permute.xlu1 %3939 }
 0xbe1   : > { %3920 = vadd.xlane.f32.xlu0 %v3919_v27  ;;  %v3916_v28 = vsel %vm1985_vm0, %v22278_v26, 0.0 }
 0xbe2   : > { %3917 = vadd.xlane.f32.xlu1 %v3916_v28 }
 0xbe3   : > { %v22280_v29 = vpop.eup %22279 }
 0xbe4   : > { %v3922_v30 = vsel %vm1985_vm0, %v22280_v29, 0.0 }
 0xbe5   : > { %3923 = vadd.xlane.f32.xlu0 %v3922_v30 }
 0xc12   : > { %3945 = vxpose.xlu0.b32.start.end [1/1] (short) (narrow) %v3934_v32, 8 }
 0xc15   : > { %3977 = vxpose.xlu1.b32.start.end [1/1] (short) (narrow) %v3936_v31, 8 }
 0xc16   : > { %4009 = vxpose.xlu0.b32.start.end [1/1] (short) (narrow) %v3938_v33, 8 }
 0xc19   : > { %3163 = vxpose.xlu1.b32.start.end [1/1] (short) (narrow) %v24415_v41, 8 }
 0xc1a   : > { %4041 = vxpose.xlu0.b32.start.end [1/1] (short) (narrow) %v3940_v34, 8 }
 0xc1d   : > { %3227 = vxpose.xlu1.b32.start.end [1/1] (short) (narrow) %v24417_v43, 8 }
 0xc1e   : > { %3195 = vxpose.xlu0.b32.start.end [1/1] (short) (narrow) %v24413_v39, 8 }
 0xc22   : > { %3259 = vxpose.xlu0.b32.start.end [1/1] (short) (narrow) %v24419_v46, 8 }
 0xc6a   : > { %v3915_v35 = vpop.xlane.xlu0 %3914 }
 0xc6b   : > { %22281 = vrcp.f32 %v3915_v35 }
 0xc6e   : > { %v3921_v41 = vpop.xlane.xlu0 %3920 }
 0xc6f   : > { %v3918_v36 = vpop.xlane.xlu1 %3917 }
 0xc70   : > { %22283 = vrcp.f32 %v3918_v36 }
 0xc71   : > { %22285 = vrcp.f32 %v3921_v41 }
 0xc72   : > { %v3924_v39 = vpop.xlane.xlu0 %3923 }
 0xc73   : > { %22287 = vrcp.f32 %v3924_v39 }
 0xc75   : > { %v22282_v37 = vpop.eup %22281 }
 0xc76   : > { %v3926_v38 = vmul.f32 %v22282_v37, %v22274_v49 }
 0xc78   : > { %20970 = vmatpush3.xpose.msk.msra.mxu1 %vm1985_vm0, %v3926_v38 }
 0xc79   : > { %20979 = vmatprep.subr.mxu1 %v23502_v12 }
 0xc7a   : > { %v22284_v40 = vpop.eup %22283 }
 0xc7b   : > { %v3928_v42 = vmul.f32 %v22284_v40, %v22278_v26  ;;  %v22286_v43 = vpop.eup %22285 }
 0xc7c   : > { %v3930_v48 = vmul.f32 %v22286_v43, %v22276_v47 }
 0xc7d   : > { %20975 = vmatpush3.xpose.msk.msra.mxu0 %vm1985_vm0, %v3928_v42  ;;  %v22288_v45 = vpop.eup %22287 }
 0xc7e   : > { %20984 = vmatprep.subr.mxu0 %v23502_v12  ;;  %v3932_v52 = vmul.f32 %v22288_v45, %v22280_v29 }
 0xc92   : > { %v3961_v46 = vpop.trf.xlu0 }
 0xc93   : > { %20972 = vmatmul.mubr.msk.f32.vlgmr.msra.gmra.mrb[14].mxu1 %vm1985_vm0, %v3961_v46 }
 0xc94   : > { %20980 = vmatpush3.xpose.msk.msra.mxu1 %vm1985_vm0, %v3930_v48  ;;  %20981 = vmatprep.mubr.msk.f32.mxu1 %vm23503_vm6, %v23502_v12 }
 0xc95   : > { %v3993_v51 = vpop.trf.xlu1 }
 0xc96   : > { %20977 = vmatmul.mubr.msk.f32.vlgmr.msra.gmra.mrb[14].mxu0 %vm1985_vm0, %v3993_v51  ;;  %v4025_v53 = vpop.trf.xlu0 }
 0xc97   : > { %20985 = vmatpush3.xpose.msk.msra.mxu0 %vm1985_vm0, %v3932_v52  ;;  %20982 = vmatmul.mubr.msk.f32.vlgmr.msra.gmra.mrb[16].mxu1 %vm1985_vm0, %v4025_v53 }
 0xc98   : > { %20986 = vmatprep.mubr.msk.f32.mxu0 %vm23503_vm6, %v23502_v12 }
 0xc99   : > { %v3179_v57 = vpop.trf.xlu1 }
 0xc9a   : > { %v4057_v54 = vpop.trf.xlu0 }
 0xc9b   : > { %20987 = vmatmul.mubr.msk.f32.vlgmr.msra.gmra.mrb[16].mxu0 %vm1985_vm0, %v4057_v54 }
 0xc9d   : > { %v3243_v60 = vpop.trf.xlu1 }
 0xc9e   : > { %v3211_v58 = vpop.trf.xlu0  ;;  %v3291_v2 = vcombine.low %v3179_v57, %v3243_v60  ;;  %v3292_v3 = vcombine.high %v3179_v57, %v3243_v60 }
 0xca0   : > { %v3299_v14 = vrot.slane %v3291_v2, %v24468_v62  ;;  %v3306_v15 = vrot.slane %v3292_v3, %v24468_v62 }
 0xca2   : > { %v3275_v61 = vpop.trf.xlu0 }
 0xca3   : > { %v3307_v5 = vcombine.low %v3211_v58, %v3275_v61  ;;  %v3308_v8 = vcombine.high %v3211_v58, %v3275_v61 }
 0xca5   : > { %v3315_v16 = vrot.slane %v3307_v5, %v24468_v62  ;;  %v3322_v17 = vrot.slane %v3308_v8, %v24468_v62 }
 0xca7   : > { %v3323_v24 = vcombine.low %v3299_v14, %v3315_v16  ;;  %v3324_v4 = vcombine.high %v3299_v14, %v3315_v16  ;;  %v3339_v49 = vcombine.low %v3306_v15, %v3322_v17  ;;  %v3340_v25 = vcombine.high %v3306_v15, %v3322_v17 }
 0xca9   : > { %v3331_v27 = vrot.slane %v3323_v24, %v24475_v44  ;;  %v3338_v28 = vrot.slane %v3324_v4, %v24475_v44  ;;  %v3347_v29 = vrot.slane %v3339_v49, %v24475_v44  ;;  %v3354_v30 = vrot.slane %v3340_v25, %v24475_v44  ;;  %v2140_v4 = vld [vmem:[%s26277_s0 + $0x10] sm:$0xff]  ;;  %v2141_v49 = vld [vmem:[%s26277_s0 + $0x18] sm:$0xff] }
 0xcab   : > { %v3359_v31 = vcombine.low %v3331_v27, %v3338_v28  ;;  %v20252_v32 = vcombine.high %v3331_v27, %v3338_v28  ;;  %v3375_v33 = vcombine.low %v3347_v29, %v3354_v30  ;;  %v20253_v1 = vcombine.high %v3347_v29, %v3354_v30 }
 0xcac   : > { %v21680_v28 = vpack.c.bf16 %v2141_v49, %v2140_v4 }
 0xcad   : > { %v3366_v34 = vrot.slane %v3359_v31, %v24468_v62  ;;  %v3374_v35 = vrot.slane %v20252_v32, %v24468_v62  ;;  %v3382_v36 = vrot.slane %v3375_v33, %v24468_v62  ;;  %v3390_v37 = vrot.slane %v20253_v1, %v24468_v62 }
 0xcaf   : > { %v3391_v38 = vcombine.low %v3366_v34, %v3374_v35  ;;  %v3407_v40 = vcombine.low %v3382_v36, %v3390_v37  ;;  %v3392_v39 = vcombine.high %v3366_v34, %v3374_v35  ;;  %v3408_v43 = vcombine.high %v3382_v36, %v3390_v37 }
 0xcb1   : > { %v24486_v42 = vrot.slane %v3391_v38, %v24475_v44  ;;  %v24489_v41 = vrot.slane %v3407_v40, %v24475_v44  ;;  %v3406_v46 = vrot.slane %v3392_v39, %v24475_v44  ;;  %v3422_v48 = vrot.slane %v3408_v43, %v24475_v44 }
 0xcb3   : > { %v3424_v45 = vcombine.high %v24486_v42, %v24489_v41  ;;  %v3426_v51 = vcombine.high %v3406_v46, %v3422_v48  ;;  %v3425_v52 = vcombine.low %v3406_v46, %v3422_v48  ;;  %v3423_v39 = vcombine.low %v24486_v42, %v24489_v41 }
 0xd66   : > { %v4145_v9 = vpop.f32.mrb[14].mxu1 }
 0xd67   : > { %4377 = vxpose.xlu1.b32.start.end [1/1] (short) (narrow) %v4145_v9, 8  ;;  %v20973_v10 = vpop.f32.mrb[15].mxu1 }
 0xd68   : > { %v2138_v10 = vld [vmem:[%s26277_s0] sm:$0xff] }
 0xd69   : > { %v4221_v13 = vpop.f32.mrb[14].mxu0  ;;  %v21676_v17 = vpack.c.bf16 %v2139_v11, %v2138_v10 }
 0xd6a   : > { %v20978_v18 = vpop.f32.mrb[15].mxu0  ;;  %v4297_v21 = vpop.f32.mrb[16].mxu1  ;;  %4409 = vxpose.xlu0.b32.start.end [1/1] (short) (narrow) %v4221_v13, 8 }
 0xd6b   : > { %4441 = vxpose.xlu1.b32.start.end [1/1] (short) (narrow) %v4297_v21, 8  ;;  %v20983_v22 = vpop.f32.mrb[17].mxu1  ;;  %21677 = vmatprep.subr.bf16.mxu1 %v21676_v17 }
 0xd6c   : > { %21679 = vmatpush3.bf16.msra.mxu1 %v21676_v17 }
 0xd6d   : > { %21681 = vmatprep.subr.bf16.mxu1 %v21680_v28 }
 0xd6e   : > { %v4373_v47 = vpop.f32.mrb[16].mxu0 }
 0xd6f   : > { %4473 = vxpose.xlu0.b32.start.end [1/1] (short) (narrow) %v4373_v47, 8  ;;  %v20988_v26 = vpop.f32.mrb[17].mxu0 }
 0xd70   : > { %21683 = vmatpush3.bf16.msra.mxu1 %v21680_v28 }
 0xd89   : > { %3428 = vrot.lane.b32.xlu1 %v3424_v45, %s26159_s10 }
 0xd8d   : > { %3436 = vrot.lane.b32.xlu1 %v3426_v51, %s26151_s7 }
 0xd98   : > { %3432 = vrot.lane.b32.xlu0 %v3425_v52, %s26149_s15 }
 0xde7   : > { %v4393_v53 = vpop.trf.xlu1 }
 0xdea   : > { %v4425_v54 = vpop.trf.xlu0 }
 0xdeb   : > { %v4457_v55 = vpop.trf.xlu1 }
 0xdec   : > { %v4505_v56 = vcombine.low %v4393_v53, %v4457_v55  ;;  %v4506_v57 = vcombine.high %v4393_v53, %v4457_v55 }
 0xdee   : > { %v4513_v61 = vrot.slane %v4505_v56, %v24468_v62  ;;  %v4520_v63 = vrot.slane %v4506_v57, %v24468_v62  ;;  %v20268_v57 = vld [vmem:[#allocation10] ss:$0 sm:$0xff] }
 0xdef   : > { %v4489_v58 = vpop.trf.xlu0 }
 0xdf0   : > { %v4521_v59 = vcombine.low %v4425_v54, %v4489_v58  ;;  %v4522_v60 = vcombine.high %v4425_v54, %v4489_v58 }
 0xdf2   : > { %v4529_v0 = vrot.slane %v4521_v59, %v24468_v62  ;;  %v4536_v2 = vrot.slane %v4522_v60, %v24468_v62 }
 0xdf4   : > { %v4537_v3 = vcombine.low %v4513_v61, %v4529_v0  ;;  %v4538_v5 = vcombine.high %v4513_v61, %v4529_v0  ;;  %v4553_v8 = vcombine.low %v4520_v63, %v4536_v2  ;;  %v4554_v9 = vcombine.high %v4520_v63, %v4536_v2 }
 0xdf6   : > { %v4545_v13 = vrot.slane %v4537_v3, %v24475_v44  ;;  %v4552_v14 = vrot.slane %v4538_v5, %v24475_v44  ;;  %v4561_v15 = vrot.slane %v4553_v8, %v24475_v44  ;;  %v4568_v16 = vrot.slane %v4554_v9, %v24475_v44 }
 0xdf8   : > { %v4573_v18 = vcombine.low %v4545_v13, %v4552_v14  ;;  %v20266_v21 = vcombine.high %v4545_v13, %v4552_v14  ;;  %v4589_v22 = vcombine.low %v4561_v15, %v4568_v16  ;;  %v20267_v24 = vcombine.high %v4561_v15, %v4568_v16 }
 0xdfa   : > { %v4580_v25 = vrot.slane %v4573_v18, %v24468_v62  ;;  %v4588_v47 = vrot.slane %v20266_v21, %v24468_v62  ;;  %v4596_v26 = vrot.slane %v4589_v22, %v24468_v62  ;;  %v4604_v27 = vrot.slane %v20267_v24, %v24468_v62 }
 0xdfb   : > { %v3429_v40 = vpop.permute.xlu1 %3428 }
 0xdfc   : > { %v4605_v29 = vcombine.low %v4580_v25, %v4588_v47  ;;  %v4621_v30 = vcombine.low %v4596_v26, %v4604_v27  ;;  %v4606_v31 = vcombine.high %v4580_v25, %v4588_v47  ;;  %v4622_v32 = vcombine.high %v4596_v26, %v4604_v27 }
 0xdfd   : > { %v3439_v46 = vsel %vm1985_vm0, %v3423_v39, %v3429_v40 }
 0xdfe   : > { %v4613_v33 = vrot.slane %v4605_v29, %v24475_v44  ;;  %v4629_v1 = vrot.slane %v4621_v30, %v24475_v44  ;;  %v4620_v35 = vrot.slane %v4606_v31, %v24475_v44  ;;  %v4636_v36 = vrot.slane %v4622_v32, %v24475_v44 }
 0xdff   : > { %v3437_v45 = vpop.permute.xlu1 %3436 }
 0xe00   : > { %v4638_v34 = vcombine.high %v4613_v33, %v4629_v1  ;;  %v4637_v37 = vcombine.low %v4613_v33, %v4629_v1  ;;  %v4639_v38 = vcombine.low %v4620_v35, %v4636_v36  ;;  %v4640_v43 = vcombine.high %v4620_v35, %v4636_v36 }
 0xe02   : > { %4642 = vrot.lane.b32.xlu1 %v4638_v34, %s26159_s10 }
 0xe06   : > { %4646 = vrot.lane.b32.xlu1 %v4639_v38, %s26149_s15  ;;  %s26278_s15 = sld [smem:[#allocation77_spill]] }
 0xe0a   : > { %4650 = vrot.lane.b32.xlu1 %v4640_v43, %s26151_s7  ;;  %v3433_v48 = vpop.permute.xlu0 %3432  ;;  %s26279_s7 = sld [smem:[#allocation79_spill]] }
 0xe0b   : > { %v3441_v51 = vsel %vm3440_vm9, %v3439_v46, %v3433_v48 }
 0xe0c   : > { %v3443_v52 = vsel %vm3442_vm10, %v3441_v51, %v3437_v45  ;;  %v4803_v16 = vld [vmem:[%s26278_s15] sm:$0xff]  ;;  %v4804_v17 = vld [vmem:[%s26278_s15 + $0x8] sm:$0xff]  ;;  %v4805_v18 = vld [vmem:[%s26278_s15 + $0x10] sm:$0xff] }
 0xe0d   : > { %20997 = vmatprep.mubr.msk.f32.mxu1 %vm2075_vm1, %v3443_v52  ;;  %v21684_v21 = vpack.c.bf16 %v4804_v17, %v4803_v16  ;;  %v4806_v22 = vld [vmem:[%s26278_s15 + $0x18] sm:$0xff]  ;;  %v20271_v52 = vld [vmem:[#allocation12] ss:$0 sm:$0xff] }
 0xe0e   : > { %v21688_v24 = vpack.c.bf16 %v4806_v22, %v4805_v18 }
 0xe0f   : > { %21685 = vmatprep.subr.bf16.mxu0 %v21684_v21 }
 0xe10   : > { %21687 = vmatpush3.bf16.msra.mxu0 %v21684_v21  ;;  %v4808_v4 = vld [vmem:[%s26279_s7] sm:$0xff]  ;;  %v4809_v49 = vld [vmem:[%s26279_s7 + $0x8] sm:$0xff]  ;;  %v4810_v25 = vld [vmem:[%s26279_s7 + $0x10] sm:$0xff] }
 0xe11   : > { %21689 = vmatprep.subr.bf16.mxu0 %v21688_v24  ;;  %v21692_v47 = vpack.c.bf16 %v4809_v49, %v4808_v4  ;;  %v4811_v26 = vld [vmem:[%s26279_s7 + $0x18] sm:$0xff]  ;;  %v4812_v28 = vld [vmem:[%s26279_s7 + $0x20] sm:$0xff]  ;;  %v4813_v29 = vld [vmem:[%s26279_s7 + $0x28] sm:$0xff] }
 0xe12   : > { %v21696_v27 = vpack.c.bf16 %v4811_v26, %v4810_v25  ;;  %v21700_v30 = vpack.c.bf16 %v4813_v29, %v4812_v28  ;;  %v20281_v29 = vld [vmem:[%s26275_s11 + $0x20] sm:$0xff] }
 0xe13   : > { %21693 = vmatprep.subr.bf16.mxu1 %v21692_v47 }
 0xe14   : > { %21691 = vmatpush3.bf16.msra.mxu0 %v21688_v24 }
 0xe74   : > { %v4643_v53 = vpop.permute.xlu1 %4642 }
 0xe75   : > { %v4653_v55 = vsel %vm1985_vm0, %v4637_v37, %v4643_v53 }
 0xe78   : > { %v4647_v54 = vpop.permute.xlu1 %4646 }
 0xe79   : > { %v4654_v42 = vsel %vm3440_vm9, %v4653_v55, %v4647_v54  ;;  %v20272_v55 = vld [vmem:[#allocation13] ss:$0 sm:$0xff] }
 0xe7c   : > { %v4651_v41 = vpop.permute.xlu1 %4650 }
 0xe7d   : > { %v4655_v56 = vsel %vm3442_vm10, %v4654_v42, %v4651_v41 }
 0xe7e   : > { %20998 = vmatmul.mubr.msk.f32.vlgmr.msra.gmra.mrb[18].mxu1 %vm2075_vm1, %v4655_v56 }
 0xe7f   : > { %21695 = vmatpush3.bf16.msra.mxu1 %v21692_v47 }
 0xe80   : > { %21697 = vmatprep.subr.bf16.mxu1 %v21696_v27 }
 0xe83   : > { %21699 = vmatpush3.bf16.msra.mxu1 %v21696_v27 }
 0xe84   : > { %21701 = vmatprep.subr.bf16.mxu1 %v21700_v30 }
 0xe87   : > { %21703 = vmatpush3.bf16.msra.mxu1 %v21700_v30  ;;  %v20282_v30 = vld [vmem:[%s26275_s11 + $0x28] sm:$0xff] }
 0xf51   : > { %v20999_v58 = vpop.f32.mrb[18].mxu1 }
 0xf52   : > { %v4740_v59 = vadd.f32 %v20999_v58, %v20268_v57  ;;  %v4734_v60 = vpop.f32.mrb[19].mxu1 }
 0xf53   : > { %v4735_v61 = vadd.f32 %v20268_v57, %v4734_v60  ;;  %v4814_v60 = vld [vmem:[%s26279_s7 + $0x30] sm:$0xff] }
 0xf54   : > { %v24532_v63 = vadd.f32 %v4740_v59, %v24255_v20 }
 0xf55   : > { %v24535_v0 = vadd.f32 %v4735_v61, %v24253_v19  ;;  %v4815_v61 = vld [vmem:[%s26279_s7 + $0x38] sm:$0xff] }
 0xf56   : > { %v4750_v2 = vsel %vm2075_vm1, %v24532_v63, 0.0 }
 0xf57   : > { %4751 = vadd.xlane.f32.xlu1 %v4750_v2  ;;  %v4747_v3 = vsel %vm2075_vm1, %v24535_v0, 0.0  ;;  %v21704_v2 = vpack.c.bf16 %v4815_v61, %v4814_v60 }
 0xf58   : > { %4748 = vadd.xlane.f32.xlu0 %v4747_v3  ;;  %v20273_v3 = vld [vmem:[#allocation15] ss:$0 sm:$0xff] }
 0xf59   : > { %21705 = vmatprep.subr.bf16.mxu1 %v21704_v2 }
 0xf5a   : > { %21707 = vmatpush3.bf16.msra.mxu1 %v21704_v2 }
 0xf5b   : > { %21051 = vmatprep.subr.mxu1 %v23502_v12 }
 0xfe4   : > { %v4752_v5 = vpop.xlane.xlu1 %4751 }
 0xfe5   : > { %v4754_v8 = vmul.f32 0.03125, %v4752_v5  ;;  %v4749_v9 = vpop.xlane.xlu0 %4748 }
 0xfe6   : > { %v4753_v20 = vmul.f32 0.03125, %v4749_v9 }
 0xfe7   : > { %v4756_v10 = vsub.f32 %v24532_v63, %v4754_v8 }
 0xfe8   : > { %v4755_v19 = vsub.f32 %v24535_v0, %v4753_v20 }
 0xfe9   : > { %v4758_v14 = vmul.f32 %v4756_v10, %v4756_v10  ;;  %v4774_v41 = vmul.f32 %v20271_v52, %v4756_v10 }
 0xfea   : > { %v4757_v11 = vmul.f32 %v4755_v19, %v4755_v19  ;;  %v4773_v53 = vmul.f32 %v20271_v52, %v4755_v19 }
 0xfeb   : > { %v4762_v15 = vsel %vm2075_vm1, %v4758_v14, 0.0 }
 0xfec   : > { %v4759_v13 = vsel %vm2075_vm1, %v4757_v11, 0.0  ;;  %v20276_v11 = vld [vmem:[#allocation16] ss:$0 sm:$0xff] }
 0xfed   : > { %4760 = vadd.xlane.f32.xlu0 %v4759_v13 }
 0xff1   : > { %4763 = vadd.xlane.f32.xlu0 %v4762_v15 }
0x107a   : > { %v4761_v31 = vpop.xlane.xlu0 %4760 }
0x107b   : > { %v4765_v32 = vmul.f32 0.032258064, %v4761_v31  ;;  %v20283_v31 = vld [vmem:[%s26275_s11 + $0x30] sm:$0xff] }
0x107d   : > { %22289 = vrsqrt.f32 %v4765_v32  ;;  %vm4777_vm11 = vcmp.eq.f32.partialorder %v4765_v32, inf  ;;  %v4780_v36 = vand.u32 2147483648, %v4765_v32  ;;  %vm4779_vm12 = vcmp.eq.f32.partialorder %v4765_v32, 0.0 }
0x107e   : > { %v4764_v33 = vpop.xlane.xlu0 %4763 }
0x107f   : > { %v4766_v1 = vmul.f32 0.032258064, %v4764_v33  ;;  %v20284_v33 = vld [vmem:[%s26275_s11 + $0x38] sm:$0xff] }
0x1081   : > { %22291 = vrsqrt.f32 %v4766_v1  ;;  %vm4784_vm13 = vcmp.eq.f32.partialorder %v4766_v1, inf  ;;  %v4787_v45 = vand.u32 2147483648, %v4766_v1  ;;  %vm4786_vm14 = vcmp.eq.f32.partialorder %v4766_v1, 0.0 }
0x1087   : > { %v22290_v34 = vpop.eup %22289 }
0x1088   : > { %v4776_v35 = vmul.f32 %v22290_v34, %v4765_v32 }
0x108a   : > { %v4778_v37 = vsel %vm4777_vm11, %v4765_v32, %v4776_v35  ;;  %v21708_v32 = vpack.c.bf16 %v20282_v30, %v20281_v29 }
0x108b   : > { %v22292_v38 = vpop.eup %22291  ;;  %v4781_v40 = vsel %vm4779_vm12, %v4780_v36, %v4778_v37 }
0x108c   : > { %v4783_v39 = vmul.f32 %v22292_v38, %v4766_v1  ;;  %v4789_v43 = vadd.f32 1e-06, %v4781_v40  ;;  %21709 = vmatprep.subr.bf16.mxu0 %v21708_v32 }
0x108e   : > { %v4785_v46 = vsel %vm4784_vm13, %v4766_v1, %v4783_v39  ;;  %22293 = vrcp.f32 %v4789_v43  ;;  %v21712_v1 = vpack.c.bf16 %v20284_v33, %v20283_v31 }
0x108f   : > { %v4788_v48 = vsel %vm4786_vm14, %v4787_v45, %v4785_v46 }
0x1090   : > { %v4790_v51 = vadd.f32 1e-06, %v4788_v48 }
0x1092   : > { %22295 = vrcp.f32 %v4790_v51 }
0x1098   : > { %v22294_v54 = vpop.eup %22293 }
0x1099   : > { %v4792_v42 = vmul.f32 %v22294_v54, %v4773_v53 }
0x109b   : > { %v4801_v56 = vadd.f32 %v20272_v55, %v4792_v42  ;;  %v20279_v42 = vld [vmem:[#allocation6 + $0x1] ss:$0 sm:$0xff] }
0x109c   : > { %v22296_v57 = vpop.eup %22295 }
0x109d   : > { %v4794_v58 = vmul.f32 %v22296_v57, %v4774_v41  ;;  %21008 = vmatprep.mubr.msk.f32.mxu0 %vm2075_vm1, %v4801_v56 }
0x109f   : > { %v4802_v59 = vadd.f32 %v20272_v55, %v4794_v58 }
0x10a1   : > { %21009 = vmatmul.mubr.msk.f32.vlgmr.msra.gmra.mrb[18].mxu0 %vm2075_vm1, %v4802_v59  ;;  %v20280_v59 = vld [vmem:[#allocation7 + $0x1] ss:$0 sm:$0xff] }
0x10a2   : > { %21711 = vmatpush3.bf16.msra.mxu0 %v21708_v32 }
0x10a3   : > { %21713 = vmatprep.subr.bf16.mxu0 %v21712_v1 }
0x10a6   : > { %21715 = vmatpush3.bf16.msra.mxu0 %v21712_v1 }
0x10a7   : > { %21041 = vmatprep.subr.mxu0 %v23502_v12 }
0x1174   : > { %v21010_v5 = vpop.f32.mrb[18].mxu0 }
0x1175   : > { %v4901_v8 = vadd.f32 %v21010_v5, %v20273_v3  ;;  %v4895_v9 = vpop.f32.mrb[19].mxu0  ;;  %v20289_v5 = vld [vmem:[#allocation9 + $0x1] ss:$0 sm:$0xff] }
0x1176   : > { %v4896_v20 = vadd.f32 %v20273_v3, %v4895_v9 }
0x1177   : > { %v4905_v19 = vmax.f32 %v4901_v8, 0.0 }
0x1178   : > { %v4904_v10 = vmax.f32 %v4896_v20, 0.0 }
0x117a   : > { %21027 = vmatprep.mubr.msk.f32.mxu1 %vm26176_vm15, %v4904_v10 }
0x117b   : > { %21028 = vmatmul.mubr.msk.f32.vlgmr.msra.gmra.mrb[20].mxu1 %vm26176_vm15, %v4905_v19 }
0x117c   : > { %21053 = vmatprep.mubr.msk.f32.mxu1 %vm23503_vm6, %v23502_v12 }
0x124e   : > { %v21029_v13 = vpop.f32.mrb[20].mxu1 }
0x124f   : > { %v4991_v14 = vadd.f32 %v21029_v13, %v20276_v11  ;;  %v4985_v15 = vpop.f32.mrb[21].mxu1 }
0x1250   : > { %v4986_v16 = vadd.f32 %v20276_v11, %v4985_v15 }
0x1251   : > { %v24565_v17 = vadd.f32 %v4991_v14, %v24532_v63 }
0x1252   : > { %v24568_v18 = vadd.f32 %v4986_v16, %v24535_v0 }
0x1253   : > { %v5003_v21 = vsel %vm2075_vm1, %v24565_v17, 0.0 }
0x1254   : > { %5004 = vadd.xlane.f32.xlu1 %v5003_v21  ;;  %v5000_v22 = vsel %vm2075_vm1, %v24568_v18, 0.0 }
0x1255   : > { %5001 = vadd.xlane.f32.xlu0 %v5000_v22 }
0x12e1   : > { %v5005_v24 = vpop.xlane.xlu1 %5004 }
0x12e2   : > { %v5007_v4 = vmul.f32 0.03125, %v5005_v24  ;;  %v5002_v49 = vpop.xlane.xlu0 %5001 }
0x12e3   : > { %v5006_v63 = vmul.f32 0.03125, %v5002_v49 }
0x12e4   : > { %v5009_v25 = vsub.f32 %v24565_v17, %v5007_v4 }
0x12e5   : > { %v5008_v0 = vsub.f32 %v24568_v18, %v5006_v63 }
0x12e6   : > { %v5011_v47 = vmul.f32 %v5009_v25, %v5009_v25  ;;  %v5027_v41 = vmul.f32 %v20279_v42, %v5009_v25 }
0x12e7   : > { %v5010_v26 = vmul.f32 %v5008_v0, %v5008_v0  ;;  %v5026_v57 = vmul.f32 %v20279_v42, %v5008_v0 }
0x12e8   : > { %v5015_v27 = vsel %vm2075_vm1, %v5011_v47, 0.0 }
0x12e9   : > { %5016 = vadd.xlane.f32.xlu1 %v5015_v27  ;;  %v5012_v28 = vsel %vm2075_vm1, %v5010_v26, 0.0 }
0x12ea   : > { %5013 = vadd.xlane.f32.xlu0 %v5012_v28 }
0x1376   : > { %v5017_v34 = vpop.xlane.xlu1 %5016 }
0x1377   : > { %v5019_v35 = vmul.f32 0.032258064, %v5017_v34  ;;  %v5014_v36 = vpop.xlane.xlu0 %5013 }
0x1378   : > { %v5018_v37 = vmul.f32 0.032258064, %v5014_v36 }
0x1379   : > { %22297 = vrsqrt.f32 %v5019_v35  ;;  %vm5037_vm2 = vcmp.eq.f32.partialorder %v5019_v35, inf  ;;  %v5040_v43 = vand.u32 2147483648, %v5019_v35  ;;  %vm5039_vm3 = vcmp.eq.f32.partialorder %v5019_v35, 0.0 }
0x137a   : > { %22299 = vrsqrt.f32 %v5018_v37  ;;  %vm5030_vm4 = vcmp.eq.f32.partialorder %v5018_v37, inf  ;;  %v5033_v48 = vand.u32 2147483648, %v5018_v37  ;;  %vm5032_vm5 = vcmp.eq.f32.partialorder %v5018_v37, 0.0 }
0x1383   : > { %v22298_v38 = vpop.eup %22297 }
0x1384   : > { %v22300_v40 = vpop.eup %22299  ;;  %v5036_v39 = vmul.f32 %v22298_v38, %v5019_v35 }
0x1385   : > { %v5029_v45 = vmul.f32 %v22300_v40, %v5018_v37 }
0x1386   : > { %v5038_v46 = vsel %vm5037_vm2, %v5019_v35, %v5036_v39  ;;  %vm8103_vm2 = vcmask 257024  }
0x1387   : > { %v5041_v51 = vsel %vm5039_vm3, %v5040_v43, %v5038_v46  ;;  %v5031_v52 = vsel %vm5030_vm4, %v5018_v37, %v5029_v45 }
0x1388   : > { %v5043_v53 = vadd.f32 1e-06, %v5041_v51  ;;  %v5034_v54 = vsel %vm5032_vm5, %v5033_v48, %v5031_v52 }
0x1389   : > { %v5042_v55 = vadd.f32 1e-06, %v5034_v54 }
0x138a   : > { %22301 = vrcp.f32 %v5043_v53 }
0x138b   : > { %22303 = vrcp.f32 %v5042_v55 }
0x1394   : > { %v22302_v56 = vpop.eup %22301 }
0x1395   : > { %v22304_v58 = vpop.eup %22303  ;;  %v5047_v60 = vmul.f32 %v22302_v56, %v5027_v41 }
0x1396   : > { %v5045_v61 = vmul.f32 %v22304_v58, %v5026_v57 }
0x1397   : > { %v5055_v3 = vadd.f32 %v20280_v59, %v5047_v60 }
0x1398   : > { %v5054_v2 = vadd.f32 %v20280_v59, %v5045_v61 }
0x139a   : > { %21038 = vmatprep.mubr.msk.f32.mxu0 %vm2075_vm1, %v5054_v2 }
0x139b   : > { %21039 = vmatmul.mubr.msk.f32.vlgmr.msra.gmra.mrb[20].mxu0 %vm2075_vm1, %v5055_v3 }
0x139c   : > { %21043 = vmatprep.mubr.msk.f32.mxu0 %vm23503_vm6, %v23502_v12 }
0x146e   : > { %v21040_v8 = vpop.f32.mrb[20].mxu0 }
0x146f   : > { %v24587_v9 = vadd.f32 %v21040_v8, %v20289_v5  ;;  %v5148_v20 = vpop.f32.mrb[21].mxu0 }
0x1470   : > { %v24589_v10 = vadd.f32 %v20289_v5, %v5148_v20 }
0x1472   : > { %5160 = vrot.lane.b32.xlu1 %v24589_v10, %s26161_s18  ;;  %5158 = vrot.lane.b32.xlu0 %v24589_v10, %s26153_s13 }
0x1476   : > { %5162 = vrot.lane.b32.xlu1 %v24589_v10, %s26157_s8 }
0x147a   : > { %5164 = vrot.lane.b32.xlu1 %v24589_v10, %s26155_s3 }
0x14e4   : > { %v24599_v19 = vpop.permute.xlu1 %5160  ;;  %v5159_v11 = vpop.permute.xlu0 %5158 }
0x14e5   : > { %5168 = vrot.lane.b32.xlu1 %v24599_v19, %s26155_s3  ;;  %5166 = vrot.lane.b32.xlu0 %v5159_v11, %s26155_s3 }
0x14e8   : > { %v5163_v13 = vpop.permute.xlu1 %5162 }
0x14e9   : > { %5170 = vrot.lane.b32.xlu0 %v5163_v13, %s26155_s3 }
0x14ec   : > { %v5165_v14 = vpop.permute.xlu1 %5164 }
0x150e   : > { %5176 = vxpose.xlu1.b32.start.end [1/1] (short) (narrow) %v5165_v14, 8 }
0x152c   : > { %6368 = vrot.lane.b32.xlu1 %v24587_v9, %s26153_s13  ;;  %s26280_s13 = smov 64  }
0x1557   : > { %v5167_v15 = vpop.permute.xlu0 %5166  ;;  %v5169_v16 = vpop.permute.xlu1 %5168 }
0x1558   : > { %5208 = vxpose.xlu0.b32.start.end [1/1] (short) (narrow) %v5167_v15, 8 }
0x155b   : > { %v5171_v21 = vpop.permute.xlu0 %5170 }
0x155c   : > { %5240 = vxpose.xlu0.b32.start.end [1/1] (short) (narrow) %v5169_v16, 8 }
0x1560   : > { %5272 = vxpose.xlu0.b32.start.end [1/1] (short) (narrow) %v5171_v21, 8 }
0x1589   : > { %6370 = vrot.lane.b32.xlu0 %v24587_v9, %s26161_s18  ;;  %s26284_s18 = sld [smem:[#allocation62_spill]] }
0x158e   : > { %v5192_v22 = vpop.trf.xlu1 }
0x158f   : > { %21042 = vmatpush3.msra.mxu0 %v5192_v22 }
0x1590   : > { %21044 = vmatmul.mubr.msk.f32.vlgmr.msra.gmra.mrb[22].mxu0 %vm1985_vm0, %v24589_v10  ;;  %21046 = vmatprep.subr.mxu0 %v23502_v12 }
0x1591   : > { %21048 = vmatprep.mubr.msk.f32.mxu0 %vm23503_vm6, %v23502_v12 }
0x159e   : > { %v24645_v43 = vpop.permute.xlu1 %6368 }
0x15d8   : > { %v5224_v24 = vpop.trf.xlu0 }
0x15d9   : > { %21047 = vmatpush3.msra.mxu0 %v5224_v24 }
0x15da   : > { %21049 = vmatmul.mubr.msk.f32.vlgmr.msra.gmra.mrb[24].mxu0 %vm1985_vm0, %v5159_v11  ;;  %21056 = vmatprep.subr.mxu0 %v23502_v12 }
0x15db   : > { %21058 = vmatprep.mubr.msk.f32.mxu0 %vm23503_vm6, %v23502_v12 }
0x15dc   : > { %v5256_v4 = vpop.trf.xlu0 }
0x15dd   : > { %21052 = vmatpush3.msra.mxu1 %v5256_v4 }
0x15de   : > { %21054 = vmatmul.mubr.msk.f32.vlgmr.msra.gmra.mrb[22].mxu1 %vm1985_vm0, %v24599_v19  ;;  %21061 = vmatprep.subr.mxu1 %v23502_v12 }
0x15df   : > { %21063 = vmatprep.mubr.msk.f32.mxu1 %vm23503_vm6, %v23502_v12 }
0x15e0   : > { %v5288_v49 = vpop.trf.xlu0 }
0x15e1   : > { %21057 = vmatpush3.msra.mxu0 %v5288_v49 }
0x15e2   : > { %21059 = vmatmul.mubr.msk.f32.vlgmr.msra.gmra.mrb[26].mxu0 %vm1985_vm0, %v5163_v13  ;;  %21066 = vmatprep.subr.mxu0 %v23502_v12 }
0x15e3   : > { %21068 = vmatprep.mubr.msk.f32.mxu0 %vm23503_vm6, %v23502_v12 }
0x15fb   : > { %v24653_v52 = vpop.permute.xlu0 %6370 }
0x1663   : > { %v5372_v63 = vpop.f32.mrb[22].mxu0 }
0x1664   : > { %v5592_v25 = vmul.f32 0.35355338, %v5372_v63  ;;  %v21045_v0 = vpop.f32.mrb[23].mxu0 }
0x1666   : > { %v5596_v47 = vsel %vm1962_vm7, 1e-09, %v5592_v25 }
0x1667   : > { %v5600_v26 = vsel %vm1985_vm0, %v5596_v47, -inf }
0x1668   : > { %5601 = vmax.xlane.f32.xlu0 %v5600_v26 }
0x16ad   : > { %v5444_v27 = vpop.f32.mrb[24].mxu0 }
0x16ae   : > { %v5593_v28 = vmul.f32 0.35355338, %v5444_v27  ;;  %v21050_v29 = vpop.f32.mrb[25].mxu0 }
0x16b0   : > { %v5597_v30 = vsel %vm1962_vm7, 1e-09, %v5593_v28 }
0x16b1   : > { %v5516_v31 = vpop.f32.mrb[22].mxu1  ;;  %v5603_v32 = vsel %vm1985_vm0, %v5597_v30, -inf }
0x16b2   : > { %v5594_v33 = vmul.f32 0.35355338, %v5516_v31  ;;  %5604 = vmax.xlane.f32.xlu1 %v5603_v32  ;;  %v21055_v1 = vpop.f32.mrb[23].mxu1 }
0x16b4   : > { %v5598_v34 = vsel %vm1962_vm7, 1e-09, %v5594_v33 }
0x16b5   : > { %v5588_v35 = vpop.f32.mrb[26].mxu0  ;;  %v5606_v36 = vsel %vm1985_vm0, %v5598_v34, -inf }
0x16b6   : > { %v5595_v37 = vmul.f32 0.35355338, %v5588_v35  ;;  %5607 = vmax.xlane.f32.xlu1 %v5606_v36  ;;  %v21060_v38 = vpop.f32.mrb[27].mxu0 }
0x16b8   : > { %v5599_v40 = vsel %vm1962_vm7, 1e-09, %v5595_v37 }
0x16b9   : > { %v5609_v39 = vsel %vm1985_vm0, %v5599_v40, -inf }
0x16ba   : > { %5610 = vmax.xlane.f32.xlu0 %v5609_v39 }
0x16c7   : > { %6372 = vrot.lane.b32.xlu1 %v24587_v9, %s26157_s8  ;;  %s26282_s8 = smov 16  }
0x16cb   : > { %5644 = vrot.lane.b32.xlu1 %v24589_v10, %s26280_s13 }
0x16cf   : > { %5646 = vrot.lane.b32.xlu1 %v5159_v11, %s26280_s13 }
0x16d3   : > { %5650 = vrot.lane.b32.xlu1 %v5163_v13, %s26280_s13 }
0x16d7   : > { %6376 = vrot.lane.b32.xlu1 %v24645_v43, %s26155_s3 }
0x16f5   : > { %v5602_v53 = vpop.xlane.xlu0 %5601 }
0x16f6   : > { %v5612_v61 = vsub.f32 %v5596_v47, %v5602_v53 }
0x16f8   : > { %v5616_v2 = vmul.f32 1.442695, %v5612_v61 }
0x173f   : > { %v5605_v45 = vpop.xlane.xlu1 %5604 }
0x1740   : > { %v5613_v54 = vsub.f32 %v5597_v30, %v5605_v45 }
0x1742   : > { %v5618_v42 = vmul.f32 1.442695, %v5613_v54 }
0x1743   : > { %v5608_v46 = vpop.xlane.xlu1 %5607 }
0x1744   : > { %22305 = vpow2.f32 %v5618_v42  ;;  %v5614_v3 = vsub.f32 %v5598_v34, %v5608_v46 }
0x1746   : > { %v5620_v5 = vmul.f32 1.442695, %v5614_v3 }
0x1747   : > { %v24649_v48 = vpop.permute.xlu1 %6372  ;;  %v5611_v55 = vpop.xlane.xlu0 %5610 }
0x1748   : > { %6380 = vrot.lane.b32.xlu1 %v24649_v48, %s26155_s3  ;;  %v5615_v41 = vsub.f32 %v5599_v40, %v5611_v55 }
0x174a   : > { %v5622_v56 = vmul.f32 1.442695, %v5615_v41 }
0x174b   : > { %v5645_v51 = vpop.permute.xlu1 %5644 }
0x174c   : > { %5656 = vxpose.xlu0.b32.start.end [1/1] (short) (narrow) %v5645_v51, 8  ;;  %22307 = vpow2.f32 %v5622_v56 }
0x174d   : > { %22309 = vpow2.f32 %v5616_v2 }
0x174e   : > { %v22306_v57 = vpop.eup %22305  ;;  %22311 = vpow2.f32 %v5620_v5 }
0x174f   : > { %v5627_v58 = vsel %vm1985_vm0, %v22306_v57, 0.0 }
0x1756   : > { %v22308_v59 = vpop.eup %22307 }
0x1757   : > { %v5633_v60 = vsel %vm1985_vm0, %v22308_v59, 0.0  ;;  %v22310_v8 = vpop.eup %22309 }
0x1758   : > { %v5624_v20 = vsel %vm1985_vm0, %v22310_v8, 0.0  ;;  %v22312_v10 = vpop.eup %22311 }
0x1759   : > { %v5630_v11 = vsel %vm1985_vm0, %v22312_v10, 0.0 }
0x176c   : > { %5628 = vadd.xlane.f32.xlu1 %v5627_v58 }
0x1770   : > { %5634 = vadd.xlane.f32.xlu1 %v5633_v60 }
0x1775   : > { %5648 = vrot.lane.b32.xlu0 %v24599_v19, %s26280_s13  ;;  %v5647_v19 = vpop.permute.xlu1 %5646 }
0x1779   : > { %6374 = vrot.lane.b32.xlu0 %v24587_v9, %s26155_s3  ;;  %v5651_v15 = vpop.permute.xlu1 %5650 }
0x177d   : > { %6378 = vrot.lane.b32.xlu0 %v24653_v52, %s26155_s3  ;;  %v6377_v22 = vpop.permute.xlu1 %6376  ;;  %s26281_s3 = smov 24  }
0x179c   : > { %5625 = vadd.xlane.f32.xlu0 %v5624_v20 }
0x17a0   : > { %5631 = vadd.xlane.f32.xlu0 %v5630_v11 }
0x17a3   : > { %5688 = vxpose.xlu1.b32.start.end [1/1] (short) (narrow) %v5647_v19, 8 }
0x17ba   : > { %v6381_v24 = vpop.permute.xlu1 %6380 }
0x17cc   : > { %v5672_v13 = vpop.trf.xlu0 }
0x17e7   : > { %v5649_v14 = vpop.permute.xlu0 %5648 }
0x17e8   : > { %5720 = vxpose.xlu0.b32.start.end [1/1] (short) (narrow) %v5649_v14, 8 }
0x17eb   : > { %v6375_v16 = vpop.permute.xlu0 %6374 }
0x17ec   : > { %5752 = vxpose.xlu0.b32.start.end [1/1] (short) (narrow) %v5651_v15, 8 }
0x17ef   : > { %v6379_v21 = vpop.permute.xlu0 %6378 }
0x17f0   : > { %6386 = vxpose.xlu0.b32.start.end [1/1] (short) (narrow) %v6375_v16, 8  ;;  %6450 = vxpose.xlu1.b32.start.end [1/1] (short) (narrow) %v6379_v21, 8 }
0x17f4   : > { %6418 = vxpose.xlu0.b32.start.end [1/1] (short) (narrow) %v6377_v22, 8 }
0x17f8   : > { %6482 = vxpose.xlu0.b32.start.end [1/1] (short) (narrow) %v6381_v24, 8 }
0x17f9   : > { %v5629_v4 = vpop.xlane.xlu1 %5628 }
0x17fa   : > { %22313 = vrcp.f32 %v5629_v4 }
0x17fd   : > { %v5635_v25 = vpop.xlane.xlu1 %5634 }
0x17fe   : > { %22315 = vrcp.f32 %v5635_v25 }
0x1804   : > { %v22314_v49 = vpop.eup %22313 }
0x1805   : > { %v5639_v63 = vmul.f32 %v22314_v49, %v22306_v57 }
0x1807   : > { %21067 = vmatpush3.xpose.msk.msra.mxu0 %vm1985_vm0, %v5639_v63 }
0x1808   : > { %21076 = vmatprep.subr.mxu0 %v23502_v12  ;;  %v22316_v0 = vpop.eup %22315 }
0x1809   : > { %v5643_v26 = vmul.f32 %v22316_v0, %v22308_v59 }
0x1823   : > { %v5704_v47 = vpop.trf.xlu1 }
0x1824   : > { %21069 = vmatmul.mubr.msk.f32.vlgmr.msra.gmra.mrb[28].mxu0 %vm1985_vm0, %v5704_v47 }
0x1825   : > { %21077 = vmatpush3.xpose.msk.msra.mxu0 %vm1985_vm0, %v5643_v26  ;;  %21078 = vmatprep.mubr.msk.f32.mxu0 %vm23503_vm6, %v23502_v12 }
0x1826   : > { %21086 = vmatprep.subr.mxu0 %v23502_v12 }
0x1829   : > { %v5626_v27 = vpop.xlane.xlu0 %5625 }
0x182a   : > { %22317 = vrcp.f32 %v5626_v27 }
0x182d   : > { %v5632_v28 = vpop.xlane.xlu0 %5631 }
0x182e   : > { %22319 = vrcp.f32 %v5632_v28 }
0x1834   : > { %v22318_v29 = vpop.eup %22317 }
0x1835   : > { %v5637_v30 = vmul.f32 %v22318_v29, %v22310_v8 }
0x1837   : > { %21062 = vmatpush3.xpose.msk.msra.mxu1 %vm1985_vm0, %v5637_v30 }
0x1838   : > { %v22320_v31 = vpop.eup %22319  ;;  %21071 = vmatprep.subr.mxu1 %v23502_v12 }
0x1839   : > { %v5641_v32 = vmul.f32 %v22320_v31, %v22312_v10 }
0x183a   : > { %21064 = vmatmul.mubr.msk.f32.vlgmr.msra.gmra.mrb[24].mxu1 %vm1985_vm0, %v5672_v13 }
0x183b   : > { %21072 = vmatpush3.xpose.msk.msra.mxu1 %vm1985_vm0, %v5641_v32  ;;  %21073 = vmatprep.mubr.msk.f32.mxu1 %vm23503_vm6, %v23502_v12 }
0x183c   : > { %21081 = vmatprep.subr.mxu1 %v23502_v12 }
0x1868   : > { %v5736_v33 = vpop.trf.xlu0 }
0x1869   : > { %21074 = vmatmul.mubr.msk.f32.vlgmr.msra.gmra.mrb[26].mxu1 %vm1985_vm0, %v5736_v33 }
0x186a   : > { %21083 = vmatprep.mubr.msk.f32.mxu1 %vm23503_vm6, %v23502_v12 }
0x186c   : > { %v5768_v1 = vpop.trf.xlu0 }
0x186d   : > { %21079 = vmatmul.mubr.msk.f32.vlgmr.msra.gmra.mrb[30].mxu0 %vm1985_vm0, %v5768_v1 }
0x186e   : > { %21088 = vmatprep.mubr.msk.f32.mxu0 %vm23503_vm6, %v23502_v12 }
0x1870   : > { %v6402_v34 = vpop.trf.xlu0  ;;  %v6466_v35 = vpop.trf.xlu1 }
0x1871   : > { %21082 = vmatpush3.msra.mxu1 %v6402_v34 }
0x1872   : > { %21084 = vmatmul.mubr.msk.f32.vlgmr.msra.gmra.mrb[28].mxu1 %vm1985_vm0, %v24587_v9  ;;  %21091 = vmatprep.subr.mxu1 %v23502_v12 }
0x1873   : > { %21092 = vmatpush3.msra.mxu1 %v6466_v35  ;;  %21093 = vmatprep.mubr.msk.f32.mxu1 %vm23503_vm6, %v23502_v12 }
0x1874   : > { %v6434_v36 = vpop.trf.xlu0  ;;  %21101 = vmatprep.subr.mxu1 %v23502_v12 }
0x1875   : > { %21087 = vmatpush3.msra.mxu0 %v6434_v36 }
0x1876   : > { %21089 = vmatmul.mubr.msk.f32.vlgmr.msra.gmra.mrb[32].mxu0 %vm1985_vm0, %v24645_v43  ;;  %21094 = vmatmul.mubr.msk.f32.vlgmr.msra.gmra.mrb[30].mxu1 %vm1985_vm0, %v24653_v52 }
0x1877   : > { %21096 = vmatprep.subr.mxu0 %v23502_v12  ;;  %21098 = vmatprep.mubr.msk.f32.mxu0 %vm23503_vm6, %v23502_v12 }
0x1878   : > { %v6498_v37 = vpop.trf.xlu0  ;;  %21103 = vmatprep.mubr.msk.f32.mxu1 %vm23503_vm6, %v23502_v12 }
0x1879   : > { %21097 = vmatpush3.msra.mxu0 %v6498_v37 }
0x187a   : > { %21099 = vmatmul.mubr.msk.f32.vlgmr.msra.gmra.mrb[34].mxu0 %vm1985_vm0, %v24649_v48  ;;  %21106 = vmatprep.subr.mxu0 %v23502_v12 }
0x187b   : > { %21108 = vmatprep.mubr.msk.f32.mxu0 %vm23503_vm6, %v23502_v12 }
0x18f7   : > { %v24705_v38 = vpop.f32.mrb[28].mxu0 }
0x18f8   : > { %v21070_v40 = vpop.f32.mrb[29].mxu0 }
0x190d   : > { %v24707_v39 = vpop.f32.mrb[24].mxu1 }
0x190e   : > { %v21065_v45 = vpop.f32.mrb[25].mxu1 }
0x193c   : > { %v24709_v46 = vpop.f32.mrb[26].mxu1 }
0x193d   : > { %v21075_v51 = vpop.f32.mrb[27].mxu1 }
0x1940   : > { %v24711_v53 = vpop.f32.mrb[30].mxu0 }
0x1941   : > { %v21080_v54 = vpop.f32.mrb[31].mxu0 }
0x1945   : > { %v6582_v55 = vpop.f32.mrb[28].mxu1 }
0x1946   : > { %v6802_v42 = vmul.f32 0.35355338, %v6582_v55  ;;  %v21085_v41 = vpop.f32.mrb[29].mxu1 }
0x1948   : > { %v6806_v56 = vsel %vm26175_vm8, 1e-09, %v6802_v42 }
0x1949   : > { %v6654_v57 = vpop.f32.mrb[32].mxu0  ;;  %v6726_v58 = vpop.f32.mrb[30].mxu1  ;;  %v6810_v59 = vsel %vm1985_vm0, %v6806_v56, -inf }
0x194a   : > { %v6803_v60 = vmul.f32 0.35355338, %v6654_v57  ;;  %v6804_v61 = vmul.f32 0.35355338, %v6726_v58  ;;  %6811 = vmax.xlane.f32.xlu1 %v6810_v59  ;;  %v21090_v2 = vpop.f32.mrb[33].mxu0  ;;  %v21095_v3 = vpop.f32.mrb[31].mxu1 }
0x194c   : > { %v6807_v5 = vsel %vm26175_vm8, 1e-09, %v6803_v60  ;;  %v6808_v8 = vsel %vm26175_vm8, 1e-09, %v6804_v61 }
0x194d   : > { %v6798_v20 = vpop.f32.mrb[34].mxu0  ;;  %v6816_v10 = vsel %vm1985_vm0, %v6808_v8, -inf  ;;  %v6813_v11 = vsel %vm1985_vm0, %v6807_v5, -inf }
0x194e   : > { %v6805_v19 = vmul.f32 0.35355338, %v6798_v20  ;;  %6817 = vmax.xlane.f32.xlu1 %v6816_v10  ;;  %6814 = vmax.xlane.f32.xlu0 %v6813_v11  ;;  %v21100_v13 = vpop.f32.mrb[35].mxu0 }
0x1950   : > { %v6809_v14 = vsel %vm26175_vm8, 1e-09, %v6805_v19 }
0x1951   : > { %v6819_v15 = vsel %vm1985_vm0, %v6809_v14, -inf }
0x1952   : > { %6820 = vmax.xlane.f32.xlu1 %v6819_v15 }
0x1963   : > { %6856 = vrot.lane.b32.xlu1 %v24645_v43, %s26280_s13 }
0x1964   : > { %6854 = vrot.lane.b32.xlu0 %v24587_v9, %s26280_s13 }
0x1967   : > { %6858 = vrot.lane.b32.xlu1 %v24653_v52, %s26280_s13 }
0x196b   : > { %6860 = vrot.lane.b32.xlu1 %v24649_v48, %s26280_s13 }
0x19d7   : > { %v6812_v16 = vpop.xlane.xlu1 %6811 }
0x19d8   : > { %v6822_v21 = vsub.f32 %v6806_v56, %v6812_v16 }
0x19da   : > { %v6826_v22 = vmul.f32 1.442695, %v6822_v21 }
0x19db   : > { %v6818_v24 = vpop.xlane.xlu1 %6817  ;;  %v6815_v4 = vpop.xlane.xlu0 %6814 }
0x19dc   : > { %22321 = vpow2.f32 %v6826_v22  ;;  %v6824_v49 = vsub.f32 %v6808_v8, %v6818_v24  ;;  %v6823_v63 = vsub.f32 %v6807_v5, %v6815_v4 }
0x19de   : > { %v6830_v25 = vmul.f32 1.442695, %v6824_v49  ;;  %v6828_v0 = vmul.f32 1.442695, %v6823_v63 }
0x19df   : > { %v6821_v43 = vpop.xlane.xlu1 %6820  ;;  %v6855_v33 = vpop.permute.xlu0 %6854 }
0x19e0   : > { %22323 = vpow2.f32 %v6830_v25  ;;  %v6825_v47 = vsub.f32 %v6809_v14, %v6821_v43 }
0x19e1   : > { %22325 = vpow2.f32 %v6828_v0 }
0x19e2   : > { %v6832_v9 = vmul.f32 1.442695, %v6825_v47 }
0x19e3   : > { %v6857_v32 = vpop.permute.xlu1 %6856 }
0x19e4   : > { %22327 = vpow2.f32 %v6832_v9 }
0x19e6   : > { %v22322_v52 = vpop.eup %22321 }
0x19e7   : > { %v6834_v26 = vsel %vm1985_vm0, %v22322_v52, 0.0  ;;  %v6859_v1 = vpop.permute.xlu1 %6858 }
0x19e8   : > { %6835 = vadd.xlane.f32.xlu0 %v6834_v26 }
0x19ea   : > { %v22324_v48 = vpop.eup %22323 }
0x19eb   : > { %v22326_v27 = vpop.eup %22325  ;;  %v6840_v28 = vsel %vm1985_vm0, %v22324_v48, 0.0  ;;  %v6861_v34 = vpop.permute.xlu1 %6860 }
0x19ec   : > { %6841 = vadd.xlane.f32.xlu0 %v6840_v28  ;;  %v6837_v29 = vsel %vm1985_vm0, %v22326_v27, 0.0 }
0x19ed   : > { %6838 = vadd.xlane.f32.xlu1 %v6837_v29 }
0x19ee   : > { %v22328_v30 = vpop.eup %22327 }
0x19ef   : > { %v6843_v31 = vsel %vm1985_vm0, %v22328_v30, 0.0 }
0x19f0   : > { %6844 = vadd.xlane.f32.xlu0 %v6843_v31 }
0x1a1d   : > { %6866 = vxpose.xlu0.b32.start.end [1/1] (short) (narrow) %v6855_v33, 8 }
0x1a20   : > { %6898 = vxpose.xlu1.b32.start.end [1/1] (short) (narrow) %v6857_v32, 8 }
0x1a21   : > { %6930 = vxpose.xlu0.b32.start.end [1/1] (short) (narrow) %v6859_v1, 8 }
0x1a24   : > { %6088 = vxpose.xlu1.b32.start.end [1/1] (short) (narrow) %v24707_v39, 8 }
0x1a25   : > { %6962 = vxpose.xlu0.b32.start.end [1/1] (short) (narrow) %v6861_v34, 8 }
0x1a28   : > { %6152 = vxpose.xlu1.b32.start.end [1/1] (short) (narrow) %v24709_v46, 8 }
0x1a29   : > { %6120 = vxpose.xlu0.b32.start.end [1/1] (short) (narrow) %v24705_v38, 8 }
0x1a2d   : > { %6184 = vxpose.xlu0.b32.start.end [1/1] (short) (narrow) %v24711_v53, 8 }
0x1a75   : > { %v6836_v35 = vpop.xlane.xlu0 %6835 }
0x1a76   : > { %22329 = vrcp.f32 %v6836_v35 }
0x1a79   : > { %v6842_v39 = vpop.xlane.xlu0 %6841 }
0x1a7a   : > { %v6839_v36 = vpop.xlane.xlu1 %6838 }
0x1a7b   : > { %22331 = vrcp.f32 %v6839_v36 }
0x1a7c   : > { %22333 = vrcp.f32 %v6842_v39 }
0x1a7d   : > { %v6845_v38 = vpop.xlane.xlu0 %6844 }
0x1a7e   : > { %22335 = vrcp.f32 %v6845_v38 }
0x1a80   : > { %v22330_v37 = vpop.eup %22329 }
0x1a81   : > { %v6847_v40 = vmul.f32 %v22330_v37, %v22322_v52 }
0x1a83   : > { %21102 = vmatpush3.xpose.msk.msra.mxu1 %vm1985_vm0, %v6847_v40 }
0x1a84   : > { %21111 = vmatprep.subr.mxu1 %v23502_v12 }
0x1a85   : > { %v22332_v45 = vpop.eup %22331 }
0x1a86   : > { %v6849_v51 = vmul.f32 %v22332_v45, %v22326_v27  ;;  %v22334_v46 = vpop.eup %22333 }
0x1a87   : > { %v6851_v55 = vmul.f32 %v22334_v46, %v22324_v48 }
0x1a88   : > { %21107 = vmatpush3.xpose.msk.msra.mxu0 %vm1985_vm0, %v6849_v51  ;;  %v22336_v53 = vpop.eup %22335 }
0x1a89   : > { %21116 = vmatprep.subr.mxu0 %v23502_v12  ;;  %v6853_v41 = vmul.f32 %v22336_v53, %v22328_v30 }
0x1a9d   : > { %v6882_v54 = vpop.trf.xlu0 }
0x1a9e   : > { %21104 = vmatmul.mubr.msk.f32.vlgmr.msra.gmra.mrb[32].mxu1 %vm1985_vm0, %v6882_v54 }
0x1a9f   : > { %21112 = vmatpush3.xpose.msk.msra.mxu1 %vm1985_vm0, %v6851_v55  ;;  %21113 = vmatprep.mubr.msk.f32.mxu1 %vm23503_vm6, %v23502_v12 }
0x1aa0   : > { %v6914_v42 = vpop.trf.xlu1 }
0x1aa1   : > { %21109 = vmatmul.mubr.msk.f32.vlgmr.msra.gmra.mrb[36].mxu0 %vm1985_vm0, %v6914_v42  ;;  %v6946_v56 = vpop.trf.xlu0 }
0x1aa2   : > { %21117 = vmatpush3.xpose.msk.msra.mxu0 %vm1985_vm0, %v6853_v41  ;;  %21114 = vmatmul.mubr.msk.f32.vlgmr.msra.gmra.mrb[34].mxu1 %vm1985_vm0, %v6946_v56 }
0x1aa3   : > { %21118 = vmatprep.mubr.msk.f32.mxu0 %vm23503_vm6, %v23502_v12 }
0x1aa4   : > { %v6104_v58 = vpop.trf.xlu1 }
0x1aa5   : > { %v6978_v57 = vpop.trf.xlu0 }
0x1aa6   : > { %21119 = vmatmul.mubr.msk.f32.vlgmr.msra.gmra.mrb[38].mxu0 %vm1985_vm0, %v6978_v57 }
0x1aa8   : > { %v6168_v60 = vpop.trf.xlu1 }
0x1aa9   : > { %v6136_v59 = vpop.trf.xlu0  ;;  %v6216_v2 = vcombine.low %v6104_v58, %v6168_v60  ;;  %v6217_v3 = vcombine.high %v6104_v58, %v6168_v60 }
0x1aab   : > { %v6224_v19 = vrot.slane %v6216_v2, %v24468_v62  ;;  %v6231_v13 = vrot.slane %v6217_v3, %v24468_v62 }
0x1aad   : > { %v6200_v61 = vpop.trf.xlu0 }
0x1aae   : > { %v6232_v5 = vcombine.low %v6136_v59, %v6200_v61  ;;  %v6233_v8 = vcombine.high %v6136_v59, %v6200_v61 }
0x1ab0   : > { %v6240_v14 = vrot.slane %v6232_v5, %v24468_v62  ;;  %v6247_v15 = vrot.slane %v6233_v8, %v24468_v62 }
0x1ab2   : > { %v6248_v24 = vcombine.low %v6224_v19, %v6240_v14  ;;  %v6249_v4 = vcombine.high %v6224_v19, %v6240_v14  ;;  %v6264_v49 = vcombine.low %v6231_v13, %v6247_v15  ;;  %v6265_v63 = vcombine.high %v6231_v13, %v6247_v15 }
0x1ab4   : > { %v6256_v43 = vrot.slane %v6248_v24, %v24475_v44  ;;  %v6263_v47 = vrot.slane %v6249_v4, %v24475_v44  ;;  %v6272_v9 = vrot.slane %v6264_v49, %v24475_v44  ;;  %v6279_v52 = vrot.slane %v6265_v63, %v24475_v44  ;;  %v20287_v4 = vld [vmem:[%s26277_s0 + $0x30] sm:$0xff]  ;;  %v20288_v49 = vld [vmem:[%s26277_s0 + $0x38] sm:$0xff] }
0x1ab6   : > { %v6284_v26 = vcombine.low %v6256_v43, %v6263_v47  ;;  %v20304_v48 = vcombine.high %v6256_v43, %v6263_v47  ;;  %v6300_v27 = vcombine.low %v6272_v9, %v6279_v52  ;;  %v20305_v28 = vcombine.high %v6272_v9, %v6279_v52 }
0x1ab7   : > { %v21720_v47 = vpack.c.bf16 %v20288_v49, %v20287_v4  ;;  %v20329_v49 = vld [vmem:[%s26279_s7 + $0x40] sm:$0xff] }
0x1ab8   : > { %v6291_v29 = vrot.slane %v6284_v26, %v24468_v62  ;;  %v6299_v30 = vrot.slane %v20304_v48, %v24468_v62  ;;  %v6307_v31 = vrot.slane %v6300_v27, %v24468_v62  ;;  %v6315_v32 = vrot.slane %v20305_v28, %v24468_v62 }
0x1aba   : > { %v6316_v33 = vcombine.low %v6291_v29, %v6299_v30  ;;  %v6332_v1 = vcombine.low %v6307_v31, %v6315_v32  ;;  %v6317_v36 = vcombine.high %v6291_v29, %v6299_v30  ;;  %v6333_v37 = vcombine.high %v6307_v31, %v6315_v32 }
0x1abc   : > { %v24768_v34 = vrot.slane %v6316_v33, %v24475_v44  ;;  %v24771_v35 = vrot.slane %v6332_v1, %v24475_v44  ;;  %v6331_v45 = vrot.slane %v6317_v36, %v24475_v44  ;;  %v6347_v51 = vrot.slane %v6333_v37, %v24475_v44 }
0x1abe   : > { %v6349_v40 = vcombine.high %v24768_v34, %v24771_v35  ;;  %v6351_v39 = vcombine.high %v6331_v45, %v6347_v51  ;;  %v6350_v38 = vcombine.low %v6331_v45, %v6347_v51  ;;  %v6348_v36 = vcombine.low %v24768_v34, %v24771_v35 }
0x1b71   : > { %v7066_v20 = vpop.f32.mrb[32].mxu1 }
0x1b72   : > { %7298 = vxpose.xlu1.b32.start.end [1/1] (short) (narrow) %v7066_v20, 8  ;;  %v21105_v10 = vpop.f32.mrb[33].mxu1  ;;  %v20285_v20 = vld [vmem:[%s26277_s0 + $0x20] sm:$0xff] }
0x1b73   : > { %v20286_v10 = vld [vmem:[%s26277_s0 + $0x28] sm:$0xff]  ;;  %s26287_s0 = smov 112  }
0x1b74   : > { %v7142_v11 = vpop.f32.mrb[36].mxu0  ;;  %v21716_v15 = vpack.c.bf16 %v20286_v10, %v20285_v20 }
0x1b75   : > { %v21110_v16 = vpop.f32.mrb[37].mxu0  ;;  %v7218_v21 = vpop.f32.mrb[34].mxu1  ;;  %7330 = vxpose.xlu0.b32.start.end [1/1] (short) (narrow) %v7142_v11, 8 }
0x1b76   : > { %7362 = vxpose.xlu1.b32.start.end [1/1] (short) (narrow) %v7218_v21, 8  ;;  %v21115_v22 = vpop.f32.mrb[35].mxu1  ;;  %21717 = vmatprep.subr.bf16.mxu1 %v21716_v15 }
0x1b77   : > { %21719 = vmatpush3.bf16.msra.mxu1 %v21716_v15  ;;  %v20326_v15 = vld [vmem:[%s26278_s15 + $0x28] sm:$0xff] }
0x1b78   : > { %21721 = vmatprep.subr.bf16.mxu1 %v21720_v47 }
0x1b79   : > { %v7294_v25 = vpop.f32.mrb[38].mxu0 }
0x1b7a   : > { %7394 = vxpose.xlu0.b32.start.end [1/1] (short) (narrow) %v7294_v25, 8  ;;  %v21120_v0 = vpop.f32.mrb[39].mxu0 }
0x1b7b   : > { %21723 = vmatpush3.bf16.msra.mxu1 %v21720_v47 }
0x1b94   : > { %6353 = vrot.lane.b32.xlu1 %v6349_v40, %s26159_s10 }
0x1b98   : > { %6361 = vrot.lane.b32.xlu1 %v6351_v39, %s26281_s3 }
0x1ba3   : > { %6357 = vrot.lane.b32.xlu0 %v6350_v38, %s26282_s8 }
0x1bf2   : > { %v7314_v46 = vpop.trf.xlu1 }
0x1bf5   : > { %v7346_v53 = vpop.trf.xlu0 }
0x1bf6   : > { %v7378_v54 = vpop.trf.xlu1 }
0x1bf7   : > { %v7426_v55 = vcombine.low %v7314_v46, %v7378_v54  ;;  %v7427_v42 = vcombine.high %v7314_v46, %v7378_v54 }
0x1bf9   : > { %v7434_v58 = vrot.slane %v7426_v55, %v24468_v62  ;;  %v7441_v59 = vrot.slane %v7427_v42, %v24468_v62  ;;  %v20320_v42 = vld [vmem:[#allocation10 + $0x1] ss:$0 sm:$0xff] }
0x1bfa   : > { %v7410_v41 = vpop.trf.xlu0 }
0x1bfb   : > { %v7442_v56 = vcombine.low %v7346_v53, %v7410_v41  ;;  %v7443_v57 = vcombine.high %v7346_v53, %v7410_v41 }
0x1bfd   : > { %v7450_v60 = vrot.slane %v7442_v56, %v24468_v62  ;;  %v7457_v61 = vrot.slane %v7443_v57, %v24468_v62 }
0x1bff   : > { %v7458_v2 = vcombine.low %v7434_v58, %v7450_v60  ;;  %v7459_v3 = vcombine.high %v7434_v58, %v7450_v60  ;;  %v7474_v5 = vcombine.low %v7441_v59, %v7457_v61  ;;  %v7475_v8 = vcombine.high %v7441_v59, %v7457_v61 }
0x1c01   : > { %v7466_v11 = vrot.slane %v7458_v2, %v24475_v44  ;;  %v7473_v19 = vrot.slane %v7459_v3, %v24475_v44  ;;  %v7482_v13 = vrot.slane %v7474_v5, %v24475_v44  ;;  %v7489_v14 = vrot.slane %v7475_v8, %v24475_v44 }
0x1c03   : > { %v7494_v16 = vcombine.low %v7466_v11, %v7473_v19  ;;  %v20318_v21 = vcombine.high %v7466_v11, %v7473_v19  ;;  %v7510_v22 = vcombine.low %v7482_v13, %v7489_v14  ;;  %v20319_v24 = vcombine.high %v7482_v13, %v7489_v14  ;;  %v20325_v14 = vld [vmem:[%s26278_s15 + $0x20] sm:$0xff] }
0x1c05   : > { %v7501_v63 = vrot.slane %v7494_v16, %v24468_v62  ;;  %v7509_v25 = vrot.slane %v20318_v21, %v24468_v62  ;;  %v7517_v0 = vrot.slane %v7510_v22, %v24468_v62  ;;  %v7525_v43 = vrot.slane %v20319_v24, %v24468_v62  ;;  %v20327_v16 = vld [vmem:[%s26278_s15 + $0x30] sm:$0xff]  ;;  %v20328_v22 = vld [vmem:[%s26278_s15 + $0x38] sm:$0xff]  ;;  %s26297_s15 = sld [smem:[#allocation97_spill]] }
0x1c06   : > { %v6354_v1 = vpop.permute.xlu1 %6353  ;;  %v21724_v21 = vpack.c.bf16 %v20326_v15, %v20325_v14  ;;  %v21728_v24 = vpack.c.bf16 %v20328_v22, %v20327_v16 }
0x1c07   : > { %v7526_v9 = vcombine.low %v7501_v63, %v7509_v25  ;;  %v7542_v52 = vcombine.low %v7517_v0, %v7525_v43  ;;  %v7527_v26 = vcombine.high %v7501_v63, %v7509_v25  ;;  %v7543_v48 = vcombine.high %v7517_v0, %v7525_v43  ;;  %v20330_v63 = vld [vmem:[%s26279_s7 + $0x48] sm:$0xff]  ;;  %v20331_v25 = vld [vmem:[%s26279_s7 + $0x50] sm:$0xff]  ;;  %v20332_v43 = vld [vmem:[%s26279_s7 + $0x58] sm:$0xff] }
0x1c08   : > { %v6364_v45 = vsel %vm1985_vm0, %v6348_v36, %v6354_v1  ;;  %21725 = vmatprep.subr.bf16.mxu0 %v21724_v21  ;;  %v21732_v0 = vpack.c.bf16 %v20330_v63, %v20329_v49  ;;  %v21736_v47 = vpack.c.bf16 %v20332_v43, %v20331_v25  ;;  %v20335_v63 = vld [vmem:[%s26279_s7 + $0x70] sm:$0xff] }
0x1c09   : > { %v7534_v27 = vrot.slane %v7526_v9, %v24475_v44  ;;  %v7550_v28 = vrot.slane %v7542_v52, %v24475_v44  ;;  %v7541_v30 = vrot.slane %v7527_v26, %v24475_v44  ;;  %v7557_v31 = vrot.slane %v7543_v48, %v24475_v44  ;;  %21727 = vmatpush3.bf16.msra.mxu0 %v21724_v21  ;;  %v20333_v9 = vld [vmem:[%s26279_s7 + $0x60] sm:$0xff]  ;;  %v20334_v52 = vld [vmem:[%s26279_s7 + $0x68] sm:$0xff] }
0x1c0a   : > { %v6362_v40 = vpop.permute.xlu1 %6361  ;;  %21729 = vmatprep.subr.bf16.mxu0 %v21728_v24  ;;  %21733 = vmatprep.subr.bf16.mxu1 %v21732_v0  ;;  %v21740_v26 = vpack.c.bf16 %v20334_v52, %v20333_v9 }
0x1c0b   : > { %v7559_v29 = vcombine.high %v7534_v27, %v7550_v28  ;;  %v7558_v32 = vcombine.low %v7534_v27, %v7550_v28  ;;  %v7560_v33 = vcombine.low %v7541_v30, %v7557_v31  ;;  %v7561_v37 = vcombine.high %v7541_v30, %v7557_v31 }
0x1c0d   : > { %7563 = vrot.lane.b32.xlu1 %v7559_v29, %s26159_s10  ;;  %s26283_s10 = sld [smem:[#allocation69_spill]]  ;;  %21731 = vmatpush3.bf16.msra.mxu0 %v21728_v24 }
0x1c11   : > { %7567 = vrot.lane.b32.xlu1 %v7560_v33, %s26282_s8 }
0x1c13   : > { %v24840_v4 = vld [vmem:[%s26283_s10] sm:$0xff]  ;;  %s1888_s10 = scalar_lea.vmem %s26284_s18, %s24238_s9  ;;  %s26285_s18 = sld [smem:[#allocation66_spill]] }
0x1c14   : > { %21162 = vmatprep.subr.mxu0 %v24840_v4  ;;  %v1907_v30 = vld [vmem:[%s1888_s10] sm:$0x3f]  ;;  %v1908_v36 = vld [vmem:[%s1888_s10 + $0x8] sm:$0x3f]  ;;  %s26286_s10 = sld [smem:[#allocation85_spill]] }
0x1c15   : > { %7571 = vrot.lane.b32.xlu1 %v7561_v37, %s26281_s3  ;;  %v6358_v51 = vpop.permute.xlu0 %6357  ;;  %v1919_v33 = vsub.f32 %v1907_v30, %v24243_v6 }
0x1c16   : > { %v6365_v39 = vsel %vm3440_vm9, %v6364_v45, %v6358_v51 }
0x1c17   : > { %v6366_v38 = vsel %vm3442_vm10, %v6365_v39, %v6362_v40 }
0x1c18   : > { %21129 = vmatprep.mubr.msk.f32.mxu1 %vm2075_vm1, %v6366_v38  ;;  %v1920_v38 = vsub.f32 %v1908_v36, %v24245_v7 }
0x1c19   : > { %v8095_v30 = vld [vmem:[%s26285_s18 + $0x8] sm:$0xf] }
0x1c7f   : > { %v7564_v46 = vpop.permute.xlu1 %7563 }
0x1c80   : > { %v7574_v54 = vsel %vm1985_vm0, %v7558_v32, %v7564_v46  ;;  %v1923_v46 = vcombine.high %v1919_v33, %v1919_v33 }
0x1c83   : > { %v7568_v53 = vpop.permute.xlu1 %7567 }
0x1c84   : > { %v7575_v55 = vsel %vm3440_vm9, %v7574_v54, %v7568_v53  ;;  %v1930_v54 = vrot.slane %v1919_v33, %v24468_v62  ;;  %v8094_v33 = vld [vmem:[%s26285_s18] sm:$0xff] }
0x1c87   : > { %v7572_v34 = vpop.permute.xlu1 %7571 }
0x1c88   : > { %v7576_v35 = vsel %vm3442_vm10, %v7575_v55, %v7572_v34 }
0x1c89   : > { %21130 = vmatmul.mubr.msk.f32.vlgmr.msra.gmra.mrb[36].mxu1 %vm2075_vm1, %v7576_v35 }
0x1c8a   : > { %21735 = vmatpush3.bf16.msra.mxu1 %v21732_v0  ;;  %v20337_v0 = vld [vmem:[#allocation15 + $0x1] ss:$0 sm:$0xff] }
0x1c8b   : > { %21737 = vmatprep.subr.bf16.mxu1 %v21736_v47 }
0x1c8e   : > { %21739 = vmatpush3.bf16.msra.mxu1 %v21736_v47 }
0x1c8f   : > { %21741 = vmatprep.subr.bf16.mxu1 %v21740_v26 }
0x1c92   : > { %21743 = vmatpush3.bf16.msra.mxu1 %v21740_v26  ;;  %v20345_v26 = vld [vmem:[#allocation4] ss:$0 sm:$0xff] }
0x1d5c   : > { %v21131_v41 = vpop.f32.mrb[36].mxu1 }
0x1d5d   : > { %v7661_v56 = vadd.f32 %v21131_v41, %v20320_v42  ;;  %v7655_v57 = vpop.f32.mrb[37].mxu1  ;;  %v1937_v41 = vrot.slane %v1923_v46, %v24468_v62 }
0x1d5e   : > { %v7656_v58 = vadd.f32 %v20320_v42, %v7655_v57  ;;  %v1946_v42 = vrot.slane %v1920_v38, %v24468_v62  ;;  %v20323_v57 = vld [vmem:[#allocation12 + $0x1] ss:$0 sm:$0xff] }
0x1d5f   : > { %v24814_v59 = vadd.f32 %v7661_v56, %v24565_v17  ;;  %v1938_v56 = vcombine.high %v1930_v54, %v1930_v54 }
0x1d60   : > { %v24817_v60 = vadd.f32 %v7656_v58, %v24568_v18  ;;  %v1939_v58 = vcombine.high %v1920_v38, %v1920_v38 }
0x1d61   : > { %v7673_v61 = vsel %vm2075_vm1, %v24814_v59, 0.0 }
0x1d62   : > { %7674 = vadd.xlane.f32.xlu1 %v7673_v61  ;;  %v7670_v2 = vsel %vm2075_vm1, %v24817_v60, 0.0  ;;  %v7988_v61 = vcombine.low %v1930_v54, %v1938_v56  ;;  %v8158_v56 = vld [vmem:[%s26286_s10 + $0x8] sm:$0xff] }
0x1d63   : > { %7671 = vadd.xlane.f32.xlu0 %v7670_v2  ;;  %v7989_v2 = vcombine.low %v1937_v41, %v1946_v42  ;;  %v8157_v41 = vld [vmem:[%s26286_s10] sm:$0xff] }
0x1def   : > { %v7675_v3 = vpop.xlane.xlu1 %7674 }
0x1df0   : > { %v7677_v5 = vmul.f32 0.03125, %v7675_v3  ;;  %v7672_v8 = vpop.xlane.xlu0 %7671 }
0x1df1   : > { %v7676_v17 = vmul.f32 0.03125, %v7672_v8  ;;  %v20324_v8 = vld [vmem:[#allocation13 + $0x1] ss:$0 sm:$0xff] }
0x1df2   : > { %v24824_v20 = vsub.f32 %v24814_v59, %v7677_v5 }
0x1df3   : > { %v24827_v18 = vsub.f32 %v24817_v60, %v7676_v17  ;;  %v1953_v17 = vrot.slane %v1939_v58, %v24468_v62  ;;  %v21748_v58 = vpack.c.bf16 %v8158_v56, %v8157_v41 }
0x1df4   : > { %v7681_v19 = vmul.f32 %v24824_v20, %v24824_v20  ;;  %v7697_v14 = vmul.f32 %v20323_v57, %v24824_v20  ;;  %v20336_v20 = vld [vmem:[%s26279_s7 + $0x78] sm:$0xff]  ;;  %s26291_s7 = sld [smem:[#allocation64_spill]] }
0x1df5   : > { %v7680_v10 = vmul.f32 %v24827_v18, %v24827_v18  ;;  %v7696_v3 = vmul.f32 %v20323_v57, %v24827_v18  ;;  %v21744_v25 = vpack.c.bf16 %v20336_v20, %v20335_v63  ;;  %v8159_v57 = vld [vmem:[%s26286_s10 + $0x10] sm:$0xff] }
0x1df6   : > { %v7685_v13 = vsel %vm2075_vm1, %v7681_v19, 0.0  ;;  %v7996_v19 = vrot.slane %v7988_v61, %v24468_v62  ;;  %v8160_v61 = vld [vmem:[%s26286_s10 + $0x18] sm:$0xff] }
0x1df7   : > { %v7682_v11 = vsel %vm2075_vm1, %v7680_v10, 0.0  ;;  %v1954_v10 = vcombine.high %v1946_v42, %v1946_v42  ;;  %21745 = vmatprep.subr.bf16.mxu1 %v21744_v25 }
0x1df8   : > { %7683 = vadd.xlane.f32.xlu0 %v7682_v11  ;;  %21747 = vmatpush3.bf16.msra.mxu1 %v21744_v25  ;;  %v20348_v25 = vld [vmem:[#allocation21] ss:$0 sm:$0xff] }
0x1df9   : > { %v8005_v18 = vcombine.low %v1954_v10, %v1953_v17  ;;  %21183 = vmatprep.subr.mxu1 %v23502_v12 }
0x1dfa   : > { %s24951_s11 = scalar_lea.vmem %s26291_s7, %s24238_s9  ;;  %s26292_s9 = sld [smem:[#allocation87_spill]] }
0x1dfb   : > { %v8012_v49 = vrot.slane %v8005_v18, %v24468_v62  ;;  %s26294_s7 = sld [smem:[#allocation92_spill]] }
0x1dfc   : > { %7686 = vadd.xlane.f32.xlu0 %v7685_v13  ;;  %v8003_v13 = vrot.slane %v7989_v2, %v24468_v62  ;;  %v21752_v2 = vpack.c.bf16 %v8160_v61, %v8159_v57 }
0x1dfe   : > { %v8004_v22 = vcombine.low %v7996_v19, %v8003_v13 }
0x1e85   : > { %v7684_v48 = vpop.xlane.xlu0 %7683 }
0x1e86   : > { %v7688_v27 = vmul.f32 0.032258064, %v7684_v48 }
0x1e88   : > { %22337 = vrsqrt.f32 %v7688_v27  ;;  %vm7700_vm11 = vcmp.eq.f32.partialorder %v7688_v27, inf  ;;  %v7703_v1 = vand.u32 2147483648, %v7688_v27  ;;  %vm7702_vm12 = vcmp.eq.f32.partialorder %v7688_v27, 0.0 }
0x1e89   : > { %v7687_v28 = vpop.xlane.xlu0 %7686 }
0x1e8a   : > { %v7689_v29 = vmul.f32 0.032258064, %v7687_v28 }
0x1e8c   : > { %22339 = vrsqrt.f32 %v7689_v29  ;;  %vm7707_vm13 = vcmp.eq.f32.partialorder %v7689_v29, inf  ;;  %v7710_v53 = vand.u32 2147483648, %v7689_v29  ;;  %vm7709_vm14 = vcmp.eq.f32.partialorder %v7689_v29, 0.0 }
0x1e92   : > { %v22338_v31 = vpop.eup %22337 }
0x1e93   : > { %v7699_v32 = vmul.f32 %v22338_v31, %v7688_v27 }
0x1e95   : > { %v7701_v37 = vsel %vm7700_vm11, %v7688_v27, %v7699_v32 }
0x1e96   : > { %v22340_v40 = vpop.eup %22339  ;;  %v7704_v45 = vsel %vm7702_vm12, %v7703_v1, %v7701_v37 }
0x1e97   : > { %v7706_v51 = vmul.f32 %v22340_v40, %v7689_v29  ;;  %v7712_v39 = vadd.f32 1e-06, %v7704_v45 }
0x1e99   : > { %v7708_v55 = vsel %vm7707_vm13, %v7689_v29, %v7706_v51  ;;  %22341 = vrcp.f32 %v7712_v39  ;;  %vm26171_vm13 = vcmask 46080  }
0x1e9a   : > { %v7711_v34 = vsel %vm7709_vm14, %v7710_v53, %v7708_v55  ;;  %vm9464_vm14 = vcmask 1041408  }
0x1e9b   : > { %v7713_v35 = vadd.f32 1e-06, %v7711_v34 }
0x1e9d   : > { %22343 = vrcp.f32 %v7713_v35 }
0x1ea3   : > { %v22342_v5 = vpop.eup %22341 }
0x1ea4   : > { %v7715_v11 = vmul.f32 %v22342_v5, %v7696_v3 }
0x1ea6   : > { %v7724_v15 = vadd.f32 %v20324_v8, %v7715_v11 }
0x1ea7   : > { %v22344_v16 = vpop.eup %22343 }
0x1ea8   : > { %v7717_v21 = vmul.f32 %v22344_v16, %v7697_v14  ;;  %21140 = vmatprep.mubr.msk.f32.mxu0 %vm2075_vm1, %v7724_v15 }
0x1eaa   : > { %v7725_v24 = vadd.f32 %v20324_v8, %v7717_v21 }
0x1eac   : > { %21141 = vmatmul.mubr.msk.f32.vlgmr.msra.gmra.mrb[40].mxu0 %vm2075_vm1, %v7725_v24 }
0x1ead   : > { %21163 = vmatpush3.msra.mxu0 %v24840_v4  ;;  %21164 = vmatprep.mubr.msk.f32.mxu0 %vm1985_vm0, %v8004_v22 }
0x1eae   : > { %21749 = vmatprep.subr.bf16.mxu0 %v21748_v58 }
0x1eb0   : > { %21165 = vmatmul.mubr.msk.f32.vlgmr.msra.gmra.mrb[42].mxu0 %vm1985_vm0, %v8012_v49 }
0x1eb1   : > { %21751 = vmatpush3.bf16.msra.mxu0 %v21748_v58 }
0x1eb2   : > { %21753 = vmatprep.subr.bf16.mxu0 %v21752_v2 }
0x1eb5   : > { %21755 = vmatpush3.bf16.msra.mxu0 %v21752_v2 }
0x1eb6   : > { %21178 = vmatprep.subr.mxu0 %v23502_v12 }
0x1f7f   : > { %v21142_v43 = vpop.f32.mrb[40].mxu0 }
0x1f80   : > { %v7828_v47 = vadd.f32 %v21142_v43, %v20337_v0  ;;  %v7822_v9 = vpop.f32.mrb[41].mxu0 }
0x1f81   : > { %v7823_v52 = vadd.f32 %v20337_v0, %v7822_v9 }
0x1f82   : > { %v7832_v27 = vmax.f32 %v7828_v47, 0.0 }
0x1f83   : > { %v7831_v4 = vmax.f32 %v7823_v52, 0.0  ;;  %v21166_v48 = vpop.f32.mrb[42].mxu0  ;;  %v20349_v52 = vld [vmem:[#allocation22] ss:$0 sm:$0xff] }
0x1f84   : > { %v8089_v28 = vadd.f32 %v21166_v48, %v20345_v26  ;;  %v8083_v29 = vpop.f32.mrb[43].mxu0 }
0x1f85   : > { %v8084_v31 = vadd.f32 %v20345_v26, %v8083_v29  ;;  %21159 = vmatprep.mubr.msk.f32.mxu1 %vm26176_vm15, %v7831_v4 }
0x1f86   : > { %v8093_v32 = vmul.f32 5.656854, %v8089_v28  ;;  %21160 = vmatmul.mubr.msk.f32.vlgmr.msra.gmra.mrb[38].mxu1 %vm26176_vm15, %v7832_v27  ;;  %v20350_v28 = vld [vmem:[#allocation24] ss:$0 sm:$0xff] }
0x1f87   : > { %v8092_v1 = vmul.f32 5.656854, %v8084_v31  ;;  %21185 = vmatprep.mubr.msk.f32.mxu1 %vm23503_vm6, %v23502_v12 }
0x1f88   : > { %v24876_v36 = vadd.f32 %v8095_v30, %v8093_v32 }
0x1f89   : > { %v24878_v37 = vadd.f32 %v8094_v33, %v8092_v1 }
0x1f8a   : > { %v8104_v40 = vsel %vm8103_vm2, %v24876_v36, 0.0 }
0x1f8b   : > { %8105 = vadd.xlane.f32.xlu1 %v8104_v40  ;;  %v8100_v45 = vsel %vm2075_vm1, %v24878_v37, 0.0 }
0x1f8c   : > { %8101 = vadd.xlane.f32.xlu0 %v8100_v45 }
0x2018   : > { %v8106_v51 = vpop.xlane.xlu1 %8105 }
0x2019   : > { %v8108_v39 = vmul.f32 0.03125, %v8106_v51  ;;  %v8102_v38 = vpop.xlane.xlu0 %8101 }
0x201a   : > { %v8107_v46 = vmul.f32 0.03125, %v8102_v38 }
0x201b   : > { %v8110_v53 = vsub.f32 %v24876_v36, %v8108_v39 }
0x201c   : > { %v8109_v54 = vsub.f32 %v24878_v37, %v8107_v46 }
0x201d   : > { %v8112_v55 = vmul.f32 %v8110_v53, %v8110_v53  ;;  %v8128_v0 = vmul.f32 %v20348_v25, %v8110_v53 }
0x201e   : > { %v8111_v34 = vmul.f32 %v8109_v54, %v8109_v54  ;;  %v8127_v47 = vmul.f32 %v20348_v25, %v8109_v54 }
0x201f   : > { %v8116_v35 = vsel %vm8103_vm2, %v8112_v55, 0.0 }
0x2020   : > { %8117 = vadd.xlane.f32.xlu1 %v8116_v35  ;;  %v8113_v42 = vsel %vm2075_vm1, %v8111_v34, 0.0  ;;  %v24954_v34 = vld [vmem:[%s24951_s11] sm:$0x3f] }
0x2021   : > { %8114 = vadd.xlane.f32.xlu0 %v8113_v42  ;;  %vm1964_vm12 = vcmp.eq.f32.partialorder %v24954_v34, 0.0 }
0x2059   : > { %v24893_v3 = vpop.f32.mrb[38].mxu1 }
0x205a   : > { %v24895_v5 = vpop.f32.mrb[39].mxu1 }
0x20ad   : > { %v8118_v8 = vpop.xlane.xlu1 %8117 }
0x20ae   : > { %v8120_v17 = vmul.f32 0.032258064, %v8118_v8  ;;  %v8115_v10 = vpop.xlane.xlu0 %8114 }
0x20af   : > { %v8119_v11 = vmul.f32 0.032258064, %v8115_v10 }
0x20b0   : > { %22345 = vrsqrt.f32 %v8120_v17  ;;  %vm8138_vm3 = vcmp.eq.f32.partialorder %v8120_v17, inf  ;;  %v8141_v15 = vand.u32 2147483648, %v8120_v17  ;;  %vm8140_vm4 = vcmp.eq.f32.partialorder %v8120_v17, 0.0 }
0x20b1   : > { %22347 = vrsqrt.f32 %v8119_v11  ;;  %vm8131_vm5 = vcmp.eq.f32.partialorder %v8119_v11, inf  ;;  %v8134_v18 = vand.u32 2147483648, %v8119_v11  ;;  %vm8133_vm11 = vcmp.eq.f32.partialorder %v8119_v11, 0.0 }
0x20ba   : > { %v22346_v19 = vpop.eup %22345 }
0x20bb   : > { %v22348_v13 = vpop.eup %22347  ;;  %v8137_v14 = vmul.f32 %v22346_v19, %v8120_v17 }
0x20bc   : > { %v8130_v16 = vmul.f32 %v22348_v13, %v8119_v11 }
0x20bd   : > { %v8139_v21 = vsel %vm8138_vm3, %v8120_v17, %v8137_v14  ;;  %vm26170_vm3 = vcmask 48128  }
0x20be   : > { %v8142_v22 = vsel %vm8140_vm4, %v8141_v15, %v8139_v21  ;;  %v8132_v24 = vsel %vm8131_vm5, %v8119_v11, %v8130_v16  ;;  %vm10674_vm5 = vcmask 1045504  }
0x20bf   : > { %v8144_v49 = vadd.f32 1e-06, %v8142_v22  ;;  %v8135_v63 = vsel %vm8133_vm11, %v8134_v18, %v8132_v24 }
0x20c0   : > { %v8143_v20 = vadd.f32 1e-06, %v8135_v63 }
0x20c1   : > { %22349 = vrcp.f32 %v8144_v49 }
0x20c2   : > { %22351 = vrcp.f32 %v8143_v20 }
0x20cb   : > { %v22350_v43 = vpop.eup %22349 }
0x20cc   : > { %v22352_v9 = vpop.eup %22351  ;;  %v8148_v26 = vmul.f32 %v22350_v43, %v8128_v0 }
0x20cd   : > { %v8146_v4 = vmul.f32 %v22352_v9, %v8127_v47 }
0x20ce   : > { %v8156_v27 = vadd.f32 %v20349_v52, %v8148_v26 }
0x20cf   : > { %v8155_v48 = vadd.f32 %v20349_v52, %v8146_v4 }
0x20d1   : > { %21175 = vmatprep.mubr.msk.f32.mxu0 %vm2075_vm1, %v8155_v48 }
0x20d2   : > { %21176 = vmatmul.mubr.msk.f32.vlgmr.msra.gmra.mrb[44].mxu0 %vm2075_vm1, %v8156_v27 }
0x20d3   : > { %21180 = vmatprep.mubr.msk.f32.mxu0 %vm23503_vm6, %v23502_v12 }
0x21a5   : > { %v21177_v29 = vpop.f32.mrb[44].mxu0 }
0x21a6   : > { %v24901_v30 = vadd.f32 %v21177_v29, %v20350_v28  ;;  %v8245_v31 = vpop.f32.mrb[45].mxu0 }
0x21a7   : > { %v24903_v32 = vadd.f32 %v20350_v28, %v8245_v31 }
0x21a9   : > { %8257 = vrot.lane.b32.xlu1 %v24903_v32, %s26287_s0  ;;  %8255 = vrot.lane.b32.xlu0 %v24903_v32, %s26288_s1 }
0x21ad   : > { %8259 = vrot.lane.b32.xlu1 %v24903_v32, %s26289_s4 }
0x21b1   : > { %8261 = vrot.lane.b32.xlu1 %v24903_v32, %s26290_s5 }
0x221b   : > { %v24913_v33 = vpop.permute.xlu1 %8257  ;;  %v24915_v1 = vpop.permute.xlu0 %8255 }
0x221c   : > { %8265 = vrot.lane.b32.xlu1 %v24913_v33, %s26290_s5  ;;  %8263 = vrot.lane.b32.xlu0 %v24915_v1, %s26290_s5  ;;  %v9468_v63 = vrot.slane %v24915_v1, 6 }
0x221f   : > { %v24921_v40 = vpop.permute.xlu1 %8259 }
0x2220   : > { %8267 = vrot.lane.b32.xlu0 %v24921_v40, %s26290_s5  ;;  %v9474_v9 = vrot.slane %v24921_v40, 6 }
0x2223   : > { %v8262_v45 = vpop.permute.xlu1 %8261 }
0x2245   : > { %8273 = vxpose.xlu1.b32.start.end [1/1] (short) (narrow) %v8262_v45, 8 }
0x2263   : > { %9458 = vrot.lane.b32.xlu1 %v24901_v30, %s26288_s1 }
0x228e   : > { %v8264_v51 = vpop.permute.xlu0 %8263  ;;  %v8266_v39 = vpop.permute.xlu1 %8265 }
0x228f   : > { %8305 = vxpose.xlu0.b32.start.end [1/1] (short) (narrow) %v8264_v51, 8 }
0x2292   : > { %v8268_v38 = vpop.permute.xlu0 %8267 }
0x2293   : > { %8337 = vxpose.xlu0.b32.start.end [1/1] (short) (narrow) %v8266_v39, 8 }
0x2297   : > { %8369 = vxpose.xlu0.b32.start.end [1/1] (short) (narrow) %v8268_v38, 8  ;;  %v9465_v38 = vrot.slane %v24903_v32, 6 }
0x22c0   : > { %9460 = vrot.lane.b32.xlu0 %v24901_v30, %s26287_s0 }
0x22c5   : > { %v8289_v46 = vpop.trf.xlu1 }
0x22c6   : > { %21179 = vmatpush3.msra.mxu0 %v8289_v46  ;;  %v9466_v46 = vrot.slane %v24901_v30, 6 }
0x22c7   : > { %21181 = vmatmul.mubr.msk.f32.vlgmr.msra.gmra.mrb[46].mxu0 %vm1985_vm0, %v24903_v32  ;;  %21188 = vmatprep.subr.mxu0 %v23502_v12 }
0x22c8   : > { %21190 = vmatprep.mubr.msk.f32.mxu0 %vm23503_vm6, %v23502_v12 }
0x22d5   : > { %v9459_v24 = vpop.permute.xlu1 %9458 }
0x22d6   : > { %v9469_v49 = vrot.slane %v9459_v24, 6 }
0x22d8   : > { %v24982_v20 = vsel %vm9464_vm14, %v9468_v63, %v9469_v49 }
0x230f   : > { %v8321_v53 = vpop.trf.xlu0 }
0x2310   : > { %21184 = vmatpush3.msra.mxu1 %v8321_v53 }
0x2311   : > { %21186 = vmatmul.mubr.msk.f32.vlgmr.msra.gmra.mrb[40].mxu1 %vm1985_vm0, %v24915_v1  ;;  %21193 = vmatprep.subr.mxu1 %v23502_v12 }
0x2312   : > { %21195 = vmatprep.mubr.msk.f32.mxu1 %vm23503_vm6, %v23502_v12 }
0x2313   : > { %v8353_v54 = vpop.trf.xlu0 }
0x2314   : > { %21189 = vmatpush3.msra.mxu0 %v8353_v54  ;;  %v24999_v54 = vsel %vm9464_vm14, %v9465_v38, %v9466_v46  ;;  %v25061_v46 = vld [vmem:[%s24951_s11 + $0x8] sm:$0x3f]  ;;  %s26293_s11 = smov 8  }
0x2315   : > { %21191 = vmatmul.mubr.msk.f32.vlgmr.msra.gmra.mrb[48].mxu0 %vm1985_vm0, %v24913_v33  ;;  %21198 = vmatprep.subr.mxu0 %v23502_v12  ;;  %vm26169_vm4 = vcmp.eq.f32.partialorder %v25061_v46, 0.0 }
0x2316   : > { %21200 = vmatprep.mubr.msk.f32.mxu0 %vm23503_vm6, %v23502_v12 }
0x2317   : > { %v8385_v55 = vpop.trf.xlu0 }
0x2318   : > { %21194 = vmatpush3.msra.mxu1 %v8385_v55  ;;  %v9471_v55 = vrot.slane %v24913_v33, 6 }
0x2319   : > { %21196 = vmatmul.mubr.msk.f32.vlgmr.msra.gmra.mrb[42].mxu1 %vm1985_vm0, %v24921_v40  ;;  %21203 = vmatprep.subr.mxu1 %v23502_v12 }
0x231a   : > { %21205 = vmatprep.mubr.msk.f32.mxu1 %vm23503_vm6, %v23502_v12 }
0x2332   : > { %v9461_v4 = vpop.permute.xlu0 %9460 }
0x2333   : > { %v9472_v53 = vrot.slane %v9461_v4, 6 }
0x239a   : > { %v8469_v35 = vpop.f32.mrb[46].mxu0 }
0x239b   : > { %v8689_v42 = vmul.f32 0.35355338, %v8469_v35  ;;  %v21182_v41 = vpop.f32.mrb[47].mxu0  ;;  %v25005_v35 = vsel %vm9464_vm14, %v9471_v55, %v9472_v53 }
0x239d   : > { %v24959_v56 = vsel %vm1964_vm12, 1e-09, %v8689_v42 }
0x239e   : > { %v8700_v57 = vsel %vm26171_vm13, %v24959_v56, -inf }
0x239f   : > { %8701 = vmax.xlane.f32.xlu0 %v8700_v57 }
0x23e4   : > { %v8541_v58 = vpop.f32.mrb[40].mxu1 }
0x23e5   : > { %v8690_v61 = vmul.f32 0.35355338, %v8541_v58  ;;  %v21187_v2 = vpop.f32.mrb[41].mxu1 }
0x23e7   : > { %v8696_v8 = vsel %vm1964_vm12, 1e-09, %v8690_v61 }
0x23e8   : > { %v8613_v17 = vpop.f32.mrb[48].mxu0  ;;  %v8703_v10 = vsel %vm26171_vm13, %v8696_v8, -inf }
0x23e9   : > { %v8691_v11 = vmul.f32 0.35355338, %v8613_v17  ;;  %v21192_v19 = vpop.f32.mrb[49].mxu0  ;;  %8704 = vmax.xlane.f32.xlu1 %v8703_v10 }
0x23eb   : > { %v8697_v13 = vsel %vm1964_vm12, 1e-09, %v8691_v11 }
0x23ec   : > { %v8685_v14 = vpop.f32.mrb[42].mxu1  ;;  %v8706_v15 = vsel %vm26171_vm13, %v8697_v13, -inf }
0x23ed   : > { %v8692_v16 = vmul.f32 0.35355338, %v8685_v14  ;;  %8707 = vmax.xlane.f32.xlu1 %v8706_v15  ;;  %v21197_v21 = vpop.f32.mrb[43].mxu1 }
0x23ef   : > { %v8698_v18 = vsel %vm1964_vm12, 1e-09, %v8692_v16 }
0x23f0   : > { %v8709_v22 = vsel %vm26171_vm13, %v8698_v18, -inf }
0x23f1   : > { %8710 = vmax.xlane.f32.xlu0 %v8709_v22 }
0x23fe   : > { %9462 = vrot.lane.b32.xlu1 %v24901_v30, %s26289_s4 }
0x2402   : > { %8744 = vrot.lane.b32.xlu1 %v24903_v32, %s26280_s13 }
0x2406   : > { %8746 = vrot.lane.b32.xlu1 %v24915_v1, %s26280_s13 }
0x240a   : > { %8750 = vrot.lane.b32.xlu1 %v24921_v40, %s26280_s13 }
0x240e   : > { %9479 = vrot.lane.b32.xlu1 %v24982_v20, %s26290_s5 }
0x242c   : > { %v8702_v48 = vpop.xlane.xlu0 %8701 }
0x242d   : > { %v8712_v30 = vsub.f32 %v24959_v56, %v8702_v48 }
0x242f   : > { %v8716_v32 = vmul.f32 1.442695, %v8712_v30 }
0x2476   : > { %v8705_v25 = vpop.xlane.xlu1 %8704 }
0x2477   : > { %v8713_v27 = vsub.f32 %v8696_v8, %v8705_v25 }
0x2479   : > { %v8718_v29 = vmul.f32 1.442695, %v8713_v27 }
0x247a   : > { %v8708_v0 = vpop.xlane.xlu1 %8707 }
0x247b   : > { %22353 = vpow2.f32 %v8718_v29  ;;  %v8714_v42 = vsub.f32 %v8697_v13, %v8708_v0 }
0x247d   : > { %v8720_v41 = vmul.f32 1.442695, %v8714_v42 }
0x247e   : > { %v9463_v43 = vpop.permute.xlu1 %9462  ;;  %v8711_v28 = vpop.xlane.xlu0 %8710 }
0x247f   : > { %v9475_v47 = vrot.slane %v9463_v43, 6  ;;  %v8715_v31 = vsub.f32 %v8698_v18, %v8711_v28 }
0x2481   : > { %v24988_v52 = vsel %vm9464_vm14, %v9474_v9, %v9475_v47  ;;  %v8722_v1 = vmul.f32 1.442695, %v8715_v31 }
0x2482   : > { %9483 = vrot.lane.b32.xlu1 %v24988_v52, %s26290_s5  ;;  %v8745_v26 = vpop.permute.xlu1 %8744 }
0x2483   : > { %8756 = vxpose.xlu0.b32.start.end [1/1] (short) (narrow) %v8745_v26, 8  ;;  %22355 = vpow2.f32 %v8722_v1 }
0x2484   : > { %22357 = vpow2.f32 %v8716_v32 }
0x2485   : > { %v22354_v45 = vpop.eup %22353  ;;  %22359 = vpow2.f32 %v8720_v41 }
0x2486   : > { %v8727_v40 = vsel %vm26171_vm13, %v22354_v45, 0.0  ;;  %v8747_v2 = vpop.permute.xlu1 %8746 }
0x248a   : > { %v8751_v10 = vpop.permute.xlu1 %8750 }
0x248d   : > { %v22356_v51 = vpop.eup %22355 }
0x248e   : > { %v8733_v39 = vsel %vm26171_vm13, %v22356_v51, 0.0  ;;  %v22358_v57 = vpop.eup %22357  ;;  %v9480_v19 = vpop.permute.xlu1 %9479 }
0x248f   : > { %v8724_v58 = vsel %vm26171_vm13, %v22358_v57, 0.0  ;;  %v22360_v61 = vpop.eup %22359 }
0x24a6   : > { %8728 = vadd.xlane.f32.xlu1 %v8727_v40 }
0x24aa   : > { %8734 = vadd.xlane.f32.xlu1 %v8733_v39 }
0x24ac   : > { %8748 = vrot.lane.b32.xlu0 %v24913_v33, %s26280_s13  ;;  %v8730_v33 = vsel %vm26171_vm13, %v22360_v61, 0.0 }
0x24b0   : > { %9477 = vrot.lane.b32.xlu0 %v24999_v54, %s26290_s5 }
0x24b4   : > { %9481 = vrot.lane.b32.xlu0 %v25005_v35, %s26290_s5 }
0x24d3   : > { %8725 = vadd.xlane.f32.xlu0 %v8724_v58 }
0x24d7   : > { %8731 = vadd.xlane.f32.xlu0 %v8730_v33 }
0x24dd   : > { %8788 = vxpose.xlu1.b32.start.end [1/1] (short) (narrow) %v8747_v2, 8 }
0x24f4   : > { %v9484_v13 = vpop.permute.xlu1 %9483 }
0x2503   : > { %v8772_v8 = vpop.trf.xlu0 }
0x251e   : > { %v8749_v17 = vpop.permute.xlu0 %8748 }
0x251f   : > { %8820 = vxpose.xlu0.b32.start.end [1/1] (short) (narrow) %v8749_v17, 8 }
0x2522   : > { %v9478_v56 = vpop.permute.xlu0 %9477 }
0x2523   : > { %8852 = vxpose.xlu0.b32.start.end [1/1] (short) (narrow) %v8751_v10, 8 }
0x2526   : > { %v9482_v11 = vpop.permute.xlu0 %9481 }
0x2527   : > { %9489 = vxpose.xlu0.b32.start.end [1/1] (short) (narrow) %v9478_v56, 8  ;;  %9553 = vxpose.xlu1.b32.start.end [1/1] (short) (narrow) %v9482_v11, 8 }
0x252b   : > { %9521 = vxpose.xlu0.b32.start.end [1/1] (short) (narrow) %v9480_v19, 8 }
0x252f   : > { %9585 = vxpose.xlu0.b32.start.end [1/1] (short) (narrow) %v9484_v13, 8 }
0x2533   : > { %v8729_v14 = vpop.xlane.xlu1 %8728 }
0x2534   : > { %22361 = vrcp.f32 %v8729_v14 }
0x2537   : > { %v8735_v21 = vpop.xlane.xlu1 %8734 }
0x2538   : > { %22363 = vrcp.f32 %v8735_v21 }
0x253e   : > { %v22362_v15 = vpop.eup %22361 }
0x253f   : > { %v8739_v16 = vmul.f32 %v22362_v15, %v22354_v45 }
0x2541   : > { %21204 = vmatpush3.xpose.msk.msra.mxu1 %vm26170_vm3, %v8739_v16 }
0x2542   : > { %21213 = vmatprep.subr.mxu1 %v23502_v12  ;;  %v22364_v18 = vpop.eup %22363 }
0x2543   : > { %v8743_v24 = vmul.f32 %v22364_v18, %v22356_v51 }
0x255d   : > { %v8804_v22 = vpop.trf.xlu1 }
0x255e   : > { %21206 = vmatmul.mubr.msk.f32.vlgmr.msra.gmra.mrb[44].mxu1 %vm26170_vm3, %v8804_v22 }
0x255f   : > { %21214 = vmatpush3.xpose.msk.msra.mxu1 %vm26170_vm3, %v8743_v24  ;;  %21215 = vmatprep.mubr.msk.f32.mxu1 %vm23503_vm6, %v23502_v12 }
0x2560   : > { %v8726_v49 = vpop.xlane.xlu0 %8725  ;;  %21223 = vmatprep.subr.mxu1 %v23502_v12 }
0x2561   : > { %22365 = vrcp.f32 %v8726_v49 }
0x2564   : > { %v8732_v63 = vpop.xlane.xlu0 %8731 }
0x2565   : > { %22367 = vrcp.f32 %v8732_v63 }
0x256b   : > { %v22366_v25 = vpop.eup %22365 }
0x256c   : > { %v8737_v0 = vmul.f32 %v22366_v25, %v22358_v57 }
0x256e   : > { %21199 = vmatpush3.xpose.msk.msra.mxu0 %vm26170_vm3, %v8737_v0 }
0x256f   : > { %v22368_v43 = vpop.eup %22367  ;;  %21208 = vmatprep.subr.mxu0 %v23502_v12 }
0x2570   : > { %v8741_v47 = vmul.f32 %v22368_v43, %v22360_v61 }
0x2571   : > { %21201 = vmatmul.mubr.msk.f32.vlgmr.msra.gmra.mrb[50].mxu0 %vm26170_vm3, %v8772_v8 }
0x2572   : > { %21209 = vmatpush3.xpose.msk.msra.mxu0 %vm26170_vm3, %v8741_v47  ;;  %21210 = vmatprep.mubr.msk.f32.mxu0 %vm23503_vm6, %v23502_v12 }
0x2573   : > { %21218 = vmatprep.subr.mxu0 %v23502_v12 }
0x259f   : > { %v8836_v9 = vpop.trf.xlu0 }
0x25a0   : > { %21211 = vmatmul.mubr.msk.f32.vlgmr.msra.gmra.mrb[52].mxu0 %vm26170_vm3, %v8836_v9 }
0x25a1   : > { %21220 = vmatprep.mubr.msk.f32.mxu0 %vm23503_vm6, %v23502_v12 }
0x25a3   : > { %v8868_v26 = vpop.trf.xlu0 }
0x25a4   : > { %21216 = vmatmul.mubr.msk.f32.vlgmr.msra.gmra.mrb[46].mxu1 %vm26170_vm3, %v8868_v26 }
0x25a5   : > { %21225 = vmatprep.mubr.msk.f32.mxu1 %vm23503_vm6, %v23502_v12 }
0x25a7   : > { %v9505_v4 = vpop.trf.xlu0  ;;  %v9569_v48 = vpop.trf.xlu1 }
0x25a8   : > { %21219 = vmatpush3.msra.mxu0 %v9505_v4 }
0x25a9   : > { %21221 = vmatmul.mubr.msk.f32.vlgmr.msra.gmra.mrb[54].mxu0 %vm1985_vm0, %v24999_v54  ;;  %21228 = vmatprep.subr.mxu0 %v23502_v12 }
0x25aa   : > { %21229 = vmatpush3.msra.mxu0 %v9569_v48  ;;  %21230 = vmatprep.mubr.msk.f32.mxu0 %vm23503_vm6, %v23502_v12 }
0x25ab   : > { %v9537_v27 = vpop.trf.xlu0  ;;  %21238 = vmatprep.subr.mxu0 %v23502_v12 }
0x25ac   : > { %21224 = vmatpush3.msra.mxu1 %v9537_v27 }
0x25ad   : > { %21226 = vmatmul.mubr.msk.f32.vlgmr.msra.gmra.mrb[48].mxu1 %vm1985_vm0, %v24982_v20  ;;  %21231 = vmatmul.mubr.msk.f32.vlgmr.msra.gmra.mrb[56].mxu0 %vm1985_vm0, %v25005_v35 }
0x25ae   : > { %21233 = vmatprep.subr.mxu1 %v23502_v12  ;;  %21235 = vmatprep.mubr.msk.f32.mxu1 %vm23503_vm6, %v23502_v12 }
0x25af   : > { %v9601_v28 = vpop.trf.xlu0  ;;  %21240 = vmatprep.mubr.msk.f32.mxu0 %vm23503_vm6, %v23502_v12 }
0x25b0   : > { %21234 = vmatpush3.msra.mxu1 %v9601_v28 }
0x25b1   : > { %21236 = vmatmul.mubr.msk.f32.vlgmr.msra.gmra.mrb[50].mxu1 %vm1985_vm0, %v24988_v52  ;;  %21243 = vmatprep.subr.mxu1 %v23502_v12 }
0x25b2   : > { %21245 = vmatprep.mubr.msk.f32.mxu1 %vm23503_vm6, %v23502_v12 }
0x2631   : > { %v25052_v29 = vpop.f32.mrb[44].mxu1 }
0x2632   : > { %v21207_v31 = vpop.f32.mrb[45].mxu1 }
0x2644   : > { %v25054_v1 = vpop.f32.mrb[50].mxu0 }
0x2645   : > { %v21202_v45 = vpop.f32.mrb[51].mxu0 }
0x2673   : > { %v25056_v40 = vpop.f32.mrb[52].mxu0 }
0x2674   : > { %v21212_v51 = vpop.f32.mrb[53].mxu0 }
0x2677   : > { %v25058_v39 = vpop.f32.mrb[46].mxu1 }
0x2678   : > { %v21217_v38 = vpop.f32.mrb[47].mxu1 }
0x267c   : > { %v9685_v53 = vpop.f32.mrb[54].mxu0 }
0x267d   : > { %v9905_v55 = vmul.f32 0.35355338, %v9685_v53  ;;  %v21222_v30 = vpop.f32.mrb[55].mxu0 }
0x267f   : > { %v9911_v32 = vsel %vm26169_vm4, 1e-09, %v9905_v55 }
0x2680   : > { %v9757_v42 = vpop.f32.mrb[48].mxu1  ;;  %v9829_v41 = vpop.f32.mrb[56].mxu0  ;;  %v9915_v57 = vsel %vm26171_vm13, %v9911_v32, -inf }
0x2681   : > { %v9906_v58 = vmul.f32 0.35355338, %v9757_v42  ;;  %v9907_v61 = vmul.f32 0.35355338, %v9829_v41  ;;  %9916 = vmax.xlane.f32.xlu1 %v9915_v57  ;;  %v21227_v33 = vpop.f32.mrb[49].mxu1  ;;  %v21232_v2 = vpop.f32.mrb[57].mxu0 }
0x2683   : > { %v9912_v8 = vsel %vm26169_vm4, 1e-09, %v9906_v58  ;;  %v9913_v17 = vsel %vm26169_vm4, 1e-09, %v9907_v61 }
0x2684   : > { %v9901_v10 = vpop.f32.mrb[50].mxu1  ;;  %v9921_v56 = vsel %vm26171_vm13, %v9913_v17, -inf  ;;  %v9918_v11 = vsel %vm26171_vm13, %v9912_v8, -inf }
0x2685   : > { %v9908_v19 = vmul.f32 0.35355338, %v9901_v10  ;;  %9922 = vmax.xlane.f32.xlu1 %v9921_v56  ;;  %9919 = vmax.xlane.f32.xlu0 %v9918_v11  ;;  %v21237_v13 = vpop.f32.mrb[51].mxu1 }
0x2687   : > { %v9914_v14 = vsel %vm26169_vm4, 1e-09, %v9908_v19 }
0x2688   : > { %v9924_v15 = vsel %vm26171_vm13, %v9914_v14, -inf }
0x2689   : > { %9925 = vmax.xlane.f32.xlu1 %v9924_v15 }
0x269a   : > { %9961 = vrot.lane.b32.xlu1 %v24982_v20, %s26280_s13 }
0x269b   : > { %9959 = vrot.lane.b32.xlu0 %v24999_v54, %s26280_s13 }
0x269e   : > { %9963 = vrot.lane.b32.xlu1 %v25005_v35, %s26280_s13 }
0x26a2   : > { %9965 = vrot.lane.b32.xlu1 %v24988_v52, %s26280_s13 }
0x270e   : > { %v9917_v16 = vpop.xlane.xlu1 %9916 }
0x270f   : > { %v9927_v21 = vsub.f32 %v9911_v32, %v9917_v16 }
0x2711   : > { %v9931_v18 = vmul.f32 1.442695, %v9927_v21 }
0x2712   : > { %v9923_v22 = vpop.xlane.xlu1 %9922  ;;  %v9920_v24 = vpop.xlane.xlu0 %9919 }
0x2713   : > { %22369 = vpow2.f32 %v9931_v18  ;;  %v9929_v49 = vsub.f32 %v9913_v17, %v9923_v22  ;;  %v9928_v63 = vsub.f32 %v9912_v8, %v9920_v24 }
0x2715   : > { %v9935_v25 = vmul.f32 1.442695, %v9929_v49  ;;  %v9933_v0 = vmul.f32 1.442695, %v9928_v63 }
0x2716   : > { %v9926_v20 = vpop.xlane.xlu1 %9925  ;;  %v9960_v31 = vpop.permute.xlu0 %9959 }
0x2717   : > { %22371 = vpow2.f32 %v9935_v25  ;;  %v9930_v43 = vsub.f32 %v9914_v14, %v9926_v20 }
0x2718   : > { %22373 = vpow2.f32 %v9933_v0 }
0x2719   : > { %v9937_v54 = vmul.f32 1.442695, %v9930_v43 }
0x271a   : > { %v9962_v28 = vpop.permute.xlu1 %9961 }
0x271b   : > { %22375 = vpow2.f32 %v9937_v54 }
0x271d   : > { %v22370_v35 = vpop.eup %22369 }
0x271e   : > { %v9939_v47 = vsel %vm26171_vm13, %v22370_v35, 0.0  ;;  %v9964_v45 = vpop.permute.xlu1 %9963 }
0x271f   : > { %9940 = vadd.xlane.f32.xlu0 %v9939_v47 }
0x2721   : > { %v22372_v52 = vpop.eup %22371 }
0x2722   : > { %v22374_v9 = vpop.eup %22373  ;;  %v9945_v26 = vsel %vm26171_vm13, %v22372_v52, 0.0  ;;  %v9966_v51 = vpop.permute.xlu1 %9965 }
0x2723   : > { %9946 = vadd.xlane.f32.xlu0 %v9945_v26  ;;  %v9942_v4 = vsel %vm26171_vm13, %v22374_v9, 0.0 }
0x2724   : > { %9943 = vadd.xlane.f32.xlu1 %v9942_v4 }
0x2725   : > { %v22376_v48 = vpop.eup %22375 }
0x2726   : > { %v9948_v27 = vsel %vm26171_vm13, %v22376_v48, 0.0 }
0x2727   : > { %9949 = vadd.xlane.f32.xlu0 %v9948_v27 }
0x2754   : > { %9971 = vxpose.xlu0.b32.start.end [1/1] (short) (narrow) %v9960_v31, 8 }
0x2757   : > { %10003 = vxpose.xlu1.b32.start.end [1/1] (short) (narrow) %v9962_v28, 8 }
0x2758   : > { %10035 = vxpose.xlu0.b32.start.end [1/1] (short) (narrow) %v9964_v45, 8 }
0x275b   : > { %9189 = vxpose.xlu1.b32.start.end [1/1] (short) (narrow) %v25054_v1, 8 }
0x275c   : > { %10067 = vxpose.xlu0.b32.start.end [1/1] (short) (narrow) %v9966_v51, 8 }
0x2760   : > { %9221 = vxpose.xlu0.b32.start.end [1/1] (short) (narrow) %v25052_v29, 8 }
0x27ac   : > { %v9941_v38 = vpop.xlane.xlu0 %9940 }
0x27ad   : > { %22377 = vrcp.f32 %v9941_v38 }
0x27b0   : > { %v9947_v1 = vpop.xlane.xlu0 %9946 }
0x27b1   : > { %v9944_v53 = vpop.xlane.xlu1 %9943 }
0x27b2   : > { %22379 = vrcp.f32 %v9944_v53 }
0x27b3   : > { %22381 = vrcp.f32 %v9947_v1 }
0x27b4   : > { %v9950_v41 = vpop.xlane.xlu0 %9949 }
0x27b5   : > { %22383 = vrcp.f32 %v9950_v41 }
0x27b7   : > { %v22378_v55 = vpop.eup %22377 }
0x27b8   : > { %v9952_v30 = vmul.f32 %v22378_v55, %v22370_v35 }
0x27ba   : > { %21239 = vmatpush3.xpose.msk.msra.mxu0 %vm26170_vm3, %v9952_v30 }
0x27bb   : > { %21248 = vmatprep.subr.mxu0 %v23502_v12 }
0x27bc   : > { %v22380_v32 = vpop.eup %22379 }
0x27bd   : > { %v9954_v42 = vmul.f32 %v22380_v32, %v22374_v9  ;;  %v22382_v29 = vpop.eup %22381 }
0x27be   : > { %v9956_v61 = vmul.f32 %v22382_v29, %v22372_v52 }
0x27bf   : > { %21244 = vmatpush3.xpose.msk.msra.mxu1 %vm26170_vm3, %v9954_v42  ;;  %v22384_v57 = vpop.eup %22383 }
0x27c0   : > { %21253 = vmatprep.subr.mxu1 %v23502_v12  ;;  %v9958_v2 = vmul.f32 %v22384_v57, %v22376_v48 }
0x27d4   : > { %v9987_v58 = vpop.trf.xlu0 }
0x27d5   : > { %21241 = vmatmul.mubr.msk.f32.vlgmr.msra.gmra.mrb[58].mxu0 %vm26170_vm3, %v9987_v58 }
0x27d6   : > { %21249 = vmatpush3.xpose.msk.msra.mxu0 %vm26170_vm3, %v9956_v61  ;;  %21250 = vmatprep.mubr.msk.f32.mxu0 %vm23503_vm6, %v23502_v12 }
0x27d7   : > { %v10019_v33 = vpop.trf.xlu1 }
0x27d8   : > { %21246 = vmatmul.mubr.msk.f32.vlgmr.msra.gmra.mrb[52].mxu1 %vm26170_vm3, %v10019_v33  ;;  %v10051_v8 = vpop.trf.xlu0 }
0x27d9   : > { %21254 = vmatpush3.xpose.msk.msra.mxu1 %vm26170_vm3, %v9958_v2  ;;  %21251 = vmatmul.mubr.msk.f32.vlgmr.msra.gmra.mrb[60].mxu0 %vm26170_vm3, %v10051_v8 }
0x27da   : > { %21255 = vmatprep.mubr.msk.f32.mxu1 %vm23503_vm6, %v23502_v12 }
0x27db   : > { %v9205_v21 = vpop.trf.xlu1 }
0x27dc   : > { %v10083_v17 = vpop.trf.xlu0 }
0x27dd   : > { %21256 = vmatmul.mubr.msk.f32.vlgmr.msra.gmra.mrb[54].mxu1 %vm26170_vm3, %v10083_v17 }
0x27e0   : > { %v9237_v18 = vpop.trf.xlu0 }
0x28a8   : > { %v10171_v10 = vpop.f32.mrb[58].mxu0 }
0x28a9   : > { %v21242_v56 = vpop.f32.mrb[59].mxu0  ;;  %10403 = vxpose.xlu1.b32.start.end [1/1] (short) (narrow) %v10171_v10, 8 }
0x28ab   : > { %v10247_v11 = vpop.f32.mrb[52].mxu1 }
0x28ac   : > { %v21247_v19 = vpop.f32.mrb[53].mxu1  ;;  %v10323_v13 = vpop.f32.mrb[60].mxu0  ;;  %10435 = vxpose.xlu0.b32.start.end [1/1] (short) (narrow) %v10247_v11, 8 }
0x28ad   : > { %10467 = vxpose.xlu1.b32.start.end [1/1] (short) (narrow) %v10323_v13, 8  ;;  %v21252_v14 = vpop.f32.mrb[61].mxu0 }
0x28b0   : > { %v10399_v15 = vpop.f32.mrb[54].mxu1 }
0x28b1   : > { %9253 = vxpose.xlu1.b32.start.end [1/1] (short) (narrow) %v25056_v40, 8  ;;  %10499 = vxpose.xlu0.b32.start.end [1/1] (short) (narrow) %v10399_v15, 8  ;;  %v21257_v16 = vpop.f32.mrb[55].mxu1 }
0x28b5   : > { %9285 = vxpose.xlu0.b32.start.end [1/1] (short) (narrow) %v25058_v39, 8 }
0x2929   : > { %v10419_v22 = vpop.trf.xlu1 }
0x292c   : > { %v10451_v24 = vpop.trf.xlu0 }
0x292d   : > { %v10483_v49 = vpop.trf.xlu1 }
0x292e   : > { %v10531_v63 = vcombine.low %v10419_v22, %v10483_v49  ;;  %v10532_v25 = vcombine.high %v10419_v22, %v10483_v49 }
0x2930   : > { %v10539_v35 = vrot.slane %v10531_v63, %v24468_v62  ;;  %v10546_v47 = vrot.slane %v10532_v25, %v24468_v62  ;;  %v8162_v25 = vld [vmem:[%s26292_s9] sm:$0xff] }
0x2931   : > { %v10515_v0 = vpop.trf.xlu0  ;;  %v9269_v20 = vpop.trf.xlu1 }
0x2932   : > { %v10547_v43 = vcombine.low %v10451_v24, %v10515_v0  ;;  %v10548_v54 = vcombine.high %v10451_v24, %v10515_v0  ;;  %v9317_v39 = vcombine.low %v9205_v21, %v9269_v20  ;;  %v9318_v9 = vcombine.high %v9205_v21, %v9269_v20  ;;  %v8163_v0 = vld [vmem:[%s26292_s9 + $0x8] sm:$0xff] }
0x2934   : > { %v10555_v40 = vrot.slane %v10547_v43, %v24468_v62  ;;  %v10562_v52 = vrot.slane %v10548_v54, %v24468_v62  ;;  %v9325_v55 = vrot.slane %v9317_v39, %v24468_v62  ;;  %v9332_v30 = vrot.slane %v9318_v9, %v24468_v62 }
0x2935   : > { %v9301_v26 = vpop.trf.xlu0 }
0x2936   : > { %v10563_v4 = vcombine.low %v10539_v35, %v10555_v40  ;;  %v10564_v48 = vcombine.high %v10539_v35, %v10555_v40  ;;  %v10579_v27 = vcombine.low %v10546_v47, %v10562_v52  ;;  %v9333_v28 = vcombine.low %v9237_v18, %v9301_v26 }
0x2937   : > { %v9334_v31 = vcombine.high %v9237_v18, %v9301_v26  ;;  %v21756_v35 = vpack.c.bf16 %v8163_v0, %v8162_v25 }
0x2938   : > { %v10571_v45 = vrot.slane %v10563_v4, %v24475_v44  ;;  %v10578_v51 = vrot.slane %v10564_v48, %v24475_v44  ;;  %v10586_v38 = vrot.slane %v10579_v27, %v24475_v44  ;;  %v9341_v53 = vrot.slane %v9333_v28, %v24468_v62  ;;  %v8164_v28 = vld [vmem:[%s26292_s9 + $0x10] sm:$0xff] }
0x2939   : > { %v9348_v32 = vrot.slane %v9334_v31, %v24468_v62  ;;  %21757 = vmatprep.subr.bf16.mxu0 %v21756_v35  ;;  %v8165_v31 = vld [vmem:[%s26292_s9 + $0x18] sm:$0xff] }
0x293a   : > { %v10589_v42 = vcombine.low %v10571_v45, %v10578_v51  ;;  %v20378_v1 = vcombine.high %v10571_v45, %v10578_v51  ;;  %v10612_v41 = vcombine.high %v10586_v38, %v23502_v12  ;;  %v9349_v29 = vcombine.low %v9325_v55, %v9341_v53  ;;  %21759 = vmatpush3.bf16.msra.mxu0 %v21756_v35 }
0x293b   : > { %v9350_v57 = vcombine.high %v9325_v55, %v9341_v53  ;;  %v9365_v58 = vcombine.low %v9332_v30, %v9348_v32  ;;  %v10611_v61 = vrot.slane %v10586_v38, %v24468_v62  ;;  %v21760_v45 = vpack.c.bf16 %v8165_v31, %v8164_v28  ;;  %v10917_v28 = vld [vmem:[%s26294_s7 + $0x18] sm:$0xff] }
0x293c   : > { %v10596_v33 = vrot.slane %v10589_v42, %v24468_v62  ;;  %v10604_v2 = vrot.slane %v20378_v1, %v24468_v62  ;;  %v10619_v8 = vrot.slane %v10612_v41, %v24468_v62  ;;  %v9357_v17 = vrot.slane %v9349_v29, %v24475_v44  ;;  %v20340_v1 = vld [vmem:[#allocation16 + $0x1] ss:$0 sm:$0xff] }
0x293d   : > { %v9364_v10 = vrot.slane %v9350_v57, %v24475_v44  ;;  %v9372_v56 = vrot.slane %v9365_v58, %v24475_v44  ;;  %21761 = vmatprep.subr.bf16.mxu0 %v21760_v45  ;;  %v7912_v41 = vadd.f32 %v20340_v1, %v24895_v5  ;;  %v7917_v58 = vadd.f32 %v24893_v3, %v20340_v1 }
0x293e   : > { %v10621_v11 = vcombine.high %v10596_v33, %v10604_v2  ;;  %v10637_v19 = vcombine.high %v10611_v61, %v10619_v8  ;;  %v10620_v13 = vcombine.low %v10596_v33, %v10604_v2  ;;  %v10636_v14 = vcombine.low %v10611_v61, %v10619_v8  ;;  %21763 = vmatpush3.bf16.msra.mxu0 %v21760_v45 }
0x293f   : > { %v9375_v15 = vcombine.low %v9357_v17, %v9364_v10  ;;  %v20365_v16 = vcombine.high %v9357_v17, %v9364_v10  ;;  %v9397_v21 = vrot.slane %v9372_v56, %v24468_v62  ;;  %v9398_v18 = vcombine.high %v9372_v56, %v23502_v12 }
0x2940   : > { %v10635_v22 = vrot.slane %v10621_v11, %v24475_v44  ;;  %v10651_v24 = vrot.slane %v10637_v19, %v24475_v44  ;;  %v10628_v49 = vrot.slane %v10620_v13, %v24475_v44  ;;  %v10644_v63 = vrot.slane %v10636_v14, %v24475_v44 }
0x2941   : > { %v9382_v20 = vrot.slane %v9375_v15, %v24468_v62  ;;  %v9390_v43 = vrot.slane %v20365_v16, %v24468_v62  ;;  %v9405_v54 = vrot.slane %v9398_v18, %v24468_v62  ;;  %v7920_v29 = vadd.f32 %v7912_v41, %v24817_v60 }
0x2942   : > { %v10654_v47 = vcombine.low %v10635_v22, %v10651_v24  ;;  %v10653_v40 = vcombine.high %v10628_v49, %v10644_v63  ;;  %v10652_v52 = vcombine.low %v10628_v49, %v10644_v63  ;;  %v10655_v32 = vcombine.high %v10635_v22, %v10651_v24  ;;  %v20379_v63 = vld [vmem:[#allocation25] ss:$0 sm:$0xff] }
0x2943   : > { %v9406_v39 = vcombine.low %v9382_v20, %v9390_v43  ;;  %v9422_v9 = vcombine.low %v9397_v21, %v9405_v54  ;;  %v9407_v26 = vcombine.high %v9382_v20, %v9390_v43  ;;  %v9423_v4 = vcombine.high %v9397_v21, %v9405_v54 }
0x2944   : > { %10661 = vrot.lane.b32.xlu0 %v10654_v47, %s26282_s8  ;;  %10657 = vrot.lane.b32.xlu1 %v10653_v40, %s26293_s11  ;;  %v7924_v57 = vsel %vm2075_vm1, %v7920_v29, 0.0  ;;  %v7921_v61 = vadd.f32 %v7917_v58, %v24814_v59 }
0x2945   : > { %v9414_v48 = vrot.slane %v9406_v39, %v24475_v44  ;;  %v9430_v27 = vrot.slane %v9422_v9, %v24475_v44  ;;  %v9421_v38 = vrot.slane %v9407_v26, %v24475_v44  ;;  %v9437_v53 = vrot.slane %v9423_v4, %v24475_v44  ;;  %v10914_v4 = vld [vmem:[%s26294_s7] sm:$0xff] }
0x2946   : > { %v7927_v33 = vsel %vm2075_vm1, %v7921_v61, 0.0 }
0x2947   : > { %v9439_v51 = vcombine.high %v9414_v48, %v9430_v27  ;;  %v9438_v55 = vcombine.low %v9414_v48, %v9430_v27  ;;  %v9440_v30 = vcombine.low %v9421_v38, %v9437_v53  ;;  %v9441_v42 = vcombine.high %v9421_v38, %v9437_v53  ;;  %v10915_v48 = vld [vmem:[%s26294_s7 + $0x8] sm:$0xff] }
0x2948   : > { %v21772_v27 = vpack.c.bf16 %v10915_v48, %v10914_v4 }
0x2949   : > { %9443 = vrot.lane.b32.xlu1 %v9439_v51, %s26293_s11 }
0x294a   : > { %21773 = vmatprep.subr.bf16.mxu0 %v21772_v27 }
0x294d   : > { %9447 = vrot.lane.b32.xlu1 %v9440_v30, %s26282_s8 }
0x2951   : > { %10665 = vrot.lane.b32.xlu1 %v10655_v32, %s26281_s3 }
0x2955   : > { %9451 = vrot.lane.b32.xlu1 %v9441_v42, %s26281_s3 }
0x2963   : > { %7925 = vadd.xlane.f32.xlu0 %v7924_v57 }
0x2979   : > { %7928 = vadd.xlane.f32.xlu1 %v7927_v33 }
0x29b6   : > { %v10658_v2 = vpop.permute.xlu1 %10657  ;;  %v10662_v56 = vpop.permute.xlu0 %10661 }
0x29b7   : > { %v10668_v10 = vsel %vm1985_vm0, %v10652_v52, %v10658_v2 }
0x29b8   : > { %v10669_v5 = vsel %vm3440_vm9, %v10668_v10, %v10662_v56 }
0x29bb   : > { %v9444_v8 = vpop.permute.xlu1 %9443 }
0x29bc   : > { %v9454_v19 = vsel %vm1985_vm0, %v9438_v55, %v9444_v8 }
0x29bf   : > { %v9448_v17 = vpop.permute.xlu1 %9447 }
0x29c0   : > { %v9455_v3 = vsel %vm3440_vm9, %v9454_v19, %v9448_v17 }
0x29c3   : > { %v10666_v11 = vpop.permute.xlu1 %10665 }
0x29c4   : > { %v10670_v60 = vsel %vm3442_vm10, %v10669_v5, %v10666_v11 }
0x29c5   : > { %v10672_v59 = vrot.slane %v10670_v60, 2 }
0x29c7   : > { %v9452_v13 = vpop.permute.xlu1 %9451 }
0x29c8   : > { %v9456_v14 = vsel %vm3442_vm10, %v9455_v3, %v9452_v13 }
0x29c9   : > { %v10675_v15 = vsel %vm10674_vm5, %v9456_v14, %v10672_v59 }
0x29ca   : > { %21266 = vmatprep.mubr.msk.f32.mxu0 %vm2075_vm1, %v10675_v15 }
0x29cb   : > { %21267 = vmatmul.mubr.msk.f32.vlgmr.msra.gmra.mrb[62].mxu0 %vm2075_vm1, %v10672_v59  ;;  %v20343_v59 = vld [vmem:[#allocation18] ss:$0 sm:$0xff] }
0x29cc   : > { %21775 = vmatpush3.bf16.msra.mxu0 %v21772_v27 }
0x29f0   : > { %v7926_v49 = vpop.xlane.xlu0 %7925 }
0x29f1   : > { %v7930_v20 = vmul.f32 0.03125, %v7926_v49 }
0x29f3   : > { %v7932_v47 = vsub.f32 %v7920_v29, %v7930_v20  ;;  %v10824_v20 = vld [vmem:[%s26295_s12 + $0x10] sm:$0xff] }
0x29f5   : > { %v7934_v9 = vmul.f32 %v7932_v47, %v7932_v47  ;;  %v7950_v15 = vmul.f32 %v20343_v59, %v7932_v47 }
0x29f7   : > { %v7936_v26 = vsel %vm2075_vm1, %v7934_v9, 0.0 }
0x2a06   : > { %v7929_v16 = vpop.xlane.xlu1 %7928 }
0x2a07   : > { %v7931_v21 = vmul.f32 0.03125, %v7929_v16 }
0x2a09   : > { %v25163_v18 = vsub.f32 %v7921_v61, %v7931_v21 }
0x2a0b   : > { %v7935_v22 = vmul.f32 %v25163_v18, %v25163_v18  ;;  %v7951_v14 = vmul.f32 %v20343_v59, %v25163_v18  ;;  %v10825_v18 = vld [vmem:[%s26295_s12 + $0x18] sm:$0xff] }
0x2a0d   : > { %v7939_v24 = vsel %vm2075_vm1, %v7935_v22, 0.0  ;;  %v20344_v22 = vld [vmem:[#allocation19] ss:$0 sm:$0xff] }
0x2a0e   : > { %7940 = vadd.xlane.f32.xlu1 %v7939_v24 }
0x2a9e   : > { %v21268_v25 = vpop.f32.mrb[62].mxu0 }
0x2a9f   : > { %v10753_v0 = vpop.f32.mrb[63].mxu0  ;;  %v10759_v43 = vadd.f32 %v21268_v25, %v20379_v63  ;;  %v10822_v25 = vld [vmem:[%s26295_s12] sm:$0xff] }
0x2aa0   : > { %v10754_v54 = vadd.f32 %v20379_v63, %v10753_v0  ;;  %v10823_v0 = vld [vmem:[%s26295_s12 + $0x8] sm:$0xff] }
0x2aa1   : > { %v25172_v40 = vadd.f32 %v10759_v43, %v24876_v36  ;;  %v7941_v36 = vpop.xlane.xlu1 %7940  ;;  %v21764_v43 = vpack.c.bf16 %v10823_v0, %v10822_v25 }
0x2aa2   : > { %v25169_v35 = vadd.f32 %v10754_v54, %v24878_v37  ;;  %v10916_v37 = vld [vmem:[%s26294_s7 + $0x10] sm:$0xff]  ;;  %v7943_v45 = vmul.f32 0.032258064, %v7941_v36  ;;  %v21768_v54 = vpack.c.bf16 %v10825_v18, %v10824_v20 }
0x2aa3   : > { %v10769_v39 = vsel %vm8103_vm2, %v25172_v40, 0.0  ;;  %v21776_v31 = vpack.c.bf16 %v10917_v28, %v10916_v37  ;;  %21765 = vmatprep.subr.bf16.mxu1 %v21764_v43 }
0x2aa4   : > { %v10766_v52 = vsel %vm2075_vm1, %v25169_v35, 0.0  ;;  %22385 = vrsqrt.f32 %v7943_v45  ;;  %vm7961_vm11 = vcmp.eq.f32.partialorder %v7943_v45, inf  ;;  %v7964_v8 = vand.u32 2147483648, %v7943_v45  ;;  %21767 = vmatpush3.bf16.msra.mxu1 %v21764_v43 }
0x2aa5   : > { %10767 = vadd.xlane.f32.xlu0 %v10766_v52  ;;  %21777 = vmatprep.subr.bf16.mxu0 %v21776_v31  ;;  %vm7963_vm4 = vcmp.eq.f32.partialorder %v7943_v45, 0.0 }
0x2aa6   : > { %21779 = vmatpush3.bf16.msra.mxu0 %v21776_v31  ;;  %21769 = vmatprep.subr.bf16.mxu1 %v21768_v54 }
0x2aa7   : > { %21301 = vmatprep.subr.mxu0 %v23502_v12 }
0x2aa8   : > { %21771 = vmatpush3.bf16.msra.mxu1 %v21768_v54 }
0x2aa9   : > { %10770 = vadd.xlane.f32.xlu0 %v10769_v39  ;;  %21291 = vmatprep.subr.mxu1 %v23502_v12 }
0x2aad   : > { %7937 = vadd.xlane.f32.xlu0 %v7936_v26 }
0x2aae   : > { %v22386_v41 = vpop.eup %22385 }
0x2aaf   : > { %v7960_v61 = vmul.f32 %v22386_v41, %v7943_v45  ;;  %v20383_v41 = vld [vmem:[#allocation28] ss:$0 sm:$0xff] }
0x2ab1   : > { %v7962_v2 = vsel %vm7961_vm11, %v7943_v45, %v7960_v61 }
0x2ab2   : > { %v7965_v17 = vsel %vm7963_vm4, %v7964_v8, %v7962_v2  ;;  %v20387_v8 = vld [vmem:[#allocation31] ss:$0 sm:$0xff] }
0x2ab3   : > { %v7967_v56 = vadd.f32 1e-06, %v7965_v17 }
0x2b32   : > { %v10768_v51 = vpop.xlane.xlu0 %10767 }
0x2b33   : > { %v10772_v38 = vmul.f32 0.03125, %v10768_v51 }
0x2b35   : > { %v25185_v53 = vsub.f32 %v25169_v35, %v10772_v38 }
0x2b36   : > { %v10771_v55 = vpop.xlane.xlu0 %10770 }
0x2b37   : > { %v10773_v30 = vmul.f32 0.03125, %v10771_v55  ;;  %v10776_v32 = vmul.f32 %v25185_v53, %v25185_v53 }
0x2b39   : > { %v25190_v42 = vsub.f32 %v25172_v40, %v10773_v30  ;;  %v10778_v1 = vsel %vm2075_vm1, %v10776_v32, 0.0  ;;  %v20382_v30 = vld [vmem:[#allocation27] ss:$0 sm:$0xff] }
0x2b3a   : > { %10779 = vadd.xlane.f32.xlu0 %v10778_v1  ;;  %v7938_v29 = vpop.xlane.xlu0 %7937  ;;  %v10792_v32 = vmul.f32 %v20382_v30, %v25185_v53 }
0x2b3b   : > { %v7942_v57 = vmul.f32 0.032258064, %v7938_v29  ;;  %v10777_v58 = vmul.f32 %v25190_v42, %v25190_v42 }
0x2b3d   : > { %22387 = vrsqrt.f32 %v7942_v57  ;;  %v10781_v33 = vsel %vm8103_vm2, %v10777_v58, 0.0  ;;  %vm7954_vm3 = vcmp.eq.f32.partialorder %v7942_v57, inf  ;;  %v7957_v11 = vand.u32 2147483648, %v7942_v57 }
0x2b3e   : > { %10782 = vadd.xlane.f32.xlu1 %v10781_v33  ;;  %vm7956_vm13 = vcmp.eq.f32.partialorder %v7942_v57, 0.0  ;;  %22389 = vrcp.f32 %v7967_v56  ;;  %v10793_v58 = vmul.f32 %v20382_v30, %v25190_v42  ;;  %v20384_v42 = vld [vmem:[#allocation30] ss:$0 sm:$0xff] }
0x2b47   : > { %v22388_v10 = vpop.eup %22387 }
0x2b48   : > { %v7953_v5 = vmul.f32 %v22388_v10, %v7942_v57  ;;  %v22390_v13 = vpop.eup %22389 }
0x2b49   : > { %v7971_v21 = vmul.f32 %v22390_v13, %v7951_v14 }
0x2b4a   : > { %v7955_v60 = vsel %vm7954_vm3, %v7942_v57, %v7953_v5 }
0x2b4b   : > { %v7958_v19 = vsel %vm7956_vm13, %v7957_v11, %v7955_v60  ;;  %v25199_v63 = vadd.f32 %v20344_v22, %v7971_v21 }
0x2b4c   : > { %v7966_v3 = vadd.f32 1e-06, %v7958_v19 }
0x2b4e   : > { %22391 = vrcp.f32 %v7966_v3 }
0x2b58   : > { %v22392_v16 = vpop.eup %22391 }
0x2b59   : > { %v7969_v24 = vmul.f32 %v22392_v16, %v7950_v15 }
0x2b5b   : > { %v25197_v49 = vadd.f32 %v20344_v22, %v7969_v24 }
0x2b5d   : > { %21288 = vmatprep.mubr.msk.f32.mxu0 %vm2075_vm1, %v25197_v49 }
0x2b5e   : > { %21289 = vmatmul.mubr.msk.f32.vlgmr.msra.gmra.mrb[64].mxu0 %vm2075_vm1, %v25199_v63 }
0x2b5f   : > { %21303 = vmatprep.mubr.msk.f32.mxu0 %vm23503_vm6, %v23502_v12 }
0x2bc7   : > { %v10780_v47 = vpop.xlane.xlu0 %10779 }
0x2bc8   : > { %v10784_v52 = vmul.f32 0.032258064, %v10780_v47 }
0x2bca   : > { %22393 = vrsqrt.f32 %v10784_v52  ;;  %vm10796_vm13 = vcmp.eq.f32.partialorder %v10784_v52, inf  ;;  %v10799_v48 = vand.u32 2147483648, %v10784_v52  ;;  %vm10798_vm3 = vcmp.eq.f32.partialorder %v10784_v52, 0.0 }
0x2bcb   : > { %v10783_v39 = vpop.xlane.xlu1 %10782 }
0x2bcc   : > { %v10785_v9 = vmul.f32 0.032258064, %v10783_v39 }
0x2bce   : > { %22395 = vrsqrt.f32 %v10785_v9  ;;  %vm10803_vm4 = vcmp.eq.f32.partialorder %v10785_v9, inf  ;;  %v10806_v45 = vand.u32 2147483648, %v10785_v9  ;;  %vm10805_vm11 = vcmp.eq.f32.partialorder %v10785_v9, 0.0 }
0x2bd4   : > { %v22394_v26 = vpop.eup %22393 }
0x2bd5   : > { %v10795_v4 = vmul.f32 %v22394_v26, %v10784_v52 }
0x2bd7   : > { %v10797_v37 = vsel %vm10796_vm13, %v10784_v52, %v10795_v4  ;;  %vm11452_vm13 = vcmask 62464  }
0x2bd8   : > { %v10800_v27 = vsel %vm10798_vm3, %v10799_v48, %v10797_v37  ;;  %v22396_v28 = vpop.eup %22395 }
0x2bd9   : > { %v10808_v31 = vadd.f32 1e-06, %v10800_v27  ;;  %v10802_v36 = vmul.f32 %v22396_v28, %v10785_v9 }
0x2bdb   : > { %22397 = vrcp.f32 %v10808_v31  ;;  %v10804_v51 = vsel %vm10803_vm4, %v10785_v9, %v10802_v36 }
0x2bdc   : > { %v10807_v38 = vsel %vm10805_vm11, %v10806_v45, %v10804_v51 }
0x2bdd   : > { %v10809_v55 = vadd.f32 1e-06, %v10807_v38 }
0x2bdf   : > { %22399 = vrcp.f32 %v10809_v55 }
0x2be5   : > { %v22398_v1 = vpop.eup %22397 }
0x2be6   : > { %v10811_v29 = vmul.f32 %v22398_v1, %v10792_v32 }
0x2be8   : > { %v10820_v57 = vadd.f32 %v20383_v41, %v10811_v29 }
0x2be9   : > { %v22400_v61 = vpop.eup %22399 }
0x2bea   : > { %21277 = vmatprep.mubr.msk.f32.mxu1 %vm2075_vm1, %v10820_v57  ;;  %v10813_v33 = vmul.f32 %v22400_v61, %v10793_v58 }
0x2bec   : > { %v10821_v2 = vadd.f32 %v20383_v41, %v10813_v33 }
0x2bee   : > { %21278 = vmatmul.mubr.msk.f32.vlgmr.msra.gmra.mrb[56].mxu1 %vm2075_vm1, %v10821_v2 }
0x2bef   : > { %21293 = vmatprep.mubr.msk.f32.mxu1 %vm23503_vm6, %v23502_v12 }
0x2c31   : > { %v21290_v17 = vpop.f32.mrb[64].mxu0 }
0x2c32   : > { %v25218_v10 = vadd.f32 %v21290_v17, %v20387_v8  ;;  %v10997_v53 = vpop.f32.mrb[65].mxu0 }
0x2c33   : > { %v25220_v56 = vadd.f32 %v20387_v8, %v10997_v53 }
0x2c35   : > { %11022 = vrot.lane.b32.xlu1 %v25220_v56, %s26287_s0  ;;  %11019 = vrot.lane.b32.xlu0 %v25220_v56, %s26288_s1 }
0x2c39   : > { %11025 = vrot.lane.b32.xlu1 %v25220_v56, %s26289_s4 }
0x2c53   : > { %11028 = vxpose.xlu0.b32.start.end [1/1] (short) (narrow) %v25220_v56, 8 }
0x2ca7   : > { %v11020_v3 = vpop.permute.xlu0 %11019  ;;  %v11023_v13 = vpop.permute.xlu1 %11022 }
0x2cab   : > { %v11026_v14 = vpop.permute.xlu1 %11025 }
0x2cc1   : > { %v21279_v5 = vpop.f32.mrb[56].mxu1 }
0x2cc2   : > { %v25229_v11 = vadd.f32 %v21279_v5, %v20384_v42  ;;  %v10905_v60 = vpop.f32.mrb[57].mxu1 }
0x2cc3   : > { %v25231_v19 = vadd.f32 %v20384_v42, %v10905_v60 }
0x2cc5   : > { %11014 = vrot.lane.b32.xlu0 %v25231_v19, %s26287_s0  ;;  %11012 = vrot.lane.b32.xlu1 %v25231_v19, %s26288_s1 }
0x2cc9   : > { %11016 = vrot.lane.b32.xlu1 %v25231_v19, %s26289_s4 }
0x2cd3   : > { %v11044_v59 = vpop.trf.xlu0 }
0x2cd4   : > { %21292 = vmatpush3.msra.mxu1 %v11044_v59 }
0x2cd5   : > { %21294 = vmatmul.mubr.msk.f32.vlgmr.msra.gmra.mrb[58].mxu1 %vm1985_vm0, %v25231_v19  ;;  %21296 = vmatprep.subr.mxu1 %v23502_v12 }
0x2cd6   : > { %21298 = vmatprep.mubr.msk.f32.mxu1 %vm23503_vm6, %v23502_v12 }
0x2ce3   : > { %11092 = vxpose.xlu0.b32.start.end [1/1] (short) (narrow) %v11023_v13, 8 }
0x2ce7   : > { %11124 = vxpose.xlu0.b32.start.end [1/1] (short) (narrow) %v11026_v14, 8 }
0x2cf2   : > { %11060 = vxpose.xlu1.b32.start.end [1/1] (short) (narrow) %v11020_v3, 8 }
0x2d37   : > { %v25244_v15 = vpop.permute.xlu0 %11014  ;;  %v25251_v21 = vpop.permute.xlu1 %11012 }
0x2d3b   : > { %v25253_v22 = vpop.permute.xlu1 %11016 }
0x2d63   : > { %v11108_v16 = vpop.trf.xlu0 }
0x2d64   : > { %21302 = vmatpush3.msra.mxu0 %v11108_v16 }
0x2d65   : > { %21304 = vmatmul.mubr.msk.f32.vlgmr.msra.gmra.mrb[66].mxu0 %vm1985_vm0, %v25244_v15  ;;  %21311 = vmatprep.subr.mxu0 %v23502_v12 }
0x2d66   : > { %21313 = vmatprep.mubr.msk.f32.mxu0 %vm23503_vm6, %v23502_v12 }
0x2d67   : > { %v11140_v25 = vpop.trf.xlu0 }
0x2d72   : > { %v11076_v24 = vpop.trf.xlu1 }
0x2d73   : > { %21297 = vmatpush3.msra.mxu1 %v11076_v24 }
0x2d74   : > { %21299 = vmatmul.mubr.msk.f32.vlgmr.msra.gmra.mrb[60].mxu1 %vm1985_vm0, %v25251_v21  ;;  %21306 = vmatprep.subr.mxu1 %v23502_v12 }
0x2d75   : > { %21307 = vmatpush3.msra.mxu1 %v11140_v25  ;;  %21308 = vmatprep.mubr.msk.f32.mxu1 %vm23503_vm6, %v23502_v12 }
0x2d76   : > { %21316 = vmatprep.subr.mxu1 %v23502_v12 }
0x2d78   : > { %21309 = vmatmul.mubr.msk.f32.vlgmr.msra.gmra.mrb[62].mxu1 %vm1985_vm0, %v25253_v22 }
0x2d79   : > { %21318 = vmatprep.mubr.msk.f32.mxu1 %vm23503_vm6, %v23502_v12 }
0x2da8   : > { %v11224_v0 = vpop.f32.mrb[58].mxu1 }
0x2da9   : > { %v11444_v20 = vmul.f32 0.35355338, %v11224_v0  ;;  %v21295_v43 = vpop.f32.mrb[59].mxu1 }
0x2dab   : > { %v11448_v18 = vsel %vm1962_vm7, 1e-09, %v11444_v20 }
0x2dac   : > { %v11453_v54 = vsel %vm11452_vm13, %v11448_v18, -inf }
0x2dad   : > { %11454 = vmax.xlane.f32.xlu0 %v11453_v54 }
0x2e38   : > { %v11368_v47 = vpop.f32.mrb[66].mxu0 }
0x2e39   : > { %v11446_v52 = vmul.f32 0.35355338, %v11368_v47  ;;  %v21305_v39 = vpop.f32.mrb[67].mxu0 }
0x2e3a   : > { %v11455_v55 = vpop.xlane.xlu0 %11454 }
0x2e3b   : > { %v11450_v9 = vsel %vm1962_vm7, 1e-09, %v11446_v52  ;;  %v11465_v30 = vsub.f32 %v11448_v18, %v11455_v55 }
0x2e3c   : > { %v11459_v26 = vsel %vm11452_vm13, %v11450_v9, -inf }
0x2e3d   : > { %11460 = vmax.xlane.f32.xlu0 %v11459_v26  ;;  %v11469_v32 = vmul.f32 1.442695, %v11465_v30 }
0x2e3f   : > { %22401 = vpow2.f32 %v11469_v32 }
0x2e47   : > { %v11296_v4 = vpop.f32.mrb[60].mxu1 }
0x2e48   : > { %v11445_v48 = vmul.f32 0.35355338, %v11296_v4  ;;  %v21300_v37 = vpop.f32.mrb[61].mxu1 }
0x2e49   : > { %v22402_v1 = vpop.eup %22401 }
0x2e4a   : > { %v11449_v27 = vsel %vm1962_vm7, 1e-09, %v11445_v48  ;;  %v11477_v41 = vsel %vm11452_vm13, %v22402_v1, 0.0 }
0x2e4b   : > { %v11440_v28 = vpop.f32.mrb[62].mxu1  ;;  %v11456_v31 = vsel %vm11452_vm13, %v11449_v27, -inf }
0x2e4c   : > { %v11447_v36 = vmul.f32 0.35355338, %v11440_v28  ;;  %11457 = vmax.xlane.f32.xlu1 %v11456_v31  ;;  %v21310_v45 = vpop.f32.mrb[63].mxu1 }
0x2e4e   : > { %v11451_v51 = vsel %vm1962_vm7, 1e-09, %v11447_v36 }
0x2e4f   : > { %v11462_v38 = vsel %vm11452_vm13, %v11451_v51, -inf }
0x2e50   : > { %11463 = vmax.xlane.f32.xlu1 %v11462_v38  ;;  %v12354_v38 = vrot.slane %v25231_v19, 6 }
0x2e53   : > { %11497 = vrot.lane.b32.xlu0 %v25220_v56, %s26290_s5 }
0x2e57   : > { %12217 = vrot.lane.b32.xlu0 %v25218_v10, %s26288_s1 }
0x2e5b   : > { %12223 = vrot.lane.b32.xlu0 %v25218_v10, %s26289_s4 }
0x2e5f   : > { %12210 = vrot.lane.b32.xlu0 %v25229_v11, %s26288_s1 }
0x2e61   : > { %11499 = vrot.lane.b32.xlu1 %v11020_v3, %s26290_s5 }
0x2e63   : > { %12212 = vrot.lane.b32.xlu0 %v25229_v11, %s26287_s0 }
0x2e65   : > { %11501 = vrot.lane.b32.xlu1 %v11023_v13, %s26290_s5 }
0x2e69   : > { %11503 = vrot.lane.b32.xlu1 %v11026_v14, %s26290_s5 }
0x2e6d   : > { %12220 = vrot.lane.b32.xlu1 %v25218_v10, %s26287_s0 }
0x2e71   : > { %12214 = vrot.lane.b32.xlu1 %v25229_v11, %s26289_s4 }
0x2e82   : > { %11478 = vadd.xlane.f32.xlu0 %v11477_v41 }
0x2eca   : > { %v11461_v29 = vpop.xlane.xlu0 %11460 }
0x2ecb   : > { %v11467_v58 = vsub.f32 %v11450_v9, %v11461_v29  ;;  %v12504_v29 = vrot.slane %v25244_v15, 6 }
0x2ecd   : > { %v11473_v2 = vmul.f32 1.442695, %v11467_v58 }
0x2ece   : > { %v11498_v57 = vpop.permute.xlu0 %11497 }
0x2ecf   : > { %11509 = vxpose.xlu0.b32.start.end [1/1] (short) (narrow) %v11498_v57, 8 }
0x2ed2   : > { %v25298_v24 = vpop.permute.xlu0 %12217 }
0x2ed6   : > { %v25302_v0 = vpop.permute.xlu0 %12223 }
0x2ed9   : > { %v11458_v61 = vpop.xlane.xlu1 %11457 }
0x2eda   : > { %v11466_v33 = vsub.f32 %v11449_v27, %v11458_v61  ;;  %v25305_v20 = vpop.permute.xlu0 %12210 }
0x2edb   : > { %v12430_v57 = vrot.slane %v25305_v20, 6 }
0x2edc   : > { %v11471_v8 = vmul.f32 1.442695, %v11466_v33  ;;  %v12429_v33 = vrot.slane %v25251_v21, 6  ;;  %v12579_v21 = vrot.slane %v25253_v22, 6 }
0x2edd   : > { %v11464_v17 = vpop.xlane.xlu1 %11463 }
0x2ede   : > { %22403 = vpow2.f32 %v11471_v8  ;;  %v11468_v53 = vsub.f32 %v11451_v51, %v11464_v17  ;;  %v12213_v43 = vpop.permute.xlu0 %12212  ;;  %v12355_v51 = vrot.slane %v25229_v11, 6  ;;  %v12431_v8 = vsel %vm9464_vm14, %v12429_v33, %v12430_v57 }
0x2edf   : > { %22405 = vpow2.f32 %v11473_v2 }
0x2ee0   : > { %v11475_v56 = vmul.f32 1.442695, %v11468_v53  ;;  %v12356_v55 = vsel %vm9464_vm14, %v12354_v38, %v12355_v51 }
0x2ee1   : > { %v11500_v42 = vpop.permute.xlu1 %11499 }
0x2ee2   : > { %22407 = vpow2.f32 %v11475_v56 }
0x2ee5   : > { %v11502_v5 = vpop.permute.xlu1 %11501 }
0x2ee6   : > { %11573 = vxpose.xlu0.b32.start.end [1/1] (short) (narrow) %v11502_v5, 8 }
0x2ee8   : > { %v22404_v60 = vpop.eup %22403 }
0x2ee9   : > { %v11504_v3 = vpop.permute.xlu1 %11503  ;;  %v11480_v59 = vsel %vm11452_vm13, %v22404_v60, 0.0  ;;  %v22406_v13 = vpop.eup %22405 }
0x2eea   : > { %11481 = vadd.xlane.f32.xlu1 %v11480_v59  ;;  %11605 = vxpose.xlu0.b32.start.end [1/1] (short) (narrow) %v11504_v3, 8  ;;  %v11483_v14 = vsel %vm11452_vm13, %v22406_v13, 0.0 }
0x2eec   : > { %v22408_v16 = vpop.eup %22407 }
0x2eed   : > { %v11486_v25 = vsel %vm11452_vm13, %v22408_v16, 0.0  ;;  %v25309_v52 = vpop.permute.xlu1 %12220 }
0x2eee   : > { %11484 = vadd.xlane.f32.xlu1 %v11483_v14  ;;  %12226 = vxpose.xlu0.b32.start.end [1/1] (short) (narrow) %v25218_v10, 8 }
0x2ef1   : > { %v12215_v9 = vpop.permute.xlu1 %12214 }
0x2ef2   : > { %11487 = vadd.xlane.f32.xlu1 %v11486_v25  ;;  %12258 = vxpose.xlu0.b32.start.end [1/1] (short) (narrow) %v25298_v24, 8  ;;  %v12580_v2 = vrot.slane %v12215_v9, 6 }
0x2ef4   : > { %v12581_v17 = vsel %vm9464_vm14, %v12579_v21, %v12580_v2 }
0x2ef6   : > { %12322 = vxpose.xlu0.b32.start.end [1/1] (short) (narrow) %v25302_v0, 8 }
0x2f0f   : > { %v11479_v18 = vpop.xlane.xlu0 %11478 }
0x2f10   : > { %22409 = vrcp.f32 %v11479_v18 }
0x2f1a   : > { %v22410_v54 = vpop.eup %22409 }
0x2f1b   : > { %v11490_v47 = vmul.f32 %v22410_v54, %v22402_v1  ;;  %v12505_v1 = vrot.slane %v12213_v43, 6 }
0x2f1d   : > { %21312 = vmatpush3.xpose.msk.msra.mxu0 %vm1985_vm0, %v11490_v47  ;;  %v12506_v61 = vsel %vm9464_vm14, %v12504_v29, %v12505_v1 }
0x2f1e   : > { %21321 = vmatprep.subr.mxu0 %v23502_v12 }
0x2f25   : > { %11541 = vxpose.xlu1.b32.start.end [1/1] (short) (narrow) %v11500_v42, 8 }
0x2f29   : > { %12290 = vxpose.xlu1.b32.start.end [1/1] (short) (narrow) %v25309_v52, 8 }
0x2f4f   : > { %v11525_v39 = vpop.trf.xlu0 }
0x2f50   : > { %21314 = vmatmul.mubr.msk.f32.vlgmr.msra.gmra.mrb[68].mxu0 %vm1985_vm0, %v11525_v39 }
0x2f51   : > { %21323 = vmatprep.mubr.msk.f32.mxu0 %vm23503_vm6, %v23502_v12 }
0x2f66   : > { %v11589_v48 = vpop.trf.xlu0 }
0x2f6a   : > { %v11621_v28 = vpop.trf.xlu0 }
0x2f6e   : > { %v12242_v45 = vpop.trf.xlu0 }
0x2f72   : > { %v12274_v41 = vpop.trf.xlu0 }
0x2f76   : > { %v12338_v15 = vpop.trf.xlu0 }
0x2f77   : > { %v11482_v26 = vpop.xlane.xlu1 %11481 }
0x2f78   : > { %22411 = vrcp.f32 %v11482_v26 }
0x2f7b   : > { %v11485_v4 = vpop.xlane.xlu1 %11484 }
0x2f7c   : > { %22413 = vrcp.f32 %v11485_v4 }
0x2f7f   : > { %v11488_v30 = vpop.xlane.xlu1 %11487 }
0x2f80   : > { %22415 = vrcp.f32 %v11488_v30 }
0x2f82   : > { %v22412_v37 = vpop.eup %22411 }
0x2f83   : > { %v11492_v27 = vmul.f32 %v22412_v37, %v22404_v60 }
0x2f85   : > { %21317 = vmatpush3.xpose.msk.msra.mxu1 %vm1985_vm0, %v11492_v27 }
0x2f86   : > { %v22414_v31 = vpop.eup %22413  ;;  %21326 = vmatprep.subr.mxu1 %v23502_v12 }
0x2f87   : > { %v11494_v36 = vmul.f32 %v22414_v31, %v22406_v13 }
0x2f89   : > { %21322 = vmatpush3.xpose.msk.msra.mxu0 %vm1985_vm0, %v11494_v36 }
0x2f8a   : > { %21331 = vmatprep.subr.mxu0 %v23502_v12  ;;  %v22416_v11 = vpop.eup %22415 }
0x2f8b   : > { %v11496_v19 = vmul.f32 %v22416_v11, %v22408_v16 }
0x2f8c   : > { %21324 = vmatmul.mubr.msk.f32.vlgmr.msra.gmra.mrb[70].mxu0 %vm1985_vm0, %v11589_v48 }
0x2f8d   : > { %21332 = vmatpush3.msra.mxu0 %v12242_v45  ;;  %21333 = vmatprep.mubr.msk.f32.mxu0 %vm23503_vm6, %v23502_v12 }
0x2f8e   : > { %21341 = vmatprep.subr.mxu0 %v23502_v12 }
0x2f90   : > { %21334 = vmatmul.mubr.msk.f32.vlgmr.msra.gmra.mrb[72].mxu0 %vm1985_vm0, %v12356_v55 }
0x2f91   : > { %21343 = vmatprep.mubr.msk.f32.mxu0 %vm23503_vm6, %v23502_v12 }
0x2fa5   : > { %v11557_v32 = vpop.trf.xlu1 }
0x2fa6   : > { %21319 = vmatmul.mubr.msk.f32.vlgmr.msra.gmra.mrb[64].mxu1 %vm1985_vm0, %v11557_v32 }
0x2fa7   : > { %21327 = vmatpush3.xpose.msk.msra.mxu1 %vm1985_vm0, %v11496_v19  ;;  %21328 = vmatprep.mubr.msk.f32.mxu1 %vm23503_vm6, %v23502_v12 }
0x2fa8   : > { %21336 = vmatprep.subr.mxu1 %v23502_v12 }
0x2fa9   : > { %v12306_v58 = vpop.trf.xlu1 }
0x2faa   : > { %21329 = vmatmul.mubr.msk.f32.vlgmr.msra.gmra.mrb[66].mxu1 %vm1985_vm0, %v11621_v28  ;;  %21342 = vmatpush3.msra.mxu0 %v12306_v58 }
0x2fab   : > { %21344 = vmatmul.mubr.msk.f32.vlgmr.msra.gmra.mrb[74].mxu0 %vm1985_vm0, %v12506_v61  ;;  %21337 = vmatpush3.msra.mxu1 %v12274_v41 }
0x2fac   : > { %21338 = vmatprep.mubr.msk.f32.mxu1 %vm23503_vm6, %v23502_v12  ;;  %21346 = vmatprep.subr.mxu1 %v23502_v12 }
0x2fad   : > { %21351 = vmatprep.subr.mxu0 %v23502_v12  ;;  %21353 = vmatprep.mubr.msk.f32.mxu0 %vm23503_vm6, %v23502_v12 }
0x2fae   : > { %21339 = vmatmul.mubr.msk.f32.vlgmr.msra.gmra.mrb[68].mxu1 %vm1985_vm0, %v12431_v8 }
0x2faf   : > { %21347 = vmatpush3.msra.mxu1 %v12338_v15  ;;  %21348 = vmatprep.mubr.msk.f32.mxu1 %vm23503_vm6, %v23502_v12 }
0x2fb0   : > { %21356 = vmatprep.subr.mxu1 %v23502_v12 }
0x2fb2   : > { %21349 = vmatmul.mubr.msk.f32.vlgmr.msra.gmra.mrb[70].mxu1 %vm1985_vm0, %v12581_v17 }
0x2fb3   : > { %21358 = vmatprep.mubr.msk.f32.mxu1 %vm23503_vm6, %v23502_v12 }
0x3023   : > { %v25356_v53 = vpop.f32.mrb[68].mxu0 }
0x3024   : > { %v21315_v56 = vpop.f32.mrb[69].mxu0 }
0x305f   : > { %v25358_v42 = vpop.f32.mrb[70].mxu0 }
0x3060   : > { %v21325_v5 = vpop.f32.mrb[71].mxu0 }
0x3063   : > { %v12425_v22 = vpop.f32.mrb[72].mxu0 }
0x3064   : > { %v12654_v60 = vmul.f32 0.35355338, %v12425_v22  ;;  %v21335_v3 = vpop.f32.mrb[73].mxu0 }
0x3066   : > { %v12658_v59 = vsel %vm26175_vm8, 1e-09, %v12654_v60 }
0x3067   : > { %v12662_v13 = vsel %vm11452_vm13, %v12658_v59, -inf }
0x3068   : > { %12663 = vmax.xlane.f32.xlu1 %v12662_v13 }
0x3079   : > { %v11785_v14 = vpop.f32.mrb[64].mxu1 }
0x307a   : > { %v21320_v16 = vpop.f32.mrb[65].mxu1 }
0x307d   : > { %v25363_v25 = vpop.f32.mrb[66].mxu1 }
0x307e   : > { %v21330_v20 = vpop.f32.mrb[67].mxu1  ;;  %v12575_v43 = vpop.f32.mrb[74].mxu0 }
0x307f   : > { %v12656_v18 = vmul.f32 0.35355338, %v12575_v43  ;;  %v21345_v54 = vpop.f32.mrb[75].mxu0 }
0x3081   : > { %v12660_v47 = vsel %vm26175_vm8, 1e-09, %v12656_v18  ;;  %v12500_v39 = vpop.f32.mrb[68].mxu1 }
0x3082   : > { %v12655_v9 = vmul.f32 0.35355338, %v12500_v39  ;;  %v21340_v26 = vpop.f32.mrb[69].mxu1  ;;  %v12668_v4 = vsel %vm11452_vm13, %v12660_v47, -inf }
0x3083   : > { %12669 = vmax.xlane.f32.xlu1 %v12668_v4 }
0x3084   : > { %v12659_v48 = vsel %vm26175_vm8, 1e-09, %v12655_v9 }
0x3085   : > { %v12650_v37 = vpop.f32.mrb[70].mxu1  ;;  %v12665_v27 = vsel %vm11452_vm13, %v12659_v48, -inf }
0x3086   : > { %v12657_v28 = vmul.f32 0.35355338, %v12650_v37  ;;  %12666 = vmax.xlane.f32.xlu0 %v12665_v27  ;;  %v21350_v31 = vpop.f32.mrb[71].mxu1 }
0x3088   : > { %v12661_v36 = vsel %vm26175_vm8, 1e-09, %v12657_v28 }
0x3089   : > { %v12671_v45 = vsel %vm11452_vm13, %v12661_v36, -inf }
0x308a   : > { %12672 = vmax.xlane.f32.xlu1 %v12671_v45 }
0x309b   : > { %12708 = vrot.lane.b32.xlu1 %v25298_v24, %s26290_s5 }
0x309c   : > { %12706 = vrot.lane.b32.xlu0 %v25218_v10, %s26290_s5 }
0x309f   : > { %12710 = vrot.lane.b32.xlu1 %v25309_v52, %s26290_s5 }
0x30a3   : > { %12712 = vrot.lane.b32.xlu1 %v25302_v0, %s26290_s5 }
0x30f5   : > { %v12664_v51 = vpop.xlane.xlu1 %12663 }
0x30f6   : > { %v12674_v38 = vsub.f32 %v12658_v59, %v12664_v51 }
0x30f8   : > { %v12678_v55 = vmul.f32 1.442695, %v12674_v38 }
0x30fa   : > { %22417 = vpow2.f32 %v12678_v55 }
0x3104   : > { %v22418_v30 = vpop.eup %22417 }
0x3105   : > { %v12686_v11 = vsel %vm11452_vm13, %v22418_v30, 0.0 }
0x3106   : > { %12687 = vadd.xlane.f32.xlu0 %v12686_v11 }
0x3110   : > { %v12670_v32 = vpop.xlane.xlu1 %12669 }
0x3111   : > { %v12676_v19 = vsub.f32 %v12660_v47, %v12670_v32 }
0x3113   : > { %v12682_v24 = vmul.f32 1.442695, %v12676_v19  ;;  %v12667_v1 = vpop.xlane.xlu0 %12666 }
0x3114   : > { %v12675_v41 = vsub.f32 %v12659_v48, %v12667_v1 }
0x3115   : > { %22419 = vpow2.f32 %v12682_v24 }
0x3116   : > { %v12680_v10 = vmul.f32 1.442695, %v12675_v41 }
0x3117   : > { %v12673_v29 = vpop.xlane.xlu1 %12672  ;;  %v12707_v21 = vpop.permute.xlu0 %12706 }
0x3118   : > { %22421 = vpow2.f32 %v12680_v10  ;;  %v12677_v52 = vsub.f32 %v12661_v36, %v12673_v29 }
0x311a   : > { %v12684_v57 = vmul.f32 1.442695, %v12677_v52 }
0x311b   : > { %v12709_v8 = vpop.permute.xlu1 %12708 }
0x311c   : > { %22423 = vpow2.f32 %v12684_v57 }
0x311f   : > { %v22420_v0 = vpop.eup %22419  ;;  %v12711_v17 = vpop.permute.xlu1 %12710 }
0x3120   : > { %v12692_v58 = vsel %vm11452_vm13, %v22420_v0, 0.0 }
0x3121   : > { %12693 = vadd.xlane.f32.xlu0 %v12692_v58 }
0x3122   : > { %v22422_v61 = vpop.eup %22421 }
0x3123   : > { %v12689_v33 = vsel %vm11452_vm13, %v22422_v61, 0.0  ;;  %v12713_v56 = vpop.permute.xlu1 %12712 }
0x3124   : > { %12690 = vadd.xlane.f32.xlu1 %v12689_v33 }
0x3126   : > { %v22424_v15 = vpop.eup %22423 }
0x3127   : > { %v12695_v2 = vsel %vm11452_vm13, %v22424_v15, 0.0 }
0x3128   : > { %12696 = vadd.xlane.f32.xlu0 %v12695_v2 }
0x3155   : > { %12718 = vxpose.xlu0.b32.start.end [1/1] (short) (narrow) %v12707_v21, 8 }
0x3157   : > { %12750 = vxpose.xlu1.b32.start.end [1/1] (short) (narrow) %v12709_v8, 8 }
0x3159   : > { %12782 = vxpose.xlu0.b32.start.end [1/1] (short) (narrow) %v12711_v17, 8 }
0x315b   : > { %11941 = vxpose.xlu1.b32.start.end [1/1] (short) (narrow) %v25356_v53, 8 }
0x315d   : > { %12814 = vxpose.xlu0.b32.start.end [1/1] (short) (narrow) %v12713_v56, 8 }
0x3161   : > { %11973 = vxpose.xlu0.b32.start.end [1/1] (short) (narrow) %v11785_v14, 8 }
0x3193   : > { %v12688_v5 = vpop.xlane.xlu0 %12687 }
0x3194   : > { %22425 = vrcp.f32 %v12688_v5 }
0x319e   : > { %v22426_v22 = vpop.eup %22425 }
0x319f   : > { %v12699_v60 = vmul.f32 %v22426_v22, %v22418_v30 }
0x31a1   : > { %21352 = vmatpush3.xpose.msk.msra.mxu0 %vm1985_vm0, %v12699_v60 }
0x31a2   : > { %21361 = vmatprep.subr.mxu0 %v23502_v12 }
0x31ae   : > { %v12694_v53 = vpop.xlane.xlu0 %12693 }
0x31b1   : > { %v12691_v3 = vpop.xlane.xlu1 %12690 }
0x31b2   : > { %22427 = vrcp.f32 %v12691_v3 }
0x31b3   : > { %22429 = vrcp.f32 %v12694_v53 }
0x31b5   : > { %v12697_v16 = vpop.xlane.xlu0 %12696 }
0x31b6   : > { %22431 = vrcp.f32 %v12697_v16 }
0x31bc   : > { %v22428_v59 = vpop.eup %22427 }
0x31bd   : > { %v12701_v13 = vmul.f32 %v22428_v59, %v22422_v61  ;;  %v22430_v14 = vpop.eup %22429 }
0x31be   : > { %v12703_v18 = vmul.f32 %v22430_v14, %v22420_v0 }
0x31bf   : > { %21357 = vmatpush3.xpose.msk.msra.mxu1 %vm1985_vm0, %v12701_v13 }
0x31c0   : > { %21366 = vmatprep.subr.mxu1 %v23502_v12  ;;  %v22432_v20 = vpop.eup %22431 }
0x31c1   : > { %v12705_v47 = vmul.f32 %v22432_v20, %v22424_v15 }
0x31d5   : > { %v12734_v43 = vpop.trf.xlu0 }
0x31d6   : > { %21354 = vmatmul.mubr.msk.f32.vlgmr.msra.gmra.mrb[76].mxu0 %vm1985_vm0, %v12734_v43 }
0x31d7   : > { %21362 = vmatpush3.xpose.msk.msra.mxu0 %vm1985_vm0, %v12703_v18  ;;  %v12766_v54 = vpop.trf.xlu1  ;;  %21363 = vmatprep.mubr.msk.f32.mxu0 %vm23503_vm6, %v23502_v12 }
0x31d8   : > { %21359 = vmatmul.mubr.msk.f32.vlgmr.msra.gmra.mrb[72].mxu1 %vm1985_vm0, %v12766_v54 }
0x31d9   : > { %21367 = vmatpush3.xpose.msk.msra.mxu1 %vm1985_vm0, %v12705_v47  ;;  %v12798_v39 = vpop.trf.xlu0  ;;  %21368 = vmatprep.mubr.msk.f32.mxu1 %vm23503_vm6, %v23502_v12 }
0x31da   : > { %21364 = vmatmul.mubr.msk.f32.vlgmr.msra.gmra.mrb[78].mxu0 %vm1985_vm0, %v12798_v39 }
0x31db   : > { %v11957_v45 = vpop.trf.xlu1 }
0x31dd   : > { %v12830_v9 = vpop.trf.xlu0 }
0x31de   : > { %21369 = vmatmul.mubr.msk.f32.vlgmr.msra.gmra.mrb[74].mxu1 %vm1985_vm0, %v12830_v9 }
0x31e1   : > { %v11989_v51 = vpop.trf.xlu0 }
0x32a9   : > { %v12918_v26 = vpop.f32.mrb[76].mxu0 }
0x32aa   : > { %13150 = vxpose.xlu1.b32.start.end [1/1] (short) (narrow) %v12918_v26, 8  ;;  %v21355_v4 = vpop.f32.mrb[77].mxu0 }
0x32ab   : > { %v12994_v48 = vpop.f32.mrb[72].mxu1 }
0x32ac   : > { %v21360_v37 = vpop.f32.mrb[73].mxu1  ;;  %13182 = vxpose.xlu0.b32.start.end [1/1] (short) (narrow) %v12994_v48, 8 }
0x32ad   : > { %v13070_v27 = vpop.f32.mrb[78].mxu0 }
0x32ae   : > { %13214 = vxpose.xlu1.b32.start.end [1/1] (short) (narrow) %v13070_v27, 8  ;;  %v21365_v28 = vpop.f32.mrb[79].mxu0 }
0x32b1   : > { %v13146_v31 = vpop.f32.mrb[74].mxu1 }
0x32b2   : > { %12005 = vxpose.xlu1.b32.start.end [1/1] (short) (narrow) %v25358_v42, 8  ;;  %13246 = vxpose.xlu0.b32.start.end [1/1] (short) (narrow) %v13146_v31, 8  ;;  %v21370_v36 = vpop.f32.mrb[75].mxu1 }
0x32b6   : > { %12037 = vxpose.xlu0.b32.start.end [1/1] (short) (narrow) %v25363_v25, 8 }
0x332a   : > { %v13166_v38 = vpop.trf.xlu1 }
0x332c   : > { %v13198_v55 = vpop.trf.xlu0 }
0x332e   : > { %v13230_v30 = vpop.trf.xlu1 }
0x332f   : > { %v13278_v11 = vcombine.low %v13166_v38, %v13230_v30  ;;  %v13279_v32 = vcombine.high %v13166_v38, %v13230_v30  ;;  %v11006_v30 = vld [vmem:[%s26296_s14] sm:$0xff] }
0x3331   : > { %v13286_v10 = vrot.slane %v13278_v11, %v24468_v62  ;;  %v13293_v29 = vrot.slane %v13279_v32, %v24468_v62  ;;  %v11007_v11 = vld [vmem:[%s26296_s14 + $0x8] sm:$0xff] }
0x3332   : > { %v13262_v19 = vpop.trf.xlu0  ;;  %v12021_v24 = vpop.trf.xlu1 }
0x3333   : > { %v13294_v1 = vcombine.low %v13198_v55, %v13262_v19  ;;  %v13295_v41 = vcombine.high %v13198_v55, %v13262_v19  ;;  %v12069_v25 = vcombine.low %v11957_v45, %v12021_v24  ;;  %v12070_v57 = vcombine.high %v11957_v45, %v12021_v24 }
0x3335   : > { %v13302_v42 = vrot.slane %v13294_v1, %v24468_v62  ;;  %v13309_v52 = vrot.slane %v13295_v41, %v24468_v62  ;;  %v12077_v5 = vrot.slane %v12069_v25, %v24468_v62  ;;  %v12084_v22 = vrot.slane %v12070_v57, %v24468_v62 }
0x3336   : > { %v12053_v0 = vpop.trf.xlu0  ;;  %v21780_v1 = vpack.c.bf16 %v11007_v11, %v11006_v30 }
0x3337   : > { %v13310_v58 = vcombine.low %v13286_v10, %v13302_v42  ;;  %v13311_v61 = vcombine.high %v13286_v10, %v13302_v42  ;;  %v13326_v33 = vcombine.low %v13293_v29, %v13309_v52  ;;  %v12085_v15 = vcombine.low %v11989_v51, %v12053_v0 }
0x3338   : > { %v12086_v2 = vcombine.high %v11989_v51, %v12053_v0  ;;  %21781 = vmatprep.subr.bf16.mxu0 %v21780_v1  ;;  %v11008_v0 = vld [vmem:[%s26296_s14 + $0x10] sm:$0xff] }
0x3339   : > { %v13318_v8 = vrot.slane %v13310_v58, %v24475_v44  ;;  %v13325_v21 = vrot.slane %v13311_v61, %v24475_v44  ;;  %v13333_v17 = vrot.slane %v13326_v33, %v24475_v44  ;;  %v12093_v56 = vrot.slane %v12085_v15, %v24468_v62  ;;  %v11009_v58 = vld [vmem:[%s26296_s14 + $0x18] sm:$0xff]  ;;  %21783 = vmatpush3.bf16.msra.mxu0 %v21780_v1  ;;  %v13568_v1 = vld [vmem:[#allocation37] sm:$0xff] }
0x333a   : > { %v12100_v60 = vrot.slane %v12086_v2, %v24468_v62  ;;  %v21784_v15 = vpack.c.bf16 %v11009_v58, %v11008_v0  ;;  %v13575_v0 = vld [vmem:[%s26297_s15 + $0x10] sm:$0xff] }
0x333b   : > { %v13336_v3 = vcombine.low %v13318_v8, %v13325_v21  ;;  %v20415_v59 = vcombine.high %v13318_v8, %v13325_v21  ;;  %v13359_v13 = vcombine.high %v13333_v17, %v23502_v12  ;;  %v12101_v53 = vcombine.low %v12077_v5, %v12093_v56 }
0x333c   : > { %v12102_v16 = vcombine.high %v12077_v5, %v12093_v56  ;;  %v12117_v14 = vcombine.low %v12084_v22, %v12100_v60  ;;  %v13358_v20 = vrot.slane %v13333_v17, %v24468_v62  ;;  %21785 = vmatprep.subr.bf16.mxu0 %v21784_v15 }
0x333d   : > { %v13343_v43 = vrot.slane %v13336_v3, %v24468_v62  ;;  %v13351_v18 = vrot.slane %v20415_v59, %v24468_v62  ;;  %v13366_v54 = vrot.slane %v13359_v13, %v24468_v62  ;;  %v12109_v47 = vrot.slane %v12101_v53, %v24475_v44  ;;  %21787 = vmatpush3.bf16.msra.mxu0 %v21784_v15  ;;  %v13577_v15 = vld [vmem:[%s26297_s15 + $0x20] sm:$0xff] }
0x333e   : > { %v12116_v39 = vrot.slane %v12102_v16, %v24475_v44  ;;  %v12124_v9 = vrot.slane %v12117_v14, %v24475_v44 }
0x333f   : > { %v13368_v26 = vcombine.high %v13343_v43, %v13351_v18  ;;  %v13384_v4 = vcombine.high %v13358_v20, %v13366_v54  ;;  %v13367_v48 = vcombine.low %v13343_v43, %v13351_v18  ;;  %v13383_v37 = vcombine.low %v13358_v20, %v13366_v54 }
0x3340   : > { %v12127_v27 = vcombine.low %v12109_v47, %v12116_v39  ;;  %v20402_v28 = vcombine.high %v12109_v47, %v12116_v39  ;;  %v12149_v31 = vrot.slane %v12124_v9, %v24468_v62  ;;  %v12150_v36 = vcombine.high %v12124_v9, %v23502_v12 }
0x3341   : > { %v13382_v45 = vrot.slane %v13368_v26, %v24475_v44  ;;  %v13398_v51 = vrot.slane %v13384_v4, %v24475_v44  ;;  %v13375_v38 = vrot.slane %v13367_v48, %v24475_v44  ;;  %v13391_v55 = vrot.slane %v13383_v37, %v24475_v44  ;;  %v20416_v26 = vld [vmem:[#allocation33] ss:$0 sm:$0xff] }
0x3342   : > { %v12134_v32 = vrot.slane %v12127_v27, %v24468_v62  ;;  %v12142_v19 = vrot.slane %v20402_v28, %v24468_v62  ;;  %v12157_v24 = vrot.slane %v12150_v36, %v24468_v62 }
0x3343   : > { %v13401_v41 = vcombine.low %v13382_v45, %v13398_v51  ;;  %v13400_v10 = vcombine.high %v13375_v38, %v13391_v55  ;;  %v13399_v29 = vcombine.low %v13375_v38, %v13391_v55  ;;  %v13402_v5 = vcombine.high %v13382_v45, %v13398_v51 }
0x3344   : > { %v12158_v42 = vcombine.low %v12134_v32, %v12142_v19  ;;  %v12174_v52 = vcombine.low %v12149_v31, %v12157_v24  ;;  %v12159_v25 = vcombine.high %v12134_v32, %v12142_v19  ;;  %v12175_v57 = vcombine.high %v12149_v31, %v12157_v24 }
0x3345   : > { %13408 = vrot.lane.b32.xlu0 %v13401_v41, %s26282_s8  ;;  %13404 = vrot.lane.b32.xlu1 %v13400_v10, %s26293_s11  ;;  %v13569_v41 = vld [vmem:[#allocation37 + $0x8] sm:$0xff]  ;;  %v13570_v10 = vld [vmem:[#allocation37 + $0x10] sm:$0xff] }
0x3346   : > { %v12166_v61 = vrot.slane %v12158_v42, %v24475_v44  ;;  %v12182_v33 = vrot.slane %v12174_v52, %v24475_v44  ;;  %v12173_v8 = vrot.slane %v12159_v25, %v24475_v44  ;;  %v12189_v21 = vrot.slane %v12175_v57, %v24475_v44  ;;  %v13571_v42 = vld [vmem:[#allocation37 + $0x18] sm:$0xff] }
0x3347   : > { %v21792_v52 = vpack.c.bf16 %v13571_v42, %v13570_v10  ;;  %v13573_v25 = vld [vmem:[%s26297_s15] sm:$0xff]  ;;  %v13574_v57 = vld [vmem:[%s26297_s15 + $0x8] sm:$0xff] }
0x3348   : > { %v12191_v2 = vcombine.high %v12166_v61, %v12182_v33  ;;  %v12190_v17 = vcombine.low %v12166_v61, %v12182_v33  ;;  %v12192_v56 = vcombine.low %v12173_v8, %v12189_v21  ;;  %v12193_v22 = vcombine.high %v12173_v8, %v12189_v21  ;;  %v13576_v61 = vld [vmem:[%s26297_s15 + $0x18] sm:$0xff] }
0x3349   : > { %v21796_v58 = vpack.c.bf16 %v13574_v57, %v13573_v25  ;;  %v21800_v33 = vpack.c.bf16 %v13576_v61, %v13575_v0 }
0x334a   : > { %12195 = vrot.lane.b32.xlu1 %v12191_v2, %s26293_s11  ;;  %v13578_v2 = vld [vmem:[%s26297_s15 + $0x28] sm:$0xff] }
0x334b   : > { %21797 = vmatprep.subr.bf16.mxu0 %v21796_v58  ;;  %v21804_v8 = vpack.c.bf16 %v13578_v2, %v13577_v15 }
0x334e   : > { %12199 = vrot.lane.b32.xlu1 %v12192_v56, %s26282_s8 }
0x3352   : > { %13412 = vrot.lane.b32.xlu1 %v13402_v5, %s26281_s3 }
0x3356   : > { %12203 = vrot.lane.b32.xlu1 %v12193_v22, %s26281_s3 }
0x33b7   : > { %v13405_v60 = vpop.permute.xlu1 %13404  ;;  %v13409_v53 = vpop.permute.xlu0 %13408 }
0x33b8   : > { %v13415_v13 = vsel %vm1985_vm0, %v13399_v29, %v13405_v60  ;;  %v21788_v29 = vpack.c.bf16 %v13569_v41, %v13568_v1  ;;  %v20424_v1 = vld [vmem:[#allocation40] ss:$0 sm:$0xff] }
0x33b9   : > { %v13416_v16 = vsel %vm3440_vm9, %v13415_v13, %v13409_v53 }
0x33ba   : > { %21789 = vmatprep.subr.bf16.mxu1 %v21788_v29 }
0x33bb   : > { %21791 = vmatpush3.bf16.msra.mxu1 %v21788_v29 }
0x33bc   : > { %v12196_v3 = vpop.permute.xlu1 %12195  ;;  %21793 = vmatprep.subr.bf16.mxu1 %v21792_v52 }
0x33bd   : > { %v12206_v43 = vsel %vm1985_vm0, %v12190_v17, %v12196_v3 }
0x33bf   : > { %21795 = vmatpush3.bf16.msra.mxu1 %v21792_v52 }
0x33c0   : > { %v12200_v59 = vpop.permute.xlu1 %12199 }
0x33c1   : > { %v12207_v18 = vsel %vm3440_vm9, %v12206_v43, %v12200_v59 }
0x33c4   : > { %v13413_v14 = vpop.permute.xlu1 %13412 }
0x33c5   : > { %v13417_v20 = vsel %vm3442_vm10, %v13416_v16, %v13413_v14 }
0x33c6   : > { %v13419_v54 = vrot.slane %v13417_v20, 2 }
0x33c8   : > { %v12204_v47 = vpop.permute.xlu1 %12203 }
0x33c9   : > { %v12208_v39 = vsel %vm3442_vm10, %v12207_v18, %v12204_v47  ;;  %v20419_v47 = vld [vmem:[#allocation34] ss:$0 sm:$0xff] }
0x33ca   : > { %v13421_v9 = vsel %vm10674_vm5, %v12208_v39, %v13419_v54 }
0x33cb   : > { %21379 = vmatprep.mubr.msk.f32.mxu0 %vm2075_vm1, %v13421_v9 }
0x33cc   : > { %21380 = vmatmul.mubr.msk.f32.vlgmr.msra.gmra.mrb[80].mxu0 %vm2075_vm1, %v13419_v54 }
0x33cd   : > { %21799 = vmatpush3.bf16.msra.mxu0 %v21796_v58 }
0x33ce   : > { %21801 = vmatprep.subr.bf16.mxu0 %v21800_v33 }
0x33d1   : > { %21803 = vmatpush3.bf16.msra.mxu0 %v21800_v33 }
0x33d2   : > { %21805 = vmatprep.subr.bf16.mxu0 %v21804_v8 }
0x33d5   : > { %21807 = vmatpush3.bf16.msra.mxu0 %v21804_v8 }
0x349f   : > { %v21381_v4 = vpop.f32.mrb[80].mxu0 }
0x34a0   : > { %v13505_v48 = vadd.f32 %v21381_v4, %v20416_v26  ;;  %v13499_v37 = vpop.f32.mrb[81].mxu0 }
0x34a1   : > { %v13500_v27 = vadd.f32 %v20416_v26, %v13499_v37  ;;  %v20420_v26 = vld [vmem:[#allocation36] ss:$0 sm:$0xff] }
0x34a2   : > { %v25455_v28 = vadd.f32 %v13505_v48, %v25172_v40 }
0x34a3   : > { %v25458_v31 = vadd.f32 %v13500_v27, %v25169_v35 }
0x34a4   : > { %v13515_v36 = vsel %vm8103_vm2, %v25455_v28, 0.0 }
0x34a5   : > { %13516 = vadd.xlane.f32.xlu1 %v13515_v36  ;;  %v13512_v45 = vsel %vm2075_vm1, %v25458_v31, 0.0 }
0x34a6   : > { %13513 = vadd.xlane.f32.xlu0 %v13512_v45 }
0x3532   : > { %v13517_v51 = vpop.xlane.xlu1 %13516 }
0x3533   : > { %v13519_v38 = vmul.f32 0.03125, %v13517_v51  ;;  %v13514_v55 = vpop.xlane.xlu0 %13513  ;;  %v13579_v51 = vld [vmem:[%s26297_s15 + $0x30] sm:$0xff] }
0x3534   : > { %v13518_v30 = vmul.f32 0.03125, %v13514_v55 }
0x3535   : > { %v13521_v11 = vsub.f32 %v25455_v28, %v13519_v38  ;;  %v13580_v38 = vld [vmem:[%s26297_s15 + $0x38] sm:$0xff] }
0x3536   : > { %v13520_v40 = vsub.f32 %v25458_v31, %v13518_v30  ;;  %v21808_v55 = vpack.c.bf16 %v13580_v38, %v13579_v51  ;;  %v20421_v30 = vld [vmem:[#allocation39] ss:$0 sm:$0xff] }
0x3537   : > { %v13523_v19 = vmul.f32 %v13521_v11, %v13521_v11  ;;  %v13539_v48 = vmul.f32 %v20419_v47, %v13521_v11 }
0x3538   : > { %v13522_v32 = vmul.f32 %v13520_v40, %v13520_v40  ;;  %v13538_v39 = vmul.f32 %v20419_v47, %v13520_v40  ;;  %21809 = vmatprep.subr.bf16.mxu0 %v21808_v55 }
0x3539   : > { %v13527_v24 = vsel %vm8103_vm2, %v13523_v19, 0.0  ;;  %21811 = vmatpush3.bf16.msra.mxu0 %v21808_v55 }
0x353a   : > { %v13524_v35 = vsel %vm2075_vm1, %v13522_v32, 0.0  ;;  %21433 = vmatprep.subr.mxu0 %v23502_v12 }
0x353b   : > { %13525 = vadd.xlane.f32.xlu0 %v13524_v35 }
0x353f   : > { %13528 = vadd.xlane.f32.xlu0 %v13527_v24 }
0x35c8   : > { %v13526_v21 = vpop.xlane.xlu0 %13525 }
0x35c9   : > { %v13530_v17 = vmul.f32 0.032258064, %v13526_v21 }
0x35cb   : > { %22433 = vrsqrt.f32 %v13530_v17  ;;  %vm13542_vm3 = vcmp.eq.f32.partialorder %v13530_v17, inf  ;;  %v13545_v3 = vand.u32 2147483648, %v13530_v17  ;;  %vm13544_vm4 = vcmp.eq.f32.partialorder %v13530_v17, 0.0 }
0x35cc   : > { %v13529_v56 = vpop.xlane.xlu0 %13528 }
0x35cd   : > { %v13531_v5 = vmul.f32 0.032258064, %v13529_v56  ;;  %v20429_v56 = vld [vmem:[%s26286_s10 + $0x20] sm:$0xff] }
0x35cf   : > { %22435 = vrsqrt.f32 %v13531_v5  ;;  %vm13549_vm11 = vcmp.eq.f32.partialorder %v13531_v5, inf  ;;  %v13552_v20 = vand.u32 2147483648, %v13531_v5  ;;  %vm13551_vm8 = vcmp.eq.f32.partialorder %v13531_v5, 0.0 }
0x35d5   : > { %v22434_v22 = vpop.eup %22433 }
0x35d6   : > { %v13541_v60 = vmul.f32 %v22434_v22, %v13530_v17  ;;  %v20431_v22 = vld [vmem:[%s26286_s10 + $0x30] sm:$0xff] }
0x35d8   : > { %v13543_v59 = vsel %vm13542_vm3, %v13530_v17, %v13541_v60 }
0x35d9   : > { %v22436_v13 = vpop.eup %22435  ;;  %v13546_v53 = vsel %vm13544_vm4, %v13545_v3, %v13543_v59  ;;  %v20432_v3 = vld [vmem:[%s26286_s10 + $0x38] sm:$0xff] }
0x35da   : > { %v13548_v16 = vmul.f32 %v22436_v13, %v13531_v5  ;;  %v13554_v14 = vadd.f32 1e-06, %v13546_v53  ;;  %v21816_v59 = vpack.c.bf16 %v20432_v3, %v20431_v22 }
0x35dc   : > { %v13550_v43 = vsel %vm13549_vm11, %v13531_v5, %v13548_v16  ;;  %22437 = vrcp.f32 %v13554_v14  ;;  %v20430_v5 = vld [vmem:[%s26286_s10 + $0x28] sm:$0xff] }
0x35dd   : > { %v13553_v18 = vsel %vm13551_vm8, %v13552_v20, %v13550_v43  ;;  %v21812_v60 = vpack.c.bf16 %v20430_v5, %v20429_v56 }
0x35de   : > { %v13555_v54 = vadd.f32 1e-06, %v13553_v18 }
0x35df   : > { %21813 = vmatprep.subr.bf16.mxu1 %v21812_v60 }
0x35e0   : > { %22439 = vrcp.f32 %v13555_v54 }
0x35e6   : > { %v22438_v9 = vpop.eup %22437 }
0x35e7   : > { %v13557_v4 = vmul.f32 %v22438_v9, %v13538_v39 }
0x35e9   : > { %v13566_v37 = vadd.f32 %v20420_v26, %v13557_v4 }
0x35ea   : > { %v22440_v27 = vpop.eup %22439 }
0x35eb   : > { %v13559_v36 = vmul.f32 %v22440_v27, %v13539_v48  ;;  %21390 = vmatprep.mubr.msk.f32.mxu1 %vm2075_vm1, %v13566_v37 }
0x35ed   : > { %v13567_v45 = vadd.f32 %v20420_v26, %v13559_v36  ;;  %v20427_v36 = vld [vmem:[#allocation21 + $0x1] ss:$0 sm:$0xff] }
0x35ef   : > { %21391 = vmatmul.mubr.msk.f32.vlgmr.msra.gmra.mrb[76].mxu1 %vm2075_vm1, %v13567_v45 }
0x35f0   : > { %21815 = vmatpush3.bf16.msra.mxu1 %v21812_v60 }
0x35f1   : > { %21817 = vmatprep.subr.bf16.mxu1 %v21816_v59 }
0x35f4   : > { %21819 = vmatpush3.bf16.msra.mxu1 %v21816_v59 }
0x35f5   : > { %21423 = vmatprep.subr.mxu1 %v23502_v12 }
0x36c2   : > { %v21392_v40 = vpop.f32.mrb[76].mxu1 }
0x36c3   : > { %v13666_v32 = vadd.f32 %v21392_v40, %v20421_v30  ;;  %v13660_v35 = vpop.f32.mrb[77].mxu1 }
0x36c4   : > { %v13661_v11 = vadd.f32 %v20421_v30, %v13660_v35  ;;  %v20428_v30 = vld [vmem:[#allocation22 + $0x1] ss:$0 sm:$0xff] }
0x36c5   : > { %v13670_v24 = vmax.f32 %v13666_v32, 0.0 }
0x36c6   : > { %v13669_v19 = vmax.f32 %v13661_v11, 0.0 }
0x36c8   : > { %21409 = vmatprep.mubr.msk.f32.mxu0 %vm26176_vm15, %v13669_v19  ;;  %v20437_v19 = vld [vmem:[#allocation24 + $0x1] ss:$0 sm:$0xff] }
0x36c9   : > { %21410 = vmatmul.mubr.msk.f32.vlgmr.msra.gmra.mrb[82].mxu0 %vm26176_vm15, %v13670_v24 }
0x36ca   : > { %21435 = vmatprep.mubr.msk.f32.mxu0 %vm23503_vm6, %v23502_v12 }
0x379c   : > { %v21411_v41 = vpop.f32.mrb[82].mxu0 }
0x379d   : > { %v13755_v10 = vadd.f32 %v21411_v41, %v20424_v1  ;;  %v13749_v29 = vpop.f32.mrb[83].mxu0 }
0x379e   : > { %v13750_v42 = vadd.f32 %v20424_v1, %v13749_v29 }
0x379f   : > { %v25484_v52 = vadd.f32 %v13755_v10, %v25455_v28 }
0x37a0   : > { %v25487_v25 = vadd.f32 %v13750_v42, %v25458_v31 }
0x37a1   : > { %v13767_v57 = vsel %vm8103_vm2, %v25484_v52, 0.0 }
0x37a2   : > { %13768 = vadd.xlane.f32.xlu1 %v13767_v57  ;;  %v13764_v0 = vsel %vm2075_vm1, %v25487_v25, 0.0 }
0x37a3   : > { %13765 = vadd.xlane.f32.xlu0 %v13764_v0 }
0x382f   : > { %v13769_v58 = vpop.xlane.xlu1 %13768 }
0x3830   : > { %v13771_v61 = vmul.f32 0.03125, %v13769_v58  ;;  %v13766_v33 = vpop.xlane.xlu0 %13765 }
0x3831   : > { %v13770_v28 = vmul.f32 0.03125, %v13766_v33 }
0x3832   : > { %v13773_v15 = vsub.f32 %v25484_v52, %v13771_v61 }
0x3833   : > { %v13772_v31 = vsub.f32 %v25487_v25, %v13770_v28 }
0x3834   : > { %v13775_v2 = vmul.f32 %v13773_v15, %v13773_v15  ;;  %v13791_v45 = vmul.f32 %v20427_v36, %v13773_v15 }
0x3835   : > { %v13774_v8 = vmul.f32 %v13772_v31, %v13772_v31  ;;  %v13790_v38 = vmul.f32 %v20427_v36, %v13772_v31 }
0x3836   : > { %v13779_v21 = vsel %vm8103_vm2, %v13775_v2, 0.0 }
0x3837   : > { %13780 = vadd.xlane.f32.xlu1 %v13779_v21  ;;  %v13776_v17 = vsel %vm2075_vm1, %v13774_v8, 0.0 }
0x3838   : > { %13777 = vadd.xlane.f32.xlu0 %v13776_v17 }
0x38c4   : > { %v13781_v13 = vpop.xlane.xlu1 %13780 }
0x38c5   : > { %v13783_v53 = vmul.f32 0.032258064, %v13781_v13  ;;  %v13778_v16 = vpop.xlane.xlu0 %13777 }
0x38c6   : > { %v13782_v14 = vmul.f32 0.032258064, %v13778_v16 }
0x38c7   : > { %22441 = vrsqrt.f32 %v13783_v53  ;;  %vm13801_vm8 = vcmp.eq.f32.partialorder %v13783_v53, inf  ;;  %v13804_v54 = vand.u32 2147483648, %v13783_v53  ;;  %vm13803_vm3 = vcmp.eq.f32.partialorder %v13783_v53, 0.0 }
0x38c8   : > { %22443 = vrsqrt.f32 %v13782_v14  ;;  %vm13794_vm4 = vcmp.eq.f32.partialorder %v13782_v14, inf  ;;  %v13797_v9 = vand.u32 2147483648, %v13782_v14  ;;  %vm13796_vm11 = vcmp.eq.f32.partialorder %v13782_v14, 0.0 }
0x38d1   : > { %v22442_v20 = vpop.eup %22441 }
0x38d2   : > { %v22444_v43 = vpop.eup %22443  ;;  %v13800_v18 = vmul.f32 %v22442_v20, %v13783_v53 }
0x38d3   : > { %v13793_v47 = vmul.f32 %v22444_v43, %v13782_v14 }
0x38d4   : > { %v13802_v39 = vsel %vm13801_vm8, %v13783_v53, %v13800_v18  ;;  %vm26298_vm8 = vcmask 46080  }
0x38d5   : > { %v13805_v26 = vsel %vm13803_vm3, %v13804_v54, %v13802_v39  ;;  %v13795_v4 = vsel %vm13794_vm4, %v13782_v14, %v13793_v47  ;;  %vm26299_vm3 = vmmov %vm26298_vm8 }
0x38d6   : > { %v13807_v48 = vadd.f32 1e-06, %v13805_v26  ;;  %v13798_v37 = vsel %vm13796_vm11, %v13797_v9, %v13795_v4  ;;  %vm26300_vm4 = vmmov %vm26299_vm3 }
0x38d7   : > { %v13806_v27 = vadd.f32 1e-06, %v13798_v37  ;;  %vm26301_vm11 = vmmov %vm26299_vm3 }
0x38d8   : > { %22445 = vrcp.f32 %v13807_v48 }
0x38d9   : > { %22447 = vrcp.f32 %v13806_v27 }
0x38e2   : > { %v22446_v51 = vpop.eup %22445 }
0x38e3   : > { %v22448_v55 = vpop.eup %22447  ;;  %v13811_v40 = vmul.f32 %v22446_v51, %v13791_v45 }
0x38e4   : > { %v13809_v32 = vmul.f32 %v22448_v55, %v13790_v38 }
0x38e5   : > { %v13819_v11 = vadd.f32 %v20428_v30, %v13811_v40 }
0x38e6   : > { %v13818_v35 = vadd.f32 %v20428_v30, %v13809_v32 }
0x38e8   : > { %21420 = vmatprep.mubr.msk.f32.mxu1 %vm2075_vm1, %v13818_v35 }
0x38e9   : > { %21421 = vmatmul.mubr.msk.f32.vlgmr.msra.gmra.mrb[78].mxu1 %vm2075_vm1, %v13819_v11 }
0x38ea   : > { %21425 = vmatprep.mubr.msk.f32.mxu1 %vm23503_vm6, %v23502_v12 }
0x39bc   : > { %v21422_v24 = vpop.f32.mrb[78].mxu1 }
0x39bd   : > { %v25506_v1 = vadd.f32 %v21422_v24, %v20437_v19  ;;  %v13912_v41 = vpop.f32.mrb[79].mxu1 }
0x39be   : > { %v25508_v10 = vadd.f32 %v20437_v19, %v13912_v41 }
0x39c0   : > { %13924 = vrot.lane.b32.xlu1 %v25508_v10, %s26287_s0  ;;  %13922 = vrot.lane.b32.xlu0 %v25508_v10, %s26288_s1 }
0x39c4   : > { %13926 = vrot.lane.b32.xlu1 %v25508_v10, %s26289_s4 }
0x39c8   : > { %13928 = vrot.lane.b32.xlu1 %v25508_v10, %s26290_s5 }
0x3a32   : > { %v25518_v29 = vpop.permute.xlu1 %13924  ;;  %v25520_v42 = vpop.permute.xlu0 %13922 }
0x3a33   : > { %13932 = vrot.lane.b32.xlu1 %v25518_v29, %s26290_s5  ;;  %13930 = vrot.lane.b32.xlu0 %v25520_v42, %s26290_s5  ;;  %v15130_v34 = vrot.slane %v25520_v42, 6 }
0x3a36   : > { %v25526_v57 = vpop.permute.xlu1 %13926 }
0x3a37   : > { %13934 = vrot.lane.b32.xlu0 %v25526_v57, %s26290_s5  ;;  %v15136_v51 = vrot.slane %v25526_v57, 6 }
0x3a3a   : > { %v13929_v0 = vpop.permute.xlu1 %13928 }
0x3a5c   : > { %13940 = vxpose.xlu1.b32.start.end [1/1] (short) (narrow) %v13929_v0, 8 }
0x3a7a   : > { %15121 = vrot.lane.b32.xlu1 %v25506_v1, %s26288_s1 }
0x3aa5   : > { %v13931_v58 = vpop.permute.xlu0 %13930  ;;  %v13933_v61 = vpop.permute.xlu1 %13932 }
0x3aa6   : > { %13972 = vxpose.xlu0.b32.start.end [1/1] (short) (narrow) %v13931_v58, 8  ;;  %v15127_v58 = vrot.slane %v25508_v10, 6 }
0x3aa9   : > { %v13935_v33 = vpop.permute.xlu0 %13934 }
0x3aaa   : > { %14004 = vxpose.xlu0.b32.start.end [1/1] (short) (narrow) %v13933_v61, 8  ;;  %v15128_v61 = vrot.slane %v25506_v1, 6 }
0x3aae   : > { %14036 = vxpose.xlu0.b32.start.end [1/1] (short) (narrow) %v13935_v33, 8 }
0x3ad7   : > { %15123 = vrot.lane.b32.xlu0 %v25506_v1, %s26287_s0 }
0x3adc   : > { %v13956_v28 = vpop.trf.xlu1 }
0x3add   : > { %21424 = vmatpush3.msra.mxu1 %v13956_v28  ;;  %v25596_v28 = vsel %vm9464_vm14, %v15127_v58, %v15128_v61 }
0x3ade   : > { %21426 = vmatmul.mubr.msk.f32.vlgmr.msra.gmra.mrb[80].mxu1 %vm1985_vm0, %v25508_v10  ;;  %21428 = vmatprep.subr.mxu1 %v23502_v12 }
0x3adf   : > { %21430 = vmatprep.mubr.msk.f32.mxu1 %vm23503_vm6, %v23502_v12 }
0x3aec   : > { %v15122_v26 = vpop.permute.xlu1 %15121 }
0x3aed   : > { %v15131_v4 = vrot.slane %v15122_v26, 6 }
0x3aef   : > { %v25579_v48 = vsel %vm9464_vm14, %v15130_v34, %v15131_v4 }
0x3b26   : > { %v13988_v15 = vpop.trf.xlu0 }
0x3b27   : > { %21429 = vmatpush3.msra.mxu1 %v13988_v15  ;;  %v15133_v15 = vrot.slane %v25518_v29, 6 }
0x3b28   : > { %21431 = vmatmul.mubr.msk.f32.vlgmr.msra.gmra.mrb[82].mxu1 %vm1985_vm0, %v25520_v42  ;;  %21438 = vmatprep.subr.mxu1 %v23502_v12 }
0x3b29   : > { %21440 = vmatprep.mubr.msk.f32.mxu1 %vm23503_vm6, %v23502_v12 }
0x3b2a   : > { %v14020_v31 = vpop.trf.xlu0 }
0x3b2b   : > { %21434 = vmatpush3.msra.mxu0 %v14020_v31 }
0x3b2c   : > { %21436 = vmatmul.mubr.msk.f32.vlgmr.msra.gmra.mrb[84].mxu0 %vm1985_vm0, %v25518_v29  ;;  %21443 = vmatprep.subr.mxu0 %v23502_v12 }
0x3b2d   : > { %21445 = vmatprep.mubr.msk.f32.mxu0 %vm23503_vm6, %v23502_v12 }
0x3b2e   : > { %v14052_v2 = vpop.trf.xlu0 }
0x3b2f   : > { %21439 = vmatpush3.msra.mxu1 %v14052_v2 }
0x3b30   : > { %21441 = vmatmul.mubr.msk.f32.vlgmr.msra.gmra.mrb[84].mxu1 %vm1985_vm0, %v25526_v57  ;;  %21448 = vmatprep.subr.mxu1 %v23502_v12 }
0x3b31   : > { %21450 = vmatprep.mubr.msk.f32.mxu1 %vm23503_vm6, %v23502_v12 }
0x3b49   : > { %v15124_v30 = vpop.permute.xlu0 %15123 }
0x3b4a   : > { %v15134_v33 = vrot.slane %v15124_v30, 6 }
0x3b4c   : > { %v25602_v31 = vsel %vm9464_vm14, %v15133_v15, %v15134_v33 }
0x3bb1   : > { %v14136_v8 = vpop.f32.mrb[80].mxu1 }
0x3bb2   : > { %v14356_v21 = vmul.f32 0.35355338, %v14136_v8  ;;  %v21427_v17 = vpop.f32.mrb[81].mxu1 }
0x3bb4   : > { %v25556_v56 = vsel %vm1964_vm12, 1e-09, %v14356_v21 }
0x3bb5   : > { %v14364_v5 = vsel %vm26298_vm8, %v25556_v56, -inf  ;;  %vm26303_vm8 = vmmov %vm26299_vm3 }
0x3bb6   : > { %14365 = vmax.xlane.f32.xlu0 %v14364_v5 }
0x3bfb   : > { %v14208_v22 = vpop.f32.mrb[82].mxu1 }
0x3bfc   : > { %v14357_v60 = vmul.f32 0.35355338, %v14208_v22  ;;  %v21432_v3 = vpop.f32.mrb[83].mxu1 }
0x3bfe   : > { %v14361_v59 = vsel %vm1964_vm12, 1e-09, %v14357_v60 }
0x3bff   : > { %v14280_v13 = vpop.f32.mrb[84].mxu0  ;;  %v14367_v53 = vsel %vm26299_vm3, %v14361_v59, -inf }
0x3c00   : > { %v14358_v16 = vmul.f32 0.35355338, %v14280_v13  ;;  %14368 = vmax.xlane.f32.xlu1 %v14367_v53  ;;  %v21437_v14 = vpop.f32.mrb[85].mxu0 }
0x3c02   : > { %v14362_v20 = vsel %vm1964_vm12, 1e-09, %v14358_v16 }
0x3c03   : > { %v14352_v43 = vpop.f32.mrb[84].mxu1  ;;  %v14370_v18 = vsel %vm26300_vm4, %v14362_v20, -inf  ;;  %vm26304_vm4 = vmmov %vm26299_vm3 }
0x3c04   : > { %v14359_v54 = vmul.f32 0.35355338, %v14352_v43  ;;  %14371 = vmax.xlane.f32.xlu1 %v14370_v18  ;;  %v21442_v47 = vpop.f32.mrb[85].mxu1 }
0x3c06   : > { %v14363_v39 = vsel %vm1964_vm12, 1e-09, %v14359_v54  ;;  %vm26302_vm12 = vmmov %vm26299_vm3 }
0x3c07   : > { %v14373_v9 = vsel %vm26301_vm11, %v14363_v39, -inf  ;;  %vm26305_vm11 = vcmask 48128  }
0x3c08   : > { %14374 = vmax.xlane.f32.xlu0 %v14373_v9 }
0x3c15   : > { %15125 = vrot.lane.b32.xlu1 %v25506_v1, %s26289_s4 }
0x3c19   : > { %14408 = vrot.lane.b32.xlu1 %v25508_v10, %s26280_s13 }
0x3c1d   : > { %14410 = vrot.lane.b32.xlu1 %v25520_v42, %s26280_s13 }
0x3c21   : > { %14414 = vrot.lane.b32.xlu1 %v25526_v57, %s26280_s13 }
0x3c25   : > { %15141 = vrot.lane.b32.xlu1 %v25579_v48, %s26290_s5 }
0x3c43   : > { %v14366_v40 = vpop.xlane.xlu0 %14365 }
0x3c44   : > { %v14376_v1 = vsub.f32 %v25556_v56, %v14366_v40 }
0x3c46   : > { %v14380_v10 = vmul.f32 1.442695, %v14376_v1 }
0x3c8d   : > { %v14369_v37 = vpop.xlane.xlu1 %14368 }
0x3c8e   : > { %v14377_v32 = vsub.f32 %v14361_v59, %v14369_v37 }
0x3c90   : > { %v14382_v11 = vmul.f32 1.442695, %v14377_v32 }
0x3c91   : > { %v14372_v27 = vpop.xlane.xlu1 %14371 }
0x3c92   : > { %22449 = vpow2.f32 %v14382_v11  ;;  %v14378_v2 = vsub.f32 %v14362_v20, %v14372_v27 }
0x3c94   : > { %v14384_v8 = vmul.f32 1.442695, %v14378_v2 }
0x3c95   : > { %v15126_v36 = vpop.permute.xlu1 %15125  ;;  %v14375_v35 = vpop.xlane.xlu0 %14374 }
0x3c96   : > { %v15137_v45 = vrot.slane %v15126_v36, 6  ;;  %v14379_v19 = vsub.f32 %v14363_v39, %v14375_v35 }
0x3c98   : > { %v25585_v38 = vsel %vm9464_vm14, %v15136_v51, %v15137_v45  ;;  %v14386_v24 = vmul.f32 1.442695, %v14379_v19 }
0x3c99   : > { %15145 = vrot.lane.b32.xlu1 %v25585_v38, %s26290_s5  ;;  %v14409_v55 = vpop.permute.xlu1 %14408 }
0x3c9a   : > { %14420 = vxpose.xlu0.b32.start.end [1/1] (short) (narrow) %v14409_v55, 8  ;;  %22451 = vpow2.f32 %v14386_v24 }
0x3c9b   : > { %22453 = vpow2.f32 %v14380_v10 }
0x3c9c   : > { %v22450_v41 = vpop.eup %22449  ;;  %22455 = vpow2.f32 %v14384_v8 }
0x3c9d   : > { %v14391_v42 = vsel %vm26302_vm12, %v22450_v41, 0.0  ;;  %v14411_v22 = vpop.permute.xlu1 %14410  ;;  %vm26306_vm12 = vmmov %vm26305_vm11 }
0x3ca1   : > { %v14415_v59 = vpop.permute.xlu1 %14414 }
0x3ca4   : > { %v22452_v57 = vpop.eup %22451 }
0x3ca5   : > { %v14397_v0 = vsel %vm26303_vm8, %v22452_v57, 0.0  ;;  %v22454_v21 = vpop.eup %22453  ;;  %v15142_v53 = vpop.permute.xlu1 %15141  ;;  %vm26307_vm8 = vmmov %vm26305_vm11 }
0x3ca6   : > { %v14388_v17 = vsel %vm26299_vm3, %v22454_v21, 0.0  ;;  %v22456_v5 = vpop.eup %22455  ;;  %vm26308_vm3 = vmmov %vm26307_vm8 }
0x3cbd   : > { %14392 = vadd.xlane.f32.xlu1 %v14391_v42 }
0x3cc1   : > { %14398 = vadd.xlane.f32.xlu1 %v14397_v0 }
0x3cc3   : > { %14412 = vrot.lane.b32.xlu0 %v25518_v29, %s26280_s13  ;;  %v14394_v29 = vsel %vm26304_vm4, %v22456_v5, 0.0  ;;  %vm26309_vm4 = vmmov %vm26308_vm3 }
0x3cc7   : > { %15139 = vrot.lane.b32.xlu0 %v25596_v28, %s26290_s5 }
0x3ccb   : > { %15143 = vrot.lane.b32.xlu0 %v25602_v31, %s26290_s5 }
0x3cea   : > { %14389 = vadd.xlane.f32.xlu0 %v14388_v17 }
0x3cee   : > { %14395 = vadd.xlane.f32.xlu0 %v14394_v29 }
0x3cf4   : > { %14452 = vxpose.xlu1.b32.start.end [1/1] (short) (narrow) %v14411_v22, 8 }
0x3d0b   : > { %v15146_v16 = vpop.permute.xlu1 %15145 }
0x3d1a   : > { %v14436_v60 = vpop.trf.xlu0 }
0x3d35   : > { %v14413_v3 = vpop.permute.xlu0 %14412 }
0x3d36   : > { %14484 = vxpose.xlu0.b32.start.end [1/1] (short) (narrow) %v14413_v3, 8 }
0x3d39   : > { %v15140_v56 = vpop.permute.xlu0 %15139 }
0x3d3a   : > { %14516 = vxpose.xlu0.b32.start.end [1/1] (short) (narrow) %v14415_v59, 8 }
0x3d3d   : > { %v15144_v13 = vpop.permute.xlu0 %15143 }
0x3d3e   : > { %15151 = vxpose.xlu0.b32.start.end [1/1] (short) (narrow) %v15140_v56, 8  ;;  %15215 = vxpose.xlu1.b32.start.end [1/1] (short) (narrow) %v15144_v13, 8 }
0x3d42   : > { %15183 = vxpose.xlu0.b32.start.end [1/1] (short) (narrow) %v15142_v53, 8 }
0x3d46   : > { %15247 = vxpose.xlu0.b32.start.end [1/1] (short) (narrow) %v15146_v16, 8 }
0x3d4a   : > { %v14393_v14 = vpop.xlane.xlu1 %14392 }
0x3d4b   : > { %22457 = vrcp.f32 %v14393_v14 }
0x3d4e   : > { %v14399_v18 = vpop.xlane.xlu1 %14398 }
0x3d4f   : > { %22459 = vrcp.f32 %v14399_v18 }
0x3d55   : > { %v22458_v20 = vpop.eup %22457 }
0x3d56   : > { %v14403_v43 = vmul.f32 %v22458_v20, %v22450_v41 }
0x3d58   : > { %21449 = vmatpush3.xpose.msk.msra.mxu1 %vm26305_vm11, %v14403_v43  ;;  %vm26310_vm11 = vmmov %vm26308_vm3 }
0x3d59   : > { %21458 = vmatprep.subr.mxu1 %v23502_v12  ;;  %v22460_v54 = vpop.eup %22459 }
0x3d5a   : > { %v14407_v39 = vmul.f32 %v22460_v54, %v22452_v57 }
0x3d74   : > { %v14468_v47 = vpop.trf.xlu1 }
0x3d75   : > { %21451 = vmatmul.mubr.msk.f32.vlgmr.msra.gmra.mrb[86].mxu1 %vm26306_vm12, %v14468_v47  ;;  %vm26311_vm12 = vmmov %vm26308_vm3 }
0x3d76   : > { %21459 = vmatpush3.xpose.msk.msra.mxu1 %vm26307_vm8, %v14407_v39  ;;  %21460 = vmatprep.mubr.msk.f32.mxu1 %vm23503_vm6, %v23502_v12  ;;  %vm26312_vm8 = vmmov %vm26308_vm3 }
0x3d77   : > { %v14390_v9 = vpop.xlane.xlu0 %14389  ;;  %21468 = vmatprep.subr.mxu1 %v23502_v12 }
0x3d78   : > { %22461 = vrcp.f32 %v14390_v9 }
0x3d7b   : > { %v14396_v26 = vpop.xlane.xlu0 %14395 }
0x3d7c   : > { %22463 = vrcp.f32 %v14396_v26 }
0x3d82   : > { %v22462_v4 = vpop.eup %22461 }
0x3d83   : > { %v14401_v34 = vmul.f32 %v22462_v4, %v22454_v21 }
0x3d85   : > { %21444 = vmatpush3.xpose.msk.msra.mxu0 %vm26308_vm3, %v14401_v34  ;;  %vm26313_vm3 = vcmp.eq.f32.partialorder %v25061_v46, 0.0 }
0x3d86   : > { %v22464_v37 = vpop.eup %22463  ;;  %21453 = vmatprep.subr.mxu0 %v23502_v12 }
0x3d87   : > { %v14405_v27 = vmul.f32 %v22464_v37, %v22456_v5 }
0x3d88   : > { %21446 = vmatmul.mubr.msk.f32.vlgmr.msra.gmra.mrb[86].mxu0 %vm26309_vm4, %v14436_v60  ;;  %vm26314_vm4 = vcmask 46080  }
0x3d89   : > { %21454 = vmatpush3.xpose.msk.msra.mxu0 %vm26310_vm11, %v14405_v27  ;;  %21455 = vmatprep.mubr.msk.f32.mxu0 %vm23503_vm6, %v23502_v12  ;;  %vm26315_vm11 = vmmov %vm26313_vm3 }
0x3d8a   : > { %21463 = vmatprep.subr.mxu0 %v23502_v12  ;;  %vm26318_vm15 = vmmov %vm26314_vm4 }
0x3db6   : > { %v14500_v36 = vpop.trf.xlu0 }
0x3db7   : > { %21456 = vmatmul.mubr.msk.f32.vlgmr.msra.gmra.mrb[88].mxu0 %vm26311_vm12, %v14500_v36  ;;  %vm26316_vm12 = vmmov %vm26313_vm3 }
0x3db8   : > { %21465 = vmatprep.mubr.msk.f32.mxu0 %vm23503_vm6, %v23502_v12 }
0x3dba   : > { %v14532_v45 = vpop.trf.xlu0 }
0x3dbb   : > { %21461 = vmatmul.mubr.msk.f32.vlgmr.msra.gmra.mrb[88].mxu1 %vm26312_vm8, %v14532_v45  ;;  %vm26317_vm8 = vmmov %vm26314_vm4 }
0x3dbc   : > { %21470 = vmatprep.mubr.msk.f32.mxu1 %vm23503_vm6, %v23502_v12 }
0x3dbe   : > { %v15167_v51 = vpop.trf.xlu0  ;;  %v15231_v55 = vpop.trf.xlu1 }
0x3dbf   : > { %21464 = vmatpush3.msra.mxu0 %v15167_v51 }
0x3dc0   : > { %21466 = vmatmul.mubr.msk.f32.vlgmr.msra.gmra.mrb[90].mxu0 %vm1985_vm0, %v25596_v28  ;;  %21473 = vmatprep.subr.mxu0 %v23502_v12 }
0x3dc1   : > { %21474 = vmatpush3.msra.mxu0 %v15231_v55  ;;  %21475 = vmatprep.mubr.msk.f32.mxu0 %vm23503_vm6, %v23502_v12 }
0x3dc2   : > { %v15199_v30 = vpop.trf.xlu0  ;;  %21483 = vmatprep.subr.mxu0 %v23502_v12 }
0x3dc3   : > { %21469 = vmatpush3.msra.mxu1 %v15199_v30 }
0x3dc4   : > { %21471 = vmatmul.mubr.msk.f32.vlgmr.msra.gmra.mrb[90].mxu1 %vm1985_vm0, %v25579_v48  ;;  %21476 = vmatmul.mubr.msk.f32.vlgmr.msra.gmra.mrb[92].mxu0 %vm1985_vm0, %v25602_v31 }
0x3dc5   : > { %21478 = vmatprep.subr.mxu1 %v23502_v12  ;;  %21480 = vmatprep.mubr.msk.f32.mxu1 %vm23503_vm6, %v23502_v12 }
0x3dc6   : > { %v15263_v40 = vpop.trf.xlu0  ;;  %21485 = vmatprep.mubr.msk.f32.mxu0 %vm23503_vm6, %v23502_v12 }
0x3dc7   : > { %21479 = vmatpush3.msra.mxu1 %v15263_v40 }
0x3dc8   : > { %21481 = vmatmul.mubr.msk.f32.vlgmr.msra.gmra.mrb[92].mxu1 %vm1985_vm0, %v25585_v38  ;;  %21488 = vmatprep.subr.mxu1 %v23502_v12 }
0x3dc9   : > { %21490 = vmatprep.mubr.msk.f32.mxu1 %vm23503_vm6, %v23502_v12 }
0x3e48   : > { %v25649_v32 = vpop.f32.mrb[86].mxu1 }
0x3e49   : > { %v21452_v35 = vpop.f32.mrb[87].mxu1 }
0x3e5b   : > { %v25651_v11 = vpop.f32.mrb[86].mxu0 }
0x3e5c   : > { %v21447_v19 = vpop.f32.mrb[87].mxu0 }
0x3e8a   : > { %v25653_v24 = vpop.f32.mrb[88].mxu0 }
0x3e8b   : > { %v21457_v41 = vpop.f32.mrb[89].mxu0 }
0x3e8e   : > { %v25655_v42 = vpop.f32.mrb[88].mxu1 }
0x3e8f   : > { %v21462_v57 = vpop.f32.mrb[89].mxu1 }
0x3e93   : > { %v15347_v0 = vpop.f32.mrb[90].mxu0 }
0x3e94   : > { %v15567_v58 = vmul.f32 0.35355338, %v15347_v0  ;;  %v21467_v61 = vpop.f32.mrb[91].mxu0 }
0x3e96   : > { %v15571_v33 = vsel %vm26313_vm3, 1e-09, %v15567_v58 }
0x3e97   : > { %v15419_v15 = vpop.f32.mrb[90].mxu1  ;;  %v15491_v1 = vpop.f32.mrb[92].mxu0  ;;  %v15575_v10 = vsel %vm26314_vm4, %v15571_v33, -inf }
0x3e98   : > { %v15568_v2 = vmul.f32 0.35355338, %v15419_v15  ;;  %v15569_v8 = vmul.f32 0.35355338, %v15491_v1  ;;  %15576 = vmax.xlane.f32.xlu1 %v15575_v10  ;;  %v21472_v21 = vpop.f32.mrb[91].mxu1  ;;  %v21477_v17 = vpop.f32.mrb[93].mxu0 }
0x3e9a   : > { %v15572_v5 = vsel %vm26315_vm11, 1e-09, %v15568_v2  ;;  %v15573_v29 = vsel %vm26316_vm12, 1e-09, %v15569_v8  ;;  %vm26320_vm11 = vmmov %vm26314_vm4 }
0x3e9b   : > { %v15563_v22 = vpop.f32.mrb[92].mxu1  ;;  %v15581_v60 = vsel %vm26317_vm8, %v15573_v29, -inf  ;;  %v15578_v3 = vsel %vm26318_vm15, %v15572_v5, -inf  ;;  %vm26319_vm15 = vmmov %vm26314_vm4 }
0x3e9c   : > { %v15570_v59 = vmul.f32 0.35355338, %v15563_v22  ;;  %15582 = vmax.xlane.f32.xlu1 %v15581_v60  ;;  %15579 = vmax.xlane.f32.xlu0 %v15578_v3  ;;  %v21482_v56 = vpop.f32.mrb[93].mxu1  ;;  %vm26321_vm12 = vmmov %vm26314_vm4 }
0x3e9d   : > { %vm26322_vm8 = vmmov %vm26314_vm4 }
0x3e9e   : > { %v15574_v13 = vsel %vm26313_vm3, 1e-09, %v15570_v59  ;;  %vm26323_vm3 = vcmask 48128  }
0x3e9f   : > { %v15584_v53 = vsel %vm26314_vm4, %v15574_v13, -inf  ;;  %vm26324_vm4 = vmmov %vm26323_vm3 }
0x3ea0   : > { %15585 = vmax.xlane.f32.xlu1 %v15584_v53 }
0x3eb1   : > { %15621 = vrot.lane.b32.xlu1 %v25579_v48, %s26280_s13 }
0x3eb2   : > { %15619 = vrot.lane.b32.xlu0 %v25596_v28, %s26280_s13 }
0x3eb5   : > { %15623 = vrot.lane.b32.xlu1 %v25602_v31, %s26280_s13 }
0x3eb9   : > { %15625 = vrot.lane.b32.xlu1 %v25585_v38, %s26280_s13 }
0x3f25   : > { %v15577_v16 = vpop.xlane.xlu1 %15576 }
0x3f26   : > { %v15587_v14 = vsub.f32 %v15571_v33, %v15577_v16 }
0x3f28   : > { %v15591_v20 = vmul.f32 1.442695, %v15587_v14 }
0x3f29   : > { %v15583_v46 = vpop.xlane.xlu1 %15582  ;;  %v15580_v43 = vpop.xlane.xlu0 %15579 }
0x3f2a   : > { %22465 = vpow2.f32 %v15591_v20  ;;  %v15589_v18 = vsub.f32 %v15573_v29, %v15583_v46  ;;  %v15588_v54 = vsub.f32 %v15572_v5, %v15580_v43 }
0x3f2c   : > { %v15595_v47 = vmul.f32 1.442695, %v15589_v18  ;;  %v15593_v39 = vmul.f32 1.442695, %v15588_v54 }
0x3f2d   : > { %v15586_v48 = vpop.xlane.xlu1 %15585  ;;  %v15620_v51 = vpop.permute.xlu0 %15619 }
0x3f2e   : > { %22467 = vpow2.f32 %v15595_v47  ;;  %v15590_v9 = vsub.f32 %v15574_v13, %v15586_v48 }
0x3f2f   : > { %22469 = vpow2.f32 %v15593_v39 }
0x3f30   : > { %v15597_v28 = vmul.f32 1.442695, %v15590_v9 }
0x3f31   : > { %v15622_v45 = vpop.permute.xlu1 %15621 }
0x3f32   : > { %22471 = vpow2.f32 %v15597_v28 }
0x3f34   : > { %v22466_v31 = vpop.eup %22465 }
0x3f35   : > { %v15599_v26 = vsel %vm26319_vm15, %v22466_v31, 0.0  ;;  %v15624_v55 = vpop.permute.xlu1 %15623  ;;  %vm26325_vm15 = vmmov %vm26323_vm3 }
0x3f36   : > { %15600 = vadd.xlane.f32.xlu0 %v15599_v26 }
0x3f38   : > { %v22468_v38 = vpop.eup %22467 }
0x3f39   : > { %v22470_v4 = vpop.eup %22469  ;;  %v15605_v34 = vsel %vm26320_vm11, %v22468_v38, 0.0  ;;  %v15626_v30 = vpop.permute.xlu1 %15625  ;;  %vm26326_vm11 = vmmov %vm26323_vm3 }
0x3f3a   : > { %15606 = vadd.xlane.f32.xlu0 %v15605_v34  ;;  %v15602_v37 = vsel %vm26321_vm12, %v22470_v4, 0.0  ;;  %vm26327_vm12 = vmmov %vm26323_vm3 }
0x3f3b   : > { %15603 = vadd.xlane.f32.xlu1 %v15602_v37 }
0x3f3c   : > { %v22472_v27 = vpop.eup %22471 }
0x3f3d   : > { %v15608_v36 = vsel %vm26322_vm8, %v22472_v27, 0.0  ;;  %vm26328_vm8 = vmmov %vm26323_vm3 }
0x3f3e   : > { %15609 = vadd.xlane.f32.xlu0 %v15608_v36 }
0x3f6b   : > { %15631 = vxpose.xlu0.b32.start.end [1/1] (short) (narrow) %v15620_v51, 8 }
0x3f6e   : > { %15663 = vxpose.xlu1.b32.start.end [1/1] (short) (narrow) %v15622_v45, 8 }
0x3f6f   : > { %15695 = vxpose.xlu0.b32.start.end [1/1] (short) (narrow) %v15624_v55, 8 }
0x3f72   : > { %14852 = vxpose.xlu1.b32.start.end [1/1] (short) (narrow) %v25651_v11, 8 }
0x3f73   : > { %15727 = vxpose.xlu0.b32.start.end [1/1] (short) (narrow) %v15626_v30, 8 }
0x3f77   : > { %14884 = vxpose.xlu0.b32.start.end [1/1] (short) (narrow) %v25649_v32, 8 }
0x3fc3   : > { %v15601_v40 = vpop.xlane.xlu0 %15600 }
0x3fc4   : > { %22473 = vrcp.f32 %v15601_v40 }
0x3fc7   : > { %v15607_v11 = vpop.xlane.xlu0 %15606 }
0x3fc8   : > { %v15604_v35 = vpop.xlane.xlu1 %15603 }
0x3fc9   : > { %22475 = vrcp.f32 %v15604_v35 }
0x3fca   : > { %22477 = vrcp.f32 %v15607_v11 }
0x3fcb   : > { %v15610_v58 = vpop.xlane.xlu0 %15609 }
0x3fcc   : > { %22479 = vrcp.f32 %v15610_v58 }
0x3fce   : > { %v22474_v19 = vpop.eup %22473 }
0x3fcf   : > { %v15612_v41 = vmul.f32 %v22474_v19, %v22466_v31 }
0x3fd1   : > { %21484 = vmatpush3.xpose.msk.msra.mxu0 %vm26323_vm3, %v15612_v41 }
0x3fd2   : > { %21493 = vmatprep.subr.mxu0 %v23502_v12 }
0x3fd3   : > { %v22476_v57 = vpop.eup %22475 }
0x3fd4   : > { %v15614_v0 = vmul.f32 %v22476_v57, %v22470_v4  ;;  %v22478_v32 = vpop.eup %22477 }
0x3fd5   : > { %v15616_v15 = vmul.f32 %v22478_v32, %v22468_v38 }
0x3fd6   : > { %21489 = vmatpush3.xpose.msk.msra.mxu1 %vm26324_vm4, %v15614_v0  ;;  %v22480_v61 = vpop.eup %22479  ;;  %vm26329_vm4 = vmmov %vm26323_vm3 }
0x3fd7   : > { %21498 = vmatprep.subr.mxu1 %v23502_v12  ;;  %v15618_v10 = vmul.f32 %v22480_v61, %v22472_v27 }
0x3feb   : > { %v15647_v33 = vpop.trf.xlu0 }
0x3fec   : > { %21486 = vmatmul.mubr.msk.f32.vlgmr.msra.gmra.mrb[94].mxu0 %vm26325_vm15, %v15647_v33 }
0x3fed   : > { %21494 = vmatpush3.xpose.msk.msra.mxu0 %vm26326_vm11, %v15616_v15  ;;  %21495 = vmatprep.mubr.msk.f32.mxu0 %vm23503_vm6, %v23502_v12 }
0x3fee   : > { %v15679_v1 = vpop.trf.xlu1 }
0x3fef   : > { %21491 = vmatmul.mubr.msk.f32.vlgmr.msra.gmra.mrb[94].mxu1 %vm26327_vm12, %v15679_v1  ;;  %v15711_v2 = vpop.trf.xlu0 }
0x3ff0   : > { %21499 = vmatpush3.xpose.msk.msra.mxu1 %vm26328_vm8, %v15618_v10  ;;  %21496 = vmatmul.mubr.msk.f32.vlgmr.msra.gmra.mrb[96].mxu0 %vm26323_vm3, %v15711_v2 }
0x3ff1   : > { %21500 = vmatprep.mubr.msk.f32.mxu1 %vm23503_vm6, %v23502_v12 }
0x3ff2   : > { %v14868_v56 = vpop.trf.xlu1 }
0x3ff3   : > { %v15743_v8 = vpop.trf.xlu0 }
0x3ff4   : > { %21501 = vmatmul.mubr.msk.f32.vlgmr.msra.gmra.mrb[96].mxu1 %vm26329_vm4, %v15743_v8 }
0x3ff7   : > { %v14900_v13 = vpop.trf.xlu0 }
0x40bf   : > { %v15831_v21 = vpop.f32.mrb[94].mxu0 }
0x40c0   : > { %16063 = vxpose.xlu1.b32.start.end [1/1] (short) (narrow) %v15831_v21, 8  ;;  %v21487_v17 = vpop.f32.mrb[95].mxu0 }
0x40c2   : > { %v15907_v5 = vpop.f32.mrb[94].mxu1 }
0x40c3   : > { %v21492_v29 = vpop.f32.mrb[95].mxu1  ;;  %v15983_v22 = vpop.f32.mrb[96].mxu0  ;;  %16095 = vxpose.xlu0.b32.start.end [1/1] (short) (narrow) %v15907_v5, 8 }
0x40c4   : > { %16127 = vxpose.xlu1.b32.start.end [1/1] (short) (narrow) %v15983_v22, 8  ;;  %v21497_v60 = vpop.f32.mrb[97].mxu0 }
0x40c7   : > { %v16059_v3 = vpop.f32.mrb[96].mxu1 }
0x40c8   : > { %14916 = vxpose.xlu1.b32.start.end [1/1] (short) (narrow) %v25653_v24, 8  ;;  %16159 = vxpose.xlu0.b32.start.end [1/1] (short) (narrow) %v16059_v3, 8  ;;  %v21502_v59 = vpop.f32.mrb[97].mxu1 }
0x40cc   : > { %14948 = vxpose.xlu0.b32.start.end [1/1] (short) (narrow) %v25655_v42, 8 }
0x4140   : > { %v16079_v53 = vpop.trf.xlu1 }
0x4143   : > { %v16111_v16 = vpop.trf.xlu0 }
0x4144   : > { %v16143_v14 = vpop.trf.xlu1 }
0x4145   : > { %v16191_v20 = vcombine.low %v16079_v53, %v16143_v14  ;;  %v16192_v46 = vcombine.high %v16079_v53, %v16143_v14  ;;  %v20433_v53 = vld [vmem:[%s26292_s9 + $0x20] sm:$0xff] }
0x4147   : > { %v16199_v39 = vrot.slane %v16191_v20, %v24468_v62  ;;  %v16206_v48 = vrot.slane %v16192_v46, %v24468_v62 }
0x4148   : > { %v16175_v43 = vpop.trf.xlu0  ;;  %v14932_v18 = vpop.trf.xlu1 }
0x4149   : > { %v16207_v54 = vcombine.low %v16111_v16, %v16175_v43  ;;  %v16208_v47 = vcombine.high %v16111_v16, %v16175_v43  ;;  %v14980_v42 = vcombine.low %v14868_v56, %v14932_v18  ;;  %v14981_v28 = vcombine.high %v14868_v56, %v14932_v18  ;;  %v20434_v16 = vld [vmem:[%s26292_s9 + $0x28] sm:$0xff] }
0x414a   : > { %v21820_v43 = vpack.c.bf16 %v20434_v16, %v20433_v53 }
0x414b   : > { %v16215_v24 = vrot.slane %v16207_v54, %v24468_v62  ;;  %v16222_v9 = vrot.slane %v16208_v47, %v24468_v62  ;;  %v14988_v55 = vrot.slane %v14980_v42, %v24468_v62  ;;  %v14995_v30 = vrot.slane %v14981_v28, %v24468_v62  ;;  %v20435_v42 = vld [vmem:[%s26292_s9 + $0x30] sm:$0xff]  ;;  %v20436_v28 = vld [vmem:[%s26292_s9 + $0x38] sm:$0xff] }
0x414c   : > { %v14964_v31 = vpop.trf.xlu0  ;;  %21821 = vmatprep.subr.bf16.mxu0 %v21820_v43 }
0x414d   : > { %v16223_v26 = vcombine.low %v16199_v39, %v16215_v24  ;;  %v16224_v38 = vcombine.high %v16199_v39, %v16215_v24  ;;  %v16239_v4 = vcombine.low %v16206_v48, %v16222_v9  ;;  %v14996_v34 = vcombine.low %v14900_v13, %v14964_v31  ;;  %21823 = vmatpush3.bf16.msra.mxu0 %v21820_v43 }
0x414e   : > { %v14997_v37 = vcombine.high %v14900_v13, %v14964_v31 }
0x414f   : > { %v16231_v27 = vrot.slane %v16223_v26, %v24475_v44  ;;  %v16238_v36 = vrot.slane %v16224_v38, %v24475_v44  ;;  %v16246_v45 = vrot.slane %v16239_v4, %v24475_v44  ;;  %v15004_v51 = vrot.slane %v14996_v34, %v24468_v62 }
0x4150   : > { %v15011_v40 = vrot.slane %v14997_v37, %v24468_v62  ;;  %v21824_v38 = vpack.c.bf16 %v20436_v28, %v20435_v42  ;;  %v20472_v42 = vld [vmem:[%s26295_s12 + $0x28] sm:$0xff]  ;;  %v20473_v28 = vld [vmem:[%s26295_s12 + $0x30] sm:$0xff] }
0x4151   : > { %v16249_v35 = vcombine.low %v16231_v27, %v16238_v36  ;;  %v20465_v19 = vcombine.high %v16231_v27, %v16238_v36  ;;  %v16272_v41 = vcombine.high %v16246_v45, %v23502_v12  ;;  %v15012_v57 = vcombine.low %v14988_v55, %v15004_v51  ;;  %v20478_v36 = vld [vmem:[%s26294_s7 + $0x20] sm:$0xff] }
0x4152   : > { %v15013_v0 = vcombine.high %v14988_v55, %v15004_v51  ;;  %v15028_v11 = vcombine.low %v14995_v30, %v15011_v40  ;;  %v16271_v61 = vrot.slane %v16246_v45, %v24468_v62  ;;  %21825 = vmatprep.subr.bf16.mxu0 %v21824_v38  ;;  %v20479_v45 = vld [vmem:[%s26294_s7 + $0x28] sm:$0xff] }
0x4153   : > { %v16256_v58 = vrot.slane %v16249_v35, %v24468_v62  ;;  %v16264_v32 = vrot.slane %v20465_v19, %v24468_v62  ;;  %v16279_v33 = vrot.slane %v16272_v41, %v24468_v62  ;;  %v15020_v15 = vrot.slane %v15012_v57, %v24475_v44  ;;  %21827 = vmatpush3.bf16.msra.mxu0 %v21824_v38 }
0x4154   : > { %v15027_v1 = vrot.slane %v15013_v0, %v24475_v44  ;;  %v15035_v10 = vrot.slane %v15028_v11, %v24475_v44  ;;  %v21836_v51 = vpack.c.bf16 %v20479_v45, %v20478_v36 }
0x4155   : > { %v16281_v2 = vcombine.high %v16256_v58, %v16264_v32  ;;  %v16297_v8 = vcombine.high %v16271_v61, %v16279_v33  ;;  %v16280_v21 = vcombine.low %v16256_v58, %v16264_v32  ;;  %v16296_v17 = vcombine.low %v16271_v61, %v16279_v33  ;;  %v20480_v33 = vld [vmem:[%s26294_s7 + $0x30] sm:$0xff] }
0x4156   : > { %v15038_v5 = vcombine.low %v15020_v15, %v15027_v1  ;;  %v20452_v29 = vcombine.high %v15020_v15, %v15027_v1  ;;  %v15060_v22 = vrot.slane %v15035_v10, %v24468_v62  ;;  %v15061_v60 = vcombine.high %v15035_v10, %v23502_v12  ;;  %21837 = vmatprep.subr.bf16.mxu0 %v21836_v51  ;;  %v20481_v15 = vld [vmem:[%s26294_s7 + $0x38] sm:$0xff] }
0x4157   : > { %v16295_v3 = vrot.slane %v16281_v2, %v24475_v44  ;;  %v16311_v59 = vrot.slane %v16297_v8, %v24475_v44  ;;  %v16288_v56 = vrot.slane %v16280_v21, %v24475_v44  ;;  %v16304_v13 = vrot.slane %v16296_v17, %v24475_v44 }
0x4158   : > { %v15045_v14 = vrot.slane %v15038_v5, %v24468_v62  ;;  %v15053_v20 = vrot.slane %v20452_v29, %v24468_v62  ;;  %v15068_v46 = vrot.slane %v15061_v60, %v24468_v62  ;;  %v21840_v17 = vpack.c.bf16 %v20481_v15, %v20480_v33  ;;  %v20466_v5 = vld [vmem:[#allocation25 + $0x1] ss:$0 sm:$0xff]  ;;  %v20470_v33 = vld [vmem:[#allocation28 + $0x1] ss:$0 sm:$0xff] }
0x4159   : > { %v16314_v18 = vcombine.low %v16295_v3, %v16311_v59  ;;  %v16313_v54 = vcombine.high %v16288_v56, %v16304_v13  ;;  %v16312_v47 = vcombine.low %v16288_v56, %v16304_v13  ;;  %v16315_v30 = vcombine.high %v16295_v3, %v16311_v59  ;;  %v20482_v13 = vld [vmem:[#allocation31 + $0x1] ss:$0 sm:$0xff] }
0x415a   : > { %v15069_v39 = vcombine.low %v15045_v14, %v15053_v20  ;;  %v15085_v48 = vcombine.low %v15060_v22, %v15068_v46  ;;  %v15070_v24 = vcombine.high %v15045_v14, %v15053_v20  ;;  %v15086_v9 = vcombine.high %v15060_v22, %v15068_v46 }
0x415b   : > { %16321 = vrot.lane.b32.xlu0 %v16314_v18, %s26282_s8  ;;  %16317 = vrot.lane.b32.xlu1 %v16313_v54, %s26293_s11 }
0x415c   : > { %v15077_v31 = vrot.slane %v15069_v39, %v24475_v44  ;;  %v15093_v26 = vrot.slane %v15085_v48, %v24475_v44  ;;  %v15084_v34 = vrot.slane %v15070_v24, %v24475_v44  ;;  %v15100_v37 = vrot.slane %v15086_v9, %v24475_v44  ;;  %v20471_v9 = vld [vmem:[%s26295_s12 + $0x20] sm:$0xff] }
0x415e   : > { %v15102_v4 = vcombine.high %v15077_v31, %v15093_v26  ;;  %v15101_v27 = vcombine.low %v15077_v31, %v15093_v26  ;;  %v15103_v55 = vcombine.low %v15084_v34, %v15100_v37  ;;  %v15104_v40 = vcombine.high %v15084_v34, %v15100_v37  ;;  %v20474_v26 = vld [vmem:[%s26295_s12 + $0x38] sm:$0xff] }
0x415f   : > { %v21828_v31 = vpack.c.bf16 %v20472_v42, %v20471_v9  ;;  %v21832_v38 = vpack.c.bf16 %v20474_v26, %v20473_v28 }
0x4160   : > { %15106 = vrot.lane.b32.xlu1 %v15102_v4, %s26293_s11 }
0x4161   : > { %21829 = vmatprep.subr.bf16.mxu1 %v21828_v31 }
0x4162   : > { %21831 = vmatpush3.bf16.msra.mxu1 %v21828_v31 }
0x4163   : > { %21833 = vmatprep.subr.bf16.mxu1 %v21832_v38 }
0x4164   : > { %15110 = vrot.lane.b32.xlu1 %v15103_v55, %s26282_s8 }
0x4166   : > { %21835 = vmatpush3.bf16.msra.mxu1 %v21832_v38 }
0x4167   : > { %21536 = vmatprep.subr.mxu1 %v23502_v12 }
0x4168   : > { %16325 = vrot.lane.b32.xlu1 %v16315_v30, %s26281_s3 }
0x416c   : > { %15114 = vrot.lane.b32.xlu1 %v15104_v40, %s26281_s3 }
0x41cd   : > { %v16318_v35 = vpop.permute.xlu1 %16317  ;;  %v16322_v0 = vpop.permute.xlu0 %16321 }
0x41ce   : > { %v16328_v57 = vsel %vm1985_vm0, %v16312_v47, %v16318_v35 }
0x41cf   : > { %v16329_v11 = vsel %vm3440_vm9, %v16328_v57, %v16322_v0 }
0x41d2   : > { %v15107_v19 = vpop.permute.xlu1 %15106 }
0x41d3   : > { %v15117_v61 = vsel %vm1985_vm0, %v15101_v27, %v15107_v19 }
0x41d6   : > { %v15111_v41 = vpop.permute.xlu1 %15110 }
0x41d7   : > { %v15118_v1 = vsel %vm3440_vm9, %v15117_v61, %v15111_v41 }
0x41da   : > { %v16326_v58 = vpop.permute.xlu1 %16325 }
0x41db   : > { %v16330_v32 = vsel %vm3442_vm10, %v16329_v11, %v16326_v58  ;;  %v20469_v58 = vld [vmem:[#allocation27 + $0x1] ss:$0 sm:$0xff] }
0x41dc   : > { %v16332_v10 = vrot.slane %v16330_v32, 2 }
0x41de   : > { %v15115_v2 = vpop.permute.xlu1 %15114 }
0x41df   : > { %v15119_v8 = vsel %vm3442_vm10, %v15118_v1, %v15115_v2 }
0x41e0   : > { %v16334_v21 = vsel %vm10674_vm5, %v15119_v8, %v16332_v10 }
0x41e1   : > { %21511 = vmatprep.mubr.msk.f32.mxu0 %vm2075_vm1, %v16334_v21 }
0x41e2   : > { %21512 = vmatmul.mubr.msk.f32.vlgmr.msra.gmra.mrb[98].mxu0 %vm2075_vm1, %v16332_v10 }
0x41e3   : > { %21839 = vmatpush3.bf16.msra.mxu0 %v21836_v51  ;;  %21533 = vmatprep.mubr.msk.f32.mxu0 %vm2075_vm1, %v25197_v49 }
0x41e4   : > { %21841 = vmatprep.subr.bf16.mxu0 %v21840_v17 }
0x41e7   : > { %21843 = vmatpush3.bf16.msra.mxu0 %v21840_v17 }
0x41e8   : > { %21546 = vmatprep.subr.mxu0 %v23502_v12 }
0x41ea   : > { %21534 = vmatmul.mubr.msk.f32.vlgmr.msra.gmra.mrb[100].mxu0 %vm2075_vm1, %v25199_v63 }
0x41eb   : > { %21548 = vmatprep.mubr.msk.f32.mxu0 %vm23503_vm6, %v23502_v12 }
0x42b5   : > { %v21513_v29 = vpop.f32.mrb[98].mxu0 }
0x42b6   : > { %v16418_v22 = vadd.f32 %v21513_v29, %v20466_v5  ;;  %v16412_v60 = vpop.f32.mrb[99].mxu0  ;;  %v20475_v29 = vld [vmem:[#allocation30 + $0x1] ss:$0 sm:$0xff] }
0x42b7   : > { %v16413_v3 = vadd.f32 %v20466_v5, %v16412_v60 }
0x42b8   : > { %v25762_v59 = vadd.f32 %v16418_v22, %v25484_v52 }
0x42b9   : > { %v25765_v49 = vadd.f32 %v16413_v3, %v25487_v25 }
0x42ba   : > { %v16430_v56 = vsel %vm8103_vm2, %v25762_v59, 0.0 }
0x42bb   : > { %16431 = vadd.xlane.f32.xlu1 %v16430_v56  ;;  %v16427_v63 = vsel %vm2075_vm1, %v25765_v49, 0.0 }
0x42bc   : > { %16428 = vadd.xlane.f32.xlu0 %v16427_v63 }
0x42bd   : > { %v21535_v53 = vpop.f32.mrb[100].mxu0 }
0x42be   : > { %v25771_v16 = vadd.f32 %v21535_v53, %v20482_v13  ;;  %v16656_v14 = vpop.f32.mrb[101].mxu0 }
0x42bf   : > { %v25773_v20 = vadd.f32 %v20482_v13, %v16656_v14 }
0x42cc   : > { %16683 = vrot.lane.b32.xlu1 %v25773_v20, %s26287_s0 }
0x42d0   : > { %16686 = vrot.lane.b32.xlu1 %v25773_v20, %s26289_s4 }
0x4348   : > { %v16432_v52 = vpop.xlane.xlu1 %16431 }
0x4349   : > { %v16434_v25 = vmul.f32 0.03125, %v16432_v52  ;;  %v16429_v46 = vpop.xlane.xlu0 %16428 }
0x434a   : > { %v16433_v43 = vmul.f32 0.03125, %v16429_v46 }
0x434b   : > { %v16436_v18 = vsub.f32 %v25762_v59, %v16434_v25 }
0x434c   : > { %v16435_v54 = vsub.f32 %v25765_v49, %v16433_v43  ;;  %v16684_v13 = vpop.permute.xlu1 %16683 }
0x434d   : > { %v16438_v48 = vmul.f32 %v16436_v18, %v16436_v18  ;;  %v16454_v1 = vmul.f32 %v20469_v58, %v16436_v18 }
0x434e   : > { %v16437_v47 = vmul.f32 %v16435_v54, %v16435_v54  ;;  %v16453_v32 = vmul.f32 %v20469_v58, %v16435_v54 }
0x434f   : > { %v16442_v24 = vsel %vm8103_vm2, %v16438_v48, 0.0 }
0x4350   : > { %v16439_v39 = vsel %vm2075_vm1, %v16437_v47, 0.0  ;;  %v16687_v63 = vpop.permute.xlu1 %16686 }
0x4351   : > { %16440 = vadd.xlane.f32.xlu0 %v16439_v39 }
0x4355   : > { %16443 = vadd.xlane.f32.xlu0 %v16442_v24 }
0x436b   : > { %16680 = vrot.lane.b32.xlu0 %v25773_v20, %s26288_s1 }
0x4389   : > { %16689 = vxpose.xlu0.b32.start.end [1/1] (short) (narrow) %v25773_v20, 8 }
0x43de   : > { %v16441_v4 = vpop.xlane.xlu0 %16440 }
0x43df   : > { %v16445_v34 = vmul.f32 0.032258064, %v16441_v4 }
0x43e1   : > { %22481 = vrsqrt.f32 %v16445_v34  ;;  %vm16457_vm15 = vcmp.eq.f32.partialorder %v16445_v34, inf  ;;  %v16460_v51 = vand.u32 2147483648, %v16445_v34  ;;  %vm16459_vm11 = vcmp.eq.f32.partialorder %v16445_v34, 0.0 }
0x43e2   : > { %v16444_v37 = vpop.xlane.xlu0 %16443 }
0x43e3   : > { %v16446_v27 = vmul.f32 0.032258064, %v16444_v37 }
0x43e5   : > { %22483 = vrsqrt.f32 %v16446_v27  ;;  %vm16464_vm12 = vcmp.eq.f32.partialorder %v16446_v27, inf  ;;  %v16467_v41 = vand.u32 2147483648, %v16446_v27  ;;  %vm16466_vm8 = vcmp.eq.f32.partialorder %v16446_v27, 0.0 }
0x43e6   : > { %v25795_v17 = vpop.permute.xlu0 %16680 }
0x43eb   : > { %v22482_v36 = vpop.eup %22481 }
0x43ec   : > { %v16456_v45 = vmul.f32 %v22482_v36, %v16445_v34 }
0x43ee   : > { %v16458_v55 = vsel %vm16457_vm15, %v16445_v34, %v16456_v45 }
0x43ef   : > { %v22484_v30 = vpop.eup %22483  ;;  %v16461_v40 = vsel %vm16459_vm11, %v16460_v51, %v16458_v55  ;;  %vm26334_vm11 = vcmask 523264  }
0x43f0   : > { %v16463_v35 = vmul.f32 %v22484_v30, %v16446_v27  ;;  %v16469_v19 = vadd.f32 1e-06, %v16461_v40 }
0x43f2   : > { %v16465_v57 = vsel %vm16464_vm12, %v16446_v27, %v16463_v35  ;;  %22485 = vrcp.f32 %v16469_v19  ;;  %vm26335_vm12 = vmmov %vm26334_vm11 }
0x43f3   : > { %v16468_v0 = vsel %vm16466_vm8, %v16467_v41, %v16465_v57 }
0x43f4   : > { %v16470_v11 = vadd.f32 1e-06, %v16468_v0 }
0x43f6   : > { %22487 = vrcp.f32 %v16470_v11 }
0x43fc   : > { %v22486_v61 = vpop.eup %22485 }
0x43fd   : > { %v16472_v15 = vmul.f32 %v22486_v61, %v16453_v32 }
0x43ff   : > { %v16481_v10 = vadd.f32 %v20470_v33, %v16472_v15 }
0x4400   : > { %v22488_v2 = vpop.eup %22487 }
0x4401   : > { %v16474_v8 = vmul.f32 %v22488_v2, %v16454_v1  ;;  %21522 = vmatprep.mubr.msk.f32.mxu1 %vm2075_vm1, %v16481_v10 }
0x4403   : > { %v16482_v21 = vadd.f32 %v20470_v33, %v16474_v8 }
0x4405   : > { %21523 = vmatmul.mubr.msk.f32.vlgmr.msra.gmra.mrb[98].mxu1 %vm2075_vm1, %v16482_v21 }
0x4406   : > { %21538 = vmatprep.mubr.msk.f32.mxu1 %vm23503_vm6, %v23502_v12 }
0x4409   : > { %v16705_v5 = vpop.trf.xlu0 }
0x440a   : > { %21537 = vmatpush3.msra.mxu1 %v16705_v5 }
0x440b   : > { %21541 = vmatprep.subr.mxu1 %v23502_v12 }
0x44d8   : > { %v21524_v22 = vpop.f32.mrb[98].mxu1 }
0x44d9   : > { %v25798_v60 = vadd.f32 %v21524_v22, %v20475_v29  ;;  %v16568_v3 = vpop.f32.mrb[99].mxu1 }
0x44da   : > { %v25800_v56 = vadd.f32 %v20475_v29, %v16568_v3 }
0x44dc   : > { %16675 = vrot.lane.b32.xlu0 %v25800_v56, %s26287_s0  ;;  %16673 = vrot.lane.b32.xlu1 %v25800_v56, %s26288_s1 }
0x44dd   : > { %21539 = vmatmul.mubr.msk.f32.vlgmr.msra.gmra.mrb[100].mxu1 %vm1985_vm0, %v25800_v56 }
0x44de   : > { %21543 = vmatprep.mubr.msk.f32.mxu1 %vm23503_vm6, %v23502_v12 }
0x44e0   : > { %16677 = vrot.lane.b32.xlu1 %v25800_v56, %s26289_s4 }
0x44fa   : > { %16753 = vxpose.xlu0.b32.start.end [1/1] (short) (narrow) %v16684_v13, 8 }
0x44fe   : > { %16785 = vxpose.xlu0.b32.start.end [1/1] (short) (narrow) %v16687_v63, 8 }
0x4509   : > { %16721 = vxpose.xlu1.b32.start.end [1/1] (short) (narrow) %v25795_v17, 8 }
0x454e   : > { %v25813_v53 = vpop.permute.xlu0 %16675  ;;  %v25820_v52 = vpop.permute.xlu1 %16673 }
0x454f   : > { %v18089_v33 = vrot.slane %v25820_v52, 6  ;;  %v18164_v5 = vrot.slane %v25813_v53, 6 }
0x4552   : > { %v25822_v25 = vpop.permute.xlu1 %16677 }
0x457a   : > { %v16769_v14 = vpop.trf.xlu0 }
0x457b   : > { %21547 = vmatpush3.msra.mxu0 %v16769_v14 }
0x457c   : > { %21549 = vmatmul.mubr.msk.f32.vlgmr.msra.gmra.mrb[102].mxu0 %vm1985_vm0, %v25813_v53  ;;  %21556 = vmatprep.subr.mxu0 %v23502_v12 }
0x457d   : > { %21558 = vmatprep.mubr.msk.f32.mxu0 %vm23503_vm6, %v23502_v12 }
0x457e   : > { %v16801_v43 = vpop.trf.xlu0 }
0x4589   : > { %v16737_v46 = vpop.trf.xlu1 }
0x458a   : > { %21542 = vmatpush3.msra.mxu1 %v16737_v46 }
0x458b   : > { %21544 = vmatmul.mubr.msk.f32.vlgmr.msra.gmra.mrb[102].mxu1 %vm1985_vm0, %v25820_v52  ;;  %21551 = vmatprep.subr.mxu1 %v23502_v12 }
0x458c   : > { %21552 = vmatpush3.msra.mxu1 %v16801_v43  ;;  %21553 = vmatprep.mubr.msk.f32.mxu1 %vm23503_vm6, %v23502_v12 }
0x458d   : > { %21561 = vmatprep.subr.mxu1 %v23502_v12 }
0x458f   : > { %21554 = vmatmul.mubr.msk.f32.vlgmr.msra.gmra.mrb[104].mxu1 %vm1985_vm0, %v25822_v25 }
0x4590   : > { %21563 = vmatprep.mubr.msk.f32.mxu1 %vm23503_vm6, %v23502_v12 }
0x45b0   : > { %v16885_v18 = vpop.f32.mrb[100].mxu1 }
0x45b1   : > { %v17105_v54 = vmul.f32 0.35355338, %v16885_v18  ;;  %v21540_v47 = vpop.f32.mrb[101].mxu1 }
0x45b3   : > { %v17109_v39 = vsel %vm1962_vm7, 1e-09, %v17105_v54 }
0x45b4   : > { %v17113_v48 = vsel %vm11452_vm13, %v17109_v39, -inf }
0x45b5   : > { %17114 = vmax.xlane.f32.xlu0 %v17113_v48 }
0x4642   : > { %v17115_v23 = vpop.xlane.xlu0 %17114 }
0x464f   : > { %v17029_v24 = vpop.f32.mrb[102].mxu0 }
0x4650   : > { %v17107_v9 = vmul.f32 0.35355338, %v17029_v24  ;;  %v21550_v42 = vpop.f32.mrb[103].mxu0 }
0x4652   : > { %v17111_v28 = vsel %vm1962_vm7, 1e-09, %v17107_v9 }
0x4653   : > { %v17119_v31 = vsel %vm11452_vm13, %v17111_v28, -inf }
0x4654   : > { %17120 = vmax.xlane.f32.xlu0 %v17119_v31 }
0x465e   : > { %v16957_v26 = vpop.f32.mrb[102].mxu1 }
0x465f   : > { %v17106_v38 = vmul.f32 0.35355338, %v16957_v26  ;;  %v21545_v4 = vpop.f32.mrb[103].mxu1 }
0x4661   : > { %v17110_v34 = vsel %vm1962_vm7, 1e-09, %v17106_v38 }
0x4662   : > { %v17101_v37 = vpop.f32.mrb[104].mxu1  ;;  %v17116_v27 = vsel %vm11452_vm13, %v17110_v34, -inf }
0x4663   : > { %v17108_v36 = vmul.f32 0.35355338, %v17101_v37  ;;  %17117 = vmax.xlane.f32.xlu1 %v17116_v27  ;;  %v21555_v45 = vpop.f32.mrb[105].mxu1 }
0x4664   : > { %v18015_v45 = vrot.slane %v25798_v60, 6 }
0x4665   : > { %v17112_v51 = vsel %vm1962_vm7, 1e-09, %v17108_v36  ;;  %vm26330_vm7 = vcmp.eq.f32.partialorder %v24422_v50, 0.0 }
0x4666   : > { %v17122_v55 = vsel %vm11452_vm13, %v17112_v51, -inf  ;;  %vm26332_vm3 = vmmov %vm26330_vm7 }
0x4667   : > { %17123 = vmax.xlane.f32.xlu1 %v17122_v55  ;;  %vm26333_vm4 = vmmov %vm26332_vm3 }
0x466a   : > { %17157 = vrot.lane.b32.xlu0 %v25773_v20, %s26290_s5  ;;  %v17125_v20 = vsub.f32 %v17109_v39, %v17115_v23 }
0x466c   : > { %v17129_v30 = vmul.f32 1.442695, %v17125_v20 }
0x466e   : > { %17877 = vrot.lane.b32.xlu0 %v25771_v16, %s26288_s1  ;;  %22489 = vpow2.f32 %v17129_v30 }
0x4672   : > { %17883 = vrot.lane.b32.xlu0 %v25771_v16, %s26289_s4 }
0x4676   : > { %17870 = vrot.lane.b32.xlu0 %v25798_v60, %s26288_s1  ;;  %s23510_s1 = smov 32  }
0x4678   : > { %17159 = vrot.lane.b32.xlu1 %v25795_v17, %s26290_s5  ;;  %v22490_v40 = vpop.eup %22489 }
0x4679   : > { %v17137_v35 = vsel %vm11452_vm13, %v22490_v40, 0.0 }
0x467a   : > { %17872 = vrot.lane.b32.xlu0 %v25798_v60, %s26287_s0 }
0x467c   : > { %17161 = vrot.lane.b32.xlu1 %v16684_v13, %s26290_s5 }
0x4680   : > { %17163 = vrot.lane.b32.xlu1 %v16687_v63, %s26290_s5 }
0x4684   : > { %17880 = vrot.lane.b32.xlu1 %v25771_v16, %s26287_s0 }
0x4688   : > { %17874 = vrot.lane.b32.xlu1 %v25798_v60, %s26289_s4  ;;  %s23511_s4 = smov 40  }
0x4699   : > { %17138 = vadd.xlane.f32.xlu0 %v17137_v35 }
0x46e1   : > { %v17121_v19 = vpop.xlane.xlu0 %17120 }
0x46e2   : > { %v17127_v11 = vsub.f32 %v17111_v28, %v17121_v19 }
0x46e4   : > { %v17133_v1 = vmul.f32 1.442695, %v17127_v11 }
0x46e5   : > { %v17158_v41 = vpop.permute.xlu0 %17157 }
0x46e6   : > { %17169 = vxpose.xlu0.b32.start.end [1/1] (short) (narrow) %v17158_v41, 8  ;;  %v18239_v41 = vrot.slane %v25822_v25, 6 }
0x46e9   : > { %v25865_v57 = vpop.permute.xlu0 %17877 }
0x46ed   : > { %v25867_v0 = vpop.permute.xlu0 %17883 }
0x46f0   : > { %v17118_v58 = vpop.xlane.xlu1 %17117 }
0x46f1   : > { %v17126_v32 = vsub.f32 %v17110_v34, %v17118_v58  ;;  %v17871_v61 = vpop.permute.xlu0 %17870 }
0x46f2   : > { %v18090_v15 = vrot.slane %v17871_v61, 6 }
0x46f3   : > { %v17131_v10 = vmul.f32 1.442695, %v17126_v32 }
0x46f4   : > { %v25871_v2 = vsel %vm9464_vm14, %v18089_v33, %v18090_v15  ;;  %v17124_v8 = vpop.xlane.xlu1 %17123 }
0x46f5   : > { %22491 = vpow2.f32 %v17131_v10  ;;  %v17128_v21 = vsub.f32 %v17112_v51, %v17124_v8  ;;  %v17873_v17 = vpop.permute.xlu0 %17872  ;;  %v18014_v51 = vrot.slane %v25800_v56, 6 }
0x46f6   : > { %v18165_v29 = vrot.slane %v17873_v17, 6  ;;  %22493 = vpow2.f32 %v17133_v1 }
0x46f7   : > { %v17135_v22 = vmul.f32 1.442695, %v17128_v21  ;;  %v18016_v55 = vsel %vm9464_vm14, %v18014_v51, %v18015_v45 }
0x46f8   : > { %v25875_v3 = vsel %vm9464_vm14, %v18164_v5, %v18165_v29  ;;  %v17160_v13 = vpop.permute.xlu1 %17159 }
0x46f9   : > { %22495 = vpow2.f32 %v17135_v22 }
0x46fc   : > { %v17162_v63 = vpop.permute.xlu1 %17161 }
0x46fd   : > { %17233 = vxpose.xlu0.b32.start.end [1/1] (short) (narrow) %v17162_v63, 8 }
0x46ff   : > { %v22492_v14 = vpop.eup %22491 }
0x4700   : > { %v17164_v52 = vpop.permute.xlu1 %17163  ;;  %v17140_v46 = vsel %vm11452_vm13, %v22492_v14, 0.0  ;;  %v22494_v43 = vpop.eup %22493 }
0x4701   : > { %17141 = vadd.xlane.f32.xlu1 %v17140_v46  ;;  %17265 = vxpose.xlu0.b32.start.end [1/1] (short) (narrow) %v17164_v52, 8  ;;  %v17143_v18 = vsel %vm11452_vm13, %v22494_v43, 0.0 }
0x4703   : > { %v22496_v53 = vpop.eup %22495 }
0x4704   : > { %v17146_v54 = vsel %vm11452_vm13, %v22496_v53, 0.0  ;;  %v25885_v24 = vpop.permute.xlu1 %17880 }
0x4705   : > { %17144 = vadd.xlane.f32.xlu1 %v17143_v18  ;;  %17886 = vxpose.xlu0.b32.start.end [1/1] (short) (narrow) %v25771_v16, 8 }
0x4708   : > { %v17875_v42 = vpop.permute.xlu1 %17874 }
0x4709   : > { %17147 = vadd.xlane.f32.xlu1 %v17146_v54  ;;  %17918 = vxpose.xlu0.b32.start.end [1/1] (short) (narrow) %v25865_v57, 8  ;;  %v18240_v19 = vrot.slane %v17875_v42, 6 }
0x470b   : > { %v18241_v11 = vsel %vm9464_vm14, %v18239_v41, %v18240_v19  ;;  %vm26331_vm14 = vmmov %vm26330_vm7 }
0x470d   : > { %17982 = vxpose.xlu0.b32.start.end [1/1] (short) (narrow) %v25867_v0, 8 }
0x4726   : > { %v17139_v47 = vpop.xlane.xlu0 %17138 }
0x4727   : > { %22497 = vrcp.f32 %v17139_v47 }
0x4731   : > { %v22498_v39 = vpop.eup %22497 }
0x4732   : > { %v17150_v48 = vmul.f32 %v22498_v39, %v22490_v40 }
0x4734   : > { %21557 = vmatpush3.xpose.msk.msra.mxu0 %vm1985_vm0, %v17150_v48 }
0x4735   : > { %21566 = vmatprep.subr.mxu0 %v23502_v12 }
0x473c   : > { %17201 = vxpose.xlu1.b32.start.end [1/1] (short) (narrow) %v17160_v13, 8 }
0x4740   : > { %17950 = vxpose.xlu1.b32.start.end [1/1] (short) (narrow) %v25885_v24, 8 }
0x4766   : > { %v17185_v9 = vpop.trf.xlu0 }
0x4767   : > { %21559 = vmatmul.mubr.msk.f32.vlgmr.msra.gmra.mrb[104].mxu0 %vm1985_vm0, %v17185_v9 }
0x4768   : > { %21568 = vmatprep.mubr.msk.f32.mxu0 %vm23503_vm6, %v23502_v12 }
0x477d   : > { %v17249_v26 = vpop.trf.xlu0 }
0x4781   : > { %v17281_v34 = vpop.trf.xlu0 }
0x4785   : > { %v17902_v36 = vpop.trf.xlu0 }
0x4789   : > { %v17934_v30 = vpop.trf.xlu0 }
0x478d   : > { %v17998_v35 = vpop.trf.xlu0 }
0x478e   : > { %v17142_v28 = vpop.xlane.xlu1 %17141 }
0x478f   : > { %22499 = vrcp.f32 %v17142_v28 }
0x4792   : > { %v17145_v31 = vpop.xlane.xlu1 %17144 }
0x4793   : > { %22501 = vrcp.f32 %v17145_v31 }
0x4796   : > { %v17148_v23 = vpop.xlane.xlu1 %17147 }
0x4797   : > { %22503 = vrcp.f32 %v17148_v23 }
0x4799   : > { %v22500_v38 = vpop.eup %22499 }
0x479a   : > { %v17152_v4 = vmul.f32 %v22500_v38, %v22492_v14 }
0x479c   : > { %21562 = vmatpush3.xpose.msk.msra.mxu1 %vm1985_vm0, %v17152_v4 }
0x479d   : > { %v22502_v37 = vpop.eup %22501  ;;  %21571 = vmatprep.subr.mxu1 %v23502_v12 }
0x479e   : > { %v17154_v27 = vmul.f32 %v22502_v37, %v22494_v43 }
0x47a0   : > { %21567 = vmatpush3.xpose.msk.msra.mxu0 %vm1985_vm0, %v17154_v27 }
0x47a1   : > { %21576 = vmatprep.subr.mxu0 %v23502_v12  ;;  %v22504_v60 = vpop.eup %22503 }
0x47a2   : > { %v17156_v20 = vmul.f32 %v22504_v60, %v22496_v53 }
0x47a3   : > { %21569 = vmatmul.mubr.msk.f32.vlgmr.msra.gmra.mrb[106].mxu0 %vm1985_vm0, %v17249_v26 }
0x47a4   : > { %21577 = vmatpush3.msra.mxu0 %v17902_v36  ;;  %21578 = vmatprep.mubr.msk.f32.mxu0 %vm23503_vm6, %v23502_v12 }
0x47a5   : > { %21586 = vmatprep.subr.mxu0 %v23502_v12 }
0x47a7   : > { %21579 = vmatmul.mubr.msk.f32.vlgmr.msra.gmra.mrb[108].mxu0 %vm1985_vm0, %v18016_v55 }
0x47a8   : > { %21588 = vmatprep.mubr.msk.f32.mxu0 %vm23503_vm6, %v23502_v12 }
0x47bc   : > { %v17217_v56 = vpop.trf.xlu1 }
0x47bd   : > { %21564 = vmatmul.mubr.msk.f32.vlgmr.msra.gmra.mrb[106].mxu1 %vm1985_vm0, %v17217_v56 }
0x47be   : > { %21572 = vmatpush3.xpose.msk.msra.mxu1 %vm1985_vm0, %v17156_v20  ;;  %21573 = vmatprep.mubr.msk.f32.mxu1 %vm23503_vm6, %v23502_v12 }
0x47bf   : > { %21581 = vmatprep.subr.mxu1 %v23502_v12 }
0x47c0   : > { %v17966_v40 = vpop.trf.xlu1 }
0x47c1   : > { %21574 = vmatmul.mubr.msk.f32.vlgmr.msra.gmra.mrb[108].mxu1 %vm1985_vm0, %v17281_v34  ;;  %21587 = vmatpush3.msra.mxu0 %v17966_v40 }
0x47c2   : > { %21589 = vmatmul.mubr.msk.f32.vlgmr.msra.gmra.mrb[110].mxu0 %vm1985_vm0, %v25875_v3  ;;  %21582 = vmatpush3.msra.mxu1 %v17934_v30 }
0x47c3   : > { %21583 = vmatprep.mubr.msk.f32.mxu1 %vm23503_vm6, %v23502_v12  ;;  %21591 = vmatprep.subr.mxu1 %v23502_v12 }
0x47c4   : > { %21596 = vmatprep.subr.mxu0 %v23502_v12  ;;  %21598 = vmatprep.mubr.msk.f32.mxu0 %vm23503_vm6, %v23502_v12 }
0x47c5   : > { %21584 = vmatmul.mubr.msk.f32.vlgmr.msra.gmra.mrb[110].mxu1 %vm1985_vm0, %v25871_v2 }
0x47c6   : > { %21592 = vmatpush3.msra.mxu1 %v17998_v35  ;;  %21593 = vmatprep.mubr.msk.f32.mxu1 %vm23503_vm6, %v23502_v12 }
0x47c7   : > { %21601 = vmatprep.subr.mxu1 %v23502_v12 }
0x47c9   : > { %21594 = vmatmul.mubr.msk.f32.vlgmr.msra.gmra.mrb[112].mxu1 %vm1985_vm0, %v18241_v11 }
0x47ca   : > { %21603 = vmatprep.mubr.msk.f32.mxu1 %vm23503_vm6, %v23502_v12 }
0x483a   : > { %v25929_v58 = vpop.f32.mrb[104].mxu0 }
0x483b   : > { %v21560_v32 = vpop.f32.mrb[105].mxu0 }
0x4876   : > { %v25931_v61 = vpop.f32.mrb[106].mxu0 }
0x4877   : > { %v21570_v33 = vpop.f32.mrb[107].mxu0 }
0x487a   : > { %v18085_v25 = vpop.f32.mrb[108].mxu0 }
0x487b   : > { %v18314_v15 = vmul.f32 0.35355338, %v18085_v25  ;;  %v21580_v1 = vpop.f32.mrb[109].mxu0 }
0x487d   : > { %v18318_v10 = vsel %vm26330_vm7, 1e-09, %v18314_v15 }
0x487e   : > { %v18322_v2 = vsel %vm11452_vm13, %v18318_v10, -inf }
0x487f   : > { %18323 = vmax.xlane.f32.xlu1 %v18322_v2 }
0x4890   : > { %v17445_v8 = vpop.f32.mrb[106].mxu1 }
0x4891   : > { %v21565_v21 = vpop.f32.mrb[107].mxu1 }
0x4894   : > { %v25936_v17 = vpop.f32.mrb[108].mxu1 }
0x4895   : > { %v21575_v5 = vpop.f32.mrb[109].mxu1  ;;  %v18235_v29 = vpop.f32.mrb[110].mxu0 }
0x4896   : > { %v18316_v22 = vmul.f32 0.35355338, %v18235_v29  ;;  %v21590_v3 = vpop.f32.mrb[111].mxu0 }
0x4898   : > { %v18320_v13 = vsel %vm26331_vm14, 1e-09, %v18316_v22  ;;  %v18160_v63 = vpop.f32.mrb[110].mxu1 }
0x4899   : > { %v18315_v14 = vmul.f32 0.35355338, %v18160_v63  ;;  %v21585_v52 = vpop.f32.mrb[111].mxu1  ;;  %v18328_v46 = vsel %vm11452_vm13, %v18320_v13, -inf }
0x489a   : > { %18329 = vmax.xlane.f32.xlu1 %v18328_v46 }
0x489b   : > { %v18319_v43 = vsel %vm26332_vm3, 1e-09, %v18315_v14  ;;  %vm19741_vm3 = vcmask 326656  }
0x489c   : > { %v18310_v18 = vpop.f32.mrb[112].mxu1  ;;  %v18325_v53 = vsel %vm11452_vm13, %v18319_v43, -inf }
0x489d   : > { %v18317_v54 = vmul.f32 0.35355338, %v18310_v18  ;;  %18326 = vmax.xlane.f32.xlu0 %v18325_v53  ;;  %v21595_v47 = vpop.f32.mrb[113].mxu1 }
0x489f   : > { %v18321_v39 = vsel %vm26333_vm4, 1e-09, %v18317_v54  ;;  %vm19743_vm4 = vcmask 386048  }
0x48a0   : > { %v18331_v48 = vsel %vm11452_vm13, %v18321_v39, -inf }
0x48a1   : > { %18332 = vmax.xlane.f32.xlu1 %v18331_v48 }
0x48b2   : > { %18368 = vrot.lane.b32.xlu1 %v25865_v57, %s26290_s5 }
0x48b3   : > { %18366 = vrot.lane.b32.xlu0 %v25771_v16, %s26290_s5 }
0x48b6   : > { %18370 = vrot.lane.b32.xlu1 %v25885_v24, %s26290_s5 }
0x48ba   : > { %18372 = vrot.lane.b32.xlu1 %v25867_v0, %s26290_s5  ;;  %s20227_s5 = sshll.u32 %s26339_s2, 1 }
0x48bb   : > { %s1904_s13 = scalar_lea.vmem %s23760_s6, %s20227_s5 }
0x490c   : > { %v18324_v9 = vpop.xlane.xlu1 %18323 }
0x490d   : > { %v18334_v42 = vsub.f32 %v18318_v10, %v18324_v9 }
0x490f   : > { %v18338_v28 = vmul.f32 1.442695, %v18334_v42 }
0x4911   : > { %22505 = vpow2.f32 %v18338_v28 }
0x491b   : > { %v22506_v50 = vpop.eup %22505 }
0x491c   : > { %v18346_v31 = vsel %vm11452_vm13, %v22506_v50, 0.0 }
0x491d   : > { %18347 = vadd.xlane.f32.xlu0 %v18346_v31 }
0x4927   : > { %v18330_v26 = vpop.xlane.xlu1 %18329 }
0x4928   : > { %v18336_v38 = vsub.f32 %v18320_v13, %v18330_v26 }
0x492a   : > { %v18342_v57 = vmul.f32 1.442695, %v18336_v38  ;;  %v18327_v4 = vpop.xlane.xlu0 %18326 }
0x492b   : > { %v18335_v34 = vsub.f32 %v18319_v43, %v18327_v4 }
0x492c   : > { %22507 = vpow2.f32 %v18342_v57 }
0x492d   : > { %v18340_v16 = vmul.f32 1.442695, %v18335_v34 }
0x492e   : > { %v18333_v37 = vpop.xlane.xlu1 %18332  ;;  %v18367_v20 = vpop.permute.xlu0 %18366 }
0x492f   : > { %22509 = vpow2.f32 %v18340_v16  ;;  %v18337_v24 = vsub.f32 %v18321_v39, %v18333_v37 }
0x4931   : > { %v18344_v27 = vmul.f32 1.442695, %v18337_v24 }
0x4932   : > { %v18369_v60 = vpop.permute.xlu1 %18368 }
0x4933   : > { %22511 = vpow2.f32 %v18344_v27 }
0x4936   : > { %v22508_v0 = vpop.eup %22507  ;;  %v18371_v56 = vpop.permute.xlu1 %18370 }
0x4937   : > { %v18352_v36 = vsel %vm11452_vm13, %v22508_v0, 0.0 }
0x4938   : > { %18353 = vadd.xlane.f32.xlu0 %v18352_v36 }
0x4939   : > { %v22510_v45 = vpop.eup %22509 }
0x493a   : > { %v18349_v51 = vsel %vm11452_vm13, %v22510_v45, 0.0  ;;  %v18373_v30 = vpop.permute.xlu1 %18372 }
0x493b   : > { %18350 = vadd.xlane.f32.xlu1 %v18349_v51 }
0x493d   : > { %v22512_v55 = vpop.eup %22511 }
0x493e   : > { %v18355_v23 = vsel %vm11452_vm13, %v22512_v55, 0.0 }
0x493f   : > { %18356 = vadd.xlane.f32.xlu0 %v18355_v23 }
0x496c   : > { %18378 = vxpose.xlu0.b32.start.end [1/1] (short) (narrow) %v18367_v20, 8 }
0x496e   : > { %18410 = vxpose.xlu1.b32.start.end [1/1] (short) (narrow) %v18369_v60, 8 }
0x4970   : > { %18442 = vxpose.xlu0.b32.start.end [1/1] (short) (narrow) %v18371_v56, 8 }
0x4972   : > { %17601 = vxpose.xlu1.b32.start.end [1/1] (short) (narrow) %v25929_v58, 8 }
0x4974   : > { %18474 = vxpose.xlu0.b32.start.end [1/1] (short) (narrow) %v18373_v30, 8 }
0x4978   : > { %17633 = vxpose.xlu0.b32.start.end [1/1] (short) (narrow) %v17445_v8, 8 }
0x49aa   : > { %v18348_v40 = vpop.xlane.xlu0 %18347 }
0x49ab   : > { %22513 = vrcp.f32 %v18348_v40 }
0x49b5   : > { %v22514_v35 = vpop.eup %22513 }
0x49b6   : > { %v18359_v19 = vmul.f32 %v22514_v35, %v22506_v50 }
0x49b8   : > { %21597 = vmatpush3.xpose.msk.msra.mxu0 %vm1985_vm0, %v18359_v19 }
0x49b9   : > { %21606 = vmatprep.subr.mxu0 %v23502_v12 }
0x49c5   : > { %v18354_v58 = vpop.xlane.xlu0 %18353 }
0x49c8   : > { %v18351_v41 = vpop.xlane.xlu1 %18350 }
0x49c9   : > { %22515 = vrcp.f32 %v18351_v41 }
0x49ca   : > { %22517 = vrcp.f32 %v18354_v58 }
0x49cc   : > { %v18357_v33 = vpop.xlane.xlu0 %18356 }
0x49cd   : > { %22519 = vrcp.f32 %v18357_v33 }
0x49d3   : > { %v22516_v11 = vpop.eup %22515 }
0x49d4   : > { %v18361_v32 = vmul.f32 %v22516_v11, %v22510_v45  ;;  %v22518_v25 = vpop.eup %22517 }
0x49d5   : > { %v18363_v1 = vmul.f32 %v22518_v25, %v22508_v0 }
0x49d6   : > { %21602 = vmatpush3.xpose.msk.msra.mxu1 %vm1985_vm0, %v18361_v32 }
0x49d7   : > { %21611 = vmatprep.subr.mxu1 %v23502_v12  ;;  %v22520_v15 = vpop.eup %22519 }
0x49d8   : > { %v18365_v2 = vmul.f32 %v22520_v15, %v22512_v55 }
0x49ec   : > { %v18394_v10 = vpop.trf.xlu0 }
0x49ed   : > { %21599 = vmatmul.mubr.msk.f32.vlgmr.msra.gmra.mrb[112].mxu0 %vm1985_vm0, %v18394_v10 }
0x49ee   : > { %21607 = vmatpush3.xpose.msk.msra.mxu0 %vm1985_vm0, %v18363_v1  ;;  %v18426_v8 = vpop.trf.xlu1  ;;  %21608 = vmatprep.mubr.msk.f32.mxu0 %vm23503_vm6, %v23502_v12 }
0x49ef   : > { %21604 = vmatmul.mubr.msk.f32.vlgmr.msra.gmra.mrb[114].mxu1 %vm1985_vm0, %v18426_v8 }
0x49f0   : > { %21612 = vmatpush3.xpose.msk.msra.mxu1 %vm1985_vm0, %v18365_v2  ;;  %v18458_v21 = vpop.trf.xlu0  ;;  %21613 = vmatprep.mubr.msk.f32.mxu1 %vm23503_vm6, %v23502_v12 }
0x49f1   : > { %21609 = vmatmul.mubr.msk.f32.vlgmr.msra.gmra.mrb[114].mxu0 %vm1985_vm0, %v18458_v21 }
0x49f2   : > { %v17617_v43 = vpop.trf.xlu1 }
0x49f4   : > { %v18490_v5 = vpop.trf.xlu0 }
0x49f5   : > { %21614 = vmatmul.mubr.msk.f32.vlgmr.msra.gmra.mrb[116].mxu1 %vm1985_vm0, %v18490_v5 }
0x49f8   : > { %v17649_v18 = vpop.trf.xlu0 }
0x4ac0   : > { %v18578_v29 = vpop.f32.mrb[112].mxu0 }
0x4ac1   : > { %18810 = vxpose.xlu1.b32.start.end [1/1] (short) (narrow) %v18578_v29, 8  ;;  %v21600_v22 = vpop.f32.mrb[113].mxu0 }
0x4ac2   : > { %v18654_v3 = vpop.f32.mrb[114].mxu1 }
0x4ac3   : > { %18842 = vxpose.xlu0.b32.start.end [1/1] (short) (narrow) %v18654_v3, 8  ;;  %v21605_v13 = vpop.f32.mrb[115].mxu1 }
0x4ac4   : > { %v18730_v63 = vpop.f32.mrb[114].mxu0 }
0x4ac5   : > { %18874 = vxpose.xlu1.b32.start.end [1/1] (short) (narrow) %v18730_v63, 8  ;;  %v21610_v14 = vpop.f32.mrb[115].mxu0 }
0x4ac8   : > { %v18806_v52 = vpop.f32.mrb[116].mxu1 }
0x4ac9   : > { %17665 = vxpose.xlu1.b32.start.end [1/1] (short) (narrow) %v25931_v61, 8  ;;  %18906 = vxpose.xlu0.b32.start.end [1/1] (short) (narrow) %v18806_v52, 8  ;;  %v21615_v46 = vpop.f32.mrb[117].mxu1  ;;  %v20485_v52 = vld [vmem:[%s26296_s14 + $0x20] sm:$0xff] }
0x4aca   : > { %v20486_v46 = vld [vmem:[%s26296_s14 + $0x28] sm:$0xff] }
0x4acd   : > { %17697 = vxpose.xlu0.b32.start.end [1/1] (short) (narrow) %v25936_v17, 8 }
0x4b41   : > { %v18826_v53 = vpop.trf.xlu1 }
0x4b43   : > { %v18858_v54 = vpop.trf.xlu0 }
0x4b45   : > { %v18890_v47 = vpop.trf.xlu1 }
0x4b46   : > { %v18938_v39 = vcombine.low %v18826_v53, %v18890_v47  ;;  %v18939_v48 = vcombine.high %v18826_v53, %v18890_v47 }
0x4b48   : > { %v18946_v31 = vrot.slane %v18938_v39, %v24468_v62  ;;  %v18953_v26 = vrot.slane %v18939_v48, %v24468_v62 }
0x4b49   : > { %v18922_v9 = vpop.trf.xlu0  ;;  %v17681_v42 = vpop.trf.xlu1 }
0x4b4a   : > { %v18954_v28 = vcombine.low %v18858_v54, %v18922_v9  ;;  %v18955_v50 = vcombine.high %v18858_v54, %v18922_v9  ;;  %v17729_v17 = vcombine.low %v17617_v43, %v17681_v42  ;;  %v17730_v57 = vcombine.high %v17617_v43, %v17681_v42 }
0x4b4b   : > { %v21844_v54 = vpack.c.bf16 %v20486_v46, %v20485_v52  ;;  %v19232_v52 = vld [vmem:[#allocation37 + $0x28] sm:$0xff]  ;;  %v19233_v46 = vld [vmem:[#allocation37 + $0x30] sm:$0xff] }
0x4b4c   : > { %v18962_v61 = vrot.slane %v18954_v28, %v24468_v62  ;;  %v18969_v38 = vrot.slane %v18955_v50, %v24468_v62  ;;  %v17737_v55 = vrot.slane %v17729_v17, %v24468_v62  ;;  %v17744_v23 = vrot.slane %v17730_v57, %v24468_v62 }
0x4b4d   : > { %v17713_v4 = vpop.trf.xlu0  ;;  %21845 = vmatprep.subr.bf16.mxu0 %v21844_v54 }
0x4b4e   : > { %v18970_v34 = vcombine.low %v18946_v31, %v18962_v61  ;;  %v18971_v16 = vcombine.high %v18946_v31, %v18962_v61  ;;  %v18986_v37 = vcombine.low %v18953_v26, %v18969_v38  ;;  %v17745_v24 = vcombine.low %v17649_v18, %v17713_v4  ;;  %v20487_v31 = vld [vmem:[%s26296_s14 + $0x30] sm:$0xff]  ;;  %v20488_v26 = vld [vmem:[%s26296_s14 + $0x38] sm:$0xff]  ;;  %21847 = vmatpush3.bf16.msra.mxu0 %v21844_v54  ;;  %v20520_v54 = vld [vmem:[%s26297_s15 + $0x40] sm:$0xff] }
0x4b4f   : > { %v17746_v27 = vcombine.high %v17649_v18, %v17713_v4  ;;  %v21848_v17 = vpack.c.bf16 %v20488_v26, %v20487_v31 }
0x4b50   : > { %v18978_v0 = vrot.slane %v18970_v34, %v24475_v44  ;;  %v18985_v36 = vrot.slane %v18971_v16, %v24475_v44  ;;  %v18993_v45 = vrot.slane %v18986_v37, %v24475_v44  ;;  %v17753_v51 = vrot.slane %v17745_v24, %v24468_v62 }
0x4b51   : > { %v17760_v60 = vrot.slane %v17746_v27, %v24468_v62  ;;  %21849 = vmatprep.subr.bf16.mxu0 %v21848_v17 }
0x4b52   : > { %v18996_v20 = vcombine.low %v18978_v0, %v18985_v36  ;;  %v20514_v56 = vcombine.high %v18978_v0, %v18985_v36  ;;  %v19019_v30 = vcombine.high %v18993_v45, %v23502_v12  ;;  %v17761_v40 = vcombine.low %v17737_v55, %v17753_v51  ;;  %21851 = vmatpush3.bf16.msra.mxu0 %v21848_v17 }
0x4b53   : > { %v17762_v35 = vcombine.high %v17737_v55, %v17753_v51  ;;  %v17777_v19 = vcombine.low %v17744_v23, %v17760_v60  ;;  %v19018_v32 = vrot.slane %v18993_v45, %v24468_v62 }
0x4b54   : > { %v19003_v41 = vrot.slane %v18996_v20, %v24468_v62  ;;  %v19011_v11 = vrot.slane %v20514_v56, %v24468_v62  ;;  %v19026_v58 = vrot.slane %v19019_v30, %v24468_v62  ;;  %v17769_v33 = vrot.slane %v17761_v40, %v24475_v44 }
0x4b55   : > { %v17776_v25 = vrot.slane %v17762_v35, %v24475_v44  ;;  %v17784_v15 = vrot.slane %v17777_v19, %v24475_v44 }
0x4b56   : > { %v19028_v1 = vcombine.high %v19003_v41, %v19011_v11  ;;  %v19044_v10 = vcombine.high %v19018_v32, %v19026_v58  ;;  %v19027_v2 = vcombine.low %v19003_v41, %v19011_v11  ;;  %v19043_v8 = vcombine.low %v19018_v32, %v19026_v58  ;;  %v20515_v11 = vld [vmem:[#allocation33 + $0x1] ss:$0 sm:$0xff] }
0x4b57   : > { %v17787_v21 = vcombine.low %v17769_v33, %v17776_v25  ;;  %v20501_v5 = vcombine.high %v17769_v33, %v17776_v25  ;;  %v17809_v29 = vrot.slane %v17784_v15, %v24468_v62  ;;  %v17810_v22 = vcombine.high %v17784_v15, %v23502_v12 }
0x4b58   : > { %v19042_v3 = vrot.slane %v19028_v1, %v24475_v44  ;;  %v19058_v13 = vrot.slane %v19044_v10, %v24475_v44  ;;  %v19035_v63 = vrot.slane %v19027_v2, %v24475_v44  ;;  %v19051_v14 = vrot.slane %v19043_v8, %v24475_v44 }
0x4b59   : > { %v17794_v43 = vrot.slane %v17787_v21, %v24468_v62  ;;  %v17802_v18 = vrot.slane %v20501_v5, %v24468_v62  ;;  %v17817_v53 = vrot.slane %v17810_v22, %v24468_v62 }
0x4b5a   : > { %v19061_v47 = vcombine.low %v19042_v3, %v19058_v13  ;;  %v19060_v39 = vcombine.high %v19035_v63, %v19051_v14  ;;  %v19059_v48 = vcombine.low %v19035_v63, %v19051_v14  ;;  %v19062_v24 = vcombine.high %v19042_v3, %v19058_v13  ;;  %v19231_v14 = vld [vmem:[#allocation37 + $0x20] sm:$0xff] }
0x4b5b   : > { %v17818_v9 = vcombine.low %v17794_v43, %v17802_v18  ;;  %v17834_v42 = vcombine.low %v17809_v29, %v17817_v53  ;;  %v17819_v28 = vcombine.high %v17794_v43, %v17802_v18  ;;  %v17835_v50 = vcombine.high %v17809_v29, %v17817_v53  ;;  %v19234_v18 = vld [vmem:[#allocation37 + $0x38] sm:$0xff] }
0x4b5c   : > { %19068 = vrot.lane.b32.xlu0 %v19061_v47, %s26282_s8  ;;  %19064 = vrot.lane.b32.xlu1 %v19060_v39, %s26293_s11  ;;  %v21852_v43 = vpack.c.bf16 %v19232_v52, %v19231_v14  ;;  %v21856_v53 = vpack.c.bf16 %v19234_v18, %v19233_v46  ;;  %v20521_v47 = vld [vmem:[%s26297_s15 + $0x48] sm:$0xff]  ;;  %v20522_v39 = vld [vmem:[%s26297_s15 + $0x50] sm:$0xff] }
0x4b5d   : > { %v17826_v61 = vrot.slane %v17818_v9, %v24475_v44  ;;  %v17842_v38 = vrot.slane %v17834_v42, %v24475_v44  ;;  %v17833_v4 = vrot.slane %v17819_v28, %v24475_v44  ;;  %v17849_v34 = vrot.slane %v17835_v50, %v24475_v44  ;;  %v20523_v9 = vld [vmem:[%s26297_s15 + $0x58] sm:$0xff]  ;;  %v20524_v28 = vld [vmem:[%s26297_s15 + $0x60] sm:$0xff]  ;;  %v20525_v50 = vld [vmem:[%s26297_s15 + $0x68] sm:$0xff] }
0x4b5e   : > { %21853 = vmatprep.subr.bf16.mxu1 %v21852_v43  ;;  %v21864_v42 = vpack.c.bf16 %v20523_v9, %v20522_v39  ;;  %v21868_v31 = vpack.c.bf16 %v20525_v50, %v20524_v28  ;;  %v19485_v28 = vld [vmem:[%s23750_s27 + $0x8] sm:$0xff]  ;;  %v19486_v50 = vld [vmem:[%s23750_s27 + $0x10] sm:$0xff] }
0x4b5f   : > { %v17851_v57 = vcombine.high %v17826_v61, %v17842_v38  ;;  %v17850_v16 = vcombine.low %v17826_v61, %v17842_v38  ;;  %v17852_v37 = vcombine.low %v17833_v4, %v17849_v34  ;;  %v17853_v27 = vcombine.high %v17833_v4, %v17849_v34  ;;  %21855 = vmatpush3.bf16.msra.mxu1 %v21852_v43 }
0x4b60   : > { %21857 = vmatprep.subr.bf16.mxu1 %v21856_v53 }
0x4b61   : > { %17855 = vrot.lane.b32.xlu1 %v17851_v57, %s26293_s11 }
0x4b63   : > { %21859 = vmatpush3.bf16.msra.mxu1 %v21856_v53 }
0x4b65   : > { %17859 = vrot.lane.b32.xlu1 %v17852_v37, %s26282_s8 }
0x4b69   : > { %19072 = vrot.lane.b32.xlu1 %v19062_v24, %s26281_s3 }
0x4b6d   : > { %17863 = vrot.lane.b32.xlu1 %v17853_v27, %s26281_s3 }
0x4bce   : > { %v19065_v0 = vpop.permute.xlu1 %19064  ;;  %v19069_v55 = vpop.permute.xlu0 %19068 }
0x4bcf   : > { %v19075_v51 = vsel %vm1985_vm0, %v19059_v48, %v19065_v0  ;;  %v21860_v48 = vpack.c.bf16 %v20521_v47, %v20520_v54 }
0x4bd0   : > { %v19076_v23 = vsel %vm3440_vm9, %v19075_v51, %v19069_v55 }
0x4bd1   : > { %21861 = vmatprep.subr.bf16.mxu0 %v21860_v48 }
0x4bd3   : > { %v17856_v36 = vpop.permute.xlu1 %17855 }
0x4bd4   : > { %v17866_v56 = vsel %vm1985_vm0, %v17850_v16, %v17856_v36 }
0x4bd7   : > { %v17860_v45 = vpop.permute.xlu1 %17859 }
0x4bd8   : > { %v17867_v30 = vsel %vm3440_vm9, %v17866_v56, %v17860_v45  ;;  %v20519_v56 = vld [vmem:[#allocation36 + $0x1] ss:$0 sm:$0xff] }
0x4bdb   : > { %v19073_v60 = vpop.permute.xlu1 %19072 }
0x4bdc   : > { %v19077_v20 = vsel %vm3442_vm10, %v19076_v23, %v19073_v60  ;;  %v20518_v23 = vld [vmem:[#allocation34 + $0x1] ss:$0 sm:$0xff] }
0x4bdd   : > { %v19079_v40 = vrot.slane %v19077_v20, 2 }
0x4bdf   : > { %v17864_v35 = vpop.permute.xlu1 %17863 }
0x4be0   : > { %v17868_v19 = vsel %vm3442_vm10, %v17867_v30, %v17864_v35 }
0x4be1   : > { %v19081_v41 = vsel %vm10674_vm5, %v17868_v19, %v19079_v40 }
0x4be2   : > { %21624 = vmatprep.mubr.msk.f32.mxu0 %vm2075_vm1, %v19081_v41 }
0x4be3   : > { %21625 = vmatmul.mubr.msk.f32.vlgmr.msra.gmra.mrb[116].mxu0 %vm2075_vm1, %v19079_v40 }
0x4be4   : > { %21863 = vmatpush3.bf16.msra.mxu0 %v21860_v48 }
0x4be5   : > { %21865 = vmatprep.subr.bf16.mxu0 %v21864_v42 }
0x4be8   : > { %21867 = vmatpush3.bf16.msra.mxu0 %v21864_v42  ;;  %v19484_v42 = vld [vmem:[%s23750_s27] sm:$0xff] }
0x4be9   : > { %21869 = vmatprep.subr.bf16.mxu0 %v21868_v31 }
0x4bec   : > { %21871 = vmatpush3.bf16.msra.mxu0 %v21868_v31  ;;  %v21876_v31 = vpack.c.bf16 %v19485_v28, %v19484_v42 }
0x4bee   : > { %21877 = vmatprep.subr.bf16.mxu1 %v21876_v31 }
0x4cb6   : > { %v21626_v32 = vpop.f32.mrb[116].mxu0 }
0x4cb7   : > { %v19165_v58 = vadd.f32 %v21626_v32, %v20515_v11  ;;  %v19159_v33 = vpop.f32.mrb[117].mxu0  ;;  %v20526_v32 = vld [vmem:[%s26297_s15 + $0x70] sm:$0xff] }
0x4cb8   : > { %v19160_v25 = vadd.f32 %v20515_v11, %v19159_v33 }
0x4cb9   : > { %v26028_v15 = vadd.f32 %v19165_v58, %v25762_v59  ;;  %v20527_v58 = vld [vmem:[%s26297_s15 + $0x78] sm:$0xff] }
0x4cba   : > { %v26031_v1 = vadd.f32 %v19160_v25, %v25765_v49  ;;  %v21872_v33 = vpack.c.bf16 %v20527_v58, %v20526_v32  ;;  %v20528_v25 = vld [vmem:[#allocation39 + $0x1] ss:$0 sm:$0xff] }
0x4cbb   : > { %v19177_v10 = vsel %vm8103_vm2, %v26028_v15, 0.0 }
0x4cbc   : > { %19178 = vadd.xlane.f32.xlu1 %v19177_v10  ;;  %v19174_v2 = vsel %vm2075_vm1, %v26031_v1, 0.0  ;;  %21873 = vmatprep.subr.bf16.mxu0 %v21872_v33 }
0x4cbd   : > { %19175 = vadd.xlane.f32.xlu0 %v19174_v2  ;;  %21875 = vmatpush3.bf16.msra.mxu0 %v21872_v33  ;;  %v20536_v33 = vld [vmem:[#allocation45] ss:$0 sm:$0xff] }
0x4d49   : > { %v19179_v8 = vpop.xlane.xlu1 %19178 }
0x4d4a   : > { %v19181_v21 = vmul.f32 0.03125, %v19179_v8  ;;  %v19176_v5 = vpop.xlane.xlu0 %19175 }
0x4d4b   : > { %v19180_v29 = vmul.f32 0.03125, %v19176_v5 }
0x4d4c   : > { %v19183_v22 = vsub.f32 %v26028_v15, %v19181_v21 }
0x4d4d   : > { %v19182_v59 = vsub.f32 %v26031_v1, %v19180_v29 }
0x4d4e   : > { %v19185_v13 = vmul.f32 %v19183_v22, %v19183_v22  ;;  %v19201_v40 = vmul.f32 %v20518_v23, %v19183_v22  ;;  %v20531_v22 = vld [vmem:[#allocation40 + $0x1] ss:$0 sm:$0xff] }
0x4d4f   : > { %v19184_v3 = vmul.f32 %v19182_v59, %v19182_v59  ;;  %v19200_v60 = vmul.f32 %v20518_v23, %v19182_v59 }
0x4d50   : > { %v19189_v63 = vsel %vm8103_vm2, %v19185_v13, 0.0 }
0x4d51   : > { %v19186_v49 = vsel %vm2075_vm1, %v19184_v3, 0.0 }
0x4d52   : > { %19187 = vadd.xlane.f32.xlu0 %v19186_v49 }
0x4d56   : > { %19190 = vadd.xlane.f32.xlu0 %v19189_v63 }
0x4ddf   : > { %v19188_v26 = vpop.xlane.xlu0 %19187 }
0x4de0   : > { %v19192_v61 = vmul.f32 0.032258064, %v19188_v26  ;;  %v19487_v26 = vld [vmem:[%s23750_s27 + $0x18] sm:$0xff] }
0x4de2   : > { %22521 = vrsqrt.f32 %v19192_v61  ;;  %vm19204_vm6 = vcmp.eq.f32.partialorder %v19192_v61, inf  ;;  %v19207_v34 = vand.u32 2147483648, %v19192_v61  ;;  %vm19206_vm5 = vcmp.eq.f32.partialorder %v19192_v61, 0.0 }
0x4de3   : > { %v19191_v38 = vpop.xlane.xlu0 %19190 }
0x4de4   : > { %v19193_v17 = vmul.f32 0.032258064, %v19191_v38 }
0x4de6   : > { %22523 = vrsqrt.f32 %v19193_v17  ;;  %vm19211_vm13 = vcmp.eq.f32.partialorder %v19193_v17, inf  ;;  %v19214_v36 = vand.u32 2147483648, %v19193_v17  ;;  %vm19213_vm15 = vcmp.eq.f32.partialorder %v19193_v17, 0.0 }
0x4dec   : > { %v22522_v57 = vpop.eup %22521 }
0x4ded   : > { %v19203_v4 = vmul.f32 %v22522_v57, %v19192_v61 }
0x4def   : > { %v19205_v16 = vsel %vm19204_vm6, %v19192_v61, %v19203_v4  ;;  %v21880_v61 = vpack.c.bf16 %v19487_v26, %v19486_v50 }
0x4df0   : > { %v22524_v37 = vpop.eup %22523  ;;  %v19208_v24 = vsel %vm19206_vm5, %v19207_v34, %v19205_v16 }
0x4df1   : > { %v19210_v27 = vmul.f32 %v22524_v37, %v19193_v17  ;;  %v19216_v0 = vadd.f32 1e-06, %v19208_v24 }
0x4df3   : > { %v19212_v45 = vsel %vm19211_vm13, %v19193_v17, %v19210_v27  ;;  %22525 = vrcp.f32 %v19216_v0 }
0x4df4   : > { %v19215_v51 = vsel %vm19213_vm15, %v19214_v36, %v19212_v45 }
0x4df5   : > { %v19217_v55 = vadd.f32 1e-06, %v19215_v51 }
0x4df7   : > { %22527 = vrcp.f32 %v19217_v55 }
0x4dfd   : > { %v22526_v20 = vpop.eup %22525 }
0x4dfe   : > { %v19219_v30 = vmul.f32 %v22526_v20, %v19200_v60  ;;  %v20534_v20 = vld [vmem:[#allocation42] ss:$0 sm:$0xff] }
0x4e00   : > { %v19228_v35 = vadd.f32 %v20519_v56, %v19219_v30 }
0x4e01   : > { %v22528_v19 = vpop.eup %22527 }
0x4e02   : > { %v19221_v41 = vmul.f32 %v22528_v19, %v19201_v40  ;;  %21635 = vmatprep.mubr.msk.f32.mxu1 %vm2075_vm1, %v19228_v35  ;;  %v20535_v19 = vld [vmem:[#allocation43] ss:$0 sm:$0xff] }
0x4e04   : > { %v19229_v11 = vadd.f32 %v20519_v56, %v19221_v41 }
0x4e06   : > { %21636 = vmatmul.mubr.msk.f32.vlgmr.msra.gmra.mrb[118].mxu1 %vm2075_vm1, %v19229_v11 }
0x4e07   : > { %21879 = vmatpush3.bf16.msra.mxu1 %v21876_v31 }
0x4e08   : > { %21881 = vmatprep.subr.bf16.mxu1 %v21880_v61 }
0x4e0b   : > { %21883 = vmatpush3.bf16.msra.mxu1 %v21880_v61 }
0x4ed9   : > { %v21637_v10 = vpop.f32.mrb[118].mxu1 }
0x4eda   : > { %v19332_v2 = vadd.f32 %v21637_v10, %v20528_v25  ;;  %v19326_v8 = vpop.f32.mrb[119].mxu1  ;;  %v19634_v10 = vrot.slane %v24245_v7, %v24468_v62 }
0x4edb   : > { %v19327_v21 = vadd.f32 %v20528_v25, %v19326_v8  ;;  %v19627_v25 = vcombine.high %v24245_v7, %v24245_v7  ;;  %v19611_v8 = vcombine.high %v24243_v6, %v24243_v6 }
0x4edc   : > { %v19336_v29 = vmax.f32 %v19332_v2, 0.0 }
0x4edd   : > { %v19335_v5 = vmax.f32 %v19327_v21, 0.0  ;;  %v19618_v21 = vrot.slane %v24243_v6, %v24468_v62  ;;  %v19625_v7 = vrot.slane %v19611_v8, %v24468_v62 }
0x4edf   : > { %21654 = vmatprep.mubr.msk.f32.mxu0 %vm26334_vm11, %v19335_v5 }
0x4ee0   : > { %21655 = vmatmul.mubr.msk.f32.vlgmr.msra.gmra.mrb[118].mxu0 %vm26335_vm12, %v19336_v29 }
0x4fb3   : > { %v21656_v59 = vpop.f32.mrb[118].mxu0 }
0x4fb4   : > { %v19421_v3 = vadd.f32 %v21656_v59, %v20531_v22  ;;  %v19415_v49 = vpop.f32.mrb[119].mxu0 }
0x4fb5   : > { %v19416_v13 = vadd.f32 %v20531_v22, %v19415_v49  ;;  %v19642_v49 = vcombine.high %v19634_v10, %v19634_v10 }
0x4fb6   : > { %v19425_v63 = vadd.f32 %v19421_v3, %v26028_v15  ;;  %v19641_v3 = vrot.slane %v19627_v25, %v24468_v62 }
0x4fb7   : > { %v19424_v14 = vadd.f32 %v19416_v13, %v26031_v1 }
0x4fb8   : > { %v19431_v52 = vsel %vm8103_vm2, %v19425_v63, 0.0 }
0x4fb9   : > { %19432 = vadd.xlane.f32.xlu1 %v19431_v52  ;;  %v19428_v46 = vsel %vm2075_vm1, %v19424_v14, 0.0 }
0x4fba   : > { %19429 = vadd.xlane.f32.xlu0 %v19428_v46 }
0x5046   : > { %v19433_v43 = vpop.xlane.xlu1 %19432 }
0x5047   : > { %v19435_v18 = vmul.f32 0.03125, %v19433_v43  ;;  %v19430_v53 = vpop.xlane.xlu0 %19429 }
0x5048   : > { %v19434_v54 = vmul.f32 0.03125, %v19430_v53 }
0x5049   : > { %v19437_v47 = vsub.f32 %v19425_v63, %v19435_v18 }
0x504a   : > { %v19436_v39 = vsub.f32 %v19424_v14, %v19434_v54  ;;  %v19626_v14 = vcombine.high %v19618_v21, %v19618_v21 }
0x504b   : > { %v19439_v48 = vmul.f32 %v19437_v47, %v19437_v47  ;;  %v19455_v56 = vmul.f32 %v20534_v20, %v19437_v47 }
0x504c   : > { %v19438_v15 = vmul.f32 %v19436_v39, %v19436_v39  ;;  %v19454_v40 = vmul.f32 %v20534_v20, %v19436_v39 }
0x504d   : > { %v19443_v1 = vsel %vm8103_vm2, %v19439_v48, 0.0 }
0x504e   : > { %19444 = vadd.xlane.f32.xlu1 %v19443_v1  ;;  %v19440_v9 = vsel %vm2075_vm1, %v19438_v15, 0.0 }
0x504f   : > { %19441 = vadd.xlane.f32.xlu0 %v19440_v9 }
0x50db   : > { %v19445_v38 = vpop.xlane.xlu1 %19444 }
0x50dc   : > { %v19447_v17 = vmul.f32 0.032258064, %v19445_v38  ;;  %v19442_v57 = vpop.xlane.xlu0 %19441 }
0x50dd   : > { %v19446_v4 = vmul.f32 0.032258064, %v19442_v57 }
0x50de   : > { %22529 = vrsqrt.f32 %v19447_v17  ;;  %vm19465_vm2 = vcmp.eq.f32.partialorder %v19447_v17, inf  ;;  %v19468_v24 = vand.u32 2147483648, %v19447_v17  ;;  %vm19467_vm8 = vcmp.eq.f32.partialorder %v19447_v17, 0.0 }
0x50df   : > { %22531 = vrsqrt.f32 %v19446_v4  ;;  %vm19458_vm7 = vcmp.eq.f32.partialorder %v19446_v4, inf  ;;  %v19461_v36 = vand.u32 2147483648, %v19446_v4  ;;  %vm19460_vm14 = vcmp.eq.f32.partialorder %v19446_v4, 0.0 }
0x50e8   : > { %v22530_v34 = vpop.eup %22529 }
0x50e9   : > { %v22532_v16 = vpop.eup %22531  ;;  %v19464_v37 = vmul.f32 %v22530_v34, %v19447_v17 }
0x50ea   : > { %v19457_v27 = vmul.f32 %v22532_v16, %v19446_v4 }
0x50eb   : > { %v19466_v0 = vsel %vm19465_vm2, %v19447_v17, %v19464_v37 }
0x50ec   : > { %v19469_v45 = vsel %vm19467_vm8, %v19468_v24, %v19466_v0  ;;  %v19459_v51 = vsel %vm19458_vm7, %v19446_v4, %v19457_v27 }
0x50ed   : > { %v19471_v55 = vadd.f32 1e-06, %v19469_v45  ;;  %v19462_v23 = vsel %vm19460_vm14, %v19461_v36, %v19459_v51 }
0x50ee   : > { %v19470_v60 = vadd.f32 1e-06, %v19462_v23 }
0x50ef   : > { %22533 = vrcp.f32 %v19471_v55 }
0x50f0   : > { %22535 = vrcp.f32 %v19470_v60 }
0x50f9   : > { %v22534_v30 = vpop.eup %22533 }
0x50fa   : > { %v22536_v35 = vpop.eup %22535  ;;  %v19475_v41 = vmul.f32 %v22534_v30, %v19455_v56 }
0x50fb   : > { %v19473_v11 = vmul.f32 %v22536_v35, %v19454_v40 }
0x50fc   : > { %v19483_v58 = vadd.f32 %v20535_v19, %v19475_v41 }
0x50fd   : > { %v19482_v32 = vadd.f32 %v20535_v19, %v19473_v11 }
0x50ff   : > { %21665 = vmatprep.mubr.msk.f32.mxu1 %vm2075_vm1, %v19482_v32 }
0x5100   : > { %21666 = vmatmul.mubr.msk.f32.vlgmr.msra.gmra.mrb[120].mxu1 %vm2075_vm1, %v19483_v58 }
0x51d3   : > { %v21667_v2 = vpop.f32.mrb[120].mxu1 }
0x51d4   : > { %v19573_v5 = vadd.f32 %v21667_v2, %v20536_v33  ;;  %v19567_v29 = vpop.f32.mrb[121].mxu1 }
0x51d5   : > { %v19568_v22 = vadd.f32 %v20536_v33, %v19567_v29 }
0x51d6   : > { %v19601_v59 = vrot.slane %v19573_v5, %v24468_v62 }
0x51d7   : > { %v19578_v13 = vcombine.high %v19568_v22, %v19568_v22  ;;  %v19585_v63 = vrot.slane %v19568_v22, %v24468_v62 }
0x51d8   : > { %v19602_v52 = vcombine.high %v19601_v59, %v19601_v59  ;;  %v19653_v6 = vadd.f32 %v19642_v49, %v19601_v59 }
0x51d9   : > { %v19592_v46 = vrot.slane %v19578_v13, %v24468_v62  ;;  %v19593_v43 = vcombine.high %v19585_v63, %v19585_v63  ;;  %v19649_v39 = vadd.f32 %v19618_v21, %v19585_v63 }
0x51da   : > { %v19654_v18 = vadd.f32 %v19641_v3, %v19602_v52 }
0x51db   : > { %v19594_v53 = vcombine.high %v19592_v46, %v19592_v46  ;;  %v19650_v54 = vadd.f32 %v19626_v14, %v19593_v43  ;;  %v19651_v47 = vadd.f32 %v19625_v7, %v19592_v46 }
0x51dd   : > { %v19652_v48 = vadd.f32 %v19634_v10, %v19594_v53  ;;  %v19664_v15 = vcombine.low %v19650_v54, %v19653_v6  ;;  %v19673_v1 = vcombine.low %v19651_v47, %v19654_v18 }
0x51df   : > { %v19655_v9 = vcombine.low %v19649_v39, %v19652_v48  ;;  %v19671_v42 = vrot.slane %v19664_v15, %v24475_v44  ;;  %v19680_v26 = vrot.slane %v19673_v1, %v24475_v44 }
0x51e1   : > { %v19662_v28 = vrot.slane %v19655_v9, %v24475_v44  ;;  %v19700_v50 = vrot.slane %v19671_v42, %v24468_v62  ;;  %v19672_v31 = vcombine.high %v19671_v42, %v23502_v12  ;;  %v19681_v57 = vcombine.high %v19680_v26, %v23502_v12 }
0x51e2   : > { %v19722_v4 = vrot.slane %v19680_v26, %v24468_v62 }
0x51e3   : > { %19701 = vrot.lane.b32.xlu1 %v19700_v50, %s26282_s8  ;;  %v19663_v61 = vcombine.high %v19662_v28, %v23502_v12  ;;  %v19711_v38 = vrot.slane %v19672_v31, %v24468_v62  ;;  %v19733_v34 = vrot.slane %v19681_v57, %v24468_v62 }
0x51e5   : > { %v19689_v17 = vrot.slane %v19663_v61, %v24468_v62 }
0x51e7   : > { %19712 = vrot.lane.b32.xlu1 %v19711_v38, %s26281_s3  ;;  %19690 = vrot.lane.b32.xlu0 %v19689_v17, %s26293_s11 }
0x51eb   : > { %19723 = vrot.lane.b32.xlu1 %v19722_v4, %s23510_s1  ;;  %19734 = vrot.lane.b32.xlu0 %v19733_v34, %s23511_s4 }
0x5255   : > { %v19702_v44 = vpop.permute.xlu1 %19701 }
0x5259   : > { %v19713_v16 = vpop.permute.xlu1 %19712  ;;  %v19691_v37 = vpop.permute.xlu0 %19690 }
0x525a   : > { %v19737_v12 = vsel %vm1985_vm0, %v19662_v28, %v19691_v37 }
0x525b   : > { %v19738_v24 = vsel %vm3440_vm9, %v19737_v12, %v19702_v44 }
0x525c   : > { %v19739_v27 = vsel %vm3442_vm10, %v19738_v24, %v19713_v16 }
0x525d   : > { %v19724_v0 = vpop.permute.xlu1 %19723  ;;  %v19735_v62 = vpop.permute.xlu0 %19734 }
0x525e   : > { %v19740_v36 = vsel %vm2075_vm1, %v19739_v27, %v19724_v0 }
0x525f   : > { %v19742_v45 = vsel %vm19741_vm3, %v19740_v36, %v19735_v62 }
0x5260   : > { %19744 = vst.msk [vmem:[%s1904_s13] sm:$0x3] %vm19743_vm4, %v19742_v45 }
0x5261 PF: > { %s122_s28 = sadd.s32 1, %s23415_s28  }
0x5262   : > { %p119_p11 = scmp.ge.s32.totalorder %s122_s28, 4  }
0x5264   :  { %121 = sbr.rel (!%p119_p11) target bundleno = 107 (0x6b), region = 450 }
0x526b   :  { %19764 = vsyncpa [#allocation3], 1 }
0x526c   :  { %19766 = vsyncpa [#allocation3 + $0x1], 1 }
0x526d   :  { %19767 = vsyncpa [#allocation5], 1 }
0x526e   :  { %19768 = vsyncpa [#allocation8], 1 }
0x526f   :  { %19769 = vsyncpa [#allocation11], 1 }
0x5270   :  { %19770 = vsyncpa [#allocation14], 1 }
0x5271   :  { %19771 = vsyncpa [#allocation17], 1 }
0x5272   :  { %19772 = vsyncpa [#allocation20], 1 }
0x5273   :  { %19773 = vsyncpa [#allocation23], 1 }
0x5274   :  { %19774 = vsyncpa [#allocation26], 1 }
0x5275   :  { %19775 = vsyncpa [#allocation29], 1 }
0x5276   :  { %19776 = vsyncpa [#allocation32], 1 }
0x5277   :  { %19777 = vsyncpa [#allocation35], 1 }
0x5278   :  { %19778 = vsyncpa [#allocation38], 1 }
0x5279   :  { %19779 = vsyncpa [#allocation41], 1 }
0x527a   :  { %19780 = vsyncpa [#allocation44], 1 }

</bundles_post_ra>
